<compile_context>
chip_gen: v7x
topology: tpu7x:2x2x1
jax: 0.10.0
libtpu: 0.0.40
codegen_flags: <defaults>
</compile_context>

<pallas_src>
import functools
import math

import jax
import jax.numpy as jnp
from jax.experimental import pallas as pl
from jax.experimental.pallas import tpu as pltpu

IMAGENET_MEAN = jnp.array([0.485, 0.456, 0.406], jnp.float32)
IMAGENET_STD = jnp.array([0.229, 0.224, 0.225], jnp.float32)

NUM_LEVELS = 2
IN_CHANNELS = 3
BASE_FEATURE_CHANNELS = 8
FEATURE_CHANNELS = 4
KERNEL_SIZE = 3
PADDING = 1
STRIDE = 1  # stride=1 assumed (as passed by the depth_cov config)

C_IN_PAD = 8   # pad the 3 RGB channels to a multiple of 8 (aligned contraction dim)
LANE = 128


def _round_up(x, m):
    return ((x + m - 1) // m) * m


# ---------------------------------------------------------------------------
# Pallas kernels
# ---------------------------------------------------------------------------
def _residual_conv_kernel(offs, x_ref, w1_ref, b1_ref, w2_ref, b2_ref,
                          ws_ref, bs_ref, mask_ref, o_ref):
    """Fused ResidualConv on one image in padded CHW-flat layout.

    x_ref   : (1, Cin, Lp)    bf16  padded-flat input (mean/zero spatial border)
    w1_ref  : (9, Cout, Cin)  bf16  conv1 taps (t = dy*3 + dx)
    w2_ref  : (9, Cout, Cout) bf16  conv2 taps
    ws_ref  : (Cout, Cin)     bf16  1x1 skip conv
    b*_ref  : (Cout, 1)       f32   biases
    mask_ref: (1, Lp)         f32   1 on interior pixels, 0 on border / tail pad
    o_ref   : (1, Cout, Lp)   bf16
    """
    lp = x_ref.shape[-1]
    cout = o_ref.shape[1]
    xv = x_ref[0].astype(jnp.float32)            # (Cin, Lp) f32
    mask = mask_ref[...]                         # (1, Lp)

    def shifted(v, off):
        # out[:, p] == v[:, p + off] for every interior p; the circular wrap only
        # lands on border / tail positions which are zeroed by `mask`.
        if off == 0:
            return v
        return pltpu.roll(v, shift=(-off) % lp, axis=1)

    # conv1 (3x3) as 9 accumulated MXU dots over shifted views (in-VMEM im2col).
    acc = jnp.zeros((cout, lp), jnp.float32)
    for t, off in enumerate(offs):
        acc = acc + jnp.dot(w1_ref[t].astype(jnp.float32), shifted(xv, off),
                            preferred_element_type=jnp.float32)
    # zero border => correct zero-padding for conv2 (f32 epilogue, v5e-safe).
    h1 = jnp.maximum(acc + b1_ref[...], 0.0) * mask

    # conv2 (3x3) + 1x1 skip conv, fused.
    acc2 = jnp.dot(ws_ref[...].astype(jnp.float32), xv,
                   preferred_element_type=jnp.float32)
    acc2 = acc2 + bs_ref[...] + b2_ref[...]
    for t, off in enumerate(offs):
        acc2 = acc2 + jnp.dot(w2_ref[t].astype(jnp.float32), shifted(h1, off),
                              preferred_element_type=jnp.float32)
    out = jnp.maximum(acc2, 0.0) * mask
    o_ref[0] = out.astype(o_ref.dtype)


def _feature_head_kernel(x_ref, w_ref, b_ref, o_ref):
    """1x1 conv + sigmoid, lane-dense (F, Lp) output (i.e. NCHW)."""
    y = jnp.dot(w_ref[...].astype(jnp.float32), x_ref[0].astype(jnp.float32),
                preferred_element_type=jnp.float32)
    y = y + b_ref[...]
    # sigmoid via exp + EUP reciprocal (keeps the VALU free).
    o_ref[0] = pl.reciprocal(1.0 + jnp.exp(-y), approx=True).astype(o_ref.dtype)


# ---------------------------------------------------------------------------
# Pallas wrappers
# ---------------------------------------------------------------------------
def _interior_mask(Hp, Wp, Lp):
    r = jnp.arange(Hp)
    c = jnp.arange(Wp)
    m = ((r[:, None] >= 1) & (r[:, None] <= Hp - 2)
         & (c[None, :] >= 1) & (c[None, :] <= Wp - 2)).astype(jnp.float32)
    m = m.reshape(1, Hp * Wp)
    if Lp > Hp * Wp:
        m = jnp.concatenate([m, jnp.zeros((1, Lp - Hp * Wp), jnp.float32)],
                            axis=1)
    return m


def residual_conv(x_flat, p, Hp, Wp):
    """x_flat: (N, Cin, Lp) bf16 canonical padded-flat -> (N, Cout, Lp) bf16."""
    N, Cin, Lp = x_flat.shape
    Cout = p["b1"].shape[0]
    offs = tuple((dy - 1) * Wp + (dx - 1) for dy in range(3) for dx in range(3))
    mask = _interior_mask(Hp, Wp, Lp)
    kernel = functools.partial(_residual_conv_kernel, offs)
    return pl.pallas_call(
        kernel,
        out_shape=jax.ShapeDtypeStruct((N, Cout, Lp), jnp.bfloat16),
        grid=(N,),
        in_specs=[
            pl.BlockSpec((1, Cin, Lp), lambda n: (n, 0, 0)),
            pl.BlockSpec((9, Cout, Cin), lambda n: (0, 0, 0)),
            pl.BlockSpec((Cout, 1), lambda n: (0, 0)),
            pl.BlockSpec((9, Cout, Cout), lambda n: (0, 0, 0)),
            pl.BlockSpec((Cout, 1), lambda n: (0, 0)),
            pl.BlockSpec((Cout, Cin), lambda n: (0, 0)),
            pl.BlockSpec((Cout, 1), lambda n: (0, 0)),
            pl.BlockSpec((1, Lp), lambda n: (0, 0)),
        ],
        out_specs=pl.BlockSpec((1, Cout, Lp), lambda n: (n, 0, 0)),
        compiler_params=pltpu.CompilerParams(
            dimension_semantics=("parallel",)),
    )(x_flat, p["w1"], p["b1"], p["w2"], p["b2"], p["ws"], p["bs"], mask)


def feature_head(x_flat, wf, bf):
    """x_flat: (N, C, Lp) bf16 -> (N, F, Lp) f32 (sigmoid features, NCHW-flat)."""
    N, C, Lp = x_flat.shape
    F = wf.shape[0]
    return pl.pallas_call(
        _feature_head_kernel,
        out_shape=jax.ShapeDtypeStruct((N, F, Lp), jnp.float32),
        grid=(N,),
        in_specs=[
            pl.BlockSpec((1, C, Lp), lambda n: (n, 0, 0)),
            pl.BlockSpec((F, C), lambda n: (0, 0)),
            pl.BlockSpec((F, 1), lambda n: (0, 0)),
        ],
        out_specs=pl.BlockSpec((1, F, Lp), lambda n: (n, 0, 0)),
        compiler_params=pltpu.CompilerParams(
            dimension_semantics=("parallel",)),
    )(x_flat, wf, bf)


# ---------------------------------------------------------------------------
# Glue (pure data movement only)
# ---------------------------------------------------------------------------
def to_canonical(x4):
    """(N, C, Hp, Wp) -> (N, C, Lp), Lp = round_up(Hp*Wp, 128), zero tail."""
    N, C, Hp, Wp = x4.shape
    L = Hp * Wp
    Lp = _round_up(L, LANE)
    flat = x4.reshape(N, C, L)
    if Lp > L:
        flat = jnp.concatenate(
            [flat, jnp.zeros((N, C, Lp - L), flat.dtype)], axis=2)
    return flat


def from_canonical(xf, Hp, Wp):
    N, C, _ = xf.shape
    return xf[:, :, :Hp * Wp].reshape(N, C, Hp, Wp)


def pad_spatial_with_values(x4, pad_vals):
    """Spatial pad=1 with a per-channel border value (mean-padding for the fold)."""
    pv = pad_vals.reshape(1, -1, 1, 1).astype(x4.dtype)
    return jnp.pad(x4 - pv, ((0, 0), (0, 0), (1, 1), (1, 1))) + pv


def max_pool_pad(x4):
    # TODO(synk): DownConv assumed = MaxPool2d(2) -> ResidualConv; the tiny 2x2
    # pool is kept as JAX glue (could be folded into the next kernel's prologue).
    N, C, Hp, Wp = x4.shape
    H, W = Hp - 2, Wp - 2
    xi = x4[:, :, 1:H + 1, 1:W + 1]
    pooled = xi.reshape(N, C, H // 2, 2, W // 2, 2).max(axis=(3, 5))
    return jnp.pad(pooled, ((0, 0), (0, 0), (1, 1), (1, 1)))


def upsample_concat_pad(low4, skip4):
    # TODO(synk): UpConv assumed = bilinear x2 upsample (align_corners=False) ->
    # concat([up, skip], channel) -> ResidualConv.
    N, C2, hp, wp = low4.shape
    _, C1, Hp, Wp = skip4.shape
    h, w = hp - 2, wp - 2
    H, W = Hp - 2, Wp - 2
    low_i = low4[:, :, 1:h + 1, 1:w + 1].astype(jnp.float32)
    up = jax.image.resize(low_i, (N, C2, H, W), method="bilinear")
    skip_i = skip4[:, :, 1:H + 1, 1:W + 1]
    cat = jnp.concatenate([up.astype(skip_i.dtype), skip_i], axis=1)
    return jnp.pad(cat, ((0, 0), (0, 0), (1, 1), (1, 1)))


# ---------------------------------------------------------------------------
# Parameter init (deterministic, PyTorch-default-style uniform bounds)
# ---------------------------------------------------------------------------
def _uniform(key, shape, bound):
    return jax.random.uniform(key, shape, jnp.float32, -bound, bound)


def init_residual_conv(key, cin, cout):
    # TODO(synk): ResidualConv assumed as
    #   relu(conv3x3_2(relu(conv3x3_1(x))) + conv1x1_skip(x))
    k = jax.random.split(key, 6)
    b1 = 1.0 / math.sqrt(9 * cin)
    b2 = 1.0 / math.sqrt(9 * cout)
    bsk = 1.0 / math.sqrt(cin)
    return dict(
        w1=_uniform(k[0], (9, cout, cin), b1), b1=_uniform(k[1], (cout, 1), b1),
        w2=_uniform(k[2], (9, cout, cout), b2), b2=_uniform(k[3], (cout, 1), b2),
        ws=_uniform(k[4], (cout, cin), bsk), bs=_uniform(k[5], (cout, 1), bsk))


def init_unet(key, num_levels, in_channels, base_c, feat_c):
    keys = jax.random.split(key, 3 * num_levels + 2)
    params = {"base": init_residual_conv(keys[0], in_channels, base_c)}
    down, up, feat = [], [], []
    c = base_c
    ki = 1
    for i in range(num_levels):
        c_next = 2 * c
        down.append(init_residual_conv(keys[ki], c, c_next)); ki += 1
        up.append(init_residual_conv(keys[ki], c_next + c, c)); ki += 1
        if i < num_levels - 1:
            kw_, kb_ = jax.random.split(keys[ki])
            bound = 1.0 / math.sqrt(c)
            feat.append((_uniform(kw_, (feat_c, c), bound),
                         _uniform(kb_, (feat_c, 1), bound)))
        ki += 1
        c = c_next
    params["down"], params["up"], params["feat"] = down, up, feat
    return params


def prepare_params(params):
    """Fold ImageNet normalization into the base block, pad Cin, cast to bf16."""
    def prep(p, fold_norm=False, cin_pad=None):
        w1, b1 = p["w1"], p["b1"]
        w2, b2 = p["w2"], p["b2"]
        ws, bs = p["ws"], p["bs"]
        if fold_norm:
            inv_std = 1.0 / IMAGENET_STD
            shift = IMAGENET_MEAN * inv_std
            b1 = b1 - (w1 * shift[None, None, :]).sum(axis=(0, 2))[:, None]
            w1 = w1 * inv_std[None, None, :]
            bs = bs - (ws * shift[None, :]).sum(axis=1, keepdims=True)
            ws = ws * inv_std[None, :]
        if cin_pad is not None and cin_pad > w1.shape[2]:
            extra = cin_pad - w1.shape[2]
            w1 = jnp.concatenate(
                [w1, jnp.zeros((9, w1.shape[1], extra), w1.dtype)], axis=2)
            ws = jnp.concatenate(
                [ws, jnp.zeros((ws.shape[0], extra), ws.dtype)], axis=1)
        return dict(w1=w1.astype(jnp.bfloat16), b1=b1.astype(jnp.float32),
                    w2=w2.astype(jnp.bfloat16), b2=b2.astype(jnp.float32),
                    ws=ws.astype(jnp.bfloat16), bs=bs.astype(jnp.float32))

    return {
        "base": prep(params["base"], fold_norm=True, cin_pad=C_IN_PAD),
        "down": [prep(p) for p in params["down"]],
        "up": [prep(p) for p in params["up"]],
        "feat": [(wf.astype(jnp.bfloat16), bf.astype(jnp.float32))
                 for wf, bf in params["feat"]],
    }


# ---------------------------------------------------------------------------
# UNet forward (matches the PyTorch module's control flow)
# ---------------------------------------------------------------------------
def unet_forward(params, x, *, num_levels):
    """x: (N, 3, H, W) f32 NCHW.  Returns [ (N, feature_channels, H_i, W_i) f32 ]."""
    pp = prepare_params(params)
    N, Cx, H, W = x.shape
    assert H % (2 ** num_levels) == 0 and W % (2 ** num_levels) == 0

    # Normalization folded into base conv weights; border padded with the
    # per-channel mean so the folded conv reproduces PyTorch's zero-padding of
    # the normalized input exactly.
    cpad = C_IN_PAD - Cx
    pad_vals = jnp.concatenate([IMAGENET_MEAN, jnp.zeros((cpad,), jnp.float32)])
    x_in = jnp.concatenate([x, jnp.zeros((N, cpad, H, W), x.dtype)], axis=1)
    x4 = pad_spatial_with_values(x_in, pad_vals).astype(jnp.bfloat16)

    hw = [(H, W)]
    x_enc = [residual_conv(to_canonical(x4), pp["base"], H + 2, W + 2)]
    h, w = H, W
    for i in range(num_levels):
        lvl4 = from_canonical(x_enc[-1], h + 2, w + 2)
        pooled = max_pool_pad(lvl4)
        h, w = h // 2, w // 2
        hw.append((h, w))
        x_enc.append(residual_conv(to_canonical(pooled), pp["down"][i],
                                   h + 2, w + 2))

    f_out = []
    x_dec = x_enc[-1]
    for i in range(num_levels - 1, -1, -1):
        hl, wl = hw[i]
        hd, wd = hw[i + 1]
        low4 = from_canonical(x_dec, hd + 2, wd + 2)
        skip4 = from_canonical(x_enc[i], hl + 2, wl + 2)
        cat4 = upsample_concat_pad(low4, skip4)
        x_dec = residual_conv(to_canonical(cat4), pp["up"][i], hl + 2, wl + 2)
        if i < num_levels - 1:
            # TODO(synk): feature_act assumed to be Sigmoid (ctor arg not shown).
            wf, bf = pp["feat"][i]
            f = feature_head(x_dec, wf, bf)
            Hp, Wp = hl + 2, wl + 2
            f4 = from_canonical(f, Hp, Wp)[:, :, 1:Hp - 1, 1:Wp - 1]
            f_out.append(f4)
    return f_out


if __name__ == "__main__":
    key = jax.random.PRNGKey(0)
    k_params, k_x = jax.random.split(key)
    params = init_unet(k_params, NUM_LEVELS, IN_CHANNELS,
                       BASE_FEATURE_CHANNELS, FEATURE_CHANNELS)
    x = jax.random.uniform(k_x, (2, IN_CHANNELS, 32, 32), jnp.float32)

    fwd = jax.jit(functools.partial(unet_forward, num_levels=NUM_LEVELS))
    f_out = fwd(params, x)
    for f in f_out:
        jax.block_until_ready(f)
    assert len(f_out) == NUM_LEVELS - 1
    assert f_out[0].shape == (2, FEATURE_CHANNELS, 32, 32)
    print("KERNEL_OK")
</pallas_src>

<mosaic_0001>
module attributes {stable_mosaic.version = 11 : i64} {
  func.func @_residual_conv_kernel(%arg0: i32, %arg1: memref<1x8x1280xbf16, #tpu.memory_space<vmem>>, %arg2: memref<9x8x8xbf16, #tpu.memory_space<vmem>>, %arg3: memref<8x1xf32, #tpu.memory_space<vmem>>, %arg4: memref<9x8x8xbf16, #tpu.memory_space<vmem>>, %arg5: memref<8x1xf32, #tpu.memory_space<vmem>>, %arg6: memref<8x8xbf16, #tpu.memory_space<vmem>>, %arg7: memref<8x1xf32, #tpu.memory_space<vmem>>, %arg8: memref<1x1280xf32, #tpu.memory_space<vmem>>, %arg9: memref<1x8x1280xbf16, #tpu.memory_space<vmem>>) attributes {dimension_semantics = [#tpu.dimension_semantics<parallel>], iteration_bounds = array<i64: 2>, scalar_prefetch = 0 : i64, scratch_operands = 0 : i64, tpu.core_type = #tpu.core_type<tc>, window_params = [{transform_indices = @transform_0, window_bounds = array<i64: 1, 8, 1280>}, {pipeline_mode = #tpu.pipeline_mode<synchronous>, transform_indices = @transform_1, window_bounds = array<i64: 9, 8, 8>}, {pipeline_mode = #tpu.pipeline_mode<synchronous>, transform_indices = @transform_2, window_bounds = array<i64: 8, 1>}, {pipeline_mode = #tpu.pipeline_mode<synchronous>, transform_indices = @transform_3, window_bounds = array<i64: 9, 8, 8>}, {pipeline_mode = #tpu.pipeline_mode<synchronous>, transform_indices = @transform_4, window_bounds = array<i64: 8, 1>}, {pipeline_mode = #tpu.pipeline_mode<synchronous>, transform_indices = @transform_5, window_bounds = array<i64: 8, 8>}, {pipeline_mode = #tpu.pipeline_mode<synchronous>, transform_indices = @transform_6, window_bounds = array<i64: 8, 1>}, {pipeline_mode = #tpu.pipeline_mode<synchronous>, transform_indices = @transform_7, window_bounds = array<i64: 1, 1280>}, {transform_indices = @transform_8, window_bounds = array<i64: 1, 8, 1280>}]} {
    %c0 = arith.constant 0 : index
    %c0_0 = arith.constant 0 : index
    %c0_1 = arith.constant 0 : index
    %0 = vector.load %arg1[%c0, %c0_0, %c0_1] : memref<1x8x1280xbf16, #tpu.memory_space<vmem>>, vector<1x8x1280xbf16>
    %1 = vector.shape_cast %0 : vector<1x8x1280xbf16> to vector<8x1280xbf16>
    %2 = arith.extf %1 : vector<8x1280xbf16> to vector<8x1280xf32>
    %c0_2 = arith.constant 0 : index
    %c0_3 = arith.constant 0 : index
    %3 = vector.load %arg8[%c0_2, %c0_3] : memref<1x1280xf32, #tpu.memory_space<vmem>>, vector<1x1280xf32>
    %cst = arith.constant 0.000000e+00 : f32
    %4 = vector.broadcast %cst : f32 to vector<8x1280xf32>
    %c0_4 = arith.constant 0 : index
    %c0_5 = arith.constant 0 : index
    %c0_6 = arith.constant 0 : index
    %5 = vector.load %arg2[%c0_4, %c0_5, %c0_6] : memref<9x8x8xbf16, #tpu.memory_space<vmem>>, vector<1x8x8xbf16>
    %6 = vector.shape_cast %5 : vector<1x8x8xbf16> to vector<8x8xbf16>
    %7 = arith.extf %6 : vector<8x8xbf16> to vector<8x8xf32>
    %c35_i32 = arith.constant 35 : i32
    %8 = tpu.dynamic_rotate %2 by %c35_i32 dim 1 : vector<8x1280xf32>, i32 -> vector<8x1280xf32>
    %cst_7 = arith.constant dense<0.000000e+00> : vector<8x1280xf32>
    %9 = tpu.matmul %7, %8, %cst_7 {dimension_numbers = #tpu.dot_dimension_numbers<[1], [0], [0], [1], [0, 0, 1, 1], [], []>} : vector<8x8xf32>, vector<8x1280xf32>, vector<8x1280xf32> -> vector<8x1280xf32>
    %10 = arith.addf %4, %9 : vector<8x1280xf32>
    %c1 = arith.constant 1 : index
    %c0_8 = arith.constant 0 : index
    %c0_9 = arith.constant 0 : index
    %11 = vector.load %arg2[%c1, %c0_8, %c0_9] : memref<9x8x8xbf16, #tpu.memory_space<vmem>>, vector<1x8x8xbf16>
    %12 = vector.shape_cast %11 : vector<1x8x8xbf16> to vector<8x8xbf16>
    %13 = arith.extf %12 : vector<8x8xbf16> to vector<8x8xf32>
    %c34_i32 = arith.constant 34 : i32
    %14 = tpu.dynamic_rotate %2 by %c34_i32 dim 1 : vector<8x1280xf32>, i32 -> vector<8x1280xf32>
    %cst_10 = arith.constant dense<0.000000e+00> : vector<8x1280xf32>
    %15 = tpu.matmul %13, %14, %cst_10 {dimension_numbers = #tpu.dot_dimension_numbers<[1], [0], [0], [1], [0, 0, 1, 1], [], []>} : vector<8x8xf32>, vector<8x1280xf32>, vector<8x1280xf32> -> vector<8x1280xf32>
    %16 = arith.addf %10, %15 : vector<8x1280xf32>
    %c2 = arith.constant 2 : index
    %c0_11 = arith.constant 0 : index
    %c0_12 = arith.constant 0 : index
    %17 = vector.load %arg2[%c2, %c0_11, %c0_12] : memref<9x8x8xbf16, #tpu.memory_space<vmem>>, vector<1x8x8xbf16>
    %18 = vector.shape_cast %17 : vector<1x8x8xbf16> to vector<8x8xbf16>
    %19 = arith.extf %18 : vector<8x8xbf16> to vector<8x8xf32>
    %c33_i32 = arith.constant 33 : i32
    %20 = tpu.dynamic_rotate %2 by %c33_i32 dim 1 : vector<8x1280xf32>, i32 -> vector<8x1280xf32>
    %cst_13 = arith.constant dense<0.000000e+00> : vector<8x1280xf32>
    %21 = tpu.matmul %19, %20, %cst_13 {dimension_numbers = #tpu.dot_dimension_numbers<[1], [0], [0], [1], [0, 0, 1, 1], [], []>} : vector<8x8xf32>, vector<8x1280xf32>, vector<8x1280xf32> -> vector<8x1280xf32>
    %22 = arith.addf %16, %21 : vector<8x1280xf32>
    %c3 = arith.constant 3 : index
    %c0_14 = arith.constant 0 : index
    %c0_15 = arith.constant 0 : index
    %23 = vector.load %arg2[%c3, %c0_14, %c0_15] : memref<9x8x8xbf16, #tpu.memory_space<vmem>>, vector<1x8x8xbf16>
    %24 = vector.shape_cast %23 : vector<1x8x8xbf16> to vector<8x8xbf16>
    %25 = arith.extf %24 : vector<8x8xbf16> to vector<8x8xf32>
    %c1_i32 = arith.constant 1 : i32
    %26 = tpu.dynamic_rotate %2 by %c1_i32 dim 1 : vector<8x1280xf32>, i32 -> vector<8x1280xf32>
    %cst_16 = arith.constant dense<0.000000e+00> : vector<8x1280xf32>
    %27 = tpu.matmul %25, %26, %cst_16 {dimension_numbers = #tpu.dot_dimension_numbers<[1], [0], [0], [1], [0, 0, 1, 1], [], []>} : vector<8x8xf32>, vector<8x1280xf32>, vector<8x1280xf32> -> vector<8x1280xf32>
    %28 = arith.addf %22, %27 : vector<8x1280xf32>
    %c4 = arith.constant 4 : index
    %c0_17 = arith.constant 0 : index
    %c0_18 = arith.constant 0 : index
    %29 = vector.load %arg2[%c4, %c0_17, %c0_18] : memref<9x8x8xbf16, #tpu.memory_space<vmem>>, vector<1x8x8xbf16>
    %30 = vector.shape_cast %29 : vector<1x8x8xbf16> to vector<8x8xbf16>
    %31 = arith.extf %30 : vector<8x8xbf16> to vector<8x8xf32>
    %cst_19 = arith.constant dense<0.000000e+00> : vector<8x1280xf32>
    %32 = tpu.matmul %31, %2, %cst_19 {dimension_numbers = #tpu.dot_dimension_numbers<[1], [0], [0], [1], [0, 0, 1, 1], [], []>} : vector<8x8xf32>, vector<8x1280xf32>, vector<8x1280xf32> -> vector<8x1280xf32>
    %33 = arith.addf %28, %32 : vector<8x1280xf32>
    %c5 = arith.constant 5 : index
    %c0_20 = arith.constant 0 : index
    %c0_21 = arith.constant 0 : index
    %34 = vector.load %arg2[%c5, %c0_20, %c0_21] : memref<9x8x8xbf16, #tpu.memory_space<vmem>>, vector<1x8x8xbf16>
    %35 = vector.shape_cast %34 : vector<1x8x8xbf16> to vector<8x8xbf16>
    %36 = arith.extf %35 : vector<8x8xbf16> to vector<8x8xf32>
    %c1279_i32 = arith.constant 1279 : i32
    %37 = tpu.dynamic_rotate %2 by %c1279_i32 dim 1 : vector<8x1280xf32>, i32 -> vector<8x1280xf32>
    %cst_22 = arith.constant dense<0.000000e+00> : vector<8x1280xf32>
    %38 = tpu.matmul %36, %37, %cst_22 {dimension_numbers = #tpu.dot_dimension_numbers<[1], [0], [0], [1], [0, 0, 1, 1], [], []>} : vector<8x8xf32>, vector<8x1280xf32>, vector<8x1280xf32> -> vector<8x1280xf32>
    %39 = arith.addf %33, %38 : vector<8x1280xf32>
    %c6 = arith.constant 6 : index
    %c0_23 = arith.constant 0 : index
    %c0_24 = arith.constant 0 : index
    %40 = vector.load %arg2[%c6, %c0_23, %c0_24] : memref<9x8x8xbf16, #tpu.memory_space<vmem>>, vector<1x8x8xbf16>
    %41 = vector.shape_cast %40 : vector<1x8x8xbf16> to vector<8x8xbf16>
    %42 = arith.extf %41 : vector<8x8xbf16> to vector<8x8xf32>
    %c1247_i32 = arith.constant 1247 : i32
    %43 = tpu.dynamic_rotate %2 by %c1247_i32 dim 1 : vector<8x1280xf32>, i32 -> vector<8x1280xf32>
    %cst_25 = arith.constant dense<0.000000e+00> : vector<8x1280xf32>
    %44 = tpu.matmul %42, %43, %cst_25 {dimension_numbers = #tpu.dot_dimension_numbers<[1], [0], [0], [1], [0, 0, 1, 1], [], []>} : vector<8x8xf32>, vector<8x1280xf32>, vector<8x1280xf32> -> vector<8x1280xf32>
    %45 = arith.addf %39, %44 : vector<8x1280xf32>
    %c7 = arith.constant 7 : index
    %c0_26 = arith.constant 0 : index
    %c0_27 = arith.constant 0 : index
    %46 = vector.load %arg2[%c7, %c0_26, %c0_27] : memref<9x8x8xbf16, #tpu.memory_space<vmem>>, vector<1x8x8xbf16>
    %47 = vector.shape_cast %46 : vector<1x8x8xbf16> to vector<8x8xbf16>
    %48 = arith.extf %47 : vector<8x8xbf16> to vector<8x8xf32>
    %c1246_i32 = arith.constant 1246 : i32
    %49 = tpu.dynamic_rotate %2 by %c1246_i32 dim 1 : vector<8x1280xf32>, i32 -> vector<8x1280xf32>
    %cst_28 = arith.constant dense<0.000000e+00> : vector<8x1280xf32>
    %50 = tpu.matmul %48, %49, %cst_28 {dimension_numbers = #tpu.dot_dimension_numbers<[1], [0], [0], [1], [0, 0, 1, 1], [], []>} : vector<8x8xf32>, vector<8x1280xf32>, vector<8x1280xf32> -> vector<8x1280xf32>
    %51 = arith.addf %45, %50 : vector<8x1280xf32>
    %c8 = arith.constant 8 : index
    %c0_29 = arith.constant 0 : index
    %c0_30 = arith.constant 0 : index
    %52 = vector.load %arg2[%c8, %c0_29, %c0_30] : memref<9x8x8xbf16, #tpu.memory_space<vmem>>, vector<1x8x8xbf16>
    %53 = vector.shape_cast %52 : vector<1x8x8xbf16> to vector<8x8xbf16>
    %54 = arith.extf %53 : vector<8x8xbf16> to vector<8x8xf32>
    %c1245_i32 = arith.constant 1245 : i32
    %55 = tpu.dynamic_rotate %2 by %c1245_i32 dim 1 : vector<8x1280xf32>, i32 -> vector<8x1280xf32>
    %cst_31 = arith.constant dense<0.000000e+00> : vector<8x1280xf32>
    %56 = tpu.matmul %54, %55, %cst_31 {dimension_numbers = #tpu.dot_dimension_numbers<[1], [0], [0], [1], [0, 0, 1, 1], [], []>} : vector<8x8xf32>, vector<8x1280xf32>, vector<8x1280xf32> -> vector<8x1280xf32>
    %57 = arith.addf %51, %56 : vector<8x1280xf32>
    %c0_32 = arith.constant 0 : index
    %c0_33 = arith.constant 0 : index
    %58 = vector.load %arg3[%c0_32, %c0_33] : memref<8x1xf32, #tpu.memory_space<vmem>>, vector<8x1xf32>
    %59 = vector.broadcast %58 : vector<8x1xf32> to vector<8x1280xf32>
    %60 = arith.addf %57, %59 : vector<8x1280xf32>
    %cst_34 = arith.constant 0.000000e+00 : f32
    %61 = vector.broadcast %cst_34 : f32 to vector<8x1280xf32>
    %62 = arith.maximumf %60, %61 : vector<8x1280xf32>
    %63 = vector.broadcast %3 : vector<1x1280xf32> to vector<8x1280xf32>
    %64 = arith.mulf %62, %63 : vector<8x1280xf32>
    %c0_35 = arith.constant 0 : index
    %c0_36 = arith.constant 0 : index
    %65 = vector.load %arg6[%c0_35, %c0_36] : memref<8x8xbf16, #tpu.memory_space<vmem>>, vector<8x8xbf16>
    %66 = arith.extf %65 : vector<8x8xbf16> to vector<8x8xf32>
    %cst_37 = arith.constant dense<0.000000e+00> : vector<8x1280xf32>
    %67 = tpu.matmul %66, %2, %cst_37 {dimension_numbers = #tpu.dot_dimension_numbers<[1], [0], [0], [1], [0, 0, 1, 1], [], []>} : vector<8x8xf32>, vector<8x1280xf32>, vector<8x1280xf32> -> vector<8x1280xf32>
    %c0_38 = arith.constant 0 : index
    %c0_39 = arith.constant 0 : index
    %68 = vector.load %arg7[%c0_38, %c0_39] : memref<8x1xf32, #tpu.memory_space<vmem>>, vector<8x1xf32>
    %69 = vector.broadcast %68 : vector<8x1xf32> to vector<8x1280xf32>
    %70 = arith.addf %67, %69 : vector<8x1280xf32>
    %c0_40 = arith.constant 0 : index
    %c0_41 = arith.constant 0 : index
    %71 = vector.load %arg5[%c0_40, %c0_41] : memref<8x1xf32, #tpu.memory_space<vmem>>, vector<8x1xf32>
    %72 = vector.broadcast %71 : vector<8x1xf32> to vector<8x1280xf32>
    %73 = arith.addf %70, %72 : vector<8x1280xf32>
    %c0_42 = arith.constant 0 : index
    %c0_43 = arith.constant 0 : index
    %c0_44 = arith.constant 0 : index
    %74 = vector.load %arg4[%c0_42, %c0_43, %c0_44] : memref<9x8x8xbf16, #tpu.memory_space<vmem>>, vector<1x8x8xbf16>
    %75 = vector.shape_cast %74 : vector<1x8x8xbf16> to vector<8x8xbf16>
    %76 = arith.extf %75 : vector<8x8xbf16> to vector<8x8xf32>
    %c35_i32_45 = arith.constant 35 : i32
    %77 = tpu.dynamic_rotate %64 by %c35_i32_45 dim 1 : vector<8x1280xf32>, i32 -> vector<8x1280xf32>
    %cst_46 = arith.constant dense<0.000000e+00> : vector<8x1280xf32>
    %78 = tpu.matmul %76, %77, %cst_46 {dimension_numbers = #tpu.dot_dimension_numbers<[1], [0], [0], [1], [0, 0, 1, 1], [], []>} : vector<8x8xf32>, vector<8x1280xf32>, vector<8x1280xf32> -> vector<8x1280xf32>
    %79 = arith.addf %73, %78 : vector<8x1280xf32>
    %c1_47 = arith.constant 1 : index
    %c0_48 = arith.constant 0 : index
    %c0_49 = arith.constant 0 : index
    %80 = vector.load %arg4[%c1_47, %c0_48, %c0_49] : memref<9x8x8xbf16, #tpu.memory_space<vmem>>, vector<1x8x8xbf16>
    %81 = vector.shape_cast %80 : vector<1x8x8xbf16> to vector<8x8xbf16>
    %82 = arith.extf %81 : vector<8x8xbf16> to vector<8x8xf32>
    %c34_i32_50 = arith.constant 34 : i32
    %83 = tpu.dynamic_rotate %64 by %c34_i32_50 dim 1 : vector<8x1280xf32>, i32 -> vector<8x1280xf32>
    %cst_51 = arith.constant dense<0.000000e+00> : vector<8x1280xf32>
    %84 = tpu.matmul %82, %83, %cst_51 {dimension_numbers = #tpu.dot_dimension_numbers<[1], [0], [0], [1], [0, 0, 1, 1], [], []>} : vector<8x8xf32>, vector<8x1280xf32>, vector<8x1280xf32> -> vector<8x1280xf32>
    %85 = arith.addf %79, %84 : vector<8x1280xf32>
    %c2_52 = arith.constant 2 : index
    %c0_53 = arith.constant 0 : index
    %c0_54 = arith.constant 0 : index
    %86 = vector.load %arg4[%c2_52, %c0_53, %c0_54] : memref<9x8x8xbf16, #tpu.memory_space<vmem>>, vector<1x8x8xbf16>
    %87 = vector.shape_cast %86 : vector<1x8x8xbf16> to vector<8x8xbf16>
    %88 = arith.extf %87 : vector<8x8xbf16> to vector<8x8xf32>
    %c33_i32_55 = arith.constant 33 : i32
    %89 = tpu.dynamic_rotate %64 by %c33_i32_55 dim 1 : vector<8x1280xf32>, i32 -> vector<8x1280xf32>
    %cst_56 = arith.constant dense<0.000000e+00> : vector<8x1280xf32>
    %90 = tpu.matmul %88, %89, %cst_56 {dimension_numbers = #tpu.dot_dimension_numbers<[1], [0], [0], [1], [0, 0, 1, 1], [], []>} : vector<8x8xf32>, vector<8x1280xf32>, vector<8x1280xf32> -> vector<8x1280xf32>
    %91 = arith.addf %85, %90 : vector<8x1280xf32>
    %c3_57 = arith.constant 3 : index
    %c0_58 = arith.constant 0 : index
    %c0_59 = arith.constant 0 : index
    %92 = vector.load %arg4[%c3_57, %c0_58, %c0_59] : memref<9x8x8xbf16, #tpu.memory_space<vmem>>, vector<1x8x8xbf16>
    %93 = vector.shape_cast %92 : vector<1x8x8xbf16> to vector<8x8xbf16>
    %94 = arith.extf %93 : vector<8x8xbf16> to vector<8x8xf32>
    %c1_i32_60 = arith.constant 1 : i32
    %95 = tpu.dynamic_rotate %64 by %c1_i32_60 dim 1 : vector<8x1280xf32>, i32 -> vector<8x1280xf32>
    %cst_61 = arith.constant dense<0.000000e+00> : vector<8x1280xf32>
    %96 = tpu.matmul %94, %95, %cst_61 {dimension_numbers = #tpu.dot_dimension_numbers<[1], [0], [0], [1], [0, 0, 1, 1], [], []>} : vector<8x8xf32>, vector<8x1280xf32>, vector<8x1280xf32> -> vector<8x1280xf32>
    %97 = arith.addf %91, %96 : vector<8x1280xf32>
    %c4_62 = arith.constant 4 : index
    %c0_63 = arith.constant 0 : index
    %c0_64 = arith.constant 0 : index
    %98 = vector.load %arg4[%c4_62, %c0_63, %c0_64] : memref<9x8x8xbf16, #tpu.memory_space<vmem>>, vector<1x8x8xbf16>
    %99 = vector.shape_cast %98 : vector<1x8x8xbf16> to vector<8x8xbf16>
    %100 = arith.extf %99 : vector<8x8xbf16> to vector<8x8xf32>
    %cst_65 = arith.constant dense<0.000000e+00> : vector<8x1280xf32>
    %101 = tpu.matmul %100, %64, %cst_65 {dimension_numbers = #tpu.dot_dimension_numbers<[1], [0], [0], [1], [0, 0, 1, 1], [], []>} : vector<8x8xf32>, vector<8x1280xf32>, vector<8x1280xf32> -> vector<8x1280xf32>
    %102 = arith.addf %97, %101 : vector<8x1280xf32>
    %c5_66 = arith.constant 5 : index
    %c0_67 = arith.constant 0 : index
    %c0_68 = arith.constant 0 : index
    %103 = vector.load %arg4[%c5_66, %c0_67, %c0_68] : memref<9x8x8xbf16, #tpu.memory_space<vmem>>, vector<1x8x8xbf16>
    %104 = vector.shape_cast %103 : vector<1x8x8xbf16> to vector<8x8xbf16>
    %105 = arith.extf %104 : vector<8x8xbf16> to vector<8x8xf32>
    %c1279_i32_69 = arith.constant 1279 : i32
    %106 = tpu.dynamic_rotate %64 by %c1279_i32_69 dim 1 : vector<8x1280xf32>, i32 -> vector<8x1280xf32>
    %cst_70 = arith.constant dense<0.000000e+00> : vector<8x1280xf32>
    %107 = tpu.matmul %105, %106, %cst_70 {dimension_numbers = #tpu.dot_dimension_numbers<[1], [0], [0], [1], [0, 0, 1, 1], [], []>} : vector<8x8xf32>, vector<8x1280xf32>, vector<8x1280xf32> -> vector<8x1280xf32>
    %108 = arith.addf %102, %107 : vector<8x1280xf32>
    %c6_71 = arith.constant 6 : index
    %c0_72 = arith.constant 0 : index
    %c0_73 = arith.constant 0 : index
    %109 = vector.load %arg4[%c6_71, %c0_72, %c0_73] : memref<9x8x8xbf16, #tpu.memory_space<vmem>>, vector<1x8x8xbf16>
    %110 = vector.shape_cast %109 : vector<1x8x8xbf16> to vector<8x8xbf16>
    %111 = arith.extf %110 : vector<8x8xbf16> to vector<8x8xf32>
    %c1247_i32_74 = arith.constant 1247 : i32
    %112 = tpu.dynamic_rotate %64 by %c1247_i32_74 dim 1 : vector<8x1280xf32>, i32 -> vector<8x1280xf32>
    %cst_75 = arith.constant dense<0.000000e+00> : vector<8x1280xf32>
    %113 = tpu.matmul %111, %112, %cst_75 {dimension_numbers = #tpu.dot_dimension_numbers<[1], [0], [0], [1], [0, 0, 1, 1], [], []>} : vector<8x8xf32>, vector<8x1280xf32>, vector<8x1280xf32> -> vector<8x1280xf32>
    %114 = arith.addf %108, %113 : vector<8x1280xf32>
    %c7_76 = arith.constant 7 : index
    %c0_77 = arith.constant 0 : index
    %c0_78 = arith.constant 0 : index
    %115 = vector.load %arg4[%c7_76, %c0_77, %c0_78] : memref<9x8x8xbf16, #tpu.memory_space<vmem>>, vector<1x8x8xbf16>
    %116 = vector.shape_cast %115 : vector<1x8x8xbf16> to vector<8x8xbf16>
    %117 = arith.extf %116 : vector<8x8xbf16> to vector<8x8xf32>
    %c1246_i32_79 = arith.constant 1246 : i32
    %118 = tpu.dynamic_rotate %64 by %c1246_i32_79 dim 1 : vector<8x1280xf32>, i32 -> vector<8x1280xf32>
    %cst_80 = arith.constant dense<0.000000e+00> : vector<8x1280xf32>
    %119 = tpu.matmul %117, %118, %cst_80 {dimension_numbers = #tpu.dot_dimension_numbers<[1], [0], [0], [1], [0, 0, 1, 1], [], []>} : vector<8x8xf32>, vector<8x1280xf32>, vector<8x1280xf32> -> vector<8x1280xf32>
    %120 = arith.addf %114, %119 : vector<8x1280xf32>
    %c8_81 = arith.constant 8 : index
    %c0_82 = arith.constant 0 : index
    %c0_83 = arith.constant 0 : index
    %121 = vector.load %arg4[%c8_81, %c0_82, %c0_83] : memref<9x8x8xbf16, #tpu.memory_space<vmem>>, vector<1x8x8xbf16>
    %122 = vector.shape_cast %121 : vector<1x8x8xbf16> to vector<8x8xbf16>
    %123 = arith.extf %122 : vector<8x8xbf16> to vector<8x8xf32>
    %c1245_i32_84 = arith.constant 1245 : i32
    %124 = tpu.dynamic_rotate %64 by %c1245_i32_84 dim 1 : vector<8x1280xf32>, i32 -> vector<8x1280xf32>
    %cst_85 = arith.constant dense<0.000000e+00> : vector<8x1280xf32>
    %125 = tpu.matmul %123, %124, %cst_85 {dimension_numbers = #tpu.dot_dimension_numbers<[1], [0], [0], [1], [0, 0, 1, 1], [], []>} : vector<8x8xf32>, vector<8x1280xf32>, vector<8x1280xf32> -> vector<8x1280xf32>
    %126 = arith.addf %120, %125 : vector<8x1280xf32>
    %cst_86 = arith.constant 0.000000e+00 : f32
    %127 = vector.broadcast %cst_86 : f32 to vector<8x1280xf32>
    %128 = arith.maximumf %126, %127 : vector<8x1280xf32>
    %129 = vector.broadcast %3 : vector<1x1280xf32> to vector<8x1280xf32>
    %130 = arith.mulf %128, %129 : vector<8x1280xf32>
    %131 = arith.truncf %130 : vector<8x1280xf32> to vector<8x1280xbf16>
    %c0_87 = arith.constant 0 : index
    %c0_88 = arith.constant 0 : index
    %c0_89 = arith.constant 0 : index
    %132 = vector.load %arg9[%c0_87, %c0_88, %c0_89] : memref<1x8x1280xbf16, #tpu.memory_space<vmem>>, vector<1x8x1280xbf16>
    %133 = vector.shape_cast %132 : vector<1x8x1280xbf16> to vector<8x1280xbf16>
    %134 = vector.shape_cast %131 : vector<8x1280xbf16> to vector<1x8x1280xbf16>
    tpu.vector_store %arg9[%c0_87, %c0_88, %c0_89], %134 {strides = array<i32>} : memref<1x8x1280xbf16, #tpu.memory_space<vmem>>, vector<1x8x1280xbf16>,
    return
  }
  func.func @transform_0(%arg0: i32) -> (i32, i32, i32) {
    %c0_i32 = arith.constant 0 : i32
    %c0_i32_0 = arith.constant 0 : i32
    %c0_i32_1 = arith.constant 0 : i32
    return %arg0, %c0_i32, %c0_i32_0 : i32, i32, i32
  }
  func.func @transform_1(%arg0: i32) -> (i32, i32, i32) {
    %c0_i32 = arith.constant 0 : i32
    %c0_i32_0 = arith.constant 0 : i32
    %c0_i32_1 = arith.constant 0 : i32
    %c0_i32_2 = arith.constant 0 : i32
    return %c0_i32, %c0_i32_0, %c0_i32_1 : i32, i32, i32
  }
  func.func @transform_2(%arg0: i32) -> (i32, i32) {
    %c0_i32 = arith.constant 0 : i32
    %c0_i32_0 = arith.constant 0 : i32
    %c0_i32_1 = arith.constant 0 : i32
    return %c0_i32, %c0_i32_0 : i32, i32
  }
  func.func @transform_3(%arg0: i32) -> (i32, i32, i32) {
    %c0_i32 = arith.constant 0 : i32
    %c0_i32_0 = arith.constant 0 : i32
    %c0_i32_1 = arith.constant 0 : i32
    %c0_i32_2 = arith.constant 0 : i32
    return %c0_i32, %c0_i32_0, %c0_i32_1 : i32, i32, i32
  }
  func.func @transform_4(%arg0: i32) -> (i32, i32) {
    %c0_i32 = arith.constant 0 : i32
    %c0_i32_0 = arith.constant 0 : i32
    %c0_i32_1 = arith.constant 0 : i32
    return %c0_i32, %c0_i32_0 : i32, i32
  }
  func.func @transform_5(%arg0: i32) -> (i32, i32) {
    %c0_i32 = arith.constant 0 : i32
    %c0_i32_0 = arith.constant 0 : i32
    %c0_i32_1 = arith.constant 0 : i32
    return %c0_i32, %c0_i32_0 : i32, i32
  }
  func.func @transform_6(%arg0: i32) -> (i32, i32) {
    %c0_i32 = arith.constant 0 : i32
    %c0_i32_0 = arith.constant 0 : i32
    %c0_i32_1 = arith.constant 0 : i32
    return %c0_i32, %c0_i32_0 : i32, i32
  }
  func.func @transform_7(%arg0: i32) -> (i32, i32) {
    %c0_i32 = arith.constant 0 : i32
    %c0_i32_0 = arith.constant 0 : i32
    %c0_i32_1 = arith.constant 0 : i32
    return %c0_i32, %c0_i32_0 : i32, i32
  }
  func.func @transform_8(%arg0: i32) -> (i32, i32, i32) {
    %c0_i32 = arith.constant 0 : i32
    %c0_i32_0 = arith.constant 0 : i32
    %c0_i32_1 = arith.constant 0 : i32
    return %arg0, %c0_i32, %c0_i32_0 : i32, i32, i32
  }
}

module attributes {stable_mosaic.version = 11 : i64} {
  func.func @_residual_conv_kernel(%arg0: i32, %arg1: memref<1x8x384xbf16, #tpu.memory_space<vmem>>, %arg2: memref<9x16x8xbf16, #tpu.memory_space<vmem>>, %arg3: memref<16x1xf32, #tpu.memory_space<vmem>>, %arg4: memref<9x16x16xbf16, #tpu.memory_space<vmem>>, %arg5: memref<16x1xf32, #tpu.memory_space<vmem>>, %arg6: memref<16x8xbf16, #tpu.memory_space<vmem>>, %arg7: memref<16x1xf32, #tpu.memory_space<vmem>>, %arg8: memref<1x384xf32, #tpu.memory_space<vmem>>, %arg9: memref<1x16x384xbf16, #tpu.memory_space<vmem>>) attributes {dimension_semantics = [#tpu.dimension_semantics<parallel>], iteration_bounds = array<i64: 2>, scalar_prefetch = 0 : i64, scratch_operands = 0 : i64, tpu.core_type = #tpu.core_type<tc>, window_params = [{transform_indices = @transform_0, window_bounds = array<i64: 1, 8, 384>}, {pipeline_mode = #tpu.pipeline_mode<synchronous>, transform_indices = @transform_1, window_bounds = array<i64: 9, 16, 8>}, {pipeline_mode = #tpu.pipeline_mode<synchronous>, transform_indices = @transform_2, window_bounds = array<i64: 16, 1>}, {pipeline_mode = #tpu.pipeline_mode<synchronous>, transform_indices = @transform_3, window_bounds = array<i64: 9, 16, 16>}, {pipeline_mode = #tpu.pipeline_mode<synchronous>, transform_indices = @transform_4, window_bounds = array<i64: 16, 1>}, {pipeline_mode = #tpu.pipeline_mode<synchronous>, transform_indices = @transform_5, window_bounds = array<i64: 16, 8>}, {pipeline_mode = #tpu.pipeline_mode<synchronous>, transform_indices = @transform_6, window_bounds = array<i64: 16, 1>}, {pipeline_mode = #tpu.pipeline_mode<synchronous>, transform_indices = @transform_7, window_bounds = array<i64: 1, 384>}, {transform_indices = @transform_8, window_bounds = array<i64: 1, 16, 384>}]} {
    %c0 = arith.constant 0 : index
    %c0_0 = arith.constant 0 : index
    %c0_1 = arith.constant 0 : index
    %0 = vector.load %arg1[%c0, %c0_0, %c0_1] : memref<1x8x384xbf16, #tpu.memory_space<vmem>>, vector<1x8x384xbf16>
    %1 = vector.shape_cast %0 : vector<1x8x384xbf16> to vector<8x384xbf16>
    %2 = arith.extf %1 : vector<8x384xbf16> to vector<8x384xf32>
    %c0_2 = arith.constant 0 : index
    %c0_3 = arith.constant 0 : index
    %3 = vector.load %arg8[%c0_2, %c0_3] : memref<1x384xf32, #tpu.memory_space<vmem>>, vector<1x384xf32>
    %cst = arith.constant 0.000000e+00 : f32
    %4 = vector.broadcast %cst : f32 to vector<16x384xf32>
    %c0_4 = arith.constant 0 : index
    %c0_5 = arith.constant 0 : index
    %c0_6 = arith.constant 0 : index
    %5 = vector.load %arg2[%c0_4, %c0_5, %c0_6] : memref<9x16x8xbf16, #tpu.memory_space<vmem>>, vector<1x16x8xbf16>
    %6 = vector.shape_cast %5 : vector<1x16x8xbf16> to vector<16x8xbf16>
    %7 = arith.extf %6 : vector<16x8xbf16> to vector<16x8xf32>
    %c19_i32 = arith.constant 19 : i32
    %8 = tpu.dynamic_rotate %2 by %c19_i32 dim 1 : vector<8x384xf32>, i32 -> vector<8x384xf32>
    %cst_7 = arith.constant dense<0.000000e+00> : vector<16x384xf32>
    %9 = tpu.matmul %7, %8, %cst_7 {dimension_numbers = #tpu.dot_dimension_numbers<[1], [0], [0], [1], [0, 0, 1, 1], [], []>} : vector<16x8xf32>, vector<8x384xf32>, vector<16x384xf32> -> vector<16x384xf32>
    %10 = arith.addf %4, %9 : vector<16x384xf32>
    %c1 = arith.constant 1 : index
    %c0_8 = arith.constant 0 : index
    %c0_9 = arith.constant 0 : index
    %11 = vector.load %arg2[%c1, %c0_8, %c0_9] : memref<9x16x8xbf16, #tpu.memory_space<vmem>>, vector<1x16x8xbf16>
    %12 = vector.shape_cast %11 : vector<1x16x8xbf16> to vector<16x8xbf16>
    %13 = arith.extf %12 : vector<16x8xbf16> to vector<16x8xf32>
    %c18_i32 = arith.constant 18 : i32
    %14 = tpu.dynamic_rotate %2 by %c18_i32 dim 1 : vector<8x384xf32>, i32 -> vector<8x384xf32>
    %cst_10 = arith.constant dense<0.000000e+00> : vector<16x384xf32>
    %15 = tpu.matmul %13, %14, %cst_10 {dimension_numbers = #tpu.dot_dimension_numbers<[1], [0], [0], [1], [0, 0, 1, 1], [], []>} : vector<16x8xf32>, vector<8x384xf32>, vector<16x384xf32> -> vector<16x384xf32>
    %16 = arith.addf %10, %15 : vector<16x384xf32>
    %c2 = arith.constant 2 : index
    %c0_11 = arith.constant 0 : index
    %c0_12 = arith.constant 0 : index
    %17 = vector.load %arg2[%c2, %c0_11, %c0_12] : memref<9x16x8xbf16, #tpu.memory_space<vmem>>, vector<1x16x8xbf16>
    %18 = vector.shape_cast %17 : vector<1x16x8xbf16> to vector<16x8xbf16>
    %19 = arith.extf %18 : vector<16x8xbf16> to vector<16x8xf32>
    %c17_i32 = arith.constant 17 : i32
    %20 = tpu.dynamic_rotate %2 by %c17_i32 dim 1 : vector<8x384xf32>, i32 -> vector<8x384xf32>
    %cst_13 = arith.constant dense<0.000000e+00> : vector<16x384xf32>
    %21 = tpu.matmul %19, %20, %cst_13 {dimension_numbers = #tpu.dot_dimension_numbers<[1], [0], [0], [1], [0, 0, 1, 1], [], []>} : vector<16x8xf32>, vector<8x384xf32>, vector<16x384xf32> -> vector<16x384xf32>
    %22 = arith.addf %16, %21 : vector<16x384xf32>
    %c3 = arith.constant 3 : index
    %c0_14 = arith.constant 0 : index
    %c0_15 = arith.constant 0 : index
    %23 = vector.load %arg2[%c3, %c0_14, %c0_15] : memref<9x16x8xbf16, #tpu.memory_space<vmem>>, vector<1x16x8xbf16>
    %24 = vector.shape_cast %23 : vector<1x16x8xbf16> to vector<16x8xbf16>
    %25 = arith.extf %24 : vector<16x8xbf16> to vector<16x8xf32>
    %c1_i32 = arith.constant 1 : i32
    %26 = tpu.dynamic_rotate %2 by %c1_i32 dim 1 : vector<8x384xf32>, i32 -> vector<8x384xf32>
    %cst_16 = arith.constant dense<0.000000e+00> : vector<16x384xf32>
    %27 = tpu.matmul %25, %26, %cst_16 {dimension_numbers = #tpu.dot_dimension_numbers<[1], [0], [0], [1], [0, 0, 1, 1], [], []>} : vector<16x8xf32>, vector<8x384xf32>, vector<16x384xf32> -> vector<16x384xf32>
    %28 = arith.addf %22, %27 : vector<16x384xf32>
    %c4 = arith.constant 4 : index
    %c0_17 = arith.constant 0 : index
    %c0_18 = arith.constant 0 : index
    %29 = vector.load %arg2[%c4, %c0_17, %c0_18] : memref<9x16x8xbf16, #tpu.memory_space<vmem>>, vector<1x16x8xbf16>
    %30 = vector.shape_cast %29 : vector<1x16x8xbf16> to vector<16x8xbf16>
    %31 = arith.extf %30 : vector<16x8xbf16> to vector<16x8xf32>
    %cst_19 = arith.constant dense<0.000000e+00> : vector<16x384xf32>
    %32 = tpu.matmul %31, %2, %cst_19 {dimension_numbers = #tpu.dot_dimension_numbers<[1], [0], [0], [1], [0, 0, 1, 1], [], []>} : vector<16x8xf32>, vector<8x384xf32>, vector<16x384xf32> -> vector<16x384xf32>
    %33 = arith.addf %28, %32 : vector<16x384xf32>
    %c5 = arith.constant 5 : index
    %c0_20 = arith.constant 0 : index
    %c0_21 = arith.constant 0 : index
    %34 = vector.load %arg2[%c5, %c0_20, %c0_21] : memref<9x16x8xbf16, #tpu.memory_space<vmem>>, vector<1x16x8xbf16>
    %35 = vector.shape_cast %34 : vector<1x16x8xbf16> to vector<16x8xbf16>
    %36 = arith.extf %35 : vector<16x8xbf16> to vector<16x8xf32>
    %c383_i32 = arith.constant 383 : i32
    %37 = tpu.dynamic_rotate %2 by %c383_i32 dim 1 : vector<8x384xf32>, i32 -> vector<8x384xf32>
    %cst_22 = arith.constant dense<0.000000e+00> : vector<16x384xf32>
    %38 = tpu.matmul %36, %37, %cst_22 {dimension_numbers = #tpu.dot_dimension_numbers<[1], [0], [0], [1], [0, 0, 1, 1], [], []>} : vector<16x8xf32>, vector<8x384xf32>, vector<16x384xf32> -> vector<16x384xf32>
    %39 = arith.addf %33, %38 : vector<16x384xf32>
    %c6 = arith.constant 6 : index
    %c0_23 = arith.constant 0 : index
    %c0_24 = arith.constant 0 : index
    %40 = vector.load %arg2[%c6, %c0_23, %c0_24] : memref<9x16x8xbf16, #tpu.memory_space<vmem>>, vector<1x16x8xbf16>
    %41 = vector.shape_cast %40 : vector<1x16x8xbf16> to vector<16x8xbf16>
    %42 = arith.extf %41 : vector<16x8xbf16> to vector<16x8xf32>
    %c367_i32 = arith.constant 367 : i32
    %43 = tpu.dynamic_rotate %2 by %c367_i32 dim 1 : vector<8x384xf32>, i32 -> vector<8x384xf32>
    %cst_25 = arith.constant dense<0.000000e+00> : vector<16x384xf32>
    %44 = tpu.matmul %42, %43, %cst_25 {dimension_numbers = #tpu.dot_dimension_numbers<[1], [0], [0], [1], [0, 0, 1, 1], [], []>} : vector<16x8xf32>, vector<8x384xf32>, vector<16x384xf32> -> vector<16x384xf32>
    %45 = arith.addf %39, %44 : vector<16x384xf32>
    %c7 = arith.constant 7 : index
    %c0_26 = arith.constant 0 : index
    %c0_27 = arith.constant 0 : index
    %46 = vector.load %arg2[%c7, %c0_26, %c0_27] : memref<9x16x8xbf16, #tpu.memory_space<vmem>>, vector<1x16x8xbf16>
    %47 = vector.shape_cast %46 : vector<1x16x8xbf16> to vector<16x8xbf16>
    %48 = arith.extf %47 : vector<16x8xbf16> to vector<16x8xf32>
    %c366_i32 = arith.constant 366 : i32
    %49 = tpu.dynamic_rotate %2 by %c366_i32 dim 1 : vector<8x384xf32>, i32 -> vector<8x384xf32>
    %cst_28 = arith.constant dense<0.000000e+00> : vector<16x384xf32>
    %50 = tpu.matmul %48, %49, %cst_28 {dimension_numbers = #tpu.dot_dimension_numbers<[1], [0], [0], [1], [0, 0, 1, 1], [], []>} : vector<16x8xf32>, vector<8x384xf32>, vector<16x384xf32> -> vector<16x384xf32>
    %51 = arith.addf %45, %50 : vector<16x384xf32>
    %c8 = arith.constant 8 : index
    %c0_29 = arith.constant 0 : index
    %c0_30 = arith.constant 0 : index
    %52 = vector.load %arg2[%c8, %c0_29, %c0_30] : memref<9x16x8xbf16, #tpu.memory_space<vmem>>, vector<1x16x8xbf16>
    %53 = vector.shape_cast %52 : vector<1x16x8xbf16> to vector<16x8xbf16>
    %54 = arith.extf %53 : vector<16x8xbf16> to vector<16x8xf32>
    %c365_i32 = arith.constant 365 : i32
    %55 = tpu.dynamic_rotate %2 by %c365_i32 dim 1 : vector<8x384xf32>, i32 -> vector<8x384xf32>
    %cst_31 = arith.constant dense<0.000000e+00> : vector<16x384xf32>
    %56 = tpu.matmul %54, %55, %cst_31 {dimension_numbers = #tpu.dot_dimension_numbers<[1], [0], [0], [1], [0, 0, 1, 1], [], []>} : vector<16x8xf32>, vector<8x384xf32>, vector<16x384xf32> -> vector<16x384xf32>
    %57 = arith.addf %51, %56 : vector<16x384xf32>
    %c0_32 = arith.constant 0 : index
    %c0_33 = arith.constant 0 : index
    %58 = vector.load %arg3[%c0_32, %c0_33] : memref<16x1xf32, #tpu.memory_space<vmem>>, vector<16x1xf32>
    %59 = vector.broadcast %58 : vector<16x1xf32> to vector<16x384xf32>
    %60 = arith.addf %57, %59 : vector<16x384xf32>
    %cst_34 = arith.constant 0.000000e+00 : f32
    %61 = vector.broadcast %cst_34 : f32 to vector<16x384xf32>
    %62 = arith.maximumf %60, %61 : vector<16x384xf32>
    %63 = vector.broadcast %3 : vector<1x384xf32> to vector<16x384xf32>
    %64 = arith.mulf %62, %63 : vector<16x384xf32>
    %c0_35 = arith.constant 0 : index
    %c0_36 = arith.constant 0 : index
    %65 = vector.load %arg6[%c0_35, %c0_36] : memref<16x8xbf16, #tpu.memory_space<vmem>>, vector<16x8xbf16>
    %66 = arith.extf %65 : vector<16x8xbf16> to vector<16x8xf32>
    %cst_37 = arith.constant dense<0.000000e+00> : vector<16x384xf32>
    %67 = tpu.matmul %66, %2, %cst_37 {dimension_numbers = #tpu.dot_dimension_numbers<[1], [0], [0], [1], [0, 0, 1, 1], [], []>} : vector<16x8xf32>, vector<8x384xf32>, vector<16x384xf32> -> vector<16x384xf32>
    %c0_38 = arith.constant 0 : index
    %c0_39 = arith.constant 0 : index
    %68 = vector.load %arg7[%c0_38, %c0_39] : memref<16x1xf32, #tpu.memory_space<vmem>>, vector<16x1xf32>
    %69 = vector.broadcast %68 : vector<16x1xf32> to vector<16x384xf32>
    %70 = arith.addf %67, %69 : vector<16x384xf32>
    %c0_40 = arith.constant 0 : index
    %c0_41 = arith.constant 0 : index
    %71 = vector.load %arg5[%c0_40, %c0_41] : memref<16x1xf32, #tpu.memory_space<vmem>>, vector<16x1xf32>
    %72 = vector.broadcast %71 : vector<16x1xf32> to vector<16x384xf32>
    %73 = arith.addf %70, %72 : vector<16x384xf32>
    %c0_42 = arith.constant 0 : index
    %c0_43 = arith.constant 0 : index
    %c0_44 = arith.constant 0 : index
    %74 = vector.load %arg4[%c0_42, %c0_43, %c0_44] : memref<9x16x16xbf16, #tpu.memory_space<vmem>>, vector<1x16x16xbf16>
    %75 = vector.shape_cast %74 : vector<1x16x16xbf16> to vector<16x16xbf16>
    %76 = arith.extf %75 : vector<16x16xbf16> to vector<16x16xf32>
    %c19_i32_45 = arith.constant 19 : i32
    %77 = tpu.dynamic_rotate %64 by %c19_i32_45 dim 1 : vector<16x384xf32>, i32 -> vector<16x384xf32>
    %cst_46 = arith.constant dense<0.000000e+00> : vector<16x384xf32>
    %78 = tpu.matmul %76, %77, %cst_46 {dimension_numbers = #tpu.dot_dimension_numbers<[1], [0], [0], [1], [0, 0, 1, 1], [], []>} : vector<16x16xf32>, vector<16x384xf32>, vector<16x384xf32> -> vector<16x384xf32>
    %79 = arith.addf %73, %78 : vector<16x384xf32>
    %c1_47 = arith.constant 1 : index
    %c0_48 = arith.constant 0 : index
    %c0_49 = arith.constant 0 : index
    %80 = vector.load %arg4[%c1_47, %c0_48, %c0_49] : memref<9x16x16xbf16, #tpu.memory_space<vmem>>, vector<1x16x16xbf16>
    %81 = vector.shape_cast %80 : vector<1x16x16xbf16> to vector<16x16xbf16>
    %82 = arith.extf %81 : vector<16x16xbf16> to vector<16x16xf32>
    %c18_i32_50 = arith.constant 18 : i32
    %83 = tpu.dynamic_rotate %64 by %c18_i32_50 dim 1 : vector<16x384xf32>, i32 -> vector<16x384xf32>
    %cst_51 = arith.constant dense<0.000000e+00> : vector<16x384xf32>
    %84 = tpu.matmul %82, %83, %cst_51 {dimension_numbers = #tpu.dot_dimension_numbers<[1], [0], [0], [1], [0, 0, 1, 1], [], []>} : vector<16x16xf32>, vector<16x384xf32>, vector<16x384xf32> -> vector<16x384xf32>
    %85 = arith.addf %79, %84 : vector<16x384xf32>
    %c2_52 = arith.constant 2 : index
    %c0_53 = arith.constant 0 : index
    %c0_54 = arith.constant 0 : index
    %86 = vector.load %arg4[%c2_52, %c0_53, %c0_54] : memref<9x16x16xbf16, #tpu.memory_space<vmem>>, vector<1x16x16xbf16>
    %87 = vector.shape_cast %86 : vector<1x16x16xbf16> to vector<16x16xbf16>
    %88 = arith.extf %87 : vector<16x16xbf16> to vector<16x16xf32>
    %c17_i32_55 = arith.constant 17 : i32
    %89 = tpu.dynamic_rotate %64 by %c17_i32_55 dim 1 : vector<16x384xf32>, i32 -> vector<16x384xf32>
    %cst_56 = arith.constant dense<0.000000e+00> : vector<16x384xf32>
    %90 = tpu.matmul %88, %89, %cst_56 {dimension_numbers = #tpu.dot_dimension_numbers<[1], [0], [0], [1], [0, 0, 1, 1], [], []>} : vector<16x16xf32>, vector<16x384xf32>, vector<16x384xf32> -> vector<16x384xf32>
    %91 = arith.addf %85, %90 : vector<16x384xf32>
    %c3_57 = arith.constant 3 : index
    %c0_58 = arith.constant 0 : index
    %c0_59 = arith.constant 0 : index
    %92 = vector.load %arg4[%c3_57, %c0_58, %c0_59] : memref<9x16x16xbf16, #tpu.memory_space<vmem>>, vector<1x16x16xbf16>
    %93 = vector.shape_cast %92 : vector<1x16x16xbf16> to vector<16x16xbf16>
    %94 = arith.extf %93 : vector<16x16xbf16> to vector<16x16xf32>
    %c1_i32_60 = arith.constant 1 : i32
    %95 = tpu.dynamic_rotate %64 by %c1_i32_60 dim 1 : vector<16x384xf32>, i32 -> vector<16x384xf32>
    %cst_61 = arith.constant dense<0.000000e+00> : vector<16x384xf32>
    %96 = tpu.matmul %94, %95, %cst_61 {dimension_numbers = #tpu.dot_dimension_numbers<[1], [0], [0], [1], [0, 0, 1, 1], [], []>} : vector<16x16xf32>, vector<16x384xf32>, vector<16x384xf32> -> vector<16x384xf32>
    %97 = arith.addf %91, %96 : vector<16x384xf32>
    %c4_62 = arith.constant 4 : index
    %c0_63 = arith.constant 0 : index
    %c0_64 = arith.constant 0 : index
    %98 = vector.load %arg4[%c4_62, %c0_63, %c0_64] : memref<9x16x16xbf16, #tpu.memory_space<vmem>>, vector<1x16x16xbf16>
    %99 = vector.shape_cast %98 : vector<1x16x16xbf16> to vector<16x16xbf16>
    %100 = arith.extf %99 : vector<16x16xbf16> to vector<16x16xf32>
    %cst_65 = arith.constant dense<0.000000e+00> : vector<16x384xf32>
    %101 = tpu.matmul %100, %64, %cst_65 {dimension_numbers = #tpu.dot_dimension_numbers<[1], [0], [0], [1], [0, 0, 1, 1], [], []>} : vector<16x16xf32>, vector<16x384xf32>, vector<16x384xf32> -> vector<16x384xf32>
    %102 = arith.addf %97, %101 : vector<16x384xf32>
    %c5_66 = arith.constant 5 : index
    %c0_67 = arith.constant 0 : index
    %c0_68 = arith.constant 0 : index
    %103 = vector.load %arg4[%c5_66, %c0_67, %c0_68] : memref<9x16x16xbf16, #tpu.memory_space<vmem>>, vector<1x16x16xbf16>
    %104 = vector.shape_cast %103 : vector<1x16x16xbf16> to vector<16x16xbf16>
    %105 = arith.extf %104 : vector<16x16xbf16> to vector<16x16xf32>
    %c383_i32_69 = arith.constant 383 : i32
    %106 = tpu.dynamic_rotate %64 by %c383_i32_69 dim 1 : vector<16x384xf32>, i32 -> vector<16x384xf32>
    %cst_70 = arith.constant dense<0.000000e+00> : vector<16x384xf32>
    %107 = tpu.matmul %105, %106, %cst_70 {dimension_numbers = #tpu.dot_dimension_numbers<[1], [0], [0], [1], [0, 0, 1, 1], [], []>} : vector<16x16xf32>, vector<16x384xf32>, vector<16x384xf32> -> vector<16x384xf32>
    %108 = arith.addf %102, %107 : vector<16x384xf32>
    %c6_71 = arith.constant 6 : index
    %c0_72 = arith.constant 0 : index
    %c0_73 = arith.constant 0 : index
    %109 = vector.load %arg4[%c6_71, %c0_72, %c0_73] : memref<9x16x16xbf16, #tpu.memory_space<vmem>>, vector<1x16x16xbf16>
    %110 = vector.shape_cast %109 : vector<1x16x16xbf16> to vector<16x16xbf16>
    %111 = arith.extf %110 : vector<16x16xbf16> to vector<16x16xf32>
    %c367_i32_74 = arith.constant 367 : i32
    %112 = tpu.dynamic_rotate %64 by %c367_i32_74 dim 1 : vector<16x384xf32>, i32 -> vector<16x384xf32>
    %cst_75 = arith.constant dense<0.000000e+00> : vector<16x384xf32>
    %113 = tpu.matmul %111, %112, %cst_75 {dimension_numbers = #tpu.dot_dimension_numbers<[1], [0], [0], [1], [0, 0, 1, 1], [], []>} : vector<16x16xf32>, vector<16x384xf32>, vector<16x384xf32> -> vector<16x384xf32>
    %114 = arith.addf %108, %113 : vector<16x384xf32>
    %c7_76 = arith.constant 7 : index
    %c0_77 = arith.constant 0 : index
    %c0_78 = arith.constant 0 : index
    %115 = vector.load %arg4[%c7_76, %c0_77, %c0_78] : memref<9x16x16xbf16, #tpu.memory_space<vmem>>, vector<1x16x16xbf16>
    %116 = vector.shape_cast %115 : vector<1x16x16xbf16> to vector<16x16xbf16>
    %117 = arith.extf %116 : vector<16x16xbf16> to vector<16x16xf32>
    %c366_i32_79 = arith.constant 366 : i32
    %118 = tpu.dynamic_rotate %64 by %c366_i32_79 dim 1 : vector<16x384xf32>, i32 -> vector<16x384xf32>
    %cst_80 = arith.constant dense<0.000000e+00> : vector<16x384xf32>
    %119 = tpu.matmul %117, %118, %cst_80 {dimension_numbers = #tpu.dot_dimension_numbers<[1], [0], [0], [1], [0, 0, 1, 1], [], []>} : vector<16x16xf32>, vector<16x384xf32>, vector<16x384xf32> -> vector<16x384xf32>
    %120 = arith.addf %114, %119 : vector<16x384xf32>
    %c8_81 = arith.constant 8 : index
    %c0_82 = arith.constant 0 : index
    %c0_83 = arith.constant 0 : index
    %121 = vector.load %arg4[%c8_81, %c0_82, %c0_83] : memref<9x16x16xbf16, #tpu.memory_space<vmem>>, vector<1x16x16xbf16>
    %122 = vector.shape_cast %121 : vector<1x16x16xbf16> to vector<16x16xbf16>
    %123 = arith.extf %122 : vector<16x16xbf16> to vector<16x16xf32>
    %c365_i32_84 = arith.constant 365 : i32
    %124 = tpu.dynamic_rotate %64 by %c365_i32_84 dim 1 : vector<16x384xf32>, i32 -> vector<16x384xf32>
    %cst_85 = arith.constant dense<0.000000e+00> : vector<16x384xf32>
    %125 = tpu.matmul %123, %124, %cst_85 {dimension_numbers = #tpu.dot_dimension_numbers<[1], [0], [0], [1], [0, 0, 1, 1], [], []>} : vector<16x16xf32>, vector<16x384xf32>, vector<16x384xf32> -> vector<16x384xf32>
    %126 = arith.addf %120, %125 : vector<16x384xf32>
    %cst_86 = arith.constant 0.000000e+00 : f32
    %127 = vector.broadcast %cst_86 : f32 to vector<16x384xf32>
    %128 = arith.maximumf %126, %127 : vector<16x384xf32>
    %129 = vector.broadcast %3 : vector<1x384xf32> to vector<16x384xf32>
    %130 = arith.mulf %128, %129 : vector<16x384xf32>
    %131 = arith.truncf %130 : vector<16x384xf32> to vector<16x384xbf16>
    %c0_87 = arith.constant 0 : index
    %c0_88 = arith.constant 0 : index
    %c0_89 = arith.constant 0 : index
    %132 = vector.load %arg9[%c0_87, %c0_88, %c0_89] : memref<1x16x384xbf16, #tpu.memory_space<vmem>>, vector<1x16x384xbf16>
    %133 = vector.shape_cast %132 : vector<1x16x384xbf16> to vector<16x384xbf16>
    %134 = vector.shape_cast %131 : vector<16x384xbf16> to vector<1x16x384xbf16>
    tpu.vector_store %arg9[%c0_87, %c0_88, %c0_89], %134 {strides = array<i32>} : memref<1x16x384xbf16, #tpu.memory_space<vmem>>, vector<1x16x384xbf16>,
    return
  }
  func.func @transform_0(%arg0: i32) -> (i32, i32, i32) {
    %c0_i32 = arith.constant 0 : i32
    %c0_i32_0 = arith.constant 0 : i32
    %c0_i32_1 = arith.constant 0 : i32
    return %arg0, %c0_i32, %c0_i32_0 : i32, i32, i32
  }
  func.func @transform_1(%arg0: i32) -> (i32, i32, i32) {
    %c0_i32 = arith.constant 0 : i32
    %c0_i32_0 = arith.constant 0 : i32
    %c0_i32_1 = arith.constant 0 : i32
    %c0_i32_2 = arith.constant 0 : i32
    return %c0_i32, %c0_i32_0, %c0_i32_1 : i32, i32, i32
  }
  func.func @transform_2(%arg0: i32) -> (i32, i32) {
    %c0_i32 = arith.constant 0 : i32
    %c0_i32_0 = arith.constant 0 : i32
    %c0_i32_1 = arith.constant 0 : i32
    return %c0_i32, %c0_i32_0 : i32, i32
  }
  func.func @transform_3(%arg0: i32) -> (i32, i32, i32) {
    %c0_i32 = arith.constant 0 : i32
    %c0_i32_0 = arith.constant 0 : i32
    %c0_i32_1 = arith.constant 0 : i32
    %c0_i32_2 = arith.constant 0 : i32
    return %c0_i32, %c0_i32_0, %c0_i32_1 : i32, i32, i32
  }
  func.func @transform_4(%arg0: i32) -> (i32, i32) {
    %c0_i32 = arith.constant 0 : i32
    %c0_i32_0 = arith.constant 0 : i32
    %c0_i32_1 = arith.constant 0 : i32
    return %c0_i32, %c0_i32_0 : i32, i32
  }
  func.func @transform_5(%arg0: i32) -> (i32, i32) {
    %c0_i32 = arith.constant 0 : i32
    %c0_i32_0 = arith.constant 0 : i32
    %c0_i32_1 = arith.constant 0 : i32
    return %c0_i32, %c0_i32_0 : i32, i32
  }
  func.func @transform_6(%arg0: i32) -> (i32, i32) {
    %c0_i32 = arith.constant 0 : i32
    %c0_i32_0 = arith.constant 0 : i32
    %c0_i32_1 = arith.constant 0 : i32
    return %c0_i32, %c0_i32_0 : i32, i32
  }
  func.func @transform_7(%arg0: i32) -> (i32, i32) {
    %c0_i32 = arith.constant 0 : i32
    %c0_i32_0 = arith.constant 0 : i32
    %c0_i32_1 = arith.constant 0 : i32
    return %c0_i32, %c0_i32_0 : i32, i32
  }
  func.func @transform_8(%arg0: i32) -> (i32, i32, i32) {
    %c0_i32 = arith.constant 0 : i32
    %c0_i32_0 = arith.constant 0 : i32
    %c0_i32_1 = arith.constant 0 : i32
    return %arg0, %c0_i32, %c0_i32_0 : i32, i32, i32
  }
}

module attributes {stable_mosaic.version = 11 : i64} {
  func.func @_residual_conv_kernel(%arg0: i32, %arg1: memref<1x16x128xbf16, #tpu.memory_space<vmem>>, %arg2: memref<9x32x16xbf16, #tpu.memory_space<vmem>>, %arg3: memref<32x1xf32, #tpu.memory_space<vmem>>, %arg4: memref<9x32x32xbf16, #tpu.memory_space<vmem>>, %arg5: memref<32x1xf32, #tpu.memory_space<vmem>>, %arg6: memref<32x16xbf16, #tpu.memory_space<vmem>>, %arg7: memref<32x1xf32, #tpu.memory_space<vmem>>, %arg8: memref<1x128xf32, #tpu.memory_space<vmem>>, %arg9: memref<1x32x128xbf16, #tpu.memory_space<vmem>>) attributes {dimension_semantics = [#tpu.dimension_semantics<parallel>], iteration_bounds = array<i64: 2>, scalar_prefetch = 0 : i64, scratch_operands = 0 : i64, tpu.core_type = #tpu.core_type<tc>, window_params = [{transform_indices = @transform_0, window_bounds = array<i64: 1, 16, 128>}, {pipeline_mode = #tpu.pipeline_mode<synchronous>, transform_indices = @transform_1, window_bounds = array<i64: 9, 32, 16>}, {pipeline_mode = #tpu.pipeline_mode<synchronous>, transform_indices = @transform_2, window_bounds = array<i64: 32, 1>}, {pipeline_mode = #tpu.pipeline_mode<synchronous>, transform_indices = @transform_3, window_bounds = array<i64: 9, 32, 32>}, {pipeline_mode = #tpu.pipeline_mode<synchronous>, transform_indices = @transform_4, window_bounds = array<i64: 32, 1>}, {pipeline_mode = #tpu.pipeline_mode<synchronous>, transform_indices = @transform_5, window_bounds = array<i64: 32, 16>}, {pipeline_mode = #tpu.pipeline_mode<synchronous>, transform_indices = @transform_6, window_bounds = array<i64: 32, 1>}, {pipeline_mode = #tpu.pipeline_mode<synchronous>, transform_indices = @transform_7, window_bounds = array<i64: 1, 128>}, {transform_indices = @transform_8, window_bounds = array<i64: 1, 32, 128>}]} {
    %c0 = arith.constant 0 : index
    %c0_0 = arith.constant 0 : index
    %c0_1 = arith.constant 0 : index
    %0 = vector.load %arg1[%c0, %c0_0, %c0_1] : memref<1x16x128xbf16, #tpu.memory_space<vmem>>, vector<1x16x128xbf16>
    %1 = vector.shape_cast %0 : vector<1x16x128xbf16> to vector<16x128xbf16>
    %2 = arith.extf %1 : vector<16x128xbf16> to vector<16x128xf32>
    %c0_2 = arith.constant 0 : index
    %c0_3 = arith.constant 0 : index
    %3 = vector.load %arg8[%c0_2, %c0_3] : memref<1x128xf32, #tpu.memory_space<vmem>>, vector<1x128xf32>
    %cst = arith.constant 0.000000e+00 : f32
    %4 = vector.broadcast %cst : f32 to vector<32x128xf32>
    %c0_4 = arith.constant 0 : index
    %c0_5 = arith.constant 0 : index
    %c0_6 = arith.constant 0 : index
    %5 = vector.load %arg2[%c0_4, %c0_5, %c0_6] : memref<9x32x16xbf16, #tpu.memory_space<vmem>>, vector<1x32x16xbf16>
    %6 = vector.shape_cast %5 : vector<1x32x16xbf16> to vector<32x16xbf16>
    %7 = arith.extf %6 : vector<32x16xbf16> to vector<32x16xf32>
    %c11_i32 = arith.constant 11 : i32
    %8 = tpu.dynamic_rotate %2 by %c11_i32 dim 1 : vector<16x128xf32>, i32 -> vector<16x128xf32>
    %cst_7 = arith.constant dense<0.000000e+00> : vector<32x128xf32>
    %9 = tpu.matmul %7, %8, %cst_7 {dimension_numbers = #tpu.dot_dimension_numbers<[1], [0], [0], [1], [0, 0, 1, 1], [], []>} : vector<32x16xf32>, vector<16x128xf32>, vector<32x128xf32> -> vector<32x128xf32>
    %10 = arith.addf %4, %9 : vector<32x128xf32>
    %c1 = arith.constant 1 : index
    %c0_8 = arith.constant 0 : index
    %c0_9 = arith.constant 0 : index
    %11 = vector.load %arg2[%c1, %c0_8, %c0_9] : memref<9x32x16xbf16, #tpu.memory_space<vmem>>, vector<1x32x16xbf16>
    %12 = vector.shape_cast %11 : vector<1x32x16xbf16> to vector<32x16xbf16>
    %13 = arith.extf %12 : vector<32x16xbf16> to vector<32x16xf32>
    %c10_i32 = arith.constant 10 : i32
    %14 = tpu.dynamic_rotate %2 by %c10_i32 dim 1 : vector<16x128xf32>, i32 -> vector<16x128xf32>
    %cst_10 = arith.constant dense<0.000000e+00> : vector<32x128xf32>
    %15 = tpu.matmul %13, %14, %cst_10 {dimension_numbers = #tpu.dot_dimension_numbers<[1], [0], [0], [1], [0, 0, 1, 1], [], []>} : vector<32x16xf32>, vector<16x128xf32>, vector<32x128xf32> -> vector<32x128xf32>
    %16 = arith.addf %10, %15 : vector<32x128xf32>
    %c2 = arith.constant 2 : index
    %c0_11 = arith.constant 0 : index
    %c0_12 = arith.constant 0 : index
    %17 = vector.load %arg2[%c2, %c0_11, %c0_12] : memref<9x32x16xbf16, #tpu.memory_space<vmem>>, vector<1x32x16xbf16>
    %18 = vector.shape_cast %17 : vector<1x32x16xbf16> to vector<32x16xbf16>
    %19 = arith.extf %18 : vector<32x16xbf16> to vector<32x16xf32>
    %c9_i32 = arith.constant 9 : i32
    %20 = tpu.dynamic_rotate %2 by %c9_i32 dim 1 : vector<16x128xf32>, i32 -> vector<16x128xf32>
    %cst_13 = arith.constant dense<0.000000e+00> : vector<32x128xf32>
    %21 = tpu.matmul %19, %20, %cst_13 {dimension_numbers = #tpu.dot_dimension_numbers<[1], [0], [0], [1], [0, 0, 1, 1], [], []>} : vector<32x16xf32>, vector<16x128xf32>, vector<32x128xf32> -> vector<32x128xf32>
    %22 = arith.addf %16, %21 : vector<32x128xf32>
    %c3 = arith.constant 3 : index
    %c0_14 = arith.constant 0 : index
    %c0_15 = arith.constant 0 : index
    %23 = vector.load %arg2[%c3, %c0_14, %c0_15] : memref<9x32x16xbf16, #tpu.memory_space<vmem>>, vector<1x32x16xbf16>
    %24 = vector.shape_cast %23 : vector<1x32x16xbf16> to vector<32x16xbf16>
    %25 = arith.extf %24 : vector<32x16xbf16> to vector<32x16xf32>
    %c1_i32 = arith.constant 1 : i32
    %26 = tpu.dynamic_rotate %2 by %c1_i32 dim 1 : vector<16x128xf32>, i32 -> vector<16x128xf32>
    %cst_16 = arith.constant dense<0.000000e+00> : vector<32x128xf32>
    %27 = tpu.matmul %25, %26, %cst_16 {dimension_numbers = #tpu.dot_dimension_numbers<[1], [0], [0], [1], [0, 0, 1, 1], [], []>} : vector<32x16xf32>, vector<16x128xf32>, vector<32x128xf32> -> vector<32x128xf32>
    %28 = arith.addf %22, %27 : vector<32x128xf32>
    %c4 = arith.constant 4 : index
    %c0_17 = arith.constant 0 : index
    %c0_18 = arith.constant 0 : index
    %29 = vector.load %arg2[%c4, %c0_17, %c0_18] : memref<9x32x16xbf16, #tpu.memory_space<vmem>>, vector<1x32x16xbf16>
    %30 = vector.shape_cast %29 : vector<1x32x16xbf16> to vector<32x16xbf16>
    %31 = arith.extf %30 : vector<32x16xbf16> to vector<32x16xf32>
    %cst_19 = arith.constant dense<0.000000e+00> : vector<32x128xf32>
    %32 = tpu.matmul %31, %2, %cst_19 {dimension_numbers = #tpu.dot_dimension_numbers<[1], [0], [0], [1], [0, 0, 1, 1], [], []>} : vector<32x16xf32>, vector<16x128xf32>, vector<32x128xf32> -> vector<32x128xf32>
    %33 = arith.addf %28, %32 : vector<32x128xf32>
    %c5 = arith.constant 5 : index
    %c0_20 = arith.constant 0 : index
    %c0_21 = arith.constant 0 : index
    %34 = vector.load %arg2[%c5, %c0_20, %c0_21] : memref<9x32x16xbf16, #tpu.memory_space<vmem>>, vector<1x32x16xbf16>
    %35 = vector.shape_cast %34 : vector<1x32x16xbf16> to vector<32x16xbf16>
    %36 = arith.extf %35 : vector<32x16xbf16> to vector<32x16xf32>
    %c127_i32 = arith.constant 127 : i32
    %37 = tpu.dynamic_rotate %2 by %c127_i32 dim 1 : vector<16x128xf32>, i32 -> vector<16x128xf32>
    %cst_22 = arith.constant dense<0.000000e+00> : vector<32x128xf32>
    %38 = tpu.matmul %36, %37, %cst_22 {dimension_numbers = #tpu.dot_dimension_numbers<[1], [0], [0], [1], [0, 0, 1, 1], [], []>} : vector<32x16xf32>, vector<16x128xf32>, vector<32x128xf32> -> vector<32x128xf32>
    %39 = arith.addf %33, %38 : vector<32x128xf32>
    %c6 = arith.constant 6 : index
    %c0_23 = arith.constant 0 : index
    %c0_24 = arith.constant 0 : index
    %40 = vector.load %arg2[%c6, %c0_23, %c0_24] : memref<9x32x16xbf16, #tpu.memory_space<vmem>>, vector<1x32x16xbf16>
    %41 = vector.shape_cast %40 : vector<1x32x16xbf16> to vector<32x16xbf16>
    %42 = arith.extf %41 : vector<32x16xbf16> to vector<32x16xf32>
    %c119_i32 = arith.constant 119 : i32
    %43 = tpu.dynamic_rotate %2 by %c119_i32 dim 1 : vector<16x128xf32>, i32 -> vector<16x128xf32>
    %cst_25 = arith.constant dense<0.000000e+00> : vector<32x128xf32>
    %44 = tpu.matmul %42, %43, %cst_25 {dimension_numbers = #tpu.dot_dimension_numbers<[1], [0], [0], [1], [0, 0, 1, 1], [], []>} : vector<32x16xf32>, vector<16x128xf32>, vector<32x128xf32> -> vector<32x128xf32>
    %45 = arith.addf %39, %44 : vector<32x128xf32>
    %c7 = arith.constant 7 : index
    %c0_26 = arith.constant 0 : index
    %c0_27 = arith.constant 0 : index
    %46 = vector.load %arg2[%c7, %c0_26, %c0_27] : memref<9x32x16xbf16, #tpu.memory_space<vmem>>, vector<1x32x16xbf16>
    %47 = vector.shape_cast %46 : vector<1x32x16xbf16> to vector<32x16xbf16>
    %48 = arith.extf %47 : vector<32x16xbf16> to vector<32x16xf32>
    %c118_i32 = arith.constant 118 : i32
    %49 = tpu.dynamic_rotate %2 by %c118_i32 dim 1 : vector<16x128xf32>, i32 -> vector<16x128xf32>
    %cst_28 = arith.constant dense<0.000000e+00> : vector<32x128xf32>
    %50 = tpu.matmul %48, %49, %cst_28 {dimension_numbers = #tpu.dot_dimension_numbers<[1], [0], [0], [1], [0, 0, 1, 1], [], []>} : vector<32x16xf32>, vector<16x128xf32>, vector<32x128xf32> -> vector<32x128xf32>
    %51 = arith.addf %45, %50 : vector<32x128xf32>
    %c8 = arith.constant 8 : index
    %c0_29 = arith.constant 0 : index
    %c0_30 = arith.constant 0 : index
    %52 = vector.load %arg2[%c8, %c0_29, %c0_30] : memref<9x32x16xbf16, #tpu.memory_space<vmem>>, vector<1x32x16xbf16>
    %53 = vector.shape_cast %52 : vector<1x32x16xbf16> to vector<32x16xbf16>
    %54 = arith.extf %53 : vector<32x16xbf16> to vector<32x16xf32>
    %c117_i32 = arith.constant 117 : i32
    %55 = tpu.dynamic_rotate %2 by %c117_i32 dim 1 : vector<16x128xf32>, i32 -> vector<16x128xf32>
    %cst_31 = arith.constant dense<0.000000e+00> : vector<32x128xf32>
    %56 = tpu.matmul %54, %55, %cst_31 {dimension_numbers = #tpu.dot_dimension_numbers<[1], [0], [0], [1], [0, 0, 1, 1], [], []>} : vector<32x16xf32>, vector<16x128xf32>, vector<32x128xf32> -> vector<32x128xf32>
    %57 = arith.addf %51, %56 : vector<32x128xf32>
    %c0_32 = arith.constant 0 : index
    %c0_33 = arith.constant 0 : index
    %58 = vector.load %arg3[%c0_32, %c0_33] : memref<32x1xf32, #tpu.memory_space<vmem>>, vector<32x1xf32>
    %59 = vector.broadcast %58 : vector<32x1xf32> to vector<32x128xf32>
    %60 = arith.addf %57, %59 : vector<32x128xf32>
    %cst_34 = arith.constant 0.000000e+00 : f32
    %61 = vector.broadcast %cst_34 : f32 to vector<32x128xf32>
    %62 = arith.maximumf %60, %61 : vector<32x128xf32>
    %63 = vector.broadcast %3 : vector<1x128xf32> to vector<32x128xf32>
    %64 = arith.mulf %62, %63 : vector<32x128xf32>
    %c0_35 = arith.constant 0 : index
    %c0_36 = arith.constant 0 : index
    %65 = vector.load %arg6[%c0_35, %c0_36] : memref<32x16xbf16, #tpu.memory_space<vmem>>, vector<32x16xbf16>
    %66 = arith.extf %65 : vector<32x16xbf16> to vector<32x16xf32>
    %cst_37 = arith.constant dense<0.000000e+00> : vector<32x128xf32>
    %67 = tpu.matmul %66, %2, %cst_37 {dimension_numbers = #tpu.dot_dimension_numbers<[1], [0], [0], [1], [0, 0, 1, 1], [], []>} : vector<32x16xf32>, vector<16x128xf32>, vector<32x128xf32> -> vector<32x128xf32>
    %c0_38 = arith.constant 0 : index
    %c0_39 = arith.constant 0 : index
    %68 = vector.load %arg7[%c0_38, %c0_39] : memref<32x1xf32, #tpu.memory_space<vmem>>, vector<32x1xf32>
    %69 = vector.broadcast %68 : vector<32x1xf32> to vector<32x128xf32>
    %70 = arith.addf %67, %69 : vector<32x128xf32>
    %c0_40 = arith.constant 0 : index
    %c0_41 = arith.constant 0 : index
    %71 = vector.load %arg5[%c0_40, %c0_41] : memref<32x1xf32, #tpu.memory_space<vmem>>, vector<32x1xf32>
    %72 = vector.broadcast %71 : vector<32x1xf32> to vector<32x128xf32>
    %73 = arith.addf %70, %72 : vector<32x128xf32>
    %c0_42 = arith.constant 0 : index
    %c0_43 = arith.constant 0 : index
    %c0_44 = arith.constant 0 : index
    %74 = vector.load %arg4[%c0_42, %c0_43, %c0_44] : memref<9x32x32xbf16, #tpu.memory_space<vmem>>, vector<1x32x32xbf16>
    %75 = vector.shape_cast %74 : vector<1x32x32xbf16> to vector<32x32xbf16>
    %76 = arith.extf %75 : vector<32x32xbf16> to vector<32x32xf32>
    %c11_i32_45 = arith.constant 11 : i32
    %77 = tpu.dynamic_rotate %64 by %c11_i32_45 dim 1 : vector<32x128xf32>, i32 -> vector<32x128xf32>
    %cst_46 = arith.constant dense<0.000000e+00> : vector<32x128xf32>
    %78 = tpu.matmul %76, %77, %cst_46 {dimension_numbers = #tpu.dot_dimension_numbers<[1], [0], [0], [1], [0, 0, 1, 1], [], []>} : vector<32x32xf32>, vector<32x128xf32>, vector<32x128xf32> -> vector<32x128xf32>
    %79 = arith.addf %73, %78 : vector<32x128xf32>
    %c1_47 = arith.constant 1 : index
    %c0_48 = arith.constant 0 : index
    %c0_49 = arith.constant 0 : index
    %80 = vector.load %arg4[%c1_47, %c0_48, %c0_49] : memref<9x32x32xbf16, #tpu.memory_space<vmem>>, vector<1x32x32xbf16>
    %81 = vector.shape_cast %80 : vector<1x32x32xbf16> to vector<32x32xbf16>
    %82 = arith.extf %81 : vector<32x32xbf16> to vector<32x32xf32>
    %c10_i32_50 = arith.constant 10 : i32
    %83 = tpu.dynamic_rotate %64 by %c10_i32_50 dim 1 : vector<32x128xf32>, i32 -> vector<32x128xf32>
    %cst_51 = arith.constant dense<0.000000e+00> : vector<32x128xf32>
    %84 = tpu.matmul %82, %83, %cst_51 {dimension_numbers = #tpu.dot_dimension_numbers<[1], [0], [0], [1], [0, 0, 1, 1], [], []>} : vector<32x32xf32>, vector<32x128xf32>, vector<32x128xf32> -> vector<32x128xf32>
    %85 = arith.addf %79, %84 : vector<32x128xf32>
    %c2_52 = arith.constant 2 : index
    %c0_53 = arith.constant 0 : index
    %c0_54 = arith.constant 0 : index
    %86 = vector.load %arg4[%c2_52, %c0_53, %c0_54] : memref<9x32x32xbf16, #tpu.memory_space<vmem>>, vector<1x32x32xbf16>
    %87 = vector.shape_cast %86 : vector<1x32x32xbf16> to vector<32x32xbf16>
    %88 = arith.extf %87 : vector<32x32xbf16> to vector<32x32xf32>
    %c9_i32_55 = arith.constant 9 : i32
    %89 = tpu.dynamic_rotate %64 by %c9_i32_55 dim 1 : vector<32x128xf32>, i32 -> vector<32x128xf32>
    %cst_56 = arith.constant dense<0.000000e+00> : vector<32x128xf32>
    %90 = tpu.matmul %88, %89, %cst_56 {dimension_numbers = #tpu.dot_dimension_numbers<[1], [0], [0], [1], [0, 0, 1, 1], [], []>} : vector<32x32xf32>, vector<32x128xf32>, vector<32x128xf32> -> vector<32x128xf32>
    %91 = arith.addf %85, %90 : vector<32x128xf32>
    %c3_57 = arith.constant 3 : index
    %c0_58 = arith.constant 0 : index
    %c0_59 = arith.constant 0 : index
    %92 = vector.load %arg4[%c3_57, %c0_58, %c0_59] : memref<9x32x32xbf16, #tpu.memory_space<vmem>>, vector<1x32x32xbf16>
    %93 = vector.shape_cast %92 : vector<1x32x32xbf16> to vector<32x32xbf16>
    %94 = arith.extf %93 : vector<32x32xbf16> to vector<32x32xf32>
    %c1_i32_60 = arith.constant 1 : i32
    %95 = tpu.dynamic_rotate %64 by %c1_i32_60 dim 1 : vector<32x128xf32>, i32 -> vector<32x128xf32>
    %cst_61 = arith.constant dense<0.000000e+00> : vector<32x128xf32>
    %96 = tpu.matmul %94, %95, %cst_61 {dimension_numbers = #tpu.dot_dimension_numbers<[1], [0], [0], [1], [0, 0, 1, 1], [], []>} : vector<32x32xf32>, vector<32x128xf32>, vector<32x128xf32> -> vector<32x128xf32>
    %97 = arith.addf %91, %96 : vector<32x128xf32>
    %c4_62 = arith.constant 4 : index
    %c0_63 = arith.constant 0 : index
    %c0_64 = arith.constant 0 : index
    %98 = vector.load %arg4[%c4_62, %c0_63, %c0_64] : memref<9x32x32xbf16, #tpu.memory_space<vmem>>, vector<1x32x32xbf16>
    %99 = vector.shape_cast %98 : vector<1x32x32xbf16> to vector<32x32xbf16>
    %100 = arith.extf %99 : vector<32x32xbf16> to vector<32x32xf32>
    %cst_65 = arith.constant dense<0.000000e+00> : vector<32x128xf32>
    %101 = tpu.matmul %100, %64, %cst_65 {dimension_numbers = #tpu.dot_dimension_numbers<[1], [0], [0], [1], [0, 0, 1, 1], [], []>} : vector<32x32xf32>, vector<32x128xf32>, vector<32x128xf32> -> vector<32x128xf32>
    %102 = arith.addf %97, %101 : vector<32x128xf32>
    %c5_66 = arith.constant 5 : index
    %c0_67 = arith.constant 0 : index
    %c0_68 = arith.constant 0 : index
    %103 = vector.load %arg4[%c5_66, %c0_67, %c0_68] : memref<9x32x32xbf16, #tpu.memory_space<vmem>>, vector<1x32x32xbf16>
    %104 = vector.shape_cast %103 : vector<1x32x32xbf16> to vector<32x32xbf16>
    %105 = arith.extf %104 : vector<32x32xbf16> to vector<32x32xf32>
    %c127_i32_69 = arith.constant 127 : i32
    %106 = tpu.dynamic_rotate %64 by %c127_i32_69 dim 1 : vector<32x128xf32>, i32 -> vector<32x128xf32>
    %cst_70 = arith.constant dense<0.000000e+00> : vector<32x128xf32>
    %107 = tpu.matmul %105, %106, %cst_70 {dimension_numbers = #tpu.dot_dimension_numbers<[1], [0], [0], [1], [0, 0, 1, 1], [], []>} : vector<32x32xf32>, vector<32x128xf32>, vector<32x128xf32> -> vector<32x128xf32>
    %108 = arith.addf %102, %107 : vector<32x128xf32>
    %c6_71 = arith.constant 6 : index
    %c0_72 = arith.constant 0 : index
    %c0_73 = arith.constant 0 : index
    %109 = vector.load %arg4[%c6_71, %c0_72, %c0_73] : memref<9x32x32xbf16, #tpu.memory_space<vmem>>, vector<1x32x32xbf16>
    %110 = vector.shape_cast %109 : vector<1x32x32xbf16> to vector<32x32xbf16>
    %111 = arith.extf %110 : vector<32x32xbf16> to vector<32x32xf32>
    %c119_i32_74 = arith.constant 119 : i32
    %112 = tpu.dynamic_rotate %64 by %c119_i32_74 dim 1 : vector<32x128xf32>, i32 -> vector<32x128xf32>
    %cst_75 = arith.constant dense<0.000000e+00> : vector<32x128xf32>
    %113 = tpu.matmul %111, %112, %cst_75 {dimension_numbers = #tpu.dot_dimension_numbers<[1], [0], [0], [1], [0, 0, 1, 1], [], []>} : vector<32x32xf32>, vector<32x128xf32>, vector<32x128xf32> -> vector<32x128xf32>
    %114 = arith.addf %108, %113 : vector<32x128xf32>
    %c7_76 = arith.constant 7 : index
    %c0_77 = arith.constant 0 : index
    %c0_78 = arith.constant 0 : index
    %115 = vector.load %arg4[%c7_76, %c0_77, %c0_78] : memref<9x32x32xbf16, #tpu.memory_space<vmem>>, vector<1x32x32xbf16>
    %116 = vector.shape_cast %115 : vector<1x32x32xbf16> to vector<32x32xbf16>
    %117 = arith.extf %116 : vector<32x32xbf16> to vector<32x32xf32>
    %c118_i32_79 = arith.constant 118 : i32
    %118 = tpu.dynamic_rotate %64 by %c118_i32_79 dim 1 : vector<32x128xf32>, i32 -> vector<32x128xf32>
    %cst_80 = arith.constant dense<0.000000e+00> : vector<32x128xf32>
    %119 = tpu.matmul %117, %118, %cst_80 {dimension_numbers = #tpu.dot_dimension_numbers<[1], [0], [0], [1], [0, 0, 1, 1], [], []>} : vector<32x32xf32>, vector<32x128xf32>, vector<32x128xf32> -> vector<32x128xf32>
    %120 = arith.addf %114, %119 : vector<32x128xf32>
    %c8_81 = arith.constant 8 : index
    %c0_82 = arith.constant 0 : index
    %c0_83 = arith.constant 0 : index
    %121 = vector.load %arg4[%c8_81, %c0_82, %c0_83] : memref<9x32x32xbf16, #tpu.memory_space<vmem>>, vector<1x32x32xbf16>
    %122 = vector.shape_cast %121 : vector<1x32x32xbf16> to vector<32x32xbf16>
    %123 = arith.extf %122 : vector<32x32xbf16> to vector<32x32xf32>
    %c117_i32_84 = arith.constant 117 : i32
    %124 = tpu.dynamic_rotate %64 by %c117_i32_84 dim 1 : vector<32x128xf32>, i32 -> vector<32x128xf32>
    %cst_85 = arith.constant dense<0.000000e+00> : vector<32x128xf32>
    %125 = tpu.matmul %123, %124, %cst_85 {dimension_numbers = #tpu.dot_dimension_numbers<[1], [0], [0], [1], [0, 0, 1, 1], [], []>} : vector<32x32xf32>, vector<32x128xf32>, vector<32x128xf32> -> vector<32x128xf32>
    %126 = arith.addf %120, %125 : vector<32x128xf32>
    %cst_86 = arith.constant 0.000000e+00 : f32
    %127 = vector.broadcast %cst_86 : f32 to vector<32x128xf32>
    %128 = arith.maximumf %126, %127 : vector<32x128xf32>
    %129 = vector.broadcast %3 : vector<1x128xf32> to vector<32x128xf32>
    %130 = arith.mulf %128, %129 : vector<32x128xf32>
    %131 = arith.truncf %130 : vector<32x128xf32> to vector<32x128xbf16>
    %c0_87 = arith.constant 0 : index
    %c0_88 = arith.constant 0 : index
    %c0_89 = arith.constant 0 : index
    %132 = vector.load %arg9[%c0_87, %c0_88, %c0_89] : memref<1x32x128xbf16, #tpu.memory_space<vmem>>, vector<1x32x128xbf16>
    %133 = vector.shape_cast %132 : vector<1x32x128xbf16> to vector<32x128xbf16>
    %134 = vector.shape_cast %131 : vector<32x128xbf16> to vector<1x32x128xbf16>
    tpu.vector_store %arg9[%c0_87, %c0_88, %c0_89], %134 {strides = array<i32>} : memref<1x32x128xbf16, #tpu.memory_space<vmem>>, vector<1x32x128xbf16>,
    return
  }
  func.func @transform_0(%arg0: i32) -> (i32, i32, i32) {
    %c0_i32 = arith.constant 0 : i32
    %c0_i32_0 = arith.constant 0 : i32
    %c0_i32_1 = arith.constant 0 : i32
    return %arg0, %c0_i32, %c0_i32_0 : i32, i32, i32
  }
  func.func @transform_1(%arg0: i32) -> (i32, i32, i32) {
    %c0_i32 = arith.constant 0 : i32
    %c0_i32_0 = arith.constant 0 : i32
    %c0_i32_1 = arith.constant 0 : i32
    %c0_i32_2 = arith.constant 0 : i32
    return %c0_i32, %c0_i32_0, %c0_i32_1 : i32, i32, i32
  }
  func.func @transform_2(%arg0: i32) -> (i32, i32) {
    %c0_i32 = arith.constant 0 : i32
    %c0_i32_0 = arith.constant 0 : i32
    %c0_i32_1 = arith.constant 0 : i32
    return %c0_i32, %c0_i32_0 : i32, i32
  }
  func.func @transform_3(%arg0: i32) -> (i32, i32, i32) {
    %c0_i32 = arith.constant 0 : i32
    %c0_i32_0 = arith.constant 0 : i32
    %c0_i32_1 = arith.constant 0 : i32
    %c0_i32_2 = arith.constant 0 : i32
    return %c0_i32, %c0_i32_0, %c0_i32_1 : i32, i32, i32
  }
  func.func @transform_4(%arg0: i32) -> (i32, i32) {
    %c0_i32 = arith.constant 0 : i32
    %c0_i32_0 = arith.constant 0 : i32
    %c0_i32_1 = arith.constant 0 : i32
    return %c0_i32, %c0_i32_0 : i32, i32
  }
  func.func @transform_5(%arg0: i32) -> (i32, i32) {
    %c0_i32 = arith.constant 0 : i32
    %c0_i32_0 = arith.constant 0 : i32
    %c0_i32_1 = arith.constant 0 : i32
    return %c0_i32, %c0_i32_0 : i32, i32
  }
  func.func @transform_6(%arg0: i32) -> (i32, i32) {
    %c0_i32 = arith.constant 0 : i32
    %c0_i32_0 = arith.constant 0 : i32
    %c0_i32_1 = arith.constant 0 : i32
    return %c0_i32, %c0_i32_0 : i32, i32
  }
  func.func @transform_7(%arg0: i32) -> (i32, i32) {
    %c0_i32 = arith.constant 0 : i32
    %c0_i32_0 = arith.constant 0 : i32
    %c0_i32_1 = arith.constant 0 : i32
    return %c0_i32, %c0_i32_0 : i32, i32
  }
  func.func @transform_8(%arg0: i32) -> (i32, i32, i32) {
    %c0_i32 = arith.constant 0 : i32
    %c0_i32_0 = arith.constant 0 : i32
    %c0_i32_1 = arith.constant 0 : i32
    return %arg0, %c0_i32, %c0_i32_0 : i32, i32, i32
  }
}

module attributes {stable_mosaic.version = 11 : i64} {
  func.func @_residual_conv_kernel(%arg0: i32, %arg1: memref<1x48x384xbf16, #tpu.memory_space<vmem>>, %arg2: memref<9x16x48xbf16, #tpu.memory_space<vmem>>, %arg3: memref<16x1xf32, #tpu.memory_space<vmem>>, %arg4: memref<9x16x16xbf16, #tpu.memory_space<vmem>>, %arg5: memref<16x1xf32, #tpu.memory_space<vmem>>, %arg6: memref<16x48xbf16, #tpu.memory_space<vmem>>, %arg7: memref<16x1xf32, #tpu.memory_space<vmem>>, %arg8: memref<1x384xf32, #tpu.memory_space<vmem>>, %arg9: memref<1x16x384xbf16, #tpu.memory_space<vmem>>) attributes {dimension_semantics = [#tpu.dimension_semantics<parallel>], iteration_bounds = array<i64: 2>, scalar_prefetch = 0 : i64, scratch_operands = 0 : i64, tpu.core_type = #tpu.core_type<tc>, window_params = [{transform_indices = @transform_0, window_bounds = array<i64: 1, 48, 384>}, {pipeline_mode = #tpu.pipeline_mode<synchronous>, transform_indices = @transform_1, window_bounds = array<i64: 9, 16, 48>}, {pipeline_mode = #tpu.pipeline_mode<synchronous>, transform_indices = @transform_2, window_bounds = array<i64: 16, 1>}, {pipeline_mode = #tpu.pipeline_mode<synchronous>, transform_indices = @transform_3, window_bounds = array<i64: 9, 16, 16>}, {pipeline_mode = #tpu.pipeline_mode<synchronous>, transform_indices = @transform_4, window_bounds = array<i64: 16, 1>}, {pipeline_mode = #tpu.pipeline_mode<synchronous>, transform_indices = @transform_5, window_bounds = array<i64: 16, 48>}, {pipeline_mode = #tpu.pipeline_mode<synchronous>, transform_indices = @transform_6, window_bounds = array<i64: 16, 1>}, {pipeline_mode = #tpu.pipeline_mode<synchronous>, transform_indices = @transform_7, window_bounds = array<i64: 1, 384>}, {transform_indices = @transform_8, window_bounds = array<i64: 1, 16, 384>}]} {
    %c0 = arith.constant 0 : index
    %c0_0 = arith.constant 0 : index
    %c0_1 = arith.constant 0 : index
    %0 = vector.load %arg1[%c0, %c0_0, %c0_1] : memref<1x48x384xbf16, #tpu.memory_space<vmem>>, vector<1x48x384xbf16>
    %1 = vector.shape_cast %0 : vector<1x48x384xbf16> to vector<48x384xbf16>
    %2 = arith.extf %1 : vector<48x384xbf16> to vector<48x384xf32>
    %c0_2 = arith.constant 0 : index
    %c0_3 = arith.constant 0 : index
    %3 = vector.load %arg8[%c0_2, %c0_3] : memref<1x384xf32, #tpu.memory_space<vmem>>, vector<1x384xf32>
    %cst = arith.constant 0.000000e+00 : f32
    %4 = vector.broadcast %cst : f32 to vector<16x384xf32>
    %c0_4 = arith.constant 0 : index
    %c0_5 = arith.constant 0 : index
    %c0_6 = arith.constant 0 : index
    %5 = vector.load %arg2[%c0_4, %c0_5, %c0_6] : memref<9x16x48xbf16, #tpu.memory_space<vmem>>, vector<1x16x48xbf16>
    %6 = vector.shape_cast %5 : vector<1x16x48xbf16> to vector<16x48xbf16>
    %7 = arith.extf %6 : vector<16x48xbf16> to vector<16x48xf32>
    %c19_i32 = arith.constant 19 : i32
    %8 = tpu.dynamic_rotate %2 by %c19_i32 dim 1 : vector<48x384xf32>, i32 -> vector<48x384xf32>
    %cst_7 = arith.constant dense<0.000000e+00> : vector<16x384xf32>
    %9 = tpu.matmul %7, %8, %cst_7 {dimension_numbers = #tpu.dot_dimension_numbers<[1], [0], [0], [1], [0, 0, 1, 1], [], []>} : vector<16x48xf32>, vector<48x384xf32>, vector<16x384xf32> -> vector<16x384xf32>
    %10 = arith.addf %4, %9 : vector<16x384xf32>
    %c1 = arith.constant 1 : index
    %c0_8 = arith.constant 0 : index
    %c0_9 = arith.constant 0 : index
    %11 = vector.load %arg2[%c1, %c0_8, %c0_9] : memref<9x16x48xbf16, #tpu.memory_space<vmem>>, vector<1x16x48xbf16>
    %12 = vector.shape_cast %11 : vector<1x16x48xbf16> to vector<16x48xbf16>
    %13 = arith.extf %12 : vector<16x48xbf16> to vector<16x48xf32>
    %c18_i32 = arith.constant 18 : i32
    %14 = tpu.dynamic_rotate %2 by %c18_i32 dim 1 : vector<48x384xf32>, i32 -> vector<48x384xf32>
    %cst_10 = arith.constant dense<0.000000e+00> : vector<16x384xf32>
    %15 = tpu.matmul %13, %14, %cst_10 {dimension_numbers = #tpu.dot_dimension_numbers<[1], [0], [0], [1], [0, 0, 1, 1], [], []>} : vector<16x48xf32>, vector<48x384xf32>, vector<16x384xf32> -> vector<16x384xf32>
    %16 = arith.addf %10, %15 : vector<16x384xf32>
    %c2 = arith.constant 2 : index
    %c0_11 = arith.constant 0 : index
    %c0_12 = arith.constant 0 : index
    %17 = vector.load %arg2[%c2, %c0_11, %c0_12] : memref<9x16x48xbf16, #tpu.memory_space<vmem>>, vector<1x16x48xbf16>
    %18 = vector.shape_cast %17 : vector<1x16x48xbf16> to vector<16x48xbf16>
    %19 = arith.extf %18 : vector<16x48xbf16> to vector<16x48xf32>
    %c17_i32 = arith.constant 17 : i32
    %20 = tpu.dynamic_rotate %2 by %c17_i32 dim 1 : vector<48x384xf32>, i32 -> vector<48x384xf32>
    %cst_13 = arith.constant dense<0.000000e+00> : vector<16x384xf32>
    %21 = tpu.matmul %19, %20, %cst_13 {dimension_numbers = #tpu.dot_dimension_numbers<[1], [0], [0], [1], [0, 0, 1, 1], [], []>} : vector<16x48xf32>, vector<48x384xf32>, vector<16x384xf32> -> vector<16x384xf32>
    %22 = arith.addf %16, %21 : vector<16x384xf32>
    %c3 = arith.constant 3 : index
    %c0_14 = arith.constant 0 : index
    %c0_15 = arith.constant 0 : index
    %23 = vector.load %arg2[%c3, %c0_14, %c0_15] : memref<9x16x48xbf16, #tpu.memory_space<vmem>>, vector<1x16x48xbf16>
    %24 = vector.shape_cast %23 : vector<1x16x48xbf16> to vector<16x48xbf16>
    %25 = arith.extf %24 : vector<16x48xbf16> to vector<16x48xf32>
    %c1_i32 = arith.constant 1 : i32
    %26 = tpu.dynamic_rotate %2 by %c1_i32 dim 1 : vector<48x384xf32>, i32 -> vector<48x384xf32>
    %cst_16 = arith.constant dense<0.000000e+00> : vector<16x384xf32>
    %27 = tpu.matmul %25, %26, %cst_16 {dimension_numbers = #tpu.dot_dimension_numbers<[1], [0], [0], [1], [0, 0, 1, 1], [], []>} : vector<16x48xf32>, vector<48x384xf32>, vector<16x384xf32> -> vector<16x384xf32>
    %28 = arith.addf %22, %27 : vector<16x384xf32>
    %c4 = arith.constant 4 : index
    %c0_17 = arith.constant 0 : index
    %c0_18 = arith.constant 0 : index
    %29 = vector.load %arg2[%c4, %c0_17, %c0_18] : memref<9x16x48xbf16, #tpu.memory_space<vmem>>, vector<1x16x48xbf16>
    %30 = vector.shape_cast %29 : vector<1x16x48xbf16> to vector<16x48xbf16>
    %31 = arith.extf %30 : vector<16x48xbf16> to vector<16x48xf32>
    %cst_19 = arith.constant dense<0.000000e+00> : vector<16x384xf32>
    %32 = tpu.matmul %31, %2, %cst_19 {dimension_numbers = #tpu.dot_dimension_numbers<[1], [0], [0], [1], [0, 0, 1, 1], [], []>} : vector<16x48xf32>, vector<48x384xf32>, vector<16x384xf32> -> vector<16x384xf32>
    %33 = arith.addf %28, %32 : vector<16x384xf32>
    %c5 = arith.constant 5 : index
    %c0_20 = arith.constant 0 : index
    %c0_21 = arith.constant 0 : index
    %34 = vector.load %arg2[%c5, %c0_20, %c0_21] : memref<9x16x48xbf16, #tpu.memory_space<vmem>>, vector<1x16x48xbf16>
    %35 = vector.shape_cast %34 : vector<1x16x48xbf16> to vector<16x48xbf16>
    %36 = arith.extf %35 : vector<16x48xbf16> to vector<16x48xf32>
    %c383_i32 = arith.constant 383 : i32
    %37 = tpu.dynamic_rotate %2 by %c383_i32 dim 1 : vector<48x384xf32>, i32 -> vector<48x384xf32>
    %cst_22 = arith.constant dense<0.000000e+00> : vector<16x384xf32>
    %38 = tpu.matmul %36, %37, %cst_22 {dimension_numbers = #tpu.dot_dimension_numbers<[1], [0], [0], [1], [0, 0, 1, 1], [], []>} : vector<16x48xf32>, vector<48x384xf32>, vector<16x384xf32> -> vector<16x384xf32>
    %39 = arith.addf %33, %38 : vector<16x384xf32>
    %c6 = arith.constant 6 : index
    %c0_23 = arith.constant 0 : index
    %c0_24 = arith.constant 0 : index
    %40 = vector.load %arg2[%c6, %c0_23, %c0_24] : memref<9x16x48xbf16, #tpu.memory_space<vmem>>, vector<1x16x48xbf16>
    %41 = vector.shape_cast %40 : vector<1x16x48xbf16> to vector<16x48xbf16>
    %42 = arith.extf %41 : vector<16x48xbf16> to vector<16x48xf32>
    %c367_i32 = arith.constant 367 : i32
    %43 = tpu.dynamic_rotate %2 by %c367_i32 dim 1 : vector<48x384xf32>, i32 -> vector<48x384xf32>
    %cst_25 = arith.constant dense<0.000000e+00> : vector<16x384xf32>
    %44 = tpu.matmul %42, %43, %cst_25 {dimension_numbers = #tpu.dot_dimension_numbers<[1], [0], [0], [1], [0, 0, 1, 1], [], []>} : vector<16x48xf32>, vector<48x384xf32>, vector<16x384xf32> -> vector<16x384xf32>
    %45 = arith.addf %39, %44 : vector<16x384xf32>
    %c7 = arith.constant 7 : index
    %c0_26 = arith.constant 0 : index
    %c0_27 = arith.constant 0 : index
    %46 = vector.load %arg2[%c7, %c0_26, %c0_27] : memref<9x16x48xbf16, #tpu.memory_space<vmem>>, vector<1x16x48xbf16>
    %47 = vector.shape_cast %46 : vector<1x16x48xbf16> to vector<16x48xbf16>
    %48 = arith.extf %47 : vector<16x48xbf16> to vector<16x48xf32>
    %c366_i32 = arith.constant 366 : i32
    %49 = tpu.dynamic_rotate %2 by %c366_i32 dim 1 : vector<48x384xf32>, i32 -> vector<48x384xf32>
    %cst_28 = arith.constant dense<0.000000e+00> : vector<16x384xf32>
    %50 = tpu.matmul %48, %49, %cst_28 {dimension_numbers = #tpu.dot_dimension_numbers<[1], [0], [0], [1], [0, 0, 1, 1], [], []>} : vector<16x48xf32>, vector<48x384xf32>, vector<16x384xf32> -> vector<16x384xf32>
    %51 = arith.addf %45, %50 : vector<16x384xf32>
    %c8 = arith.constant 8 : index
    %c0_29 = arith.constant 0 : index
    %c0_30 = arith.constant 0 : index
    %52 = vector.load %arg2[%c8, %c0_29, %c0_30] : memref<9x16x48xbf16, #tpu.memory_space<vmem>>, vector<1x16x48xbf16>
    %53 = vector.shape_cast %52 : vector<1x16x48xbf16> to vector<16x48xbf16>
    %54 = arith.extf %53 : vector<16x48xbf16> to vector<16x48xf32>
    %c365_i32 = arith.constant 365 : i32
    %55 = tpu.dynamic_rotate %2 by %c365_i32 dim 1 : vector<48x384xf32>, i32 -> vector<48x384xf32>
    %cst_31 = arith.constant dense<0.000000e+00> : vector<16x384xf32>
    %56 = tpu.matmul %54, %55, %cst_31 {dimension_numbers = #tpu.dot_dimension_numbers<[1], [0], [0], [1], [0, 0, 1, 1], [], []>} : vector<16x48xf32>, vector<48x384xf32>, vector<16x384xf32> -> vector<16x384xf32>
    %57 = arith.addf %51, %56 : vector<16x384xf32>
    %c0_32 = arith.constant 0 : index
    %c0_33 = arith.constant 0 : index
    %58 = vector.load %arg3[%c0_32, %c0_33] : memref<16x1xf32, #tpu.memory_space<vmem>>, vector<16x1xf32>
    %59 = vector.broadcast %58 : vector<16x1xf32> to vector<16x384xf32>
    %60 = arith.addf %57, %59 : vector<16x384xf32>
    %cst_34 = arith.constant 0.000000e+00 : f32
    %61 = vector.broadcast %cst_34 : f32 to vector<16x384xf32>
    %62 = arith.maximumf %60, %61 : vector<16x384xf32>
    %63 = vector.broadcast %3 : vector<1x384xf32> to vector<16x384xf32>
    %64 = arith.mulf %62, %63 : vector<16x384xf32>
    %c0_35 = arith.constant 0 : index
    %c0_36 = arith.constant 0 : index
    %65 = vector.load %arg6[%c0_35, %c0_36] : memref<16x48xbf16, #tpu.memory_space<vmem>>, vector<16x48xbf16>
    %66 = arith.extf %65 : vector<16x48xbf16> to vector<16x48xf32>
    %cst_37 = arith.constant dense<0.000000e+00> : vector<16x384xf32>
    %67 = tpu.matmul %66, %2, %cst_37 {dimension_numbers = #tpu.dot_dimension_numbers<[1], [0], [0], [1], [0, 0, 1, 1], [], []>} : vector<16x48xf32>, vector<48x384xf32>, vector<16x384xf32> -> vector<16x384xf32>
    %c0_38 = arith.constant 0 : index
    %c0_39 = arith.constant 0 : index
    %68 = vector.load %arg7[%c0_38, %c0_39] : memref<16x1xf32, #tpu.memory_space<vmem>>, vector<16x1xf32>
    %69 = vector.broadcast %68 : vector<16x1xf32> to vector<16x384xf32>
    %70 = arith.addf %67, %69 : vector<16x384xf32>
    %c0_40 = arith.constant 0 : index
    %c0_41 = arith.constant 0 : index
    %71 = vector.load %arg5[%c0_40, %c0_41] : memref<16x1xf32, #tpu.memory_space<vmem>>, vector<16x1xf32>
    %72 = vector.broadcast %71 : vector<16x1xf32> to vector<16x384xf32>
    %73 = arith.addf %70, %72 : vector<16x384xf32>
    %c0_42 = arith.constant 0 : index
    %c0_43 = arith.constant 0 : index
    %c0_44 = arith.constant 0 : index
    %74 = vector.load %arg4[%c0_42, %c0_43, %c0_44] : memref<9x16x16xbf16, #tpu.memory_space<vmem>>, vector<1x16x16xbf16>
    %75 = vector.shape_cast %74 : vector<1x16x16xbf16> to vector<16x16xbf16>
    %76 = arith.extf %75 : vector<16x16xbf16> to vector<16x16xf32>
    %c19_i32_45 = arith.constant 19 : i32
    %77 = tpu.dynamic_rotate %64 by %c19_i32_45 dim 1 : vector<16x384xf32>, i32 -> vector<16x384xf32>
    %cst_46 = arith.constant dense<0.000000e+00> : vector<16x384xf32>
    %78 = tpu.matmul %76, %77, %cst_46 {dimension_numbers = #tpu.dot_dimension_numbers<[1], [0], [0], [1], [0, 0, 1, 1], [], []>} : vector<16x16xf32>, vector<16x384xf32>, vector<16x384xf32> -> vector<16x384xf32>
    %79 = arith.addf %73, %78 : vector<16x384xf32>
    %c1_47 = arith.constant 1 : index
    %c0_48 = arith.constant 0 : index
    %c0_49 = arith.constant 0 : index
    %80 = vector.load %arg4[%c1_47, %c0_48, %c0_49] : memref<9x16x16xbf16, #tpu.memory_space<vmem>>, vector<1x16x16xbf16>
    %81 = vector.shape_cast %80 : vector<1x16x16xbf16> to vector<16x16xbf16>
    %82 = arith.extf %81 : vector<16x16xbf16> to vector<16x16xf32>
    %c18_i32_50 = arith.constant 18 : i32
    %83 = tpu.dynamic_rotate %64 by %c18_i32_50 dim 1 : vector<16x384xf32>, i32 -> vector<16x384xf32>
    %cst_51 = arith.constant dense<0.000000e+00> : vector<16x384xf32>
    %84 = tpu.matmul %82, %83, %cst_51 {dimension_numbers = #tpu.dot_dimension_numbers<[1], [0], [0], [1], [0, 0, 1, 1], [], []>} : vector<16x16xf32>, vector<16x384xf32>, vector<16x384xf32> -> vector<16x384xf32>
    %85 = arith.addf %79, %84 : vector<16x384xf32>
    %c2_52 = arith.constant 2 : index
    %c0_53 = arith.constant 0 : index
    %c0_54 = arith.constant 0 : index
    %86 = vector.load %arg4[%c2_52, %c0_53, %c0_54] : memref<9x16x16xbf16, #tpu.memory_space<vmem>>, vector<1x16x16xbf16>
    %87 = vector.shape_cast %86 : vector<1x16x16xbf16> to vector<16x16xbf16>
    %88 = arith.extf %87 : vector<16x16xbf16> to vector<16x16xf32>
    %c17_i32_55 = arith.constant 17 : i32
    %89 = tpu.dynamic_rotate %64 by %c17_i32_55 dim 1 : vector<16x384xf32>, i32 -> vector<16x384xf32>
    %cst_56 = arith.constant dense<0.000000e+00> : vector<16x384xf32>
    %90 = tpu.matmul %88, %89, %cst_56 {dimension_numbers = #tpu.dot_dimension_numbers<[1], [0], [0], [1], [0, 0, 1, 1], [], []>} : vector<16x16xf32>, vector<16x384xf32>, vector<16x384xf32> -> vector<16x384xf32>
    %91 = arith.addf %85, %90 : vector<16x384xf32>
    %c3_57 = arith.constant 3 : index
    %c0_58 = arith.constant 0 : index
    %c0_59 = arith.constant 0 : index
    %92 = vector.load %arg4[%c3_57, %c0_58, %c0_59] : memref<9x16x16xbf16, #tpu.memory_space<vmem>>, vector<1x16x16xbf16>
    %93 = vector.shape_cast %92 : vector<1x16x16xbf16> to vector<16x16xbf16>
    %94 = arith.extf %93 : vector<16x16xbf16> to vector<16x16xf32>
    %c1_i32_60 = arith.constant 1 : i32
    %95 = tpu.dynamic_rotate %64 by %c1_i32_60 dim 1 : vector<16x384xf32>, i32 -> vector<16x384xf32>
    %cst_61 = arith.constant dense<0.000000e+00> : vector<16x384xf32>
    %96 = tpu.matmul %94, %95, %cst_61 {dimension_numbers = #tpu.dot_dimension_numbers<[1], [0], [0], [1], [0, 0, 1, 1], [], []>} : vector<16x16xf32>, vector<16x384xf32>, vector<16x384xf32> -> vector<16x384xf32>
    %97 = arith.addf %91, %96 : vector<16x384xf32>
    %c4_62 = arith.constant 4 : index
    %c0_63 = arith.constant 0 : index
    %c0_64 = arith.constant 0 : index
    %98 = vector.load %arg4[%c4_62, %c0_63, %c0_64] : memref<9x16x16xbf16, #tpu.memory_space<vmem>>, vector<1x16x16xbf16>
    %99 = vector.shape_cast %98 : vector<1x16x16xbf16> to vector<16x16xbf16>
    %100 = arith.extf %99 : vector<16x16xbf16> to vector<16x16xf32>
    %cst_65 = arith.constant dense<0.000000e+00> : vector<16x384xf32>
    %101 = tpu.matmul %100, %64, %cst_65 {dimension_numbers = #tpu.dot_dimension_numbers<[1], [0], [0], [1], [0, 0, 1, 1], [], []>} : vector<16x16xf32>, vector<16x384xf32>, vector<16x384xf32> -> vector<16x384xf32>
    %102 = arith.addf %97, %101 : vector<16x384xf32>
    %c5_66 = arith.constant 5 : index
    %c0_67 = arith.constant 0 : index
    %c0_68 = arith.constant 0 : index
    %103 = vector.load %arg4[%c5_66, %c0_67, %c0_68] : memref<9x16x16xbf16, #tpu.memory_space<vmem>>, vector<1x16x16xbf16>
    %104 = vector.shape_cast %103 : vector<1x16x16xbf16> to vector<16x16xbf16>
    %105 = arith.extf %104 : vector<16x16xbf16> to vector<16x16xf32>
    %c383_i32_69 = arith.constant 383 : i32
    %106 = tpu.dynamic_rotate %64 by %c383_i32_69 dim 1 : vector<16x384xf32>, i32 -> vector<16x384xf32>
    %cst_70 = arith.constant dense<0.000000e+00> : vector<16x384xf32>
    %107 = tpu.matmul %105, %106, %cst_70 {dimension_numbers = #tpu.dot_dimension_numbers<[1], [0], [0], [1], [0, 0, 1, 1], [], []>} : vector<16x16xf32>, vector<16x384xf32>, vector<16x384xf32> -> vector<16x384xf32>
    %108 = arith.addf %102, %107 : vector<16x384xf32>
    %c6_71 = arith.constant 6 : index
    %c0_72 = arith.constant 0 : index
    %c0_73 = arith.constant 0 : index
    %109 = vector.load %arg4[%c6_71, %c0_72, %c0_73] : memref<9x16x16xbf16, #tpu.memory_space<vmem>>, vector<1x16x16xbf16>
    %110 = vector.shape_cast %109 : vector<1x16x16xbf16> to vector<16x16xbf16>
    %111 = arith.extf %110 : vector<16x16xbf16> to vector<16x16xf32>
    %c367_i32_74 = arith.constant 367 : i32
    %112 = tpu.dynamic_rotate %64 by %c367_i32_74 dim 1 : vector<16x384xf32>, i32 -> vector<16x384xf32>
    %cst_75 = arith.constant dense<0.000000e+00> : vector<16x384xf32>
    %113 = tpu.matmul %111, %112, %cst_75 {dimension_numbers = #tpu.dot_dimension_numbers<[1], [0], [0], [1], [0, 0, 1, 1], [], []>} : vector<16x16xf32>, vector<16x384xf32>, vector<16x384xf32> -> vector<16x384xf32>
    %114 = arith.addf %108, %113 : vector<16x384xf32>
    %c7_76 = arith.constant 7 : index
    %c0_77 = arith.constant 0 : index
    %c0_78 = arith.constant 0 : index
    %115 = vector.load %arg4[%c7_76, %c0_77, %c0_78] : memref<9x16x16xbf16, #tpu.memory_space<vmem>>, vector<1x16x16xbf16>
    %116 = vector.shape_cast %115 : vector<1x16x16xbf16> to vector<16x16xbf16>
    %117 = arith.extf %116 : vector<16x16xbf16> to vector<16x16xf32>
    %c366_i32_79 = arith.constant 366 : i32
    %118 = tpu.dynamic_rotate %64 by %c366_i32_79 dim 1 : vector<16x384xf32>, i32 -> vector<16x384xf32>
    %cst_80 = arith.constant dense<0.000000e+00> : vector<16x384xf32>
    %119 = tpu.matmul %117, %118, %cst_80 {dimension_numbers = #tpu.dot_dimension_numbers<[1], [0], [0], [1], [0, 0, 1, 1], [], []>} : vector<16x16xf32>, vector<16x384xf32>, vector<16x384xf32> -> vector<16x384xf32>
    %120 = arith.addf %114, %119 : vector<16x384xf32>
    %c8_81 = arith.constant 8 : index
    %c0_82 = arith.constant 0 : index
    %c0_83 = arith.constant 0 : index
    %121 = vector.load %arg4[%c8_81, %c0_82, %c0_83] : memref<9x16x16xbf16, #tpu.memory_space<vmem>>, vector<1x16x16xbf16>
    %122 = vector.shape_cast %121 : vector<1x16x16xbf16> to vector<16x16xbf16>
    %123 = arith.extf %122 : vector<16x16xbf16> to vector<16x16xf32>
    %c365_i32_84 = arith.constant 365 : i32
    %124 = tpu.dynamic_rotate %64 by %c365_i32_84 dim 1 : vector<16x384xf32>, i32 -> vector<16x384xf32>
    %cst_85 = arith.constant dense<0.000000e+00> : vector<16x384xf32>
    %125 = tpu.matmul %123, %124, %cst_85 {dimension_numbers = #tpu.dot_dimension_numbers<[1], [0], [0], [1], [0, 0, 1, 1], [], []>} : vector<16x16xf32>, vector<16x384xf32>, vector<16x384xf32> -> vector<16x384xf32>
    %126 = arith.addf %120, %125 : vector<16x384xf32>
    %cst_86 = arith.constant 0.000000e+00 : f32
    %127 = vector.broadcast %cst_86 : f32 to vector<16x384xf32>
    %128 = arith.maximumf %126, %127 : vector<16x384xf32>
    %129 = vector.broadcast %3 : vector<1x384xf32> to vector<16x384xf32>
    %130 = arith.mulf %128, %129 : vector<16x384xf32>
    %131 = arith.truncf %130 : vector<16x384xf32> to vector<16x384xbf16>
    %c0_87 = arith.constant 0 : index
    %c0_88 = arith.constant 0 : index
    %c0_89 = arith.constant 0 : index
    %132 = vector.load %arg9[%c0_87, %c0_88, %c0_89] : memref<1x16x384xbf16, #tpu.memory_space<vmem>>, vector<1x16x384xbf16>
    %133 = vector.shape_cast %132 : vector<1x16x384xbf16> to vector<16x384xbf16>
    %134 = vector.shape_cast %131 : vector<16x384xbf16> to vector<1x16x384xbf16>
    tpu.vector_store %arg9[%c0_87, %c0_88, %c0_89], %134 {strides = array<i32>} : memref<1x16x384xbf16, #tpu.memory_space<vmem>>, vector<1x16x384xbf16>,
    return
  }
  func.func @transform_0(%arg0: i32) -> (i32, i32, i32) {
    %c0_i32 = arith.constant 0 : i32
    %c0_i32_0 = arith.constant 0 : i32
    %c0_i32_1 = arith.constant 0 : i32
    return %arg0, %c0_i32, %c0_i32_0 : i32, i32, i32
  }
  func.func @transform_1(%arg0: i32) -> (i32, i32, i32) {
    %c0_i32 = arith.constant 0 : i32
    %c0_i32_0 = arith.constant 0 : i32
    %c0_i32_1 = arith.constant 0 : i32
    %c0_i32_2 = arith.constant 0 : i32
    return %c0_i32, %c0_i32_0, %c0_i32_1 : i32, i32, i32
  }
  func.func @transform_2(%arg0: i32) -> (i32, i32) {
    %c0_i32 = arith.constant 0 : i32
    %c0_i32_0 = arith.constant 0 : i32
    %c0_i32_1 = arith.constant 0 : i32
    return %c0_i32, %c0_i32_0 : i32, i32
  }
  func.func @transform_3(%arg0: i32) -> (i32, i32, i32) {
    %c0_i32 = arith.constant 0 : i32
    %c0_i32_0 = arith.constant 0 : i32
    %c0_i32_1 = arith.constant 0 : i32
    %c0_i32_2 = arith.constant 0 : i32
    return %c0_i32, %c0_i32_0, %c0_i32_1 : i32, i32, i32
  }
  func.func @transform_4(%arg0: i32) -> (i32, i32) {
    %c0_i32 = arith.constant 0 : i32
    %c0_i32_0 = arith.constant 0 : i32
    %c0_i32_1 = arith.constant 0 : i32
    return %c0_i32, %c0_i32_0 : i32, i32
  }
  func.func @transform_5(%arg0: i32) -> (i32, i32) {
    %c0_i32 = arith.constant 0 : i32
    %c0_i32_0 = arith.constant 0 : i32
    %c0_i32_1 = arith.constant 0 : i32
    return %c0_i32, %c0_i32_0 : i32, i32
  }
  func.func @transform_6(%arg0: i32) -> (i32, i32) {
    %c0_i32 = arith.constant 0 : i32
    %c0_i32_0 = arith.constant 0 : i32
    %c0_i32_1 = arith.constant 0 : i32
    return %c0_i32, %c0_i32_0 : i32, i32
  }
  func.func @transform_7(%arg0: i32) -> (i32, i32) {
    %c0_i32 = arith.constant 0 : i32
    %c0_i32_0 = arith.constant 0 : i32
    %c0_i32_1 = arith.constant 0 : i32
    return %c0_i32, %c0_i32_0 : i32, i32
  }
  func.func @transform_8(%arg0: i32) -> (i32, i32, i32) {
    %c0_i32 = arith.constant 0 : i32
    %c0_i32_0 = arith.constant 0 : i32
    %c0_i32_1 = arith.constant 0 : i32
    return %arg0, %c0_i32, %c0_i32_0 : i32, i32, i32
  }
}

module attributes {stable_mosaic.version = 11 : i64} {
  func.func @_residual_conv_kernel(%arg0: i32, %arg1: memref<1x24x1280xbf16, #tpu.memory_space<vmem>>, %arg2: memref<9x8x24xbf16, #tpu.memory_space<vmem>>, %arg3: memref<8x1xf32, #tpu.memory_space<vmem>>, %arg4: memref<9x8x8xbf16, #tpu.memory_space<vmem>>, %arg5: memref<8x1xf32, #tpu.memory_space<vmem>>, %arg6: memref<8x24xbf16, #tpu.memory_space<vmem>>, %arg7: memref<8x1xf32, #tpu.memory_space<vmem>>, %arg8: memref<1x1280xf32, #tpu.memory_space<vmem>>, %arg9: memref<1x8x1280xbf16, #tpu.memory_space<vmem>>) attributes {dimension_semantics = [#tpu.dimension_semantics<parallel>], iteration_bounds = array<i64: 2>, scalar_prefetch = 0 : i64, scratch_operands = 0 : i64, tpu.core_type = #tpu.core_type<tc>, window_params = [{transform_indices = @transform_0, window_bounds = array<i64: 1, 24, 1280>}, {pipeline_mode = #tpu.pipeline_mode<synchronous>, transform_indices = @transform_1, window_bounds = array<i64: 9, 8, 24>}, {pipeline_mode = #tpu.pipeline_mode<synchronous>, transform_indices = @transform_2, window_bounds = array<i64: 8, 1>}, {pipeline_mode = #tpu.pipeline_mode<synchronous>, transform_indices = @transform_3, window_bounds = array<i64: 9, 8, 8>}, {pipeline_mode = #tpu.pipeline_mode<synchronous>, transform_indices = @transform_4, window_bounds = array<i64: 8, 1>}, {pipeline_mode = #tpu.pipeline_mode<synchronous>, transform_indices = @transform_5, window_bounds = array<i64: 8, 24>}, {pipeline_mode = #tpu.pipeline_mode<synchronous>, transform_indices = @transform_6, window_bounds = array<i64: 8, 1>}, {pipeline_mode = #tpu.pipeline_mode<synchronous>, transform_indices = @transform_7, window_bounds = array<i64: 1, 1280>}, {transform_indices = @transform_8, window_bounds = array<i64: 1, 8, 1280>}]} {
    %c0 = arith.constant 0 : index
    %c0_0 = arith.constant 0 : index
    %c0_1 = arith.constant 0 : index
    %0 = vector.load %arg1[%c0, %c0_0, %c0_1] : memref<1x24x1280xbf16, #tpu.memory_space<vmem>>, vector<1x24x1280xbf16>
    %1 = vector.shape_cast %0 : vector<1x24x1280xbf16> to vector<24x1280xbf16>
    %2 = arith.extf %1 : vector<24x1280xbf16> to vector<24x1280xf32>
    %c0_2 = arith.constant 0 : index
    %c0_3 = arith.constant 0 : index
    %3 = vector.load %arg8[%c0_2, %c0_3] : memref<1x1280xf32, #tpu.memory_space<vmem>>, vector<1x1280xf32>
    %cst = arith.constant 0.000000e+00 : f32
    %4 = vector.broadcast %cst : f32 to vector<8x1280xf32>
    %c0_4 = arith.constant 0 : index
    %c0_5 = arith.constant 0 : index
    %c0_6 = arith.constant 0 : index
    %5 = vector.load %arg2[%c0_4, %c0_5, %c0_6] : memref<9x8x24xbf16, #tpu.memory_space<vmem>>, vector<1x8x24xbf16>
    %6 = vector.shape_cast %5 : vector<1x8x24xbf16> to vector<8x24xbf16>
    %7 = arith.extf %6 : vector<8x24xbf16> to vector<8x24xf32>
    %c35_i32 = arith.constant 35 : i32
    %8 = tpu.dynamic_rotate %2 by %c35_i32 dim 1 : vector<24x1280xf32>, i32 -> vector<24x1280xf32>
    %cst_7 = arith.constant dense<0.000000e+00> : vector<8x1280xf32>
    %9 = tpu.matmul %7, %8, %cst_7 {dimension_numbers = #tpu.dot_dimension_numbers<[1], [0], [0], [1], [0, 0, 1, 1], [], []>} : vector<8x24xf32>, vector<24x1280xf32>, vector<8x1280xf32> -> vector<8x1280xf32>
    %10 = arith.addf %4, %9 : vector<8x1280xf32>
    %c1 = arith.constant 1 : index
    %c0_8 = arith.constant 0 : index
    %c0_9 = arith.constant 0 : index
    %11 = vector.load %arg2[%c1, %c0_8, %c0_9] : memref<9x8x24xbf16, #tpu.memory_space<vmem>>, vector<1x8x24xbf16>
    %12 = vector.shape_cast %11 : vector<1x8x24xbf16> to vector<8x24xbf16>
    %13 = arith.extf %12 : vector<8x24xbf16> to vector<8x24xf32>
    %c34_i32 = arith.constant 34 : i32
    %14 = tpu.dynamic_rotate %2 by %c34_i32 dim 1 : vector<24x1280xf32>, i32 -> vector<24x1280xf32>
    %cst_10 = arith.constant dense<0.000000e+00> : vector<8x1280xf32>
    %15 = tpu.matmul %13, %14, %cst_10 {dimension_numbers = #tpu.dot_dimension_numbers<[1], [0], [0], [1], [0, 0, 1, 1], [], []>} : vector<8x24xf32>, vector<24x1280xf32>, vector<8x1280xf32> -> vector<8x1280xf32>
    %16 = arith.addf %10, %15 : vector<8x1280xf32>
    %c2 = arith.constant 2 : index
    %c0_11 = arith.constant 0 : index
    %c0_12 = arith.constant 0 : index
    %17 = vector.load %arg2[%c2, %c0_11, %c0_12] : memref<9x8x24xbf16, #tpu.memory_space<vmem>>, vector<1x8x24xbf16>
    %18 = vector.shape_cast %17 : vector<1x8x24xbf16> to vector<8x24xbf16>
    %19 = arith.extf %18 : vector<8x24xbf16> to vector<8x24xf32>
    %c33_i32 = arith.constant 33 : i32
    %20 = tpu.dynamic_rotate %2 by %c33_i32 dim 1 : vector<24x1280xf32>, i32 -> vector<24x1280xf32>
    %cst_13 = arith.constant dense<0.000000e+00> : vector<8x1280xf32>
    %21 = tpu.matmul %19, %20, %cst_13 {dimension_numbers = #tpu.dot_dimension_numbers<[1], [0], [0], [1], [0, 0, 1, 1], [], []>} : vector<8x24xf32>, vector<24x1280xf32>, vector<8x1280xf32> -> vector<8x1280xf32>
    %22 = arith.addf %16, %21 : vector<8x1280xf32>
    %c3 = arith.constant 3 : index
    %c0_14 = arith.constant 0 : index
    %c0_15 = arith.constant 0 : index
    %23 = vector.load %arg2[%c3, %c0_14, %c0_15] : memref<9x8x24xbf16, #tpu.memory_space<vmem>>, vector<1x8x24xbf16>
    %24 = vector.shape_cast %23 : vector<1x8x24xbf16> to vector<8x24xbf16>
    %25 = arith.extf %24 : vector<8x24xbf16> to vector<8x24xf32>
    %c1_i32 = arith.constant 1 : i32
    %26 = tpu.dynamic_rotate %2 by %c1_i32 dim 1 : vector<24x1280xf32>, i32 -> vector<24x1280xf32>
    %cst_16 = arith.constant dense<0.000000e+00> : vector<8x1280xf32>
    %27 = tpu.matmul %25, %26, %cst_16 {dimension_numbers = #tpu.dot_dimension_numbers<[1], [0], [0], [1], [0, 0, 1, 1], [], []>} : vector<8x24xf32>, vector<24x1280xf32>, vector<8x1280xf32> -> vector<8x1280xf32>
    %28 = arith.addf %22, %27 : vector<8x1280xf32>
    %c4 = arith.constant 4 : index
    %c0_17 = arith.constant 0 : index
    %c0_18 = arith.constant 0 : index
    %29 = vector.load %arg2[%c4, %c0_17, %c0_18] : memref<9x8x24xbf16, #tpu.memory_space<vmem>>, vector<1x8x24xbf16>
    %30 = vector.shape_cast %29 : vector<1x8x24xbf16> to vector<8x24xbf16>
    %31 = arith.extf %30 : vector<8x24xbf16> to vector<8x24xf32>
    %cst_19 = arith.constant dense<0.000000e+00> : vector<8x1280xf32>
    %32 = tpu.matmul %31, %2, %cst_19 {dimension_numbers = #tpu.dot_dimension_numbers<[1], [0], [0], [1], [0, 0, 1, 1], [], []>} : vector<8x24xf32>, vector<24x1280xf32>, vector<8x1280xf32> -> vector<8x1280xf32>
    %33 = arith.addf %28, %32 : vector<8x1280xf32>
    %c5 = arith.constant 5 : index
    %c0_20 = arith.constant 0 : index
    %c0_21 = arith.constant 0 : index
    %34 = vector.load %arg2[%c5, %c0_20, %c0_21] : memref<9x8x24xbf16, #tpu.memory_space<vmem>>, vector<1x8x24xbf16>
    %35 = vector.shape_cast %34 : vector<1x8x24xbf16> to vector<8x24xbf16>
    %36 = arith.extf %35 : vector<8x24xbf16> to vector<8x24xf32>
    %c1279_i32 = arith.constant 1279 : i32
    %37 = tpu.dynamic_rotate %2 by %c1279_i32 dim 1 : vector<24x1280xf32>, i32 -> vector<24x1280xf32>
    %cst_22 = arith.constant dense<0.000000e+00> : vector<8x1280xf32>
    %38 = tpu.matmul %36, %37, %cst_22 {dimension_numbers = #tpu.dot_dimension_numbers<[1], [0], [0], [1], [0, 0, 1, 1], [], []>} : vector<8x24xf32>, vector<24x1280xf32>, vector<8x1280xf32> -> vector<8x1280xf32>
    %39 = arith.addf %33, %38 : vector<8x1280xf32>
    %c6 = arith.constant 6 : index
    %c0_23 = arith.constant 0 : index
    %c0_24 = arith.constant 0 : index
    %40 = vector.load %arg2[%c6, %c0_23, %c0_24] : memref<9x8x24xbf16, #tpu.memory_space<vmem>>, vector<1x8x24xbf16>
    %41 = vector.shape_cast %40 : vector<1x8x24xbf16> to vector<8x24xbf16>
    %42 = arith.extf %41 : vector<8x24xbf16> to vector<8x24xf32>
    %c1247_i32 = arith.constant 1247 : i32
    %43 = tpu.dynamic_rotate %2 by %c1247_i32 dim 1 : vector<24x1280xf32>, i32 -> vector<24x1280xf32>
    %cst_25 = arith.constant dense<0.000000e+00> : vector<8x1280xf32>
    %44 = tpu.matmul %42, %43, %cst_25 {dimension_numbers = #tpu.dot_dimension_numbers<[1], [0], [0], [1], [0, 0, 1, 1], [], []>} : vector<8x24xf32>, vector<24x1280xf32>, vector<8x1280xf32> -> vector<8x1280xf32>
    %45 = arith.addf %39, %44 : vector<8x1280xf32>
    %c7 = arith.constant 7 : index
    %c0_26 = arith.constant 0 : index
    %c0_27 = arith.constant 0 : index
    %46 = vector.load %arg2[%c7, %c0_26, %c0_27] : memref<9x8x24xbf16, #tpu.memory_space<vmem>>, vector<1x8x24xbf16>
    %47 = vector.shape_cast %46 : vector<1x8x24xbf16> to vector<8x24xbf16>
    %48 = arith.extf %47 : vector<8x24xbf16> to vector<8x24xf32>
    %c1246_i32 = arith.constant 1246 : i32
    %49 = tpu.dynamic_rotate %2 by %c1246_i32 dim 1 : vector<24x1280xf32>, i32 -> vector<24x1280xf32>
    %cst_28 = arith.constant dense<0.000000e+00> : vector<8x1280xf32>
    %50 = tpu.matmul %48, %49, %cst_28 {dimension_numbers = #tpu.dot_dimension_numbers<[1], [0], [0], [1], [0, 0, 1, 1], [], []>} : vector<8x24xf32>, vector<24x1280xf32>, vector<8x1280xf32> -> vector<8x1280xf32>
    %51 = arith.addf %45, %50 : vector<8x1280xf32>
    %c8 = arith.constant 8 : index
    %c0_29 = arith.constant 0 : index
    %c0_30 = arith.constant 0 : index
    %52 = vector.load %arg2[%c8, %c0_29, %c0_30] : memref<9x8x24xbf16, #tpu.memory_space<vmem>>, vector<1x8x24xbf16>
    %53 = vector.shape_cast %52 : vector<1x8x24xbf16> to vector<8x24xbf16>
    %54 = arith.extf %53 : vector<8x24xbf16> to vector<8x24xf32>
    %c1245_i32 = arith.constant 1245 : i32
    %55 = tpu.dynamic_rotate %2 by %c1245_i32 dim 1 : vector<24x1280xf32>, i32 -> vector<24x1280xf32>
    %cst_31 = arith.constant dense<0.000000e+00> : vector<8x1280xf32>
    %56 = tpu.matmul %54, %55, %cst_31 {dimension_numbers = #tpu.dot_dimension_numbers<[1], [0], [0], [1], [0, 0, 1, 1], [], []>} : vector<8x24xf32>, vector<24x1280xf32>, vector<8x1280xf32> -> vector<8x1280xf32>
    %57 = arith.addf %51, %56 : vector<8x1280xf32>
    %c0_32 = arith.constant 0 : index
    %c0_33 = arith.constant 0 : index
    %58 = vector.load %arg3[%c0_32, %c0_33] : memref<8x1xf32, #tpu.memory_space<vmem>>, vector<8x1xf32>
    %59 = vector.broadcast %58 : vector<8x1xf32> to vector<8x1280xf32>
    %60 = arith.addf %57, %59 : vector<8x1280xf32>
    %cst_34 = arith.constant 0.000000e+00 : f32
    %61 = vector.broadcast %cst_34 : f32 to vector<8x1280xf32>
    %62 = arith.maximumf %60, %61 : vector<8x1280xf32>
    %63 = vector.broadcast %3 : vector<1x1280xf32> to vector<8x1280xf32>
    %64 = arith.mulf %62, %63 : vector<8x1280xf32>
    %c0_35 = arith.constant 0 : index
    %c0_36 = arith.constant 0 : index
    %65 = vector.load %arg6[%c0_35, %c0_36] : memref<8x24xbf16, #tpu.memory_space<vmem>>, vector<8x24xbf16>
    %66 = arith.extf %65 : vector<8x24xbf16> to vector<8x24xf32>
    %cst_37 = arith.constant dense<0.000000e+00> : vector<8x1280xf32>
    %67 = tpu.matmul %66, %2, %cst_37 {dimension_numbers = #tpu.dot_dimension_numbers<[1], [0], [0], [1], [0, 0, 1, 1], [], []>} : vector<8x24xf32>, vector<24x1280xf32>, vector<8x1280xf32> -> vector<8x1280xf32>
    %c0_38 = arith.constant 0 : index
    %c0_39 = arith.constant 0 : index
    %68 = vector.load %arg7[%c0_38, %c0_39] : memref<8x1xf32, #tpu.memory_space<vmem>>, vector<8x1xf32>
    %69 = vector.broadcast %68 : vector<8x1xf32> to vector<8x1280xf32>
    %70 = arith.addf %67, %69 : vector<8x1280xf32>
    %c0_40 = arith.constant 0 : index
    %c0_41 = arith.constant 0 : index
    %71 = vector.load %arg5[%c0_40, %c0_41] : memref<8x1xf32, #tpu.memory_space<vmem>>, vector<8x1xf32>
    %72 = vector.broadcast %71 : vector<8x1xf32> to vector<8x1280xf32>
    %73 = arith.addf %70, %72 : vector<8x1280xf32>
    %c0_42 = arith.constant 0 : index
    %c0_43 = arith.constant 0 : index
    %c0_44 = arith.constant 0 : index
    %74 = vector.load %arg4[%c0_42, %c0_43, %c0_44] : memref<9x8x8xbf16, #tpu.memory_space<vmem>>, vector<1x8x8xbf16>
    %75 = vector.shape_cast %74 : vector<1x8x8xbf16> to vector<8x8xbf16>
    %76 = arith.extf %75 : vector<8x8xbf16> to vector<8x8xf32>
    %c35_i32_45 = arith.constant 35 : i32
    %77 = tpu.dynamic_rotate %64 by %c35_i32_45 dim 1 : vector<8x1280xf32>, i32 -> vector<8x1280xf32>
    %cst_46 = arith.constant dense<0.000000e+00> : vector<8x1280xf32>
    %78 = tpu.matmul %76, %77, %cst_46 {dimension_numbers = #tpu.dot_dimension_numbers<[1], [0], [0], [1], [0, 0, 1, 1], [], []>} : vector<8x8xf32>, vector<8x1280xf32>, vector<8x1280xf32> -> vector<8x1280xf32>
    %79 = arith.addf %73, %78 : vector<8x1280xf32>
    %c1_47 = arith.constant 1 : index
    %c0_48 = arith.constant 0 : index
    %c0_49 = arith.constant 0 : index
    %80 = vector.load %arg4[%c1_47, %c0_48, %c0_49] : memref<9x8x8xbf16, #tpu.memory_space<vmem>>, vector<1x8x8xbf16>
    %81 = vector.shape_cast %80 : vector<1x8x8xbf16> to vector<8x8xbf16>
    %82 = arith.extf %81 : vector<8x8xbf16> to vector<8x8xf32>
    %c34_i32_50 = arith.constant 34 : i32
    %83 = tpu.dynamic_rotate %64 by %c34_i32_50 dim 1 : vector<8x1280xf32>, i32 -> vector<8x1280xf32>
    %cst_51 = arith.constant dense<0.000000e+00> : vector<8x1280xf32>
    %84 = tpu.matmul %82, %83, %cst_51 {dimension_numbers = #tpu.dot_dimension_numbers<[1], [0], [0], [1], [0, 0, 1, 1], [], []>} : vector<8x8xf32>, vector<8x1280xf32>, vector<8x1280xf32> -> vector<8x1280xf32>
    %85 = arith.addf %79, %84 : vector<8x1280xf32>
    %c2_52 = arith.constant 2 : index
    %c0_53 = arith.constant 0 : index
    %c0_54 = arith.constant 0 : index
    %86 = vector.load %arg4[%c2_52, %c0_53, %c0_54] : memref<9x8x8xbf16, #tpu.memory_space<vmem>>, vector<1x8x8xbf16>
    %87 = vector.shape_cast %86 : vector<1x8x8xbf16> to vector<8x8xbf16>
    %88 = arith.extf %87 : vector<8x8xbf16> to vector<8x8xf32>
    %c33_i32_55 = arith.constant 33 : i32
    %89 = tpu.dynamic_rotate %64 by %c33_i32_55 dim 1 : vector<8x1280xf32>, i32 -> vector<8x1280xf32>
    %cst_56 = arith.constant dense<0.000000e+00> : vector<8x1280xf32>
    %90 = tpu.matmul %88, %89, %cst_56 {dimension_numbers = #tpu.dot_dimension_numbers<[1], [0], [0], [1], [0, 0, 1, 1], [], []>} : vector<8x8xf32>, vector<8x1280xf32>, vector<8x1280xf32> -> vector<8x1280xf32>
    %91 = arith.addf %85, %90 : vector<8x1280xf32>
    %c3_57 = arith.constant 3 : index
    %c0_58 = arith.constant 0 : index
    %c0_59 = arith.constant 0 : index
    %92 = vector.load %arg4[%c3_57, %c0_58, %c0_59] : memref<9x8x8xbf16, #tpu.memory_space<vmem>>, vector<1x8x8xbf16>
    %93 = vector.shape_cast %92 : vector<1x8x8xbf16> to vector<8x8xbf16>
    %94 = arith.extf %93 : vector<8x8xbf16> to vector<8x8xf32>
    %c1_i32_60 = arith.constant 1 : i32
    %95 = tpu.dynamic_rotate %64 by %c1_i32_60 dim 1 : vector<8x1280xf32>, i32 -> vector<8x1280xf32>
    %cst_61 = arith.constant dense<0.000000e+00> : vector<8x1280xf32>
    %96 = tpu.matmul %94, %95, %cst_61 {dimension_numbers = #tpu.dot_dimension_numbers<[1], [0], [0], [1], [0, 0, 1, 1], [], []>} : vector<8x8xf32>, vector<8x1280xf32>, vector<8x1280xf32> -> vector<8x1280xf32>
    %97 = arith.addf %91, %96 : vector<8x1280xf32>
    %c4_62 = arith.constant 4 : index
    %c0_63 = arith.constant 0 : index
    %c0_64 = arith.constant 0 : index
    %98 = vector.load %arg4[%c4_62, %c0_63, %c0_64] : memref<9x8x8xbf16, #tpu.memory_space<vmem>>, vector<1x8x8xbf16>
    %99 = vector.shape_cast %98 : vector<1x8x8xbf16> to vector<8x8xbf16>
    %100 = arith.extf %99 : vector<8x8xbf16> to vector<8x8xf32>
    %cst_65 = arith.constant dense<0.000000e+00> : vector<8x1280xf32>
    %101 = tpu.matmul %100, %64, %cst_65 {dimension_numbers = #tpu.dot_dimension_numbers<[1], [0], [0], [1], [0, 0, 1, 1], [], []>} : vector<8x8xf32>, vector<8x1280xf32>, vector<8x1280xf32> -> vector<8x1280xf32>
    %102 = arith.addf %97, %101 : vector<8x1280xf32>
    %c5_66 = arith.constant 5 : index
    %c0_67 = arith.constant 0 : index
    %c0_68 = arith.constant 0 : index
    %103 = vector.load %arg4[%c5_66, %c0_67, %c0_68] : memref<9x8x8xbf16, #tpu.memory_space<vmem>>, vector<1x8x8xbf16>
    %104 = vector.shape_cast %103 : vector<1x8x8xbf16> to vector<8x8xbf16>
    %105 = arith.extf %104 : vector<8x8xbf16> to vector<8x8xf32>
    %c1279_i32_69 = arith.constant 1279 : i32
    %106 = tpu.dynamic_rotate %64 by %c1279_i32_69 dim 1 : vector<8x1280xf32>, i32 -> vector<8x1280xf32>
    %cst_70 = arith.constant dense<0.000000e+00> : vector<8x1280xf32>
    %107 = tpu.matmul %105, %106, %cst_70 {dimension_numbers = #tpu.dot_dimension_numbers<[1], [0], [0], [1], [0, 0, 1, 1], [], []>} : vector<8x8xf32>, vector<8x1280xf32>, vector<8x1280xf32> -> vector<8x1280xf32>
    %108 = arith.addf %102, %107 : vector<8x1280xf32>
    %c6_71 = arith.constant 6 : index
    %c0_72 = arith.constant 0 : index
    %c0_73 = arith.constant 0 : index
    %109 = vector.load %arg4[%c6_71, %c0_72, %c0_73] : memref<9x8x8xbf16, #tpu.memory_space<vmem>>, vector<1x8x8xbf16>
    %110 = vector.shape_cast %109 : vector<1x8x8xbf16> to vector<8x8xbf16>
    %111 = arith.extf %110 : vector<8x8xbf16> to vector<8x8xf32>
    %c1247_i32_74 = arith.constant 1247 : i32
    %112 = tpu.dynamic_rotate %64 by %c1247_i32_74 dim 1 : vector<8x1280xf32>, i32 -> vector<8x1280xf32>
    %cst_75 = arith.constant dense<0.000000e+00> : vector<8x1280xf32>
    %113 = tpu.matmul %111, %112, %cst_75 {dimension_numbers = #tpu.dot_dimension_numbers<[1], [0], [0], [1], [0, 0, 1, 1], [], []>} : vector<8x8xf32>, vector<8x1280xf32>, vector<8x1280xf32> -> vector<8x1280xf32>
    %114 = arith.addf %108, %113 : vector<8x1280xf32>
    %c7_76 = arith.constant 7 : index
    %c0_77 = arith.constant 0 : index
    %c0_78 = arith.constant 0 : index
    %115 = vector.load %arg4[%c7_76, %c0_77, %c0_78] : memref<9x8x8xbf16, #tpu.memory_space<vmem>>, vector<1x8x8xbf16>
    %116 = vector.shape_cast %115 : vector<1x8x8xbf16> to vector<8x8xbf16>
    %117 = arith.extf %116 : vector<8x8xbf16> to vector<8x8xf32>
    %c1246_i32_79 = arith.constant 1246 : i32
    %118 = tpu.dynamic_rotate %64 by %c1246_i32_79 dim 1 : vector<8x1280xf32>, i32 -> vector<8x1280xf32>
    %cst_80 = arith.constant dense<0.000000e+00> : vector<8x1280xf32>
    %119 = tpu.matmul %117, %118, %cst_80 {dimension_numbers = #tpu.dot_dimension_numbers<[1], [0], [0], [1], [0, 0, 1, 1], [], []>} : vector<8x8xf32>, vector<8x1280xf32>, vector<8x1280xf32> -> vector<8x1280xf32>
    %120 = arith.addf %114, %119 : vector<8x1280xf32>
    %c8_81 = arith.constant 8 : index
    %c0_82 = arith.constant 0 : index
    %c0_83 = arith.constant 0 : index
    %121 = vector.load %arg4[%c8_81, %c0_82, %c0_83] : memref<9x8x8xbf16, #tpu.memory_space<vmem>>, vector<1x8x8xbf16>
    %122 = vector.shape_cast %121 : vector<1x8x8xbf16> to vector<8x8xbf16>
    %123 = arith.extf %122 : vector<8x8xbf16> to vector<8x8xf32>
    %c1245_i32_84 = arith.constant 1245 : i32
    %124 = tpu.dynamic_rotate %64 by %c1245_i32_84 dim 1 : vector<8x1280xf32>, i32 -> vector<8x1280xf32>
    %cst_85 = arith.constant dense<0.000000e+00> : vector<8x1280xf32>
    %125 = tpu.matmul %123, %124, %cst_85 {dimension_numbers = #tpu.dot_dimension_numbers<[1], [0], [0], [1], [0, 0, 1, 1], [], []>} : vector<8x8xf32>, vector<8x1280xf32>, vector<8x1280xf32> -> vector<8x1280xf32>
    %126 = arith.addf %120, %125 : vector<8x1280xf32>
    %cst_86 = arith.constant 0.000000e+00 : f32
    %127 = vector.broadcast %cst_86 : f32 to vector<8x1280xf32>
    %128 = arith.maximumf %126, %127 : vector<8x1280xf32>
    %129 = vector.broadcast %3 : vector<1x1280xf32> to vector<8x1280xf32>
    %130 = arith.mulf %128, %129 : vector<8x1280xf32>
    %131 = arith.truncf %130 : vector<8x1280xf32> to vector<8x1280xbf16>
    %c0_87 = arith.constant 0 : index
    %c0_88 = arith.constant 0 : index
    %c0_89 = arith.constant 0 : index
    %132 = vector.load %arg9[%c0_87, %c0_88, %c0_89] : memref<1x8x1280xbf16, #tpu.memory_space<vmem>>, vector<1x8x1280xbf16>
    %133 = vector.shape_cast %132 : vector<1x8x1280xbf16> to vector<8x1280xbf16>
    %134 = vector.shape_cast %131 : vector<8x1280xbf16> to vector<1x8x1280xbf16>
    tpu.vector_store %arg9[%c0_87, %c0_88, %c0_89], %134 {strides = array<i32>} : memref<1x8x1280xbf16, #tpu.memory_space<vmem>>, vector<1x8x1280xbf16>,
    return
  }
  func.func @transform_0(%arg0: i32) -> (i32, i32, i32) {
    %c0_i32 = arith.constant 0 : i32
    %c0_i32_0 = arith.constant 0 : i32
    %c0_i32_1 = arith.constant 0 : i32
    return %arg0, %c0_i32, %c0_i32_0 : i32, i32, i32
  }
  func.func @transform_1(%arg0: i32) -> (i32, i32, i32) {
    %c0_i32 = arith.constant 0 : i32
    %c0_i32_0 = arith.constant 0 : i32
    %c0_i32_1 = arith.constant 0 : i32
    %c0_i32_2 = arith.constant 0 : i32
    return %c0_i32, %c0_i32_0, %c0_i32_1 : i32, i32, i32
  }
  func.func @transform_2(%arg0: i32) -> (i32, i32) {
    %c0_i32 = arith.constant 0 : i32
    %c0_i32_0 = arith.constant 0 : i32
    %c0_i32_1 = arith.constant 0 : i32
    return %c0_i32, %c0_i32_0 : i32, i32
  }
  func.func @transform_3(%arg0: i32) -> (i32, i32, i32) {
    %c0_i32 = arith.constant 0 : i32
    %c0_i32_0 = arith.constant 0 : i32
    %c0_i32_1 = arith.constant 0 : i32
    %c0_i32_2 = arith.constant 0 : i32
    return %c0_i32, %c0_i32_0, %c0_i32_1 : i32, i32, i32
  }
  func.func @transform_4(%arg0: i32) -> (i32, i32) {
    %c0_i32 = arith.constant 0 : i32
    %c0_i32_0 = arith.constant 0 : i32
    %c0_i32_1 = arith.constant 0 : i32
    return %c0_i32, %c0_i32_0 : i32, i32
  }
  func.func @transform_5(%arg0: i32) -> (i32, i32) {
    %c0_i32 = arith.constant 0 : i32
    %c0_i32_0 = arith.constant 0 : i32
    %c0_i32_1 = arith.constant 0 : i32
    return %c0_i32, %c0_i32_0 : i32, i32
  }
  func.func @transform_6(%arg0: i32) -> (i32, i32) {
    %c0_i32 = arith.constant 0 : i32
    %c0_i32_0 = arith.constant 0 : i32
    %c0_i32_1 = arith.constant 0 : i32
    return %c0_i32, %c0_i32_0 : i32, i32
  }
  func.func @transform_7(%arg0: i32) -> (i32, i32) {
    %c0_i32 = arith.constant 0 : i32
    %c0_i32_0 = arith.constant 0 : i32
    %c0_i32_1 = arith.constant 0 : i32
    return %c0_i32, %c0_i32_0 : i32, i32
  }
  func.func @transform_8(%arg0: i32) -> (i32, i32, i32) {
    %c0_i32 = arith.constant 0 : i32
    %c0_i32_0 = arith.constant 0 : i32
    %c0_i32_1 = arith.constant 0 : i32
    return %arg0, %c0_i32, %c0_i32_0 : i32, i32, i32
  }
}

module attributes {stable_mosaic.version = 11 : i64} {
  func.func @_feature_head_kernel(%arg0: i32, %arg1: memref<1x8x1280xbf16, #tpu.memory_space<vmem>>, %arg2: memref<4x8xbf16, #tpu.memory_space<vmem>>, %arg3: memref<4x1xf32, #tpu.memory_space<vmem>>, %arg4: memref<1x4x1280xf32, #tpu.memory_space<vmem>>) attributes {dimension_semantics = [#tpu.dimension_semantics<parallel>], iteration_bounds = array<i64: 2>, scalar_prefetch = 0 : i64, scratch_operands = 0 : i64, tpu.core_type = #tpu.core_type<tc>, window_params = [{transform_indices = @transform_0, window_bounds = array<i64: 1, 8, 1280>}, {pipeline_mode = #tpu.pipeline_mode<synchronous>, transform_indices = @transform_1, window_bounds = array<i64: 4, 8>}, {pipeline_mode = #tpu.pipeline_mode<synchronous>, transform_indices = @transform_2, window_bounds = array<i64: 4, 1>}, {transform_indices = @transform_3, window_bounds = array<i64: 1, 4, 1280>}]} {
    %c0 = arith.constant 0 : index
    %c0_0 = arith.constant 0 : index
    %0 = vector.load %arg2[%c0, %c0_0] : memref<4x8xbf16, #tpu.memory_space<vmem>>, vector<4x8xbf16>
    %1 = arith.extf %0 : vector<4x8xbf16> to vector<4x8xf32>
    %c0_1 = arith.constant 0 : index
    %c0_2 = arith.constant 0 : index
    %c0_3 = arith.constant 0 : index
    %2 = vector.load %arg1[%c0_1, %c0_2, %c0_3] : memref<1x8x1280xbf16, #tpu.memory_space<vmem>>, vector<1x8x1280xbf16>
    %3 = vector.shape_cast %2 : vector<1x8x1280xbf16> to vector<8x1280xbf16>
    %4 = arith.extf %3 : vector<8x1280xbf16> to vector<8x1280xf32>
    %cst = arith.constant dense<0.000000e+00> : vector<4x1280xf32>
    %5 = tpu.matmul %1, %4, %cst {dimension_numbers = #tpu.dot_dimension_numbers<[1], [0], [0], [1], [0, 0, 1, 1], [], []>} : vector<4x8xf32>, vector<8x1280xf32>, vector<4x1280xf32> -> vector<4x1280xf32>
    %c0_4 = arith.constant 0 : index
    %c0_5 = arith.constant 0 : index
    %6 = vector.load %arg3[%c0_4, %c0_5] : memref<4x1xf32, #tpu.memory_space<vmem>>, vector<4x1xf32>
    %7 = vector.broadcast %6 : vector<4x1xf32> to vector<4x1280xf32>
    %8 = arith.addf %5, %7 : vector<4x1280xf32>
    %cst_6 = arith.constant 0.000000e+00 : f32
    %9 = vector.broadcast %cst_6 : f32 to vector<4x1280xf32>
    %10 = arith.subf %9, %8 : vector<4x1280xf32>
    %11 = math.exp %10 : vector<4x1280xf32>
    %cst_7 = arith.constant 1.000000e+00 : f32
    %12 = vector.broadcast %cst_7 : f32 to vector<4x1280xf32>
    %13 = arith.addf %12, %11 : vector<4x1280xf32>
    %14 = tpu.reciprocal %13 {approx = true} : vector<4x1280xf32> -> vector<4x1280xf32>
    %c0_8 = arith.constant 0 : index
    %c0_9 = arith.constant 0 : index
    %c0_10 = arith.constant 0 : index
    %15 = vector.load %arg4[%c0_8, %c0_9, %c0_10] : memref<1x4x1280xf32, #tpu.memory_space<vmem>>, vector<1x4x1280xf32>
    %16 = vector.shape_cast %15 : vector<1x4x1280xf32> to vector<4x1280xf32>
    %17 = vector.shape_cast %14 : vector<4x1280xf32> to vector<1x4x1280xf32>
    tpu.vector_store %arg4[%c0_8, %c0_9, %c0_10], %17 {strides = array<i32>} : memref<1x4x1280xf32, #tpu.memory_space<vmem>>, vector<1x4x1280xf32>,
    return
  }
  func.func @transform_0(%arg0: i32) -> (i32, i32, i32) {
    %c0_i32 = arith.constant 0 : i32
    %c0_i32_0 = arith.constant 0 : i32
    %c0_i32_1 = arith.constant 0 : i32
    return %arg0, %c0_i32, %c0_i32_0 : i32, i32, i32
  }
  func.func @transform_1(%arg0: i32) -> (i32, i32) {
    %c0_i32 = arith.constant 0 : i32
    %c0_i32_0 = arith.constant 0 : i32
    %c0_i32_1 = arith.constant 0 : i32
    return %c0_i32, %c0_i32_0 : i32, i32
  }
  func.func @transform_2(%arg0: i32) -> (i32, i32) {
    %c0_i32 = arith.constant 0 : i32
    %c0_i32_0 = arith.constant 0 : i32
    %c0_i32_1 = arith.constant 0 : i32
    return %c0_i32, %c0_i32_0 : i32, i32
  }
  func.func @transform_3(%arg0: i32) -> (i32, i32, i32) {
    %c0_i32 = arith.constant 0 : i32
    %c0_i32_0 = arith.constant 0 : i32
    %c0_i32_1 = arith.constant 0 : i32
    return %arg0, %c0_i32, %c0_i32_0 : i32, i32, i32
  }
}

</mosaic_0001>

<bundles_post_ra>
// kernel: sub.78
= control target key start
LH: loop header
LB: loop body
LE: loop exit
PB: predicated region body
PF: predicated region fallthrough
CT: control target
= control target key end

     0   :  { %s34_s0 = inlined_call_operand.vmem [shape: f32[8,1], index: 0, kind: input, shape index: {}]   ;;  %s35_s1 = inlined_call_operand.vmem [shape: f32[8,1], index: 1, kind: input, shape index: {}]   ;;  %s36_s2 = inlined_call_operand.vmem [shape: f32[8,1], index: 2, kind: output, shape index: {}]  }
   0x1   :  { %v3_v0 = vld [vmem:[%s34_s0] sm:$0xff] }
   0x2   :  { %v4_v1 = vld [vmem:[%s35_s1] sm:$0xff] }
   0x3   :  { %v7_v2 = vsub.f32 %v3_v0, %v4_v1 }
   0x5   :  { %9 = vst [vmem:[%s36_s2] sm:$0xff] %v7_v2 }

// kernel: unet_forward.6
= control target key start
LH: loop header
LB: loop body
LE: loop exit
PB: predicated region body
PF: predicated region fallthrough
CT: control target
= control target key end

     0   :  { %s8624_s27 = smov 0   ;;  %s9631_s0 = inlined_call_operand.vmem [shape: bf16[2,8,1280], index: 0, kind: input, shape index: {}]   ;;  %s9632_s1 = inlined_call_operand.vmem [shape: bf16[9,8,8], index: 1, kind: input, shape index: {}]   ;;  %s9633_s2 = inlined_call_operand.vmem [shape: f32[8,1], index: 2, kind: input, shape index: {}]   ;;  %s9634_s3 = inlined_call_operand.vmem [shape: bf16[9,8,8], index: 3, kind: input, shape index: {}]   ;;  %s9635_s4 = inlined_call_operand.vmem [shape: f32[8,1], index: 4, kind: input, shape index: {}]   ;;  %s9636_s5 = inlined_call_operand.vmem [shape: bf16[8,8], index: 5, kind: input, shape index: {}]   ;;  %s9637_s6 = inlined_call_operand.vmem [shape: f32[8,1], index: 6, kind: input, shape index: {}]   ;;  %s9638_s7 = inlined_call_operand.vmem [shape: f32[1,1280], index: 7, kind: input, shape index: {}]   ;;  %s9639_s8 = inlined_call_operand.vmem [shape: bf16[2,8,1280], index: 8, kind: output, shape index: {}]  }
   0x1 LB: > { %s8060_s28 = sadd.s32 4294967295, %s8567_s27   ;;  %p8064_p0 = scmp.ge.s32.totalorder %s8567_s27, 1  ;;  %s8567_s27 = sphi %s8624_s27, %s18_s27  }
   0x2   : > { %p262_p1 = scmp.lt.s32.totalorder %s8567_s27, 3 }
   0x4   : > { %p263_p2 = pnand %p8064_p0, %p262_p1 }
   0x5   : > { %p296_p3 = scmp.lt.s32.totalorder (!%p263_p2), %s8060_s28, 1  ;;  %v8569_v0 = vmov (!%p263_p2), 0.0   ;;  %s8570_s11 = smov (!%p263_p2), 34   ;;  %v345_v24 = vlaneseq (!%p263_p2)  ;;  %v8752_v30 = vld [vmem:[%s9632_s1 + $0x4] sm:$0xff] (!%p263_p2)   ;;  %vm392_vm1 = vcmask (!%p263_p2), 64512  }
   0x6   : > { %266 = sbr.rel (%p263_p2) target bundleno = 1056 (0x420), region = 52  ;;  %460 = vmatprep.mubr.f32.mxu0 (!%p263_p2), %v8569_v0  ;;  %4197 = vmatprep.mubr.f32.mxu1 (!%p263_p2), %v8569_v0  ;;  %s8571_s12 = smov (!%p263_p2), 35   ;;  %v360_v37 = vunpack.c.l.bf16 (!%p263_p2), %v8752_v30  ;;  %v323_v60 = vld [vmem:[%s9632_s1] sm:$0xf] (!%p263_p2) }
   0x7   : > { %s8572_s13 = smov (!%p263_p2), 33   ;;  %s8573_s14 = smov (!%p263_p2), 1   ;;  %v8746_v25 = vand.u32 (!%p263_p2), 127, %v345_v24 }
   0x8   : > { %s8574_s15 = smov (!%p263_p2), 127   ;;  %s8575_s16 = smov (!%p263_p2), 95  }
   0x9   : > { %s8576_s17 = smov (!%p263_p2), 94   ;;  %s8577_s18 = smov (!%p263_p2), 93   ;;  %vm381_vm0 = vcmp.lt.s32.totalorder (!%p263_p2), %v8746_v25, 34  ;;  %vm347_vm2 = vcmp.lt.s32.totalorder (!%p263_p2), %v8746_v25, 35  ;;  %vm1132_vm3 = vcmp.lt.s32.totalorder (!%p263_p2), %v8746_v25, 33  ;;  %vm1534_vm4 = vcmp.lt.s32.totalorder (!%p263_p2), %v8746_v25, 1 }
   0xa   : > { %vm2307_vm5 = vcmp.lt.s32.totalorder (!%p263_p2), %v8746_v25, 127  ;;  %vm2709_vm6 = vcmp.lt.s32.totalorder (!%p263_p2), %v8746_v25, 95  ;;  %vm3111_vm7 = vcmp.lt.s32.totalorder (!%p263_p2), %v8746_v25, 94  ;;  %vm3513_vm8 = vcmp.lt.s32.totalorder (!%p263_p2), %v8746_v25, 93 }
   0xd   : > { %s9641_s28 = smov (!%p296_p3, %s8060_s28), 1 }
   0xe   : > { %s8380_s29 = smul.u32 40, %s9641_s28 }
  0x10   : > { %s300_s10 = scalar_lea.vmem %s9631_s0, %s8380_s29  ;;  %s9613_s23 = scalar_lea.vmem %s9639_s8, %s8380_s29 }
  0x11   : > { %v307_v1 = vld [vmem:[%s300_s10 + $0x8] sm:$0xff]  ;;  %v306_v2 = vld [vmem:[%s300_s10] sm:$0xff]  ;;  %v308_v3 = vld [vmem:[%s300_s10 + $0x10] sm:$0xff] }
  0x12   : > { %v8642_v4 = vunpack.c.h.bf16 %v307_v1  ;;  %v8644_v5 = vunpack.c.l.bf16 %v307_v1  ;;  %v8646_v6 = vunpack.c.l.bf16 %v306_v2  ;;  %v8648_v7 = vunpack.c.h.bf16 %v306_v2  ;;  %v310_v8 = vld [vmem:[%s300_s10 + $0x20] sm:$0xff]  ;;  %v309_v12 = vld [vmem:[%s300_s10 + $0x18] sm:$0xff] }
  0x13   : > { %v8650_v9 = vunpack.c.l.bf16 %v308_v3  ;;  %v8652_v10 = vunpack.c.h.bf16 %v308_v3  ;;  %v8654_v11 = vunpack.c.h.bf16 %v310_v8  ;;  %v8666_v16 = vunpack.c.l.bf16 %v309_v12 }
  0x14   : > { %367 = vrot.lane.b32.xlu1 %v8642_v4, %s8570_s11  ;;  %v8399_v13 = vpack.i.bf16 %v8648_v7, %v8646_v6  ;;  %v8668_v17 = vunpack.c.h.bf16 %v309_v12  ;;  %v8672_v18 = vunpack.c.l.bf16 %v310_v8  ;;  %v8484_v20 = vpack.i.bf16 %v8642_v4, %v8646_v6 }
  0x15   : > { %v8409_v14 = vpack.i.bf16 %v8652_v10, %v8650_v9  ;;  %4133 = vmatprep.subr.mxu1 %v8652_v10  ;;  %v8404_v15 = vpack.i.bf16 %v8644_v5, %v8654_v11  ;;  %v8479_v21 = vpack.i.bf16 %v8644_v5, %v8648_v7  ;;  %v8489_v22 = vpack.i.bf16 %v8666_v16, %v8652_v10 }
  0x16   : > { %8400 = vrot.lane.b32.xlu0 %v8399_v13, %s8570_s11  ;;  %4134 = vmatpush1.msra.mxu1 %v8650_v9  ;;  %v8414_v19 = vpack.i.bf16 %v8668_v17, %v8666_v16  ;;  %v8494_v23 = vpack.i.bf16 %v8672_v18, %v8668_v17  ;;  %v324_v3 = vunpack.c.l.bf16 %v323_v60 }
  0x17   : > { %4204 = vmatprep.subr.mxu1 %v8668_v17 }
  0x18   : > { %8410 = vrot.lane.b32.xlu1 %v8409_v14, %s8570_s11 }
  0x1a   : > { %8405 = vrot.lane.b32.xlu0 %v8404_v15, %s8570_s11 }
  0x1c   : > { %377 = vrot.lane.b32.xlu1 %v8672_v18, %s8570_s11 }
  0x1e   : > { %8415 = vrot.lane.b32.xlu0 %v8414_v19, %s8570_s11 }
  0x20   : > { %8425 = vrot.lane.b32.xlu1 %v8404_v15, %s8571_s12 }
  0x22   : > { %8420 = vrot.lane.b32.xlu0 %v8399_v13, %s8571_s12 }
  0x24   : > { %8430 = vrot.lane.b32.xlu1 %v8409_v14, %s8571_s12 }
  0x26   : > { %331 = vrot.lane.b32.xlu0 %v8642_v4, %s8571_s12 }
  0x28   : > { %341 = vrot.lane.b32.xlu1 %v8672_v18, %s8571_s12 }
  0x2a   : > { %8435 = vrot.lane.b32.xlu0 %v8414_v19, %s8571_s12 }
  0x2c   : > { %8445 = vrot.lane.b32.xlu1 %v8404_v15, %s8572_s13 }
  0x2e   : > { %8440 = vrot.lane.b32.xlu0 %v8399_v13, %s8572_s13 }
  0x30   : > { %8450 = vrot.lane.b32.xlu1 %v8409_v14, %s8572_s13 }
  0x32   : > { %1118 = vrot.lane.b32.xlu0 %v8642_v4, %s8572_s13 }
  0x34   : > { %1128 = vrot.lane.b32.xlu1 %v8672_v18, %s8572_s13 }
  0x36   : > { %8455 = vrot.lane.b32.xlu0 %v8414_v19, %s8572_s13 }
  0x38   : > { %8465 = vrot.lane.b32.xlu1 %v8404_v15, %s8573_s14 }
  0x3a   : > { %8460 = vrot.lane.b32.xlu0 %v8399_v13, %s8573_s14 }
  0x3c   : > { %8470 = vrot.lane.b32.xlu1 %v8409_v14, %s8573_s14 }
  0x3e   : > { %1520 = vrot.lane.b32.xlu0 %v8642_v4, %s8573_s14 }
  0x40   : > { %1530 = vrot.lane.b32.xlu1 %v8672_v18, %s8573_s14 }
  0x42   : > { %8475 = vrot.lane.b32.xlu0 %v8414_v19, %s8573_s14 }
  0x44   : > { %8485 = vrot.lane.b32.xlu1 %v8484_v20, %s8574_s15 }
  0x46   : > { %8480 = vrot.lane.b32.xlu0 %v8479_v21, %s8574_s15 }
  0x48   : > { %8490 = vrot.lane.b32.xlu1 %v8489_v22, %s8574_s15 }
  0x4a   : > { %2295 = vrot.lane.b32.xlu0 %v8650_v9, %s8574_s15 }
  0x4c   : > { %2305 = vrot.lane.b32.xlu1 %v8654_v11, %s8574_s15 }
  0x4e   : > { %8495 = vrot.lane.b32.xlu0 %v8494_v23, %s8574_s15 }
  0x50   : > { %8505 = vrot.lane.b32.xlu1 %v8484_v20, %s8575_s16 }
  0x52   : > { %8500 = vrot.lane.b32.xlu0 %v8479_v21, %s8575_s16 }
  0x54   : > { %8510 = vrot.lane.b32.xlu1 %v8489_v22, %s8575_s16 }
  0x56   : > { %2697 = vrot.lane.b32.xlu0 %v8650_v9, %s8575_s16 }
  0x58   : > { %2707 = vrot.lane.b32.xlu1 %v8654_v11, %s8575_s16 }
  0x5a   : > { %8515 = vrot.lane.b32.xlu0 %v8494_v23, %s8575_s16 }
  0x5c   : > { %8525 = vrot.lane.b32.xlu1 %v8484_v20, %s8576_s17 }
  0x5e   : > { %8520 = vrot.lane.b32.xlu0 %v8479_v21, %s8576_s17 }
  0x60   : > { %8530 = vrot.lane.b32.xlu1 %v8489_v22, %s8576_s17 }
  0x62   : > { %3099 = vrot.lane.b32.xlu0 %v8650_v9, %s8576_s17 }
  0x64   : > { %3109 = vrot.lane.b32.xlu1 %v8654_v11, %s8576_s17 }
  0x66   : > { %8535 = vrot.lane.b32.xlu0 %v8494_v23, %s8576_s17 }
  0x68   : > { %8545 = vrot.lane.b32.xlu1 %v8484_v20, %s8577_s18 }
  0x6a   : > { %8540 = vrot.lane.b32.xlu0 %v8479_v21, %s8577_s18 }
  0x6c   : > { %8550 = vrot.lane.b32.xlu1 %v8489_v22, %s8577_s18 }
  0x6e   : > { %3501 = vrot.lane.b32.xlu0 %v8650_v9, %s8577_s18 }
  0x70   : > { %3511 = vrot.lane.b32.xlu1 %v8654_v11, %s8577_s18 }
  0x72   : > { %8555 = vrot.lane.b32.xlu0 %v8494_v23, %s8577_s18 }
  0x86   : > { %v368_v26 = vpop.permute.xlu1 %367 }
  0x88   : > { %v8401_v27 = vpop.permute.xlu0 %8400 }
  0x89   : > { %v8403_v28 = vunpack.i.h.bf16 %v8401_v27  ;;  %v8402_v29 = vunpack.i.l.bf16 %v8401_v27 }
  0x8a   : > { %v8411_v31 = vpop.permute.xlu1 %8410 }
  0x8b   : > { %v390_v32 = vsel %vm381_vm0, %v8402_v29, %v8403_v28  ;;  %v8413_v33 = vunpack.i.h.bf16 %v8411_v31  ;;  %v8412_v38 = vunpack.i.l.bf16 %v8411_v31 }
  0x8c   : > { %v8406_v34 = vpop.permute.xlu0 %8405  ;;  %396 = vmatprep.subr.mxu0 %v390_v32 }
  0x8d   : > { %v8408_v35 = vunpack.i.h.bf16 %v8406_v34  ;;  %v8407_v36 = vunpack.i.l.bf16 %v8406_v34  ;;  %v386_v42 = vsel %vm381_vm0, %v8412_v38, %v8413_v33  ;;  %v387_v48 = vsel %vm381_vm0, %v368_v26, %v8412_v38 }
  0x8e   : > { %v378_v47 = vpop.permute.xlu1 %377 }
  0x8f   : > { %v391_v39 = vsel %vm381_vm0, %v8407_v36, %v8402_v29  ;;  %v388_v40 = vsel %vm381_vm0, %v8408_v35, %v368_v26  ;;  %v389_v43 = vsel %vm381_vm0, %v8403_v28, %v8408_v35  ;;  %v382_v54 = vsel %vm381_vm0, %v378_v47, %v8407_v36 }
  0x90   : > { %397 = vmatpush1.msra.mxu0 %v391_v39  ;;  %v8416_v41 = vpop.permute.xlu0 %8415 }
  0x91   : > { %8068 = vmatmul.mubr.msk.f32.vlgmr.msra.gmra.mrb[0].mxu0 %vm392_vm1, %v360_v37  ;;  %467 = vmatprep.subr.mxu0 %v388_v40  ;;  %v8418_v44 = vunpack.i.h.bf16 %v8416_v41  ;;  %v8417_v45 = vunpack.i.l.bf16 %v8416_v41  ;;  %v1111_v41 = vunpack.c.h.bf16 %v8752_v30 }
  0x92   : > { %468 = vmatpush1.msra.mxu0 %v389_v43  ;;  %531 = vmatprep.mubr.f32.mxu0 %v8569_v0  ;;  %v8426_v53 = vpop.permute.xlu1 %8425 }
  0x93   : > { %538 = vmatprep.subr.mxu0 %v386_v42  ;;  %v384_v46 = vsel %vm381_vm0, %v8417_v45, %v8418_v44  ;;  %v385_v52 = vsel %vm381_vm0, %v8413_v33, %v8417_v45  ;;  %v8427_v55 = vunpack.i.l.bf16 %v8426_v53  ;;  %v8428_v57 = vunpack.i.h.bf16 %v8426_v53 }
  0x94   : > { %v8421_v49 = vpop.permute.xlu0 %8420  ;;  %v383_v59 = vsel %vm381_vm0, %v8418_v44, %v378_v47 }
  0x95   : > { %8069 = vmatmul.mubr.msk.f32.vlgmr.msra.gmra.mrb[2].mxu0 %vm392_vm1, %v360_v37  ;;  %v8423_v50 = vunpack.i.h.bf16 %v8421_v49  ;;  %v8422_v51 = vunpack.i.l.bf16 %v8421_v49 }
  0x96   : > { %539 = vmatpush1.msra.mxu0 %v387_v48  ;;  %602 = vmatprep.mubr.f32.mxu0 %v8569_v0  ;;  %v8431_v61 = vpop.permute.xlu1 %8430 }
  0x97   : > { %609 = vmatprep.subr.mxu0 %v384_v46  ;;  %v356_v58 = vsel %vm347_vm2, %v8422_v51, %v8423_v50  ;;  %v357_v62 = vsel %vm347_vm2, %v8427_v55, %v8422_v51  ;;  %v8433_v63 = vunpack.i.h.bf16 %v8431_v61  ;;  %v8432_v1 = vunpack.i.l.bf16 %v8431_v61 }
  0x98   : > { %v332_v56 = vpop.permute.xlu0 %331  ;;  %v355_v15 = vsel %vm347_vm2, %v8423_v50, %v8428_v57 }
  0x99   : > { %8070 = vmatmul.mubr.msk.f32.vlgmr.msra.gmra.mrb[4].mxu0 %vm392_vm1, %v360_v37  ;;  %v354_v2 = vsel %vm347_vm2, %v8428_v57, %v332_v56  ;;  %v352_v14 = vsel %vm347_vm2, %v8432_v1, %v8433_v63  ;;  %v353_v21 = vsel %vm347_vm2, %v332_v56, %v8432_v1 }
  0x9a   : > { %610 = vmatpush1.msra.mxu0 %v385_v52  ;;  %673 = vmatprep.mubr.f32.mxu0 %v8569_v0  ;;  %v342_v20 = vpop.permute.xlu1 %341 }
  0x9b   : > { %680 = vmatprep.subr.mxu0 %v382_v54  ;;  %v348_v29 = vsel %vm347_vm2, %v342_v20, %v8427_v55  ;;  %v3892_v54 = vld [vmem:[%s9633_s2] sm:$0xff] }
  0x9c   : > { %v8436_v8 = vpop.permute.xlu0 %8435 }
  0x9d   : > { %8071 = vmatmul.mubr.msk.f32.vlgmr.msra.gmra.mrb[6].mxu0 %vm392_vm1, %v360_v37  ;;  %v8438_v12 = vunpack.i.h.bf16 %v8436_v8  ;;  %v8437_v13 = vunpack.i.l.bf16 %v8436_v8 }
  0x9e   : > { %681 = vmatpush1.msra.mxu0 %v383_v59  ;;  %744 = vmatprep.mubr.f32.mxu0 %v8569_v0  ;;  %v8446_v28 = vpop.permute.xlu1 %8445 }
  0x9f   : > { %754 = vmatprep.subr.mxu0 %v356_v58  ;;  %v350_v19 = vsel %vm347_vm2, %v8437_v13, %v8438_v12  ;;  %v351_v27 = vsel %vm347_vm2, %v8433_v63, %v8437_v13  ;;  %v8447_v31 = vunpack.i.l.bf16 %v8446_v28  ;;  %v8448_v33 = vunpack.i.h.bf16 %v8446_v28 }
  0xa0   : > { %v8441_v22 = vpop.permute.xlu0 %8440  ;;  %v349_v35 = vsel %vm347_vm2, %v8438_v12, %v342_v20  ;;  %v8578_v58 = vmov 0  }
  0xa1   : > { %8072 = vmatmul.mubr.msk.f32.vlgmr.msra.gmra.mrb[8].mxu0 %vm392_vm1, %v360_v37  ;;  %v8443_v23 = vunpack.i.h.bf16 %v8441_v22  ;;  %v8442_v26 = vunpack.i.l.bf16 %v8441_v22  ;;  %8559 = vset.pattern.permute.xlu0 %v8578_v58 }
  0xa2   : > { %755 = vmatpush1.msra.mxu0 %v357_v62  ;;  %818 = vmatprep.mubr.f32.mxu0 %v8569_v0  ;;  %v8451_v36 = vpop.permute.xlu1 %8450  ;;  %v8084_v62 = vld [vmem:[%s9632_s1 + $0xc] sm:$0xff]  }
  0xa3   : > { %825 = vmatprep.subr.mxu0 %v354_v2  ;;  %v1141_v34 = vsel %vm1132_vm3, %v8442_v26, %v8443_v23  ;;  %v1142_v37 = vsel %vm1132_vm3, %v8447_v31, %v8442_v26  ;;  %v8453_v38 = vunpack.i.h.bf16 %v8451_v36  ;;  %v8452_v39 = vunpack.i.l.bf16 %v8451_v36  ;;  %3895 = vperm.xlu0 %8559, %v3892_v54  }
  0xa4   : > { %v1119_v32 = vpop.permute.xlu0 %1118  ;;  %v1140_v46 = vsel %vm1132_vm3, %v8443_v23, %v8448_v33  ;;  %8560 = vset.pattern.permute.xlu1 %v8578_v58  ;;  %v1513_v12 = vunpack.c.l.bf16 %v8084_v62 }
  0xa5   : > { %8073 = vmatmul.mubr.msk.f32.vlgmr.msra.gmra.mrb[0].mxu0 %vm392_vm1, %v324_v3  ;;  %v1139_v40 = vsel %vm1132_vm3, %v8448_v33, %v1119_v32  ;;  %v1137_v45 = vsel %vm1132_vm3, %v8452_v39, %v8453_v38  ;;  %v1138_v48 = vsel %vm1132_vm3, %v1119_v32, %v8452_v39 }
  0xa6   : > { %826 = vmatpush1.msra.mxu0 %v355_v15  ;;  %889 = vmatprep.mubr.f32.mxu0 %v8569_v0  ;;  %v1129_v47 = vpop.permute.xlu1 %1128 }
  0xa7   : > { %896 = vmatprep.subr.mxu0 %v352_v14  ;;  %v1133_v55 = vsel %vm1132_vm3, %v1129_v47, %v8447_v31 }
  0xa8   : > { %v8456_v42 = vpop.permute.xlu0 %8455 }
  0xa9   : > { %8074 = vmatmul.mubr.msk.f32.vlgmr.msra.gmra.mrb[2].mxu0 %vm392_vm1, %v324_v3  ;;  %v8458_v43 = vunpack.i.h.bf16 %v8456_v42  ;;  %v8457_v44 = vunpack.i.l.bf16 %v8456_v42 }
  0xaa   : > { %897 = vmatpush1.msra.mxu0 %v353_v21  ;;  %960 = vmatprep.mubr.f32.mxu0 %v8569_v0  ;;  %v8466_v53 = vpop.permute.xlu1 %8465 }
  0xab   : > { %967 = vmatprep.subr.mxu0 %v350_v19  ;;  %v1135_v30 = vsel %vm1132_vm3, %v8457_v44, %v8458_v43  ;;  %v1136_v52 = vsel %vm1132_vm3, %v8453_v38, %v8457_v44  ;;  %v8467_v56 = vunpack.i.l.bf16 %v8466_v53  ;;  %v8468_v59 = vunpack.i.h.bf16 %v8466_v53 }
  0xac   : > { %v8461_v49 = vpop.permute.xlu0 %8460  ;;  %v1134_v61 = vsel %vm1132_vm3, %v8458_v43, %v1129_v47 }
  0xad   : > { %8075 = vmatmul.mubr.msk.f32.vlgmr.msra.gmra.mrb[4].mxu0 %vm392_vm1, %v324_v3  ;;  %v8463_v50 = vunpack.i.h.bf16 %v8461_v49  ;;  %v8462_v51 = vunpack.i.l.bf16 %v8461_v49 }
  0xae   : > { %968 = vmatpush1.msra.mxu0 %v351_v27  ;;  %1031 = vmatprep.mubr.f32.mxu0 %v8569_v0  ;;  %v8471_v63 = vpop.permute.xlu1 %8470 }
  0xaf   : > { %1038 = vmatprep.subr.mxu0 %v348_v29  ;;  %v1543_v60 = vsel %vm1534_vm4, %v8462_v51, %v8463_v50  ;;  %v1544_v1 = vsel %vm1534_vm4, %v8467_v56, %v8462_v51  ;;  %v8473_v2 = vunpack.i.h.bf16 %v8471_v63  ;;  %v1542_v20 = vsel %vm1534_vm4, %v8463_v50, %v8468_v59 }
  0xb0   : > { %v1521_v57 = vpop.permute.xlu0 %1520  ;;  %v1915_v29 = vunpack.c.h.bf16 %v8084_v62 }
  0xb1   : > { %8076 = vmatmul.mubr.msk.f32.vlgmr.msra.gmra.mrb[6].mxu0 %vm392_vm1, %v324_v3  ;;  %v1541_v8 = vsel %vm1534_vm4, %v8468_v59, %v1521_v57 }
  0xb2   : > { %1039 = vmatpush1.msra.mxu0 %v349_v35  ;;  %1102 = vmatprep.mubr.f32.mxu0 %v8569_v0  ;;  %v1531_v23 = vpop.permute.xlu1 %1530 }
  0xb3   : > { %1146 = vmatprep.subr.mxu0 %v1141_v34  ;;  %v1535_v27 = vsel %vm1534_vm4, %v1531_v23, %v8467_v56 }
  0xb4   : > { %v8476_v13 = vpop.permute.xlu0 %8475 }
  0xb5   : > { %8077 = vmatmul.mubr.msk.f32.vlgmr.msra.gmra.mrb[8].mxu0 %vm392_vm1, %v324_v3  ;;  %v8472_v3 = vunpack.i.l.bf16 %v8471_v63  ;;  %v8478_v14 = vunpack.i.h.bf16 %v8476_v13  ;;  %v8477_v15 = vunpack.i.l.bf16 %v8476_v13 }
  0xb6   : > { %1147 = vmatpush1.msra.mxu0 %v1142_v37  ;;  %1210 = vmatprep.mubr.f32.mxu0 %v8569_v0  ;;  %v8486_v34 = vpop.permute.xlu1 %8485 }
  0xb7   : > { %1217 = vmatprep.subr.mxu0 %v1139_v40  ;;  %v1539_v19 = vsel %vm1534_vm4, %v8472_v3, %v8473_v2  ;;  %v1537_v21 = vsel %vm1534_vm4, %v8477_v15, %v8478_v14  ;;  %v1540_v22 = vsel %vm1534_vm4, %v1521_v57, %v8472_v3  ;;  %v1538_v26 = vsel %vm1534_vm4, %v8473_v2, %v8477_v15 }
  0xb8   : > { %v1536_v28 = vsel %vm1534_vm4, %v8478_v14, %v1531_v23  ;;  %v8481_v31 = vpop.permute.xlu0 %8480 }
  0xb9   : > { %8079 = vmatmul.mubr.msk.f32.vlgmr.msra.gmra.mrb[0].mxu0 %vm392_vm1, %v1111_v41  ;;  %v8483_v32 = vunpack.i.h.bf16 %v8481_v31  ;;  %v8482_v33 = vunpack.i.l.bf16 %v8481_v31 }
  0xba   : > { %1218 = vmatpush1.msra.mxu0 %v1140_v46  ;;  %1281 = vmatprep.mubr.f32.mxu0 %v8569_v0  ;;  %v8491_v37 = vpop.permute.xlu1 %8490 }
  0xbb   : > { %1288 = vmatprep.subr.mxu0 %v1137_v45  ;;  %v2315_v36 = vsel %vm2307_vm5, %v8482_v33, %v8483_v32  ;;  %v8493_v39 = vunpack.i.h.bf16 %v8491_v37  ;;  %v8492_v40 = vunpack.i.l.bf16 %v8491_v37 }
  0xbc   : > { %v2296_v35 = vpop.permute.xlu0 %2295 }
  0xbd   : > { %8080 = vmatmul.mubr.msk.f32.vlgmr.msra.gmra.mrb[2].mxu0 %vm392_vm1, %v1111_v41  ;;  %v2311_v46 = vsel %vm2307_vm5, %v8492_v40, %v8493_v39  ;;  %v2312_v49 = vsel %vm2307_vm5, %v2296_v35, %v8492_v40 }
  0xbe   : > { %1289 = vmatpush1.msra.mxu0 %v1138_v48  ;;  %1352 = vmatprep.mubr.f32.mxu0 %v8569_v0  ;;  %v2306_v48 = vpop.permute.xlu1 %2305 }
  0xbf   : > { %1359 = vmatprep.subr.mxu0 %v1135_v30 }
  0xc0   : > { %v8496_v43 = vpop.permute.xlu0 %8495 }
  0xc1   : > { %8081 = vmatmul.mubr.msk.f32.vlgmr.msra.gmra.mrb[4].mxu0 %vm392_vm1, %v1111_v41  ;;  %v8498_v44 = vunpack.i.h.bf16 %v8496_v43  ;;  %v8497_v45 = vunpack.i.l.bf16 %v8496_v43 }
  0xc2   : > { %1360 = vmatpush1.msra.mxu0 %v1136_v52  ;;  %1423 = vmatprep.mubr.f32.mxu0 %v8569_v0  ;;  %v8506_v54 = vpop.permute.xlu1 %8505 }
  0xc3   : > { %1430 = vmatprep.subr.mxu0 %v1133_v55  ;;  %v2309_v47 = vsel %vm2307_vm5, %v8497_v45, %v8498_v44  ;;  %v2310_v53 = vsel %vm2307_vm5, %v8493_v39, %v8497_v45  ;;  %v8507_v56 = vunpack.i.l.bf16 %v8506_v54  ;;  %v8508_v58 = vunpack.i.h.bf16 %v8506_v54 }
  0xc4   : > { %v8501_v50 = vpop.permute.xlu0 %8500 }
  0xc5   : > { %8082 = vmatmul.mubr.msk.f32.vlgmr.msra.gmra.mrb[6].mxu0 %vm392_vm1, %v1111_v41  ;;  %v8503_v51 = vunpack.i.h.bf16 %v8501_v50  ;;  %v8502_v52 = vunpack.i.l.bf16 %v8501_v50 }
  0xc6   : > { %1431 = vmatpush1.msra.mxu0 %v1134_v61  ;;  %1494 = vmatprep.mubr.f32.mxu0 %v8569_v0  ;;  %v8511_v61 = vpop.permute.xlu1 %8510 }
  0xc7   : > { %1548 = vmatprep.subr.mxu0 %v1543_v60  ;;  %v2717_v59 = vsel %vm2709_vm6, %v8502_v52, %v8503_v51  ;;  %v2308_v60 = vsel %vm2307_vm5, %v8498_v44, %v2306_v48  ;;  %v2718_v62 = vsel %vm2709_vm6, %v8507_v56, %v8502_v52  ;;  %v8513_v63 = vunpack.i.h.bf16 %v8511_v61 }
  0xc8   : > { %v2698_v57 = vpop.permute.xlu0 %2697  ;;  %v2716_v15 = vsel %vm2709_vm6, %v8503_v51, %v8508_v58 }
  0xc9   : > { %8083 = vmatmul.mubr.msk.f32.vlgmr.msra.gmra.mrb[8].mxu0 %vm392_vm1, %v1111_v41  ;;  %v2715_v2 = vsel %vm2709_vm6, %v8508_v58, %v2698_v57 }
  0xca   : > { %1549 = vmatpush1.msra.mxu0 %v1544_v1  ;;  %1612 = vmatprep.mubr.f32.mxu0 %v8569_v0  ;;  %v8512_v1 = vunpack.i.l.bf16 %v8511_v61 }
  0xcb   : > { %1619 = vmatprep.subr.mxu0 %v1541_v8 }
  0xcc   : > { %v8516_v8 = vpop.permute.xlu0 %8515  ;;  %v2713_v14 = vsel %vm2709_vm6, %v8512_v1, %v8513_v63 }
  0xcd   : > { %8085 = vmatmul.mubr.msk.f32.vlgmr.msra.gmra.mrb[0].mxu0 %vm392_vm1, %v1513_v12  ;;  %v8517_v13 = vunpack.i.l.bf16 %v8516_v8 }
  0xce   : > { %1620 = vmatpush1.msra.mxu0 %v1542_v20  ;;  %1683 = vmatprep.mubr.f32.mxu0 %v8569_v0  ;;  %v2708_v20 = vpop.permute.xlu1 %2707 }
  0xcf   : > { %1690 = vmatprep.subr.mxu0 %v1539_v19 }
  0xd1   : > { %8086 = vmatmul.mubr.msk.f32.vlgmr.msra.gmra.mrb[2].mxu0 %vm392_vm1, %v1513_v12 }
  0xd2   : > { %1691 = vmatpush1.msra.mxu0 %v1540_v22  ;;  %1754 = vmatprep.mubr.f32.mxu0 %v8569_v0  ;;  %v8521_v22 = vpop.permute.xlu0 %8520 }
  0xd3   : > { %1761 = vmatprep.subr.mxu0 %v1537_v21  ;;  %v2714_v21 = vsel %vm2709_vm6, %v2698_v57, %v8512_v1  ;;  %v8523_v23 = vunpack.i.h.bf16 %v8521_v22 }
  0xd5   : > { %8087 = vmatmul.mubr.msk.f32.vlgmr.msra.gmra.mrb[4].mxu0 %vm392_vm1, %v1513_v12 }
  0xd6   : > { %1762 = vmatpush1.msra.mxu0 %v1538_v26  ;;  %1825 = vmatprep.mubr.f32.mxu0 %v8569_v0  ;;  %v8522_v26 = vunpack.i.l.bf16 %v8521_v22  ;;  %v3980_v22 = vld [vmem:[%s9636_s5] sm:$0xf] }
  0xd7   : > { %1832 = vmatprep.subr.mxu0 %v1535_v27  ;;  %v2712_v27 = vsel %vm2709_vm6, %v8513_v63, %v8517_v13 }
  0xd9   : > { %8088 = vmatmul.mubr.msk.f32.vlgmr.msra.gmra.mrb[6].mxu0 %vm392_vm1, %v1513_v12 }
  0xda   : > { %1833 = vmatpush1.msra.mxu0 %v1536_v28  ;;  %1896 = vmatprep.mubr.f32.mxu0 %v8569_v0  ;;  %v8526_v28 = vpop.permute.xlu1 %8525 }
  0xdb   : > { %1919 = vmatprep.subr.mxu0 %v8648_v7  ;;  %v8527_v31 = vunpack.i.l.bf16 %v8526_v28 }
  0xdd   : > { %8089 = vmatmul.mubr.msk.f32.vlgmr.msra.gmra.mrb[8].mxu0 %vm392_vm1, %v1513_v12  ;;  %v8518_v12 = vunpack.i.h.bf16 %v8516_v8 }
  0xde   : > { %1920 = vmatpush1.msra.mxu0 %v8646_v6  ;;  %1983 = vmatprep.mubr.f32.mxu0 %v8569_v0 }
  0xdf   : > { %1990 = vmatprep.subr.mxu0 %v8642_v4  ;;  %v2711_v19 = vsel %vm2709_vm6, %v8517_v13, %v8518_v12 }
  0xe1   : > { %8091 = vmatmul.mubr.msk.f32.vlgmr.msra.gmra.mrb[0].mxu0 %vm392_vm1, %v1915_v29 }
  0xe2   : > { %1991 = vmatpush1.msra.mxu0 %v8644_v5  ;;  %2054 = vmatprep.mubr.f32.mxu0 %v8569_v0 }
  0xe3   : > { %2061 = vmatprep.subr.mxu0 %v8652_v10  ;;  %v8487_v10 = vunpack.i.l.bf16 %v8486_v34 }
  0xe5   : > { %8092 = vmatmul.mubr.msk.f32.vlgmr.msra.gmra.mrb[2].mxu0 %vm392_vm1, %v1915_v29  ;;  %v2316_v38 = vsel %vm2307_vm5, %v8487_v10, %v8482_v33  ;;  %v2317_v55 = vsel %vm2307_vm5, %v2306_v48, %v8487_v10  ;;  %v8528_v33 = vunpack.i.h.bf16 %v8526_v28  ;;  %v2710_v10 = vsel %vm2709_vm6, %v8518_v12, %v2708_v20 }
  0xe6   : > { %2062 = vmatpush1.msra.mxu0 %v8650_v9  ;;  %2125 = vmatprep.mubr.f32.mxu0 %v8569_v0  ;;  %v8488_v9 = vunpack.i.h.bf16 %v8486_v34  ;;  %v3119_v34 = vsel %vm3111_vm7, %v8522_v26, %v8523_v23 }
  0xe7   : > { %2132 = vmatprep.subr.mxu0 %v8668_v17  ;;  %v8096_v17 = vld [vmem:[%s9632_s1 + $0x14] sm:$0xff]   ;;  %v3118_v44 = vsel %vm3111_vm7, %v8523_v23, %v8528_v33  ;;  %v3981_v23 = vunpack.c.l.bf16 %v3980_v22 }
  0xe8   : > { %v2313_v41 = vsel %vm2307_vm5, %v8488_v9, %v2296_v35  ;;  %v2286_v42 = vunpack.c.l.bf16 %v8096_v17  ;;  %v2314_v30 = vsel %vm2307_vm5, %v8483_v32, %v8488_v9  ;;  %v2688_v3 = vunpack.c.h.bf16 %v8096_v17  ;;  %v3100_v32 = vpop.permute.xlu0 %3099  ;;  %v8108_v35 = vld [vmem:[%s9632_s1 + $0x1c] sm:$0xff]   ;;  %v8531_v9 = vpop.permute.xlu1 %8530 }
  0xe9   : > { %8093 = vmatmul.mubr.msk.f32.vlgmr.msra.gmra.mrb[4].mxu0 %vm392_vm1, %v1915_v29  ;;  %v8533_v17 = vunpack.i.h.bf16 %v8531_v9  ;;  %v8532_v37 = vunpack.i.l.bf16 %v8531_v9  ;;  %v3090_v39 = vunpack.c.l.bf16 %v8108_v35  ;;  %v3492_v63 = vunpack.c.h.bf16 %v8108_v35  ;;  %8122 = vmatmul.mubr.msk.f32.vlgmr.msra.gmra.mrb[0].mxu1 %vm392_vm1, %v3981_v23 }
  0xea   : > { %2133 = vmatpush1.msra.mxu0 %v8666_v16  ;;  %2196 = vmatprep.mubr.f32.mxu0 %v8569_v0 }
  0xeb   : > { %2203 = vmatprep.subr.mxu0 %v8654_v11  ;;  %v3115_v43 = vsel %vm3111_vm7, %v8532_v37, %v8533_v17  ;;  %4205 = vmatpush1.msra.mxu1 %v8666_v16 }
  0xec   : > { %v8536_v40 = vpop.permute.xlu0 %8535  ;;  %4268 = vmatprep.mubr.f32.mxu1 %v8569_v0  ;;  %4275 = vmatprep.subr.mxu1 %v8654_v11 }
  0xed   : > { %8094 = vmatmul.mubr.msk.f32.vlgmr.msra.gmra.mrb[6].mxu0 %vm392_vm1, %v1915_v29  ;;  %8123 = vmatmul.mubr.msk.f32.vlgmr.msra.gmra.mrb[2].mxu1 %vm392_vm1, %v3981_v23 }
  0xee   : > { %2204 = vmatpush1.msra.mxu0 %v8672_v18  ;;  %2267 = vmatprep.mubr.f32.mxu0 %v8569_v0 }
  0xef   : > { %2321 = vmatprep.subr.mxu0 %v2315_v36  ;;  %v3120_v36 = vsel %vm3111_vm7, %v8527_v31, %v8522_v26  ;;  %4276 = vmatpush1.msra.mxu1 %v8672_v18 }
  0xf0   : > { %4339 = vmatprep.mubr.f32.mxu1 %v8569_v0 }
  0xf1   : > { %8095 = vmatmul.mubr.msk.f32.vlgmr.msra.gmra.mrb[8].mxu0 %vm392_vm1, %v1915_v29  ;;  %v2719_v29 = vsel %vm2709_vm6, %v2708_v20, %v8507_v56  ;;  %8124 = vmatmul.mubr.msk.f32.vlgmr.msra.gmra.mrb[4].mxu1 %vm392_vm1, %v3981_v23 }
  0xf2   : > { %2322 = vmatpush1.msra.mxu0 %v2316_v38  ;;  %2385 = vmatprep.mubr.f32.mxu0 %v8569_v0  ;;  %v3117_v38 = vsel %vm3111_vm7, %v8528_v33, %v3100_v32 }
  0xf3   : > { %2392 = vmatprep.subr.mxu0 %v2313_v41  ;;  %v8538_v41 = vunpack.i.h.bf16 %v8536_v40  ;;  %4461 = vmatprep.mubr.f32.mxu1 %v8569_v0 }
  0xf5   : > { %8097 = vmatmul.mubr.msk.f32.vlgmr.msra.gmra.mrb[0].mxu0 %vm392_vm1, %v2286_v42 }
  0xf6   : > { %2393 = vmatpush1.msra.mxu0 %v2314_v30  ;;  %2456 = vmatprep.mubr.f32.mxu0 %v8569_v0  ;;  %v3116_v30 = vsel %vm3111_vm7, %v3100_v32, %v8532_v37 }
  0xf7   : > { %2463 = vmatprep.subr.mxu0 %v2311_v46  ;;  %v3110_v46 = vpop.permute.xlu1 %3109 }
  0xf8   : > { %v3121_v52 = vsel %vm3111_vm7, %v3110_v46, %v8527_v31  ;;  %v3112_v57 = vsel %vm3111_vm7, %v8538_v41, %v3110_v46 }
  0xf9   : > { %8098 = vmatmul.mubr.msk.f32.vlgmr.msra.gmra.mrb[2].mxu0 %vm392_vm1, %v2286_v42 }
  0xfa   : > { %2464 = vmatpush1.msra.mxu0 %v2312_v49  ;;  %2527 = vmatprep.mubr.f32.mxu0 %v8569_v0 }
  0xfb   : > { %2534 = vmatprep.subr.mxu0 %v2309_v47  ;;  %v8541_v47 = vpop.permute.xlu0 %8540  ;;  %v8546_v51 = vpop.permute.xlu1 %8545 }
  0xfc   : > { %v8543_v48 = vunpack.i.h.bf16 %v8541_v47  ;;  %v8542_v49 = vunpack.i.l.bf16 %v8541_v47  ;;  %v322_v47 = vld [vmem:[%s9638_s7 + $0x8] sm:$0x3] }
  0xfd   : > { %8099 = vmatmul.mubr.msk.f32.vlgmr.msra.gmra.mrb[4].mxu0 %vm392_vm1, %v2286_v42 }
  0xfe   : > { %2535 = vmatpush1.msra.mxu0 %v2310_v53  ;;  %2598 = vmatprep.mubr.f32.mxu0 %v8569_v0  ;;  %v8547_v53 = vunpack.i.l.bf16 %v8546_v51  ;;  %v3521_v56 = vsel %vm3513_vm8, %v8542_v49, %v8543_v48 }
  0xff   : > { %2605 = vmatprep.subr.mxu0 %v2317_v55  ;;  %v3502_v54 = vpop.permute.xlu0 %3501  ;;  %v8548_v55 = vunpack.i.h.bf16 %v8546_v51  ;;  %v8551_v58 = vpop.permute.xlu1 %8550 }
 0x100   : > { %v8552_v61 = vunpack.i.l.bf16 %v8551_v58 }
 0x101   : > { %8100 = vmatmul.mubr.msk.f32.vlgmr.msra.gmra.mrb[6].mxu0 %vm392_vm1, %v2286_v42  ;;  %v3520_v12 = vsel %vm3513_vm8, %v8543_v48, %v8548_v55 }
 0x102   : > { %2606 = vmatpush1.msra.mxu0 %v2308_v60  ;;  %2669 = vmatprep.mubr.f32.mxu0 %v8569_v0  ;;  %v8553_v60 = vunpack.i.h.bf16 %v8551_v58 }
 0x103   : > { %2723 = vmatprep.subr.mxu0 %v2717_v59  ;;  %v3522_v59 = vsel %vm3513_vm8, %v8547_v53, %v8542_v49  ;;  %v8556_v1 = vpop.permute.xlu0 %8555 }
 0x104   : > { %v3517_v8 = vsel %vm3513_vm8, %v8552_v61, %v8553_v60 }
 0x105   : > { %8101 = vmatmul.mubr.msk.f32.vlgmr.msra.gmra.mrb[8].mxu0 %vm392_vm1, %v2286_v42  ;;  %v8537_v42 = vunpack.i.l.bf16 %v8536_v40 }
 0x106   : > { %2724 = vmatpush1.msra.mxu0 %v2718_v62  ;;  %2787 = vmatprep.mubr.f32.mxu0 %v8569_v0  ;;  %v3519_v62 = vsel %vm3513_vm8, %v8548_v55, %v3502_v54 }
 0x107   : > { %2794 = vmatprep.subr.mxu0 %v2715_v2  ;;  %v3113_v45 = vsel %vm3111_vm7, %v8537_v42, %v8538_v41  ;;  %v3114_v50 = vsel %vm3111_vm7, %v8533_v17, %v8537_v42  ;;  %v8558_v2 = vunpack.i.h.bf16 %v8556_v1 }
 0x109   : > { %8103 = vmatmul.mubr.msk.f32.vlgmr.msra.gmra.mrb[0].mxu0 %vm392_vm1, %v2688_v3 }
 0x10a   : > { %2795 = vmatpush1.msra.mxu0 %v2716_v15  ;;  %2858 = vmatprep.mubr.f32.mxu0 %v8569_v0  ;;  %v3512_v15 = vpop.permute.xlu1 %3511 }
 0x10b   : > { %2865 = vmatprep.subr.mxu0 %v2713_v14  ;;  %v3518_v14 = vsel %vm3513_vm8, %v3502_v54, %v8552_v61  ;;  %v3523_v20 = vsel %vm3513_vm8, %v3512_v15, %v8547_v53 }
 0x10d   : > { %8104 = vmatmul.mubr.msk.f32.vlgmr.msra.gmra.mrb[2].mxu0 %vm392_vm1, %v2688_v3 }
 0x10e   : > { %2866 = vmatpush1.msra.mxu0 %v2714_v21  ;;  %2929 = vmatprep.mubr.f32.mxu0 %v8569_v0  ;;  %v3514_v21 = vsel %vm3513_vm8, %v8558_v2, %v3512_v15 }
 0x10f   : > { %2936 = vmatprep.subr.mxu0 %v2711_v19 }
 0x111   : > { %8105 = vmatmul.mubr.msk.f32.vlgmr.msra.gmra.mrb[4].mxu0 %vm392_vm1, %v2688_v3 }
 0x112   : > { %2937 = vmatpush1.msra.mxu0 %v2712_v27  ;;  %3000 = vmatprep.mubr.f32.mxu0 %v8569_v0 }
 0x113   : > { %3007 = vmatprep.subr.mxu0 %v2719_v29 }
 0x115   : > { %8106 = vmatmul.mubr.msk.f32.vlgmr.msra.gmra.mrb[6].mxu0 %vm392_vm1, %v2688_v3 }
 0x116   : > { %3008 = vmatpush1.msra.mxu0 %v2710_v10  ;;  %3071 = vmatprep.mubr.f32.mxu0 %v8569_v0 }
 0x117   : > { %3125 = vmatprep.subr.mxu0 %v3119_v34 }
 0x119   : > { %8107 = vmatmul.mubr.msk.f32.vlgmr.msra.gmra.mrb[8].mxu0 %vm392_vm1, %v2688_v3  ;;  %v8557_v3 = vunpack.i.l.bf16 %v8556_v1 }
 0x11a   : > { %3126 = vmatpush1.msra.mxu0 %v3120_v36  ;;  %3189 = vmatprep.mubr.f32.mxu0 %v8569_v0 }
 0x11b   : > { %3196 = vmatprep.subr.mxu0 %v3117_v38  ;;  %v3515_v13 = vsel %vm3513_vm8, %v8557_v3, %v8558_v2  ;;  %v3516_v19 = vsel %vm3513_vm8, %v8553_v60, %v8557_v3 }
 0x11d   : > { %8109 = vmatmul.mubr.msk.f32.vlgmr.msra.gmra.mrb[0].mxu0 %vm392_vm1, %v3090_v39 }
 0x11e   : > { %3197 = vmatpush1.msra.mxu0 %v3118_v44  ;;  %3260 = vmatprep.mubr.f32.mxu0 %v8569_v0 }
 0x11f   : > { %3267 = vmatprep.subr.mxu0 %v3115_v43 }
 0x121   : > { %8110 = vmatmul.mubr.msk.f32.vlgmr.msra.gmra.mrb[2].mxu0 %vm392_vm1, %v3090_v39 }
 0x122   : > { %3268 = vmatpush1.msra.mxu0 %v3116_v30  ;;  %3331 = vmatprep.mubr.f32.mxu0 %v8569_v0 }
 0x123   : > { %3338 = vmatprep.subr.mxu0 %v3113_v45 }
 0x125   : > { %8111 = vmatmul.mubr.msk.f32.vlgmr.msra.gmra.mrb[4].mxu0 %vm392_vm1, %v3090_v39 }
 0x126   : > { %3339 = vmatpush1.msra.mxu0 %v3114_v50  ;;  %3402 = vmatprep.mubr.f32.mxu0 %v8569_v0 }
 0x127   : > { %3409 = vmatprep.subr.mxu0 %v3121_v52 }
 0x129   : > { %8112 = vmatmul.mubr.msk.f32.vlgmr.msra.gmra.mrb[6].mxu0 %vm392_vm1, %v3090_v39 }
 0x12a   : > { %3410 = vmatpush1.msra.mxu0 %v3112_v57  ;;  %3473 = vmatprep.mubr.f32.mxu0 %v8569_v0 }
 0x12b   : > { %3527 = vmatprep.subr.mxu0 %v3521_v56 }
 0x12d   : > { %8113 = vmatmul.mubr.msk.f32.vlgmr.msra.gmra.mrb[8].mxu0 %vm392_vm1, %v3090_v39 }
 0x12e   : > { %3528 = vmatpush1.msra.mxu0 %v3522_v59  ;;  %3591 = vmatprep.mubr.f32.mxu0 %v8569_v0 }
 0x12f   : > { %3598 = vmatprep.subr.mxu0 %v3519_v62 }
 0x131   : > { %8115 = vmatmul.mubr.msk.f32.vlgmr.msra.gmra.mrb[0].mxu0 %vm392_vm1, %v3492_v63 }
 0x132   : > { %3599 = vmatpush1.msra.mxu0 %v3520_v12  ;;  %3662 = vmatprep.mubr.f32.mxu0 %v8569_v0 }
 0x133   : > { %3669 = vmatprep.subr.mxu0 %v3517_v8 }
 0x135   : > { %8116 = vmatmul.mubr.msk.f32.vlgmr.msra.gmra.mrb[2].mxu0 %vm392_vm1, %v3492_v63 }
 0x136   : > { %3670 = vmatpush1.msra.mxu0 %v3518_v14  ;;  %3733 = vmatprep.mubr.f32.mxu0 %v8569_v0 }
 0x137   : > { %3740 = vmatprep.subr.mxu0 %v3515_v13 }
 0x139   : > { %8117 = vmatmul.mubr.msk.f32.vlgmr.msra.gmra.mrb[4].mxu0 %vm392_vm1, %v3492_v63 }
 0x13a   : > { %3741 = vmatpush1.msra.mxu0 %v3516_v19  ;;  %3804 = vmatprep.mubr.f32.mxu0 %v8569_v0 }
 0x13b   : > { %3811 = vmatprep.subr.mxu0 %v3523_v20 }
 0x13d   : > { %8118 = vmatmul.mubr.msk.f32.vlgmr.msra.gmra.mrb[6].mxu0 %vm392_vm1, %v3492_v63 }
 0x13e   : > { %3812 = vmatpush1.msra.mxu0 %v3514_v21  ;;  %3875 = vmatprep.mubr.f32.mxu0 %v8569_v0 }
 0x13f   : > { %3991 = vmatprep.subr.mxu0 %v8648_v7  ;;  %v9064_v7 = vld [vmem:[%s9638_s7] sm:$0xff] }
 0x141   : > { %8119 = vmatmul.mubr.msk.f32.vlgmr.msra.gmra.mrb[8].mxu0 %vm392_vm1, %v3492_v63 }
 0x142   : > { %3992 = vmatpush1.msra.mxu0 %v8646_v6  ;;  %4055 = vmatprep.mubr.f32.mxu0 %v8569_v0  ;;  %v3896_v6 = vpop.permute.xlu0 %3895 }
 0x143   : > { %4062 = vmatprep.subr.mxu0 %v8642_v4  ;;  %v9058_v4 = vshrl.u32 %v345_v24, 7 }
 0x145   : > { %8120 = vmatmul.mubr.msk.f32.vlgmr.msra.gmra.mrb[10].mxu0 %vm392_vm1, %v3981_v23  ;;  %v3926_v16 = vsub.s32 1, %v9058_v4  ;;  %v3930_v10 = vsub.s32 2, %v9058_v4  ;;  %v3938_v36 = vsub.s32 4, %v9058_v4  ;;  %v3946_v46 = vsub.s32 6, %v9058_v4 }
 0x146   : > { %4063 = vmatpush1.msra.mxu0 %v8644_v5  ;;  %4126 = vmatprep.mubr.f32.mxu0 %v8569_v0  ;;  %v3922_v5 = vsub.s32 0, %v9058_v4  ;;  %v3934_v55 = vsub.s32 3, %v9058_v4  ;;  %v3942_v59 = vsub.s32 5, %v9058_v4  ;;  %v3950_v19 = vsub.s32 7, %v9058_v4 }
 0x147   : > { %v9071_v24 = vrot.slane %v9064_v7, %v3926_v16  ;;  %v9084_v38 = vrot.slane %v9064_v7, %v3930_v10  ;;  %v9089_v41 = vrot.slane %v9064_v7, %v3938_v36  ;;  %v9104_v51 = vrot.slane %v9064_v7, %v3946_v46 }
 0x148   : > { %v9068_v26 = vrot.slane %v9064_v7, %v3922_v5  ;;  %v9107_v57 = vrot.slane %v322_v47, %v3926_v16  ;;  %v9115_v62 = vrot.slane %v322_v47, %v3922_v5  ;;  %v9118_v1 = vrot.slane %v9064_v7, %v3934_v55  ;;  %v4362_v16 = vld [vmem:[%s9634_s3] sm:$0xff]  }
 0x149   : > { %8121 = vmatmul.mubr.msk.f32.vlgmr.msra.gmra.mrb[12].mxu0 %vm392_vm1, %v3981_v23  ;;  %v9128_v8 = vrot.slane %v9064_v7, %v3942_v59  ;;  %v9145_v22 = vrot.slane %v9064_v7, %v3950_v19 }
 0x204   : > { %v3593_v11 = vpop.f32.mrb[0].mxu0 }
 0x205   : > { %v3898_v18 = vadd.f32 %v3896_v6, %v3593_v11  ;;  %v3595_v27 = vpop.f32.mrb[1].mxu0 }
 0x206   : > { %v3899_v28 = vadd.f32 %v3896_v6, %v3595_v27  ;;  %v4363_v27 = vunpack.c.l.bf16 %v4362_v16 }
 0x207   : > { %v3908_v29 = vmax.f32 %v3898_v18, 0.0 }
 0x208   : > { %v3664_v31 = vpop.f32.mrb[2].mxu0  ;;  %v3909_v33 = vmax.f32 %v3899_v28, 0.0 }
 0x209   : > { %v9074_v32 = vmul.f32 %v9068_v26, %v3908_v29  ;;  %v3900_v34 = vadd.f32 %v3896_v6, %v3664_v31  ;;  %v3666_v35 = vpop.f32.mrb[3].mxu0 }
 0x20a   : > { %v9081_v17 = vmul.f32 %v9071_v24, %v3909_v33  ;;  %v3901_v54 = vadd.f32 %v3896_v6, %v3666_v35 }
 0x20b   : > { %4364 = vrot.lane.b32.xlu1 %v9074_v32, %s8571_s12  ;;  %v3910_v37 = vmax.f32 %v3900_v34, 0.0 }
 0x20c   : > { %v3735_v9 = vpop.f32.mrb[4].mxu0  ;;  %v3911_v63 = vmax.f32 %v3901_v54, 0.0 }
 0x20d   : > { %v3902_v39 = vadd.f32 %v3896_v6, %v3735_v9  ;;  %v3737_v40 = vpop.f32.mrb[5].mxu0  ;;  %v9092_v43 = vmul.f32 %v9084_v38, %v3910_v37 }
 0x20e   : > { %v3903_v2 = vadd.f32 %v3896_v6, %v3737_v40  ;;  %v9134_v13 = vmul.f32 %v9118_v1, %v3911_v63 }
 0x20f   : > { %4366 = vrot.lane.b32.xlu1 %v9081_v17, %s8571_s12  ;;  %v3912_v44 = vmax.f32 %v3902_v39, 0.0 }
 0x210   : > { %v3806_v42 = vpop.f32.mrb[6].mxu0  ;;  %v3913_v14 = vmax.f32 %v3903_v2, 0.0 }
 0x211   : > { %v3904_v45 = vadd.f32 %v3896_v6, %v3806_v42  ;;  %v3808_v30 = vpop.f32.mrb[7].mxu0  ;;  %v9101_v49 = vmul.f32 %v9089_v41, %v3912_v44 }
 0x212   : > { %v3905_v15 = vadd.f32 %v3896_v6, %v3808_v30  ;;  %v9142_v20 = vmul.f32 %v9128_v8, %v3913_v14 }
 0x213   : > { %4368 = vrot.lane.b32.xlu1 %v9092_v43, %s8571_s12  ;;  %v3914_v50 = vmax.f32 %v3904_v45, 0.0 }
 0x214   : > { %v3877_v48 = vpop.f32.mrb[8].mxu0  ;;  %v3915_v21 = vmax.f32 %v3905_v15, 0.0  ;;  %v4346_v15 = vld [vmem:[%s9635_s4] sm:$0xff] }
 0x215   : > { %v3906_v52 = vadd.f32 %v3896_v6, %v3877_v48  ;;  %v3879_v53 = vpop.f32.mrb[9].mxu0  ;;  %v9113_v60 = vmul.f32 %v9104_v51, %v3914_v50 }
 0x216   : > { %v3907_v56 = vadd.f32 %v3896_v6, %v3879_v53  ;;  %v9152_v23 = vmul.f32 %v9145_v22, %v3915_v21  ;;  %v4764_v53 = vunpack.c.h.bf16 %v4362_v16 }
 0x217   : > { %4372 = vrot.lane.b32.xlu1 %v9101_v49, %s8571_s12  ;;  %v3916_v61 = vmax.f32 %v3906_v52, 0.0 }
 0x218   : > { %v3917_v58 = vmax.f32 %v3907_v56, 0.0 }
 0x219   : > { %v9131_v12 = vmul.f32 %v9115_v62, %v3916_v61 }
 0x21a   : > { %v9121_v3 = vmul.f32 %v9107_v57, %v3917_v58 }
 0x21b   : > { %4376 = vrot.lane.b32.xlu1 %v9113_v60, %s8571_s12 }
 0x21c   : > { %4382 = vrot.lane.b32.xlu0 %v9121_v3, %s8571_s12 }
 0x21f   : > { %4380 = vrot.lane.b32.xlu1 %v9131_v12, %s8571_s12 }
 0x220   : > { %4370 = vrot.lane.b32.xlu0 %v9134_v13, %s8571_s12 }
 0x223   : > { %4767 = vrot.lane.b32.xlu1 %v9081_v17, %s8570_s11 }
 0x224   : > { %4374 = vrot.lane.b32.xlu0 %v9142_v20, %s8571_s12 }
 0x227   : > { %4769 = vrot.lane.b32.xlu1 %v9092_v43, %s8570_s11 }
 0x228   : > { %4378 = vrot.lane.b32.xlu0 %v9152_v23, %s8571_s12 }
 0x22b   : > { %4773 = vrot.lane.b32.xlu1 %v9101_v49, %s8570_s11 }
 0x22c   : > { %4765 = vrot.lane.b32.xlu0 %v9074_v32, %s8570_s11 }
 0x22f   : > { %4777 = vrot.lane.b32.xlu1 %v9113_v60, %s8570_s11 }
 0x230   : > { %4783 = vrot.lane.b32.xlu0 %v9121_v3, %s8570_s11 }
 0x233   : > { %4781 = vrot.lane.b32.xlu1 %v9131_v12, %s8570_s11 }
 0x234   : > { %4771 = vrot.lane.b32.xlu0 %v9134_v13, %s8570_s11 }
 0x237   : > { %5168 = vrot.lane.b32.xlu1 %v9081_v17, %s8572_s13 }
 0x238   : > { %4775 = vrot.lane.b32.xlu0 %v9142_v20, %s8570_s11 }
 0x23b   : > { %5170 = vrot.lane.b32.xlu1 %v9092_v43, %s8572_s13 }
 0x23c   : > { %4779 = vrot.lane.b32.xlu0 %v9152_v23, %s8570_s11 }
 0x23f   : > { %5174 = vrot.lane.b32.xlu1 %v9101_v49, %s8572_s13 }
 0x240   : > { %5166 = vrot.lane.b32.xlu0 %v9074_v32, %s8572_s13 }
 0x243   : > { %5178 = vrot.lane.b32.xlu1 %v9113_v60, %s8572_s13 }
 0x244   : > { %5184 = vrot.lane.b32.xlu0 %v9121_v3, %s8572_s13 }
 0x247   : > { %5182 = vrot.lane.b32.xlu1 %v9131_v12, %s8572_s13 }
 0x248   : > { %5172 = vrot.lane.b32.xlu0 %v9134_v13, %s8572_s13 }
 0x24b   : > { %5569 = vrot.lane.b32.xlu1 %v9081_v17, %s8573_s14 }
 0x24c   : > { %5176 = vrot.lane.b32.xlu0 %v9142_v20, %s8572_s13 }
 0x24f   : > { %5571 = vrot.lane.b32.xlu1 %v9092_v43, %s8573_s14 }
 0x250   : > { %5180 = vrot.lane.b32.xlu0 %v9152_v23, %s8572_s13 }
 0x253   : > { %5575 = vrot.lane.b32.xlu1 %v9101_v49, %s8573_s14 }
 0x254   : > { %5567 = vrot.lane.b32.xlu0 %v9074_v32, %s8573_s14 }
 0x257   : > { %5579 = vrot.lane.b32.xlu1 %v9113_v60, %s8573_s14 }
 0x258   : > { %5585 = vrot.lane.b32.xlu0 %v9121_v3, %s8573_s14 }
 0x25b   : > { %5583 = vrot.lane.b32.xlu1 %v9131_v12, %s8573_s14 }
 0x25c   : > { %5573 = vrot.lane.b32.xlu0 %v9134_v13, %s8573_s14 }
 0x25f   : > { %6343 = vrot.lane.b32.xlu1 %v9092_v43, %s8574_s15 }
 0x260   : > { %5577 = vrot.lane.b32.xlu0 %v9142_v20, %s8573_s14 }
 0x263   : > { %6345 = vrot.lane.b32.xlu1 %v9134_v13, %s8574_s15 }
 0x264   : > { %5581 = vrot.lane.b32.xlu0 %v9152_v23, %s8573_s14 }
 0x267   : > { %6349 = vrot.lane.b32.xlu1 %v9142_v20, %s8574_s15 }
 0x268   : > { %6341 = vrot.lane.b32.xlu0 %v9081_v17, %s8574_s15 }
 0x26b   : > { %6353 = vrot.lane.b32.xlu1 %v9152_v23, %s8574_s15 }
 0x26c   : > { %6339 = vrot.lane.b32.xlu0 %v9074_v32, %s8574_s15 }
 0x26f   : > { %6357 = vrot.lane.b32.xlu1 %v9121_v3, %s8574_s15 }
 0x270   : > { %6347 = vrot.lane.b32.xlu0 %v9101_v49, %s8574_s15 }
 0x273   : > { %6744 = vrot.lane.b32.xlu1 %v9092_v43, %s8575_s16 }
 0x274   : > { %6351 = vrot.lane.b32.xlu0 %v9113_v60, %s8574_s15 }
 0x277   : > { %6746 = vrot.lane.b32.xlu1 %v9134_v13, %s8575_s16 }
 0x278   : > { %6355 = vrot.lane.b32.xlu0 %v9131_v12, %s8574_s15 }
 0x27b   : > { %6750 = vrot.lane.b32.xlu1 %v9142_v20, %s8575_s16 }
 0x27c   : > { %6742 = vrot.lane.b32.xlu0 %v9081_v17, %s8575_s16 }
 0x27d   : > { %v4365_v4 = vpop.permute.xlu1 %4364 }
 0x27f   : > { %6754 = vrot.lane.b32.xlu1 %v9152_v23, %s8575_s16 }
 0x280   : > { %6740 = vrot.lane.b32.xlu0 %v9074_v32, %s8575_s16 }
 0x281   : > { %v4367_v5 = vpop.permute.xlu1 %4366 }
 0x282   : > { %v4392_v6 = vsel %vm347_vm2, %v4365_v4, %v4367_v5 }
 0x283   : > { %4397 = vmatprep.subr.mxu1 %v4392_v6  ;;  %6758 = vrot.lane.b32.xlu1 %v9121_v3, %s8575_s16 }
 0x284   : > { %6748 = vrot.lane.b32.xlu0 %v9101_v49, %s8575_s16 }
 0x285   : > { %v4369_v7 = vpop.permute.xlu1 %4368 }
 0x286   : > { %v4391_v10 = vsel %vm347_vm2, %v4367_v5, %v4369_v7 }
 0x287   : > { %7145 = vrot.lane.b32.xlu1 %v9092_v43, %s8576_s17 }
 0x288   : > { %6752 = vrot.lane.b32.xlu0 %v9113_v60, %s8575_s16 }
 0x289   : > { %v4373_v11 = vpop.permute.xlu1 %4372 }
 0x28b   : > { %7147 = vrot.lane.b32.xlu1 %v9134_v13, %s8576_s17 }
 0x28c   : > { %6756 = vrot.lane.b32.xlu0 %v9131_v12, %s8575_s16 }
 0x28d   : > { %v4377_v18 = vpop.permute.xlu1 %4376 }
 0x28e   : > { %v4383_v28 = vpop.permute.xlu0 %4382 }
 0x28f   : > { %v4393_v29 = vsel %vm347_vm2, %v4383_v28, %v4365_v4  ;;  %7151 = vrot.lane.b32.xlu1 %v9142_v20, %s8576_s17 }
 0x290   : > { %7143 = vrot.lane.b32.xlu0 %v9081_v17, %s8576_s17  ;;  %4398 = vmatpush1.msra.mxu1 %v4393_v29 }
 0x291   : > { %v4381_v31 = vpop.permute.xlu1 %4380  ;;  %8125 = vmatmul.mubr.msk.f32.vlgmr.msra.gmra.mrb[6].mxu1 %vm392_vm1, %v4363_v27 }
 0x292   : > { %v4371_v33 = vpop.permute.xlu0 %4370  ;;  %4532 = vmatprep.mubr.f32.mxu1 %v8569_v0  ;;  %v4384_v46 = vsel %vm347_vm2, %v4381_v31, %v4383_v28  ;;  %v9363_v28 = vpop.f32.mrb[10].mxu0 }
 0x293   : > { %7155 = vrot.lane.b32.xlu1 %v9152_v23, %s8576_s17  ;;  %v4390_v34 = vsel %vm347_vm2, %v4369_v7, %v4371_v33  ;;  %v4389_v37 = vsel %vm347_vm2, %v4371_v33, %v4373_v11  ;;  %v9368_v33 = vpop.f32.mrb[11].mxu0 }
 0x294   : > { %7141 = vrot.lane.b32.xlu0 %v9074_v32, %s8576_s17  ;;  %4468 = vmatprep.subr.mxu1 %v4390_v34 }
 0x295   : > { %v4768_v35 = vpop.permute.xlu1 %4767  ;;  %4469 = vmatpush1.msra.mxu1 %v4391_v10 }
 0x296   : > { %8126 = vmatmul.mubr.msk.f32.vlgmr.msra.gmra.mrb[8].mxu1 %vm392_vm1, %v4363_v27  ;;  %v4375_v9 = vpop.permute.xlu0 %4374 }
 0x297   : > { %7159 = vrot.lane.b32.xlu1 %v9121_v3, %s8576_s17  ;;  %v4388_v36 = vsel %vm347_vm2, %v4373_v11, %v4375_v9  ;;  %4603 = vmatprep.mubr.f32.mxu1 %v8569_v0  ;;  %v4387_v44 = vsel %vm347_vm2, %v4375_v9, %v4377_v18 }
 0x298   : > { %7149 = vrot.lane.b32.xlu0 %v9101_v49, %s8576_s17  ;;  %4539 = vmatprep.subr.mxu1 %v4388_v36 }
 0x299   : > { %v4770_v39 = vpop.permute.xlu1 %4769  ;;  %4540 = vmatpush1.msra.mxu1 %v4389_v37 }
 0x29a   : > { %8127 = vmatmul.mubr.msk.f32.vlgmr.msra.gmra.mrb[0].mxu1 %vm392_vm1, %v4363_v27  ;;  %v4379_v40 = vpop.permute.xlu0 %4378  ;;  %v4792_v59 = vsel %vm381_vm0, %v4768_v35, %v4770_v39 }
 0x29b   : > { %7546 = vrot.lane.b32.xlu1 %v9092_v43, %s8577_s18  ;;  %v4386_v42 = vsel %vm347_vm2, %v4377_v18, %v4379_v40  ;;  %4674 = vmatprep.mubr.f32.mxu1 %v8569_v0  ;;  %v4385_v30 = vsel %vm347_vm2, %v4379_v40, %v4381_v31  ;;  %v3982_v31 = vld [vmem:[%s9637_s6] sm:$0xff] }
 0x29c   : > { %7153 = vrot.lane.b32.xlu0 %v9113_v60, %s8576_s17  ;;  %4610 = vmatprep.subr.mxu1 %v4386_v42 }
 0x29d   : > { %v4774_v45 = vpop.permute.xlu1 %4773  ;;  %4611 = vmatpush1.msra.mxu1 %v4387_v44 }
 0x29e   : > { %8128 = vmatmul.mubr.msk.f32.vlgmr.msra.gmra.mrb[2].mxu1 %vm392_vm1, %v4363_v27  ;;  %4681 = vmatprep.subr.mxu1 %v4384_v46  ;;  %v4766_v47 = vpop.permute.xlu0 %4765 }
 0x29f   : > { %7548 = vrot.lane.b32.xlu1 %v9134_v13, %s8577_s18  ;;  %4682 = vmatpush1.msra.mxu1 %v4385_v30  ;;  %v4793_v48 = vsel %vm381_vm0, %v4766_v47, %v4768_v35  ;;  %v9371_v35 = vpop.f32.mrb[12].mxu0 }
 0x2a0   : > { %7157 = vrot.lane.b32.xlu0 %v9131_v12, %s8576_s17  ;;  %4798 = vmatprep.subr.mxu1 %v4793_v48  ;;  %v9376_v36 = vpop.f32.mrb[13].mxu0 }
 0x2a1   : > { %v4778_v50 = vpop.permute.xlu1 %4777  ;;  %4745 = vmatprep.mubr.f32.mxu1 %v8569_v0 }
 0x2a2   : > { %8129 = vmatmul.mubr.msk.f32.vlgmr.msra.gmra.mrb[4].mxu1 %vm392_vm1, %v4363_v27  ;;  %v4784_v52 = vpop.permute.xlu0 %4783  ;;  %v8136_v27 = vld [vmem:[%s9634_s3 + $0x8] sm:$0xff]  }
 0x2a3   : > { %v4794_v54 = vsel %vm381_vm0, %v4784_v52, %v4766_v47  ;;  %7552 = vrot.lane.b32.xlu1 %v9142_v20, %s8577_s18  ;;  %4862 = vmatprep.mubr.f32.mxu1 %v8569_v0  ;;  %v5165_v10 = vunpack.c.l.bf16 %v8136_v27 }
 0x2a4   : > { %7544 = vrot.lane.b32.xlu0 %v9081_v17, %s8577_s18  ;;  %4799 = vmatpush1.msra.mxu1 %v4794_v54 }
 0x2a5   : > { %v4782_v55 = vpop.permute.xlu1 %4781 }
 0x2a6   : > { %8131 = vmatmul.mubr.msk.f32.vlgmr.msra.gmra.mrb[6].mxu1 %vm392_vm1, %v4764_v53  ;;  %v4772_v56 = vpop.permute.xlu0 %4771  ;;  %v4785_v7 = vsel %vm381_vm0, %v4782_v55, %v4784_v52 }
 0x2a7   : > { %7556 = vrot.lane.b32.xlu1 %v9152_v23, %s8577_s18  ;;  %v4791_v58 = vsel %vm381_vm0, %v4770_v39, %v4772_v56  ;;  %4933 = vmatprep.mubr.f32.mxu1 %v8569_v0  ;;  %v4790_v14 = vsel %vm381_vm0, %v4772_v56, %v4774_v45 }
 0x2a8   : > { %7542 = vrot.lane.b32.xlu0 %v9074_v32, %s8577_s18  ;;  %4869 = vmatprep.subr.mxu1 %v4791_v58 }
 0x2a9   : > { %v5169_v61 = vpop.permute.xlu1 %5168  ;;  %4870 = vmatpush1.msra.mxu1 %v4792_v59 }
 0x2aa   : > { %8132 = vmatmul.mubr.msk.f32.vlgmr.msra.gmra.mrb[8].mxu1 %vm392_vm1, %v4764_v53  ;;  %v4776_v63 = vpop.permute.xlu0 %4775 }
 0x2ab   : > { %7560 = vrot.lane.b32.xlu1 %v9121_v3, %s8577_s18  ;;  %v4789_v2 = vsel %vm381_vm0, %v4774_v45, %v4776_v63  ;;  %5004 = vmatprep.mubr.f32.mxu1 %v8569_v0  ;;  %v4788_v5 = vsel %vm381_vm0, %v4776_v63, %v4778_v50  ;;  %v5566_v63 = vunpack.c.h.bf16 %v8136_v27 }
 0x2ac   : > { %7550 = vrot.lane.b32.xlu0 %v9101_v49, %s8577_s18  ;;  %4940 = vmatprep.subr.mxu1 %v4789_v2 }
 0x2ad   : > { %v5171_v19 = vpop.permute.xlu1 %5170  ;;  %4941 = vmatpush1.msra.mxu1 %v4790_v14 }
 0x2ae   : > { %8133 = vmatmul.mubr.msk.f32.vlgmr.msra.gmra.mrb[0].mxu1 %vm392_vm1, %v4764_v53  ;;  %v4780_v21 = vpop.permute.xlu0 %4779  ;;  %v5193_v42 = vsel %vm1132_vm3, %v5169_v61, %v5171_v19 }
 0x2af   : > { %v4787_v4 = vsel %vm381_vm0, %v4778_v50, %v4780_v21  ;;  %5075 = vmatprep.mubr.f32.mxu1 %v8569_v0  ;;  %4349 = vperm.xlu1 %8560, %v4346_v15   ;;  %v4786_v11 = vsel %vm381_vm0, %v4780_v21, %v4782_v55 }
 0x2b0   : > { %7554 = vrot.lane.b32.xlu0 %v9113_v60, %s8577_s18  ;;  %5011 = vmatprep.subr.mxu1 %v4787_v4 }
 0x2b1   : > { %v5175_v6 = vpop.permute.xlu1 %5174  ;;  %5012 = vmatpush1.msra.mxu1 %v4788_v5 }
 0x2b2   : > { %8134 = vmatmul.mubr.msk.f32.vlgmr.msra.gmra.mrb[2].mxu1 %vm392_vm1, %v4764_v53  ;;  %5082 = vmatprep.subr.mxu1 %v4785_v7  ;;  %v5167_v16 = vpop.permute.xlu0 %5166 }
 0x2b3   : > { %5083 = vmatpush1.msra.mxu1 %v4786_v11  ;;  %v5194_v18 = vsel %vm1132_vm3, %v5167_v16, %v5169_v61  ;;  %5146 = vmatprep.mubr.f32.mxu1 %v8569_v0 }
 0x2b4   : > { %7558 = vrot.lane.b32.xlu0 %v9131_v12, %s8577_s18  ;;  %5199 = vmatprep.subr.mxu1 %v5194_v18 }
 0x2b5   : > { %v5179_v29 = vpop.permute.xlu1 %5178 }
 0x2b6   : > { %8135 = vmatmul.mubr.msk.f32.vlgmr.msra.gmra.mrb[4].mxu1 %vm392_vm1, %v4764_v53  ;;  %v5185_v34 = vpop.permute.xlu0 %5184 }
 0x2b7   : > { %v5195_v9 = vsel %vm1132_vm3, %v5185_v34, %v5167_v16  ;;  %5263 = vmatprep.mubr.f32.mxu1 %v8569_v0 }
 0x2b8   : > { %3985 = vperm.xlu0 %8559, %v3982_v31   ;;  %5200 = vmatpush1.msra.mxu1 %v5195_v9  ;;  %v8148_v9 = vld [vmem:[%s9634_s3 + $0x10] sm:$0xff]  }
 0x2b9   : > { %v5183_v37 = vpop.permute.xlu1 %5182 }
 0x2ba   : > { %8137 = vmatmul.mubr.msk.f32.vlgmr.msra.gmra.mrb[6].mxu1 %vm392_vm1, %v5165_v10  ;;  %v5173_v39 = vpop.permute.xlu0 %5172  ;;  %v5186_v54 = vsel %vm1132_vm3, %v5183_v37, %v5185_v34 }
 0x2bb   : > { %v5192_v40 = vsel %vm1132_vm3, %v5171_v19, %v5173_v39  ;;  %5334 = vmatprep.mubr.f32.mxu1 %v8569_v0  ;;  %v5191_v30 = vsel %vm1132_vm3, %v5173_v39, %v5175_v6 }
 0x2bc   : > { %5270 = vmatprep.subr.mxu1 %v5192_v40  ;;  %v5967_v40 = vunpack.c.l.bf16 %v8148_v9 }
 0x2bd   : > { %v5570_v44 = vpop.permute.xlu1 %5569  ;;  %5271 = vmatpush1.msra.mxu1 %v5193_v42 }
 0x2be   : > { %8138 = vmatmul.mubr.msk.f32.vlgmr.msra.gmra.mrb[8].mxu1 %vm392_vm1, %v5165_v10  ;;  %v5177_v45 = vpop.permute.xlu0 %5176 }
 0x2bf   : > { %v5190_v46 = vsel %vm1132_vm3, %v5175_v6, %v5177_v45  ;;  %5405 = vmatprep.mubr.f32.mxu1 %v8569_v0  ;;  %v5189_v52 = vsel %vm1132_vm3, %v5177_v45, %v5179_v29 }
 0x2c0   : > { %5341 = vmatprep.subr.mxu1 %v5190_v46 }
 0x2c1   : > { %v5572_v47 = vpop.permute.xlu1 %5571  ;;  %5342 = vmatpush1.msra.mxu1 %v5191_v30 }
 0x2c2   : > { %8139 = vmatmul.mubr.msk.f32.vlgmr.msra.gmra.mrb[0].mxu1 %vm392_vm1, %v5165_v10  ;;  %v5181_v48 = vpop.permute.xlu0 %5180  ;;  %v5594_v21 = vsel %vm1534_vm4, %v5570_v44, %v5572_v47 }
 0x2c3   : > { %v5188_v50 = vsel %vm1132_vm3, %v5179_v29, %v5181_v48  ;;  %5476 = vmatprep.mubr.f32.mxu1 %v8569_v0  ;;  %v5187_v55 = vsel %vm1132_vm3, %v5181_v48, %v5183_v37 }
 0x2c4   : > { %5412 = vmatprep.subr.mxu1 %v5188_v50 }
 0x2c5   : > { %v5576_v53 = vpop.permute.xlu1 %5575  ;;  %5413 = vmatpush1.msra.mxu1 %v5189_v52 }
 0x2c6   : > { %8140 = vmatmul.mubr.msk.f32.vlgmr.msra.gmra.mrb[2].mxu1 %vm392_vm1, %v5165_v10  ;;  %5483 = vmatprep.subr.mxu1 %v5186_v54  ;;  %v5568_v56 = vpop.permute.xlu0 %5567 }
 0x2c7   : > { %5484 = vmatpush1.msra.mxu1 %v5187_v55  ;;  %v5595_v58 = vsel %vm1534_vm4, %v5568_v56, %v5570_v44  ;;  %5547 = vmatprep.mubr.f32.mxu1 %v8569_v0 }
 0x2c8   : > { %5600 = vmatprep.subr.mxu1 %v5595_v58 }
 0x2c9   : > { %v5580_v59 = vpop.permute.xlu1 %5579 }
 0x2ca   : > { %8141 = vmatmul.mubr.msk.f32.vlgmr.msra.gmra.mrb[4].mxu1 %vm392_vm1, %v5165_v10  ;;  %v5586_v61 = vpop.permute.xlu0 %5585 }
 0x2cb   : > { %v5596_v2 = vsel %vm1534_vm4, %v5586_v61, %v5568_v56  ;;  %5664 = vmatprep.mubr.f32.mxu1 %v8569_v0 }
 0x2cc   : > { %5601 = vmatpush1.msra.mxu1 %v5596_v2 }
 0x2cd   : > { %v5584_v14 = vpop.permute.xlu1 %5583 }
 0x2ce   : > { %8143 = vmatmul.mubr.msk.f32.vlgmr.msra.gmra.mrb[6].mxu1 %vm392_vm1, %v5566_v63  ;;  %v5574_v15 = vpop.permute.xlu0 %5573  ;;  %v5587_v31 = vsel %vm1534_vm4, %v5584_v14, %v5586_v61 }
 0x2cf   : > { %v5593_v19 = vsel %vm1534_vm4, %v5572_v47, %v5574_v15  ;;  %5735 = vmatprep.mubr.f32.mxu1 %v8569_v0  ;;  %v5592_v7 = vsel %vm1534_vm4, %v5574_v15, %v5576_v53 }
 0x2d0   : > { %5671 = vmatprep.subr.mxu1 %v5593_v19 }
 0x2d1   : > { %v9414_v4 = vpop.permute.xlu1 %6343  ;;  %5672 = vmatpush1.msra.mxu1 %v5594_v21 }
 0x2d2   : > { %8144 = vmatmul.mubr.msk.f32.vlgmr.msra.gmra.mrb[8].mxu1 %vm392_vm1, %v5566_v63  ;;  %v5578_v5 = vpop.permute.xlu0 %5577 }
 0x2d3   : > { %v5591_v6 = vsel %vm1534_vm4, %v5576_v53, %v5578_v5  ;;  %5806 = vmatprep.mubr.f32.mxu1 %v8569_v0  ;;  %v5590_v27 = vsel %vm1534_vm4, %v5578_v5, %v5580_v59 }
 0x2d4   : > { %5742 = vmatprep.subr.mxu1 %v5591_v6 }
 0x2d5   : > { %v6346_v11 = vpop.permute.xlu1 %6345  ;;  %5743 = vmatpush1.msra.mxu1 %v5592_v7 }
 0x2d6   : > { %8145 = vmatmul.mubr.msk.f32.vlgmr.msra.gmra.mrb[0].mxu1 %vm392_vm1, %v5566_v63  ;;  %v5582_v16 = vpop.permute.xlu0 %5581  ;;  %v6365_v46 = vsel %vm2307_vm5, %v9414_v4, %v6346_v11 }
 0x2d7   : > { %v5589_v18 = vsel %vm1534_vm4, %v5580_v59, %v5582_v16  ;;  %5877 = vmatprep.mubr.f32.mxu1 %v8569_v0  ;;  %v5588_v34 = vsel %vm1534_vm4, %v5582_v16, %v5584_v14  ;;  %v8160_v14 = vld [vmem:[%s9634_s3 + $0x18] sm:$0xff]  }
 0x2d8   : > { %5813 = vmatprep.subr.mxu1 %v5589_v18  ;;  %v6739_v21 = vunpack.c.l.bf16 %v8160_v14 }
 0x2d9   : > { %v6350_v29 = vpop.permute.xlu1 %6349  ;;  %5814 = vmatpush1.msra.mxu1 %v5590_v27 }
 0x2da   : > { %8146 = vmatmul.mubr.msk.f32.vlgmr.msra.gmra.mrb[2].mxu1 %vm392_vm1, %v5566_v63  ;;  %5884 = vmatprep.subr.mxu1 %v5587_v31  ;;  %v6342_v10 = vpop.permute.xlu0 %6341 }
 0x2db   : > { %5885 = vmatpush1.msra.mxu1 %v5588_v34  ;;  %5948 = vmatprep.mubr.f32.mxu1 %v8569_v0 }
 0x2dc   : > { %5971 = vmatprep.subr.mxu1 %v9081_v17 }
 0x2dd   : > { %v6354_v37 = vpop.permute.xlu1 %6353 }
 0x2de   : > { %8147 = vmatmul.mubr.msk.f32.vlgmr.msra.gmra.mrb[4].mxu1 %vm392_vm1, %v5566_v63  ;;  %v6340_v39 = vpop.permute.xlu0 %6339 }
 0x2df   : > { %5972 = vmatpush1.msra.mxu1 %v9074_v32  ;;  %6035 = vmatprep.mubr.f32.mxu1 %v8569_v0 }
 0x2e0   : > { %6042 = vmatprep.subr.mxu1 %v9134_v13 }
 0x2e1   : > { %v6358_v42 = vpop.permute.xlu1 %6357 }
 0x2e2   : > { %8149 = vmatmul.mubr.msk.f32.vlgmr.msra.gmra.mrb[6].mxu1 %vm392_vm1, %v5967_v40  ;;  %v6348_v44 = vpop.permute.xlu0 %6347  ;;  %v6368_v58 = vsel %vm2307_vm5, %v6358_v42, %v6340_v39 }
 0x2e3   : > { %6043 = vmatpush1.msra.mxu1 %v9092_v43  ;;  %6106 = vmatprep.mubr.f32.mxu1 %v8569_v0  ;;  %v6363_v50 = vsel %vm2307_vm5, %v6348_v44, %v6350_v29 }
 0x2e4   : > { %6113 = vmatprep.subr.mxu1 %v9142_v20 }
 0x2e5   : > { %v9446_v17 = vpop.permute.xlu1 %6744 }
 0x2e6   : > { %8150 = vmatmul.mubr.msk.f32.vlgmr.msra.gmra.mrb[8].mxu1 %vm392_vm1, %v5967_v40  ;;  %v6352_v45 = vpop.permute.xlu0 %6351 }
 0x2e7   : > { %6114 = vmatpush1.msra.mxu1 %v9101_v49  ;;  %6177 = vmatprep.mubr.f32.mxu1 %v8569_v0  ;;  %v6366_v49 = vsel %vm2307_vm5, %v6342_v10, %v9414_v4  ;;  %v6362_v48 = vsel %vm2307_vm5, %v6350_v29, %v6352_v45  ;;  %v6361_v55 = vsel %vm2307_vm5, %v6352_v45, %v6354_v37 }
 0x2e8   : > { %6184 = vmatprep.subr.mxu1 %v9152_v23 }
 0x2e9   : > { %v9452_v32 = vpop.permute.xlu1 %6746 }
 0x2ea   : > { %8151 = vmatmul.mubr.msk.f32.vlgmr.msra.gmra.mrb[0].mxu1 %vm392_vm1, %v5967_v40  ;;  %v6356_v43 = vpop.permute.xlu0 %6355  ;;  %v6766_v6 = vsel %vm2709_vm6, %v9446_v17, %v9452_v32 }
 0x2eb   : > { %6185 = vmatpush1.msra.mxu1 %v9113_v60  ;;  %6248 = vmatprep.mubr.f32.mxu1 %v8569_v0  ;;  %v6367_v60 = vsel %vm2307_vm5, %v6340_v39, %v6342_v10  ;;  %v6360_v53 = vsel %vm2307_vm5, %v6354_v37, %v6356_v43  ;;  %v6359_v59 = vsel %vm2307_vm5, %v6356_v43, %v6358_v42 }
 0x2ec   : > { %6255 = vmatprep.subr.mxu1 %v9121_v3  ;;  %v6338_v3 = vunpack.c.h.bf16 %v8148_v9 }
 0x2ed   : > { %v6751_v20 = vpop.permute.xlu1 %6750 }
 0x2ee   : > { %8152 = vmatmul.mubr.msk.f32.vlgmr.msra.gmra.mrb[2].mxu1 %vm392_vm1, %v5967_v40  ;;  %v6743_v13 = vpop.permute.xlu0 %6742 }
 0x2ef   : > { %6256 = vmatpush1.msra.mxu1 %v9131_v12  ;;  %6319 = vmatprep.mubr.f32.mxu1 %v8569_v0  ;;  %v6364_v12 = vsel %vm2307_vm5, %v6346_v11, %v6348_v44  ;;  %v6767_v2 = vsel %vm2709_vm6, %v6743_v13, %v9446_v17  ;;  %v7140_v44 = vunpack.c.h.bf16 %v8160_v14 }
 0x2f0   : > { %6372 = vmatprep.subr.mxu1 %v6366_v49 }
 0x2f1   : > { %v6755_v30 = vpop.permute.xlu1 %6754 }
 0x2f2   : > { %8153 = vmatmul.mubr.msk.f32.vlgmr.msra.gmra.mrb[4].mxu1 %vm392_vm1, %v5967_v40  ;;  %v9467_v23 = vpop.permute.xlu0 %6740 }
 0x2f3   : > { %6373 = vmatpush1.msra.mxu1 %v6367_v60  ;;  %6436 = vmatprep.mubr.f32.mxu1 %v8569_v0  ;;  %v6768_v15 = vsel %vm2709_vm6, %v9467_v23, %v6743_v13 }
 0x2f4   : > { %6443 = vmatprep.subr.mxu1 %v6364_v12 }
 0x2f5   : > { %v6759_v54 = vpop.permute.xlu1 %6758 }
 0x2f6   : > { %8155 = vmatmul.mubr.msk.f32.vlgmr.msra.gmra.mrb[6].mxu1 %vm392_vm1, %v6338_v3  ;;  %v6749_v47 = vpop.permute.xlu0 %6748  ;;  %v6769_v34 = vsel %vm2709_vm6, %v6759_v54, %v9467_v23 }
 0x2f7   : > { %6444 = vmatpush1.msra.mxu1 %v6365_v46  ;;  %6507 = vmatprep.mubr.f32.mxu1 %v8569_v0  ;;  %v6765_v4 = vsel %vm2709_vm6, %v9452_v32, %v6749_v47  ;;  %v6764_v16 = vsel %vm2709_vm6, %v6749_v47, %v6751_v20 }
 0x2f8   : > { %6514 = vmatprep.subr.mxu1 %v6362_v48  ;;  %v8172_v48 = vld [vmem:[%s9634_s3 + $0x20] sm:$0xf] }
 0x2f9   : > { %v7146_v61 = vpop.permute.xlu1 %7145 }
 0x2fa   : > { %8156 = vmatmul.mubr.msk.f32.vlgmr.msra.gmra.mrb[8].mxu1 %vm392_vm1, %v6338_v3  ;;  %v6753_v52 = vpop.permute.xlu0 %6752 }
 0x2fb   : > { %6515 = vmatpush1.msra.mxu1 %v6363_v50  ;;  %6578 = vmatprep.mubr.f32.mxu1 %v8569_v0  ;;  %v6763_v11 = vsel %vm2709_vm6, %v6751_v20, %v6753_v52  ;;  %v6762_v31 = vsel %vm2709_vm6, %v6753_v52, %v6755_v30 }
 0x2fc   : > { %6585 = vmatprep.subr.mxu1 %v6360_v53 }
 0x2fd   : > { %v7148_v5 = vpop.permute.xlu1 %7147 }
 0x2fe   : > { %8157 = vmatmul.mubr.msk.f32.vlgmr.msra.gmra.mrb[0].mxu1 %vm392_vm1, %v6338_v3  ;;  %v6757_v56 = vpop.permute.xlu0 %6756  ;;  %v7167_v32 = vsel %vm3111_vm7, %v7146_v61, %v7148_v5 }
 0x2ff   : > { %6586 = vmatpush1.msra.mxu1 %v6361_v55  ;;  %6649 = vmatprep.mubr.f32.mxu1 %v8569_v0  ;;  %v6761_v27 = vsel %vm2709_vm6, %v6755_v30, %v6757_v56  ;;  %v6760_v9 = vsel %vm2709_vm6, %v6757_v56, %v6759_v54  ;;  %v7541_v54 = vunpack.c.l.bf16 %v8172_v48 }
 0x300   : > { %6656 = vmatprep.subr.mxu1 %v6368_v58 }
 0x301   : > { %v7152_v18 = vpop.permute.xlu1 %7151 }
 0x302   : > { %8158 = vmatmul.mubr.msk.f32.vlgmr.msra.gmra.mrb[2].mxu1 %vm392_vm1, %v6338_v3  ;;  %v7144_v63 = vpop.permute.xlu0 %7143 }
 0x303   : > { %6657 = vmatpush1.msra.mxu1 %v6359_v59  ;;  %6720 = vmatprep.mubr.f32.mxu1 %v8569_v0  ;;  %v7168_v39 = vsel %vm3111_vm7, %v7144_v63, %v7146_v61 }
 0x304   : > { %6773 = vmatprep.subr.mxu1 %v6767_v2 }
 0x305   : > { %v7156_v10 = vpop.permute.xlu1 %7155 }
 0x306   : > { %8159 = vmatmul.mubr.msk.f32.vlgmr.msra.gmra.mrb[4].mxu1 %vm392_vm1, %v6338_v3  ;;  %v9505_v19 = vpop.permute.xlu0 %7141 }
 0x307   : > { %6774 = vmatpush1.msra.mxu1 %v6768_v15  ;;  %6837 = vmatprep.mubr.f32.mxu1 %v8569_v0  ;;  %v7169_v40 = vsel %vm3111_vm7, %v9505_v19, %v7144_v63 }
 0x308   : > { %6844 = vmatprep.subr.mxu1 %v6765_v4 }
 0x309   : > { %v7160_v42 = vpop.permute.xlu1 %7159 }
 0x30a   : > { %8161 = vmatmul.mubr.msk.f32.vlgmr.msra.gmra.mrb[6].mxu1 %vm392_vm1, %v6739_v21  ;;  %v7150_v7 = vpop.permute.xlu0 %7149  ;;  %v7170_v12 = vsel %vm3111_vm7, %v7160_v42, %v9505_v19 }
 0x30b   : > { %6845 = vmatpush1.msra.mxu1 %v6766_v6  ;;  %6908 = vmatprep.mubr.f32.mxu1 %v8569_v0  ;;  %v7166_v17 = vsel %vm3111_vm7, %v7148_v5, %v7150_v7  ;;  %v7165_v49 = vsel %vm3111_vm7, %v7150_v7, %v7152_v18 }
 0x30c   : > { %6915 = vmatprep.subr.mxu1 %v6763_v11 }
 0x30d   : > { %v7547_v13 = vpop.permute.xlu1 %7546 }
 0x30e   : > { %8162 = vmatmul.mubr.msk.f32.vlgmr.msra.gmra.mrb[8].mxu1 %vm392_vm1, %v6739_v21  ;;  %v7154_v29 = vpop.permute.xlu0 %7153 }
 0x30f   : > { %6916 = vmatpush1.msra.mxu1 %v6764_v16  ;;  %6979 = vmatprep.mubr.f32.mxu1 %v8569_v0  ;;  %v7164_v43 = vsel %vm3111_vm7, %v7152_v18, %v7154_v29  ;;  %v7163_v23 = vsel %vm3111_vm7, %v7154_v29, %v7156_v10 }
 0x310   : > { %6986 = vmatprep.subr.mxu1 %v6761_v27 }
 0x311   : > { %v7549_v3 = vpop.permute.xlu1 %7548 }
 0x312   : > { %8163 = vmatmul.mubr.msk.f32.vlgmr.msra.gmra.mrb[0].mxu1 %vm392_vm1, %v6739_v21  ;;  %v7158_v37 = vpop.permute.xlu0 %7157  ;;  %v7568_v56 = vsel %vm3513_vm8, %v7547_v13, %v7549_v3 }
 0x313   : > { %6987 = vmatpush1.msra.mxu1 %v6762_v31  ;;  %7050 = vmatprep.mubr.f32.mxu1 %v8569_v0  ;;  %v7162_v60 = vsel %vm3111_vm7, %v7156_v10, %v7158_v37  ;;  %v7161_v30 = vsel %vm3111_vm7, %v7158_v37, %v7160_v42 }
 0x314   : > { %7057 = vmatprep.subr.mxu1 %v6769_v34 }
 0x315   : > { %v7553_v50 = vpop.permute.xlu1 %7552 }
 0x316   : > { %8164 = vmatmul.mubr.msk.f32.vlgmr.msra.gmra.mrb[2].mxu1 %vm392_vm1, %v6739_v21  ;;  %v7545_v45 = vpop.permute.xlu0 %7544 }
 0x317   : > { %7058 = vmatpush1.msra.mxu1 %v6760_v9  ;;  %7121 = vmatprep.mubr.f32.mxu1 %v8569_v0  ;;  %v7569_v47 = vsel %vm3513_vm8, %v7545_v45, %v7547_v13 }
 0x318   : > { %7174 = vmatprep.subr.mxu1 %v7168_v39 }
 0x319   : > { %v7557_v58 = vpop.permute.xlu1 %7556 }
 0x31a   : > { %8165 = vmatmul.mubr.msk.f32.vlgmr.msra.gmra.mrb[4].mxu1 %vm392_vm1, %v6739_v21  ;;  %v7543_v20 = vpop.permute.xlu0 %7542 }
 0x31b   : > { %7175 = vmatpush1.msra.mxu1 %v7169_v40  ;;  %7238 = vmatprep.mubr.f32.mxu1 %v8569_v0  ;;  %v7570_v52 = vsel %vm3513_vm8, %v7543_v20, %v7545_v45 }
 0x31c   : > { %7245 = vmatprep.subr.mxu1 %v7166_v17 }
 0x31d   : > { %v7561_v14 = vpop.permute.xlu1 %7560 }
 0x31e   : > { %8167 = vmatmul.mubr.msk.f32.vlgmr.msra.gmra.mrb[6].mxu1 %vm392_vm1, %v7140_v44  ;;  %v7551_v46 = vpop.permute.xlu0 %7550  ;;  %v7571_v19 = vsel %vm3513_vm8, %v7561_v14, %v7543_v20 }
 0x31f   : > { %7246 = vmatpush1.msra.mxu1 %v7167_v32  ;;  %7309 = vmatprep.mubr.f32.mxu1 %v8569_v0  ;;  %v7567_v55 = vsel %vm3513_vm8, %v7549_v3, %v7551_v46  ;;  %v7566_v63 = vsel %vm3513_vm8, %v7551_v46, %v7553_v50 }
 0x320   : > { %7316 = vmatprep.subr.mxu1 %v7164_v43 }
 0x322   : > { %8168 = vmatmul.mubr.msk.f32.vlgmr.msra.gmra.mrb[8].mxu1 %vm392_vm1, %v7140_v44  ;;  %v7555_v53 = vpop.permute.xlu0 %7554 }
 0x323   : > { %7317 = vmatpush1.msra.mxu1 %v7165_v49  ;;  %7380 = vmatprep.mubr.f32.mxu1 %v8569_v0  ;;  %v7565_v59 = vsel %vm3513_vm8, %v7553_v50, %v7555_v53  ;;  %v7564_v15 = vsel %vm3513_vm8, %v7555_v53, %v7557_v58 }
 0x324   : > { %7387 = vmatprep.subr.mxu1 %v7162_v60 }
 0x326   : > { %8169 = vmatmul.mubr.msk.f32.vlgmr.msra.gmra.mrb[0].mxu1 %vm392_vm1, %v7140_v44  ;;  %v7559_v61 = vpop.permute.xlu0 %7558 }
 0x327   : > { %7388 = vmatpush1.msra.mxu1 %v7163_v23  ;;  %7451 = vmatprep.mubr.f32.mxu1 %v8569_v0  ;;  %v7563_v2 = vsel %vm3513_vm8, %v7557_v58, %v7559_v61  ;;  %v7562_v21 = vsel %vm3513_vm8, %v7559_v61, %v7561_v14 }
 0x328   : > { %7458 = vmatprep.subr.mxu1 %v7170_v12 }
 0x32a   : > { %8170 = vmatmul.mubr.msk.f32.vlgmr.msra.gmra.mrb[2].mxu1 %vm392_vm1, %v7140_v44 }
 0x32b   : > { %7459 = vmatpush1.msra.mxu1 %v7161_v30  ;;  %7522 = vmatprep.mubr.f32.mxu1 %v8569_v0 }
 0x32c   : > { %7575 = vmatprep.subr.mxu1 %v7569_v47 }
 0x32e   : > { %8171 = vmatmul.mubr.msk.f32.vlgmr.msra.gmra.mrb[4].mxu1 %vm392_vm1, %v7140_v44  ;;  %v4350_v7 = vpop.permute.xlu1 %4349 }
 0x32f   : > { %7576 = vmatpush1.msra.mxu1 %v7570_v52  ;;  %7639 = vmatprep.mubr.f32.mxu1 %v8569_v0 }
 0x330   : > { %7646 = vmatprep.subr.mxu1 %v7567_v55 }
 0x332   : > { %8173 = vmatmul.mubr.msk.f32.vlgmr.msra.gmra.mrb[6].mxu1 %vm392_vm1, %v7541_v54 }
 0x333   : > { %7647 = vmatpush1.msra.mxu1 %v7568_v56  ;;  %7710 = vmatprep.mubr.f32.mxu1 %v8569_v0 }
 0x334   : > { %7717 = vmatprep.subr.mxu1 %v7565_v59 }
 0x336   : > { %8174 = vmatmul.mubr.msk.f32.vlgmr.msra.gmra.mrb[8].mxu1 %vm392_vm1, %v7541_v54 }
 0x337   : > { %7718 = vmatpush1.msra.mxu1 %v7566_v63  ;;  %7781 = vmatprep.mubr.f32.mxu1 %v8569_v0  ;;  %v3986_v4 = vpop.permute.xlu0 %3985 }
 0x338   : > { %7788 = vmatprep.subr.mxu1 %v7563_v2  ;;  %v4058_v5 = vadd.f32 %v9363_v28, %v3986_v4  ;;  %v4060_v6 = vadd.f32 %v9368_v33, %v3986_v4  ;;  %v4129_v16 = vadd.f32 %v9371_v35, %v3986_v4  ;;  %v4131_v25 = vadd.f32 %v9376_v36, %v3986_v4 }
 0x339   : > { %v8202_v44 = vadd.f32 %v4350_v7, %v3986_v4 }
 0x33a   : > { %8175 = vmatmul.mubr.msk.f32.vlgmr.msra.gmra.mrb[0].mxu1 %vm392_vm1, %v7541_v54  ;;  %v4352_v11 = vadd.f32 %v4350_v7, %v4058_v5  ;;  %v4353_v27 = vadd.f32 %v4350_v7, %v4060_v6  ;;  %v4354_v10 = vadd.f32 %v4350_v7, %v4129_v16  ;;  %v4355_v39 = vadd.f32 %v4350_v7, %v4131_v25 }
 0x33b   : > { %7789 = vmatpush1.msra.mxu1 %v7564_v15  ;;  %7852 = vmatprep.mubr.f32.mxu1 %v8569_v0 }
 0x33c   : > { %7859 = vmatprep.subr.mxu1 %v7571_v19 }
 0x33e   : > { %8176 = vmatmul.mubr.msk.f32.vlgmr.msra.gmra.mrb[2].mxu1 %vm392_vm1, %v7541_v54 }
 0x33f   : > { %7860 = vmatpush1.msra.mxu1 %v7562_v21  ;;  %7923 = vmatprep.mubr.f32.mxu1 %v8569_v0 }
 0x342   : > { %8177 = vmatmul.mubr.msk.f32.vlgmr.msra.gmra.mrb[4].mxu1 %vm392_vm1, %v7541_v54 }
 0x405   : > { %v7641_v18 = vpop.f32.mrb[6].mxu1 }
 0x406   : > { %v8192_v29 = vadd.f32 %v7641_v18, %v4352_v11  ;;  %v7643_v31 = vpop.f32.mrb[7].mxu1 }
 0x407   : > { %v8195_v34 = vadd.f32 %v7643_v31, %v4353_v27 }
 0x408   : > { %v7940_v0 = vmax.f32 %v8192_v29, 0.0 }
 0x409   : > { %v7941_v9 = vmax.f32 %v8195_v34, 0.0  ;;  %v7712_v37 = vpop.f32.mrb[8].mxu1 }
 0x40a   : > { %v7950_v28 = vmul.f32 %v7940_v0, %v9068_v26  ;;  %v8198_v33 = vadd.f32 %v7712_v37, %v4354_v10  ;;  %v7714_v40 = vpop.f32.mrb[9].mxu1 }
 0x40b   : > { %v7951_v42 = vmul.f32 %v7941_v9, %v9071_v24  ;;  %v8201_v35 = vadd.f32 %v7714_v40, %v4355_v39 }
 0x40c   : > { %v7942_v36 = vmax.f32 %v8198_v33, 0.0 }
 0x40d   : > { %v8185_v17 = vpack.c.bf16 %v7951_v42, %v7950_v28  ;;  %v7943_v45 = vmax.f32 %v8201_v35, 0.0  ;;  %v7783_v32 = vpop.f32.mrb[0].mxu1 }
 0x40e   : > { %v7952_v26 = vmul.f32 %v7942_v36, %v9084_v38  ;;  %v8203_v43 = vadd.f32 %v8202_v44, %v7783_v32  ;;  %v7785_v13 = vpop.f32.mrb[1].mxu1 }
 0x40f   : > { %8000 = vst [vmem:[%s9613_s23] sm:$0xff] %v8185_v17  ;;  %v7953_v24 = vmul.f32 %v7943_v45, %v9118_v1  ;;  %v8205_v49 = vadd.f32 %v8202_v44, %v7785_v13 }
 0x410   : > { %v7944_v20 = vmax.f32 %v8203_v43, 0.0 }
 0x411   : > { %v8186_v60 = vpack.c.bf16 %v7953_v24, %v7952_v26  ;;  %v7945_v23 = vmax.f32 %v8205_v49, 0.0  ;;  %v7854_v3 = vpop.f32.mrb[2].mxu1 }
 0x412   : > { %v7954_v12 = vmul.f32 %v7944_v20, %v9089_v41  ;;  %v8207_v46 = vadd.f32 %v8202_v44, %v7854_v3  ;;  %v7856_v30 = vpop.f32.mrb[3].mxu1 }
 0x413   : > { %8001 = vst [vmem:[%s9613_s23 + $0x8] sm:$0xff] %v8186_v60  ;;  %v7955_v47 = vmul.f32 %v7945_v23, %v9128_v8  ;;  %v8209_v38 = vadd.f32 %v8202_v44, %v7856_v30 }
 0x414   : > { %v7946_v48 = vmax.f32 %v8207_v46, 0.0 }
 0x415   : > { %v8187_v50 = vpack.c.bf16 %v7955_v47, %v7954_v12  ;;  %v7947_v52 = vmax.f32 %v8209_v38, 0.0  ;;  %v7925_v1 = vpop.f32.mrb[4].mxu1 }
 0x416   : > { %v7956_v53 = vmul.f32 %v7946_v48, %v9104_v51  ;;  %v8211_v54 = vadd.f32 %v8202_v44, %v7925_v1  ;;  %v7927_v55 = vpop.f32.mrb[5].mxu1 }
 0x417   : > { %8002 = vst [vmem:[%s9613_s23 + $0x10] sm:$0xff] %v8187_v50  ;;  %v7957_v56 = vmul.f32 %v7947_v52, %v9145_v22  ;;  %v8213_v41 = vadd.f32 %v8202_v44, %v7927_v55 }
 0x418   : > { %v7948_v58 = vmax.f32 %v8211_v54, 0.0 }
 0x419   : > { %v8188_v59 = vpack.c.bf16 %v7957_v56, %v7956_v53  ;;  %v7949_v61 = vmax.f32 %v8213_v41, 0.0 }
 0x41a   : > { %v7958_v8 = vmul.f32 %v7948_v58, %v9115_v62 }
 0x41b   : > { %8003 = vst [vmem:[%s9613_s23 + $0x18] sm:$0xff] %v8188_v59  ;;  %v7959_v63 = vmul.f32 %v7949_v61, %v9107_v57 }
 0x41d   : > { %v8189_v2 = vpack.c.bf16 %v7959_v63, %v7958_v8 }
 0x41f   : > { %8004 = vst [vmem:[%s9613_s23 + $0x20] sm:$0xff] %v8189_v2 }
 0x420 PF: > { %s18_s27 = sadd.s32 1, %s8567_s27  }
 0x421   : > { %p15_p4 = scmp.ge.s32.totalorder %s18_s27, 4  }
 0x423   :  { %17 = sbr.rel (!%p15_p4) target bundleno = 1 (0x1), region = 98 }

// kernel: unet_forward.7
= control target key start
LH: loop header
LB: loop body
LE: loop exit
PB: predicated region body
PF: predicated region fallthrough
CT: control target
= control target key end

     0   :  { %s4724_s27 = smov 0   ;;  %s5387_s0 = inlined_call_operand.vmem [shape: bf16[2,8,384], index: 0, kind: input, shape index: {}]   ;;  %s5388_s1 = inlined_call_operand.vmem [shape: bf16[9,16,8], index: 1, kind: input, shape index: {}]   ;;  %s5389_s2 = inlined_call_operand.vmem [shape: f32[16,1], index: 2, kind: input, shape index: {}]   ;;  %s5390_s3 = inlined_call_operand.vmem [shape: bf16[9,16,16], index: 3, kind: input, shape index: {}]   ;;  %s5391_s4 = inlined_call_operand.vmem [shape: f32[16,1], index: 4, kind: input, shape index: {}]   ;;  %s5392_s5 = inlined_call_operand.vmem [shape: bf16[16,8], index: 5, kind: input, shape index: {}]   ;;  %s5393_s6 = inlined_call_operand.vmem [shape: f32[16,1], index: 6, kind: input, shape index: {}]   ;;  %s5394_s7 = inlined_call_operand.vmem [shape: f32[1,384], index: 7, kind: input, shape index: {}]   ;;  %s5395_s8 = inlined_call_operand.vmem [shape: bf16[2,16,384], index: 8, kind: output, shape index: {}]  }
   0x1 LB: > { %s3897_s28 = sadd.s32 4294967295, %s4667_s27   ;;  %p3901_p0 = scmp.ge.s32.totalorder %s4667_s27, 1  ;;  %s4667_s27 = sphi %s4724_s27, %s18_s27  }
   0x2   : > { %p262_p1 = scmp.lt.s32.totalorder %s4667_s27, 3 }
   0x4   : > { %p263_p2 = pnand %p3901_p0, %p262_p1 }
   0x5   : > { %p296_p3 = scmp.lt.s32.totalorder (!%p263_p2), %s3897_s28, 1  ;;  %v4737_v0 = vld [vmem:[%s5388_s1 + $0x8] sm:$0xff] (!%p263_p2)   ;;  %v4669_v2 = vmov (!%p263_p2), 0.0   ;;  %vm343_vm0 = vcmask (!%p263_p2), 64512   ;;  %s4670_s13 = smov (!%p263_p2), 18   ;;  %v1903_v10 = vld [vmem:[%s5389_s2] sm:$0xff] (!%p263_p2)  ;;  %v322_v13 = vlaneseq (!%p263_p2) }
   0x6   : > { %266 = sbr.rel (%p263_p2) target bundleno = 862 (0x35e), region = 52  ;;  %v4028_v1 = vunpack.c.l.bf16 (!%p263_p2), %v4737_v0  ;;  %414 = vmatprep.mubr.f32.mxu0 (!%p263_p2), %v4669_v2  ;;  %s4671_s14 = smov (!%p263_p2), 19   ;;  %v1904_v11 = vld [vmem:[%s5389_s2 + $0x8] sm:$0xff] (!%p263_p2)  ;;  %v4678_v12 = vmov (!%p263_p2), 0   ;;  %v4029_v23 = vunpack.c.h.bf16 (!%p263_p2), %v4737_v0  ;;  %v4023_v25 = vld [vmem:[%s5388_s1] sm:$0xff] (!%p263_p2)   ;;  %v4099_v38 = vld [vmem:[%s5388_s1 + $0x10] sm:$0xff] (!%p263_p2)  }
   0x7   : > { %s4672_s15 = smov (!%p263_p2), 17   ;;  %s4673_s16 = smov (!%p263_p2), 1   ;;  %4539 = vset.pattern.permute.xlu0 (!%p263_p2), %v4678_v12  ;;  %4540 = vset.pattern.permute.xlu1 (!%p263_p2), %v4678_v12  ;;  %v4789_v14 = vand.u32 (!%p263_p2), 127, %v322_v13  ;;  %v4024_v31 = vunpack.c.l.bf16 (!%p263_p2), %v4023_v25  ;;  %v4025_v39 = vunpack.c.h.bf16 (!%p263_p2), %v4023_v25  ;;  %v4032_v45 = vunpack.c.l.bf16 (!%p263_p2), %v4099_v38  ;;  %v4100_v48 = vld [vmem:[%s5388_s1 + $0x18] sm:$0xff] (!%p263_p2)   ;;  %v4101_v55 = vld [vmem:[%s5388_s1 + $0x20] sm:$0xff] (!%p263_p2)   ;;  %v4102_v0 = vld [vmem:[%s5388_s1 + $0x28] sm:$0xff] (!%p263_p2)  }
   0x8   : > { %4182 = vmatprep.mubr.msk.f32.mxu1 (!%p263_p2), %vm343_vm0, %v4028_v1  ;;  %s4674_s17 = smov (!%p263_p2), 127   ;;  %s4675_s18 = smov (!%p263_p2), 111   ;;  %v4033_v49 = vunpack.c.h.bf16 (!%p263_p2), %v4099_v38  ;;  %v4036_v51 = vunpack.c.l.bf16 (!%p263_p2), %v4100_v48  ;;  %v4037_v56 = vunpack.c.h.bf16 (!%p263_p2), %v4100_v48  ;;  %v4040_v58 = vunpack.c.l.bf16 (!%p263_p2), %v4101_v55 }
   0x9   : > { %s4676_s19 = smov (!%p263_p2), 110   ;;  %s4677_s20 = smov (!%p263_p2), 109   ;;  %vm339_vm1 = vcmp.lt.s32.totalorder (!%p263_p2), %v4789_v14, 18  ;;  %vm324_vm2 = vcmp.lt.s32.totalorder (!%p263_p2), %v4789_v14, 19  ;;  %vm671_vm3 = vcmp.lt.s32.totalorder (!%p263_p2), %v4789_v14, 17  ;;  %vm850_vm4 = vcmp.lt.s32.totalorder (!%p263_p2), %v4789_v14, 1 }
   0xa   : > { %vm1198_vm5 = vcmp.lt.s32.totalorder (!%p263_p2), %v4789_v14, 127  ;;  %vm1377_vm6 = vcmp.lt.s32.totalorder (!%p263_p2), %v4789_v14, 111  ;;  %vm1556_vm7 = vcmp.lt.s32.totalorder (!%p263_p2), %v4789_v14, 110  ;;  %vm1735_vm8 = vcmp.lt.s32.totalorder (!%p263_p2), %v4789_v14, 109 }
   0xb   : > { %v1929_v38 = vshrl.u32 (!%p263_p2), %v322_v13, 7  ;;  %vm2163_vm9 = vcmask (!%p263_p2), 130048  }
   0xd   : > { %s5399_s28 = smov (!%p296_p3, %s3897_s28), 1 }
   0xe   : > { %s4479_s9 = smul.u32 12, %s5399_s28 }
  0x10   : > { %s300_s12 = scalar_lea.vmem %s5387_s0, %s4479_s9 }
  0x11   : > { %v306_v3 = vld [vmem:[%s300_s12] sm:$0xff]  ;;  %v307_v6 = vld [vmem:[%s300_s12 + $0x8] sm:$0xf] }
  0x12   : > { %v4748_v4 = vunpack.c.l.bf16 %v306_v3  ;;  %v4750_v5 = vunpack.c.h.bf16 %v306_v3  ;;  %v4754_v8 = vunpack.c.l.bf16 %v307_v6 }
  0x14   : > { %v4499_v7 = vpack.i.bf16 %v4750_v5, %v4748_v4  ;;  %v4519_v9 = vpack.i.bf16 %v4754_v8, %v4750_v5 }
  0x16   : > { %4500 = vrot.lane.b32.xlu0 %v4499_v7, %s4670_s13  ;;  %4505 = vrot.lane.b32.xlu1 %v4499_v7, %s4671_s14 }
  0x1a   : > { %337 = vrot.lane.b32.xlu0 %v4754_v8, %s4670_s13  ;;  %320 = vrot.lane.b32.xlu1 %v4754_v8, %s4671_s14 }
  0x1e   : > { %4510 = vrot.lane.b32.xlu0 %v4499_v7, %s4672_s15  ;;  %669 = vrot.lane.b32.xlu1 %v4754_v8, %s4672_s15 }
  0x22   : > { %4515 = vrot.lane.b32.xlu0 %v4499_v7, %s4673_s16  ;;  %848 = vrot.lane.b32.xlu1 %v4754_v8, %s4673_s16  ;;  %v4044_v7 = vunpack.c.l.bf16 %v4102_v0 }
  0x26   : > { %4520 = vrot.lane.b32.xlu0 %v4519_v9, %s4674_s17  ;;  %1192 = vrot.lane.b32.xlu1 %v4748_v4, %s4674_s17 }
  0x2a   : > { %4525 = vrot.lane.b32.xlu0 %v4519_v9, %s4675_s18  ;;  %1371 = vrot.lane.b32.xlu1 %v4748_v4, %s4675_s18 }
  0x2e   : > { %4530 = vrot.lane.b32.xlu0 %v4519_v9, %s4676_s19  ;;  %1550 = vrot.lane.b32.xlu1 %v4748_v4, %s4676_s19 }
  0x32   : > { %4535 = vrot.lane.b32.xlu0 %v4519_v9, %s4677_s20  ;;  %1729 = vrot.lane.b32.xlu1 %v4748_v4, %s4677_s20 }
  0x36   : > { %1907 = vperm.xlu0 %4539, %v1903_v10   ;;  %1912 = vperm.xlu1 %4540, %v1904_v11  }
  0x88   : > { %v4501_v15 = vpop.permute.xlu0 %4500  ;;  %v4506_v16 = vpop.permute.xlu1 %4505 }
  0x89   : > { %v4503_v17 = vunpack.i.h.bf16 %v4501_v15  ;;  %v4502_v18 = vunpack.i.l.bf16 %v4501_v15  ;;  %v4508_v19 = vunpack.i.h.bf16 %v4506_v16  ;;  %v4507_v20 = vunpack.i.l.bf16 %v4506_v16  ;;  %v4103_v16 = vld [vmem:[%s5388_s1 + $0x30] sm:$0xff]  }
  0x8b   : > { %v341_v21 = vsel %vm339_vm1, %v4502_v18, %v4503_v17  ;;  %v326_v28 = vsel %vm324_vm2, %v4507_v20, %v4508_v19 }
  0x8c   : > { %v338_v22 = vpop.permute.xlu0 %337  ;;  %350 = vmatprep.subr.mxu0 %v341_v21  ;;  %v321_v24 = vpop.permute.xlu1 %320 }
  0x8d   : > { %v342_v26 = vsel %vm339_vm1, %v338_v22, %v4502_v18  ;;  %v340_v27 = vsel %vm339_vm1, %v4503_v17, %v338_v22  ;;  %v325_v29 = vsel %vm324_vm2, %v4508_v19, %v321_v24  ;;  %v327_v30 = vsel %vm324_vm2, %v321_v24, %v4507_v20 }
  0x8e   : > { %351 = vmatpush1.msra.mxu0 %v342_v26  ;;  %4180 = vmatprep.subr.mxu1 %v340_v27  ;;  %v4045_v17 = vunpack.c.h.bf16 %v4102_v0  ;;  %v4048_v20 = vunpack.c.l.bf16 %v4103_v16  ;;  %v4104_v26 = vld [vmem:[%s5388_s1 + $0x38] sm:$0xff]  }
  0x8f   : > { %3906 = vmatmul.mubr.msk.f32.vlgmr.msra.gmra.mrb[0].mxu0 %vm343_vm0, %v4028_v1  ;;  %4181 = vmatpush3.msra.mxu1 %v340_v27  ;;  %v4041_v1 = vunpack.c.h.bf16 %v4101_v55  ;;  %v4049_v27 = vunpack.c.h.bf16 %v4103_v16  ;;  %v4976_v16 = vld [vmem:[%s5390_s3] sm:$0xff]  }
  0x90   : > { %4183 = vmatmul.mubr.msk.f32.vlgmr.msra.gmra.mrb[0].mxu1 %vm343_vm0, %v4029_v23  ;;  %508 = vmatprep.subr.mxu0 %v326_v28  ;;  %v4511_v32 = vpop.permute.xlu0 %4510  ;;  %v670_v33 = vpop.permute.xlu1 %669 }
  0x91   : > { %4185 = vmatprep.subr.mxu1 %v325_v29  ;;  %420 = vmatprep.mubr.f32.mxu0 %v4669_v2  ;;  %v4513_v34 = vunpack.i.h.bf16 %v4511_v32  ;;  %v4512_v35 = vunpack.i.l.bf16 %v4511_v32 }
  0x92   : > { %509 = vmatpush1.msra.mxu0 %v327_v30  ;;  %4186 = vmatpush3.msra.mxu1 %v325_v29  ;;  %v4052_v30 = vunpack.c.l.bf16 %v4104_v26 }
  0x93   : > { %3907 = vmatmul.mubr.msk.f32.gmra.mrb[2].mxu0 %vm343_vm0, %v4029_v23  ;;  %4187 = vmatprep.mubr.msk.f32.mxu1 %vm343_vm0, %v4024_v31  ;;  %v673_v36 = vsel %vm671_vm3, %v4512_v35, %v4513_v34  ;;  %v672_v37 = vsel %vm671_vm3, %v4513_v34, %v670_v33  ;;  %v674_v44 = vsel %vm671_vm3, %v670_v33, %v4512_v35  ;;  %v4105_v33 = vld [vmem:[%s5388_s1 + $0x40] sm:$0xff]   ;;  %v4053_v34 = vunpack.c.h.bf16 %v4104_v26 }
  0x94   : > { %572 = vmatprep.mubr.f32.mxu0 %v4669_v2  ;;  %681 = vmatprep.subr.mxu0 %v673_v36  ;;  %v4516_v40 = vpop.permute.xlu0 %4515  ;;  %v849_v43 = vpop.permute.xlu1 %848  ;;  %v4056_v36 = vunpack.c.l.bf16 %v4105_v33 }
  0x95   : > { %4190 = vmatprep.subr.mxu1 %v672_v37  ;;  %v4518_v41 = vunpack.i.h.bf16 %v4516_v40  ;;  %v4517_v42 = vunpack.i.l.bf16 %v4516_v40  ;;  %v311_v40 = vld [vmem:[%s5394_s7] sm:$0x7] }
  0x97   : > { %3910 = vmatmul.mubr.msk.f32.vlgmr.msra.gmra.mrb[0].mxu0 %vm343_vm0, %v4024_v31  ;;  %v852_v46 = vsel %vm850_vm4, %v4517_v42, %v4518_v41  ;;  %v851_v47 = vsel %vm850_vm4, %v4518_v41, %v849_v43  ;;  %v853_v50 = vsel %vm850_vm4, %v849_v43, %v4517_v42  ;;  %v1930_v41 = vsub.s32 0, %v1929_v38 }
  0x98   : > { %4188 = vmatmul.mubr.msk.f32.vlgmr.msra.gmra.mrb[0].mxu1 %vm343_vm0, %v4025_v39  ;;  %578 = vmatprep.mubr.f32.mxu0 %v4669_v2  ;;  %v4521_v52 = vpop.permute.xlu0 %4520  ;;  %v1193_v57 = vpop.permute.xlu1 %1192 }
  0x99   : > { %682 = vmatpush1.msra.mxu0 %v674_v44  ;;  %4191 = vmatpush3.msra.mxu1 %v672_v37  ;;  %v4523_v53 = vunpack.i.h.bf16 %v4521_v52  ;;  %v4522_v54 = vunpack.i.l.bf16 %v4521_v52  ;;  %v4057_v37 = vunpack.c.h.bf16 %v4105_v33  ;;  %v1934_v44 = vsub.s32 1, %v1929_v38 }
  0x9a   : > { %4192 = vmatprep.mubr.msk.f32.mxu1 %vm343_vm0, %v4032_v45  ;;  %860 = vmatprep.subr.mxu0 %v852_v46  ;;  %v4944_v52 = vrot.slane %v311_v40, %v1930_v41  ;;  %v4065_v41 = vunpack.c.h.bf16 %v4976_v16 }
  0x9b   : > { %3911 = vmatmul.mubr.msk.f32.gmra.mrb[2].mxu0 %vm343_vm0, %v4025_v39  ;;  %4195 = vmatprep.subr.mxu1 %v851_v47  ;;  %v1199_v59 = vsel %vm1198_vm5, %v4522_v54, %v4523_v53  ;;  %v1201_v60 = vsel %vm1198_vm5, %v4523_v53, %v1193_v57  ;;  %v1200_v6 = vsel %vm1198_vm5, %v1193_v57, %v4522_v54 }
  0x9c   : > { %745 = vmatprep.mubr.f32.mxu0 %v4669_v2  ;;  %v4526_v61 = vpop.permute.xlu0 %4525  ;;  %v1372_v3 = vpop.permute.xlu1 %1371 }
  0x9d   : > { %v4528_v62 = vunpack.i.h.bf16 %v4526_v61  ;;  %v4527_v63 = vunpack.i.l.bf16 %v4526_v61 }
  0x9f   : > { %3916 = vmatmul.mubr.msk.f32.vlgmr.msra.gmra.mrb[0].mxu0 %vm343_vm0, %v4032_v45  ;;  %v1378_v9 = vsel %vm1377_vm6, %v4527_v63, %v4528_v62  ;;  %v1380_v10 = vsel %vm1377_vm6, %v4528_v62, %v1372_v3  ;;  %v1379_v19 = vsel %vm1377_vm6, %v1372_v3, %v4527_v63 }
  0xa0   : > { %4193 = vmatmul.mubr.msk.f32.vlgmr.msra.gmra.mrb[0].mxu1 %vm343_vm0, %v4033_v49  ;;  %751 = vmatprep.mubr.f32.mxu0 %v4669_v2  ;;  %v4531_v11 = vpop.permute.xlu0 %4530  ;;  %v1551_v18 = vpop.permute.xlu1 %1550 }
  0xa1   : > { %861 = vmatpush1.msra.mxu0 %v853_v50  ;;  %4196 = vmatpush3.msra.mxu1 %v851_v47  ;;  %v4533_v12 = vunpack.i.h.bf16 %v4531_v11  ;;  %v4532_v15 = vunpack.i.l.bf16 %v4531_v11  ;;  %v4059_v47 = vld [vmem:[%s5392_s5] sm:$0xff]  }
  0xa2   : > { %4197 = vmatprep.mubr.msk.f32.mxu1 %vm343_vm0, %v4036_v51  ;;  %1029 = vmatprep.subr.mxu0 %v4750_v5  ;;  %v4060_v50 = vunpack.c.l.bf16 %v4059_v47 }
  0xa3   : > { %3917 = vmatmul.mubr.msk.f32.gmra.mrb[2].mxu0 %vm343_vm0, %v4033_v49  ;;  %4200 = vmatprep.subr.mxu1 %v4754_v8  ;;  %v1557_v21 = vsel %vm1556_vm7, %v4532_v15, %v4533_v12  ;;  %v1559_v22 = vsel %vm1556_vm7, %v4533_v12, %v1551_v18  ;;  %v1558_v29 = vsel %vm1556_vm7, %v1551_v18, %v4532_v15 }
  0xa4   : > { %924 = vmatprep.mubr.f32.mxu0 %v4669_v2  ;;  %v4536_v23 = vpop.permute.xlu0 %4535  ;;  %v1730_v28 = vpop.permute.xlu1 %1729 }
  0xa5   : > { %v4538_v24 = vunpack.i.h.bf16 %v4536_v23  ;;  %v4537_v25 = vunpack.i.l.bf16 %v4536_v23  ;;  %v2124_v23 = vld [vmem:[%s5391_s4 + $0x8] sm:$0xff] }
  0xa7   : > { %3922 = vmatmul.mubr.msk.f32.vlgmr.msra.gmra.mrb[0].mxu0 %vm343_vm0, %v4036_v51  ;;  %v1736_v31 = vsel %vm1735_vm8, %v4537_v25, %v4538_v24  ;;  %v1738_v32 = vsel %vm1735_vm8, %v4538_v24, %v1730_v28  ;;  %v1737_v35 = vsel %vm1735_vm8, %v1730_v28, %v4537_v25  ;;  %v4061_v51 = vunpack.c.h.bf16 %v4059_v47  ;;  %v2123_v24 = vld [vmem:[%s5391_s4] sm:$0xff] }
  0xa8   : > { %4198 = vmatmul.mubr.msk.f32.vlgmr.msra.gmra.mrb[0].mxu1 %vm343_vm0, %v4037_v56  ;;  %930 = vmatprep.mubr.f32.mxu0 %v4669_v2 }
  0xa9   : > { %1030 = vmatpush1.msra.mxu0 %v4748_v4  ;;  %4201 = vmatpush3.msra.mxu1 %v4754_v8 }
  0xaa   : > { %4202 = vmatprep.mubr.msk.f32.mxu1 %vm343_vm0, %v4040_v58  ;;  %1208 = vmatprep.subr.mxu0 %v1199_v59 }
  0xab   : > { %3923 = vmatmul.mubr.msk.f32.gmra.mrb[2].mxu0 %vm343_vm0, %v4037_v56  ;;  %4205 = vmatprep.subr.mxu1 %v1201_v60  ;;  %v4946_v56 = vrot.slane %v311_v40, %v1934_v44 }
  0xac   : > { %1093 = vmatprep.mubr.f32.mxu0 %v4669_v2 }
  0xaf   : > { %3928 = vmatmul.mubr.msk.f32.vlgmr.msra.gmra.mrb[0].mxu0 %vm343_vm0, %v4040_v58 }
  0xb0   : > { %4203 = vmatmul.mubr.msk.f32.vlgmr.msra.gmra.mrb[0].mxu1 %vm343_vm0, %v4041_v1  ;;  %1099 = vmatprep.mubr.f32.mxu0 %v4669_v2 }
  0xb1   : > { %1209 = vmatpush1.msra.mxu0 %v1200_v6  ;;  %4206 = vmatpush3.msra.mxu1 %v1201_v60 }
  0xb2   : > { %4207 = vmatprep.mubr.msk.f32.mxu1 %vm343_vm0, %v4044_v7  ;;  %1387 = vmatprep.subr.mxu0 %v1378_v9 }
  0xb3   : > { %3929 = vmatmul.mubr.msk.f32.gmra.mrb[2].mxu0 %vm343_vm0, %v4041_v1  ;;  %4210 = vmatprep.subr.mxu1 %v1380_v10 }
  0xb4   : > { %1272 = vmatprep.mubr.f32.mxu0 %v4669_v2 }
  0xb5   : > { %v1908_v39 = vpop.permute.xlu0 %1907  ;;  %v1913_v42 = vpop.permute.xlu1 %1912 }
  0xb7   : > { %3934 = vmatmul.mubr.msk.f32.vlgmr.msra.gmra.mrb[0].mxu0 %vm343_vm0, %v4044_v7 }
  0xb8   : > { %4208 = vmatmul.mubr.msk.f32.vlgmr.msra.gmra.mrb[0].mxu1 %vm343_vm0, %v4045_v17  ;;  %1278 = vmatprep.mubr.f32.mxu0 %v4669_v2 }
  0xb9   : > { %1388 = vmatpush1.msra.mxu0 %v1379_v19  ;;  %4211 = vmatpush3.msra.mxu1 %v1380_v10 }
  0xba   : > { %4212 = vmatprep.mubr.msk.f32.mxu1 %vm343_vm0, %v4048_v20  ;;  %1566 = vmatprep.subr.mxu0 %v1557_v21  ;;  %v1954_v21 = vld [vmem:[%s5393_s6 + $0x8] sm:$0xff] }
  0xbb   : > { %3935 = vmatmul.mubr.msk.f32.gmra.mrb[2].mxu0 %vm343_vm0, %v4045_v17  ;;  %4215 = vmatprep.subr.mxu1 %v1559_v22  ;;  %v4064_v17 = vunpack.c.l.bf16 %v4976_v16  ;;  %v4110_v16 = vld [vmem:[%s5390_s3 + $0x28] sm:$0xff]  }
  0xbc   : > { %1451 = vmatprep.mubr.f32.mxu0 %v4669_v2 }
  0xbf   : > { %3940 = vmatmul.mubr.msk.f32.vlgmr.msra.gmra.mrb[0].mxu0 %vm343_vm0, %v4048_v20 }
  0xc0   : > { %4213 = vmatmul.mubr.msk.f32.vlgmr.msra.gmra.mrb[0].mxu1 %vm343_vm0, %v4049_v27  ;;  %1457 = vmatprep.mubr.f32.mxu0 %v4669_v2 }
  0xc1   : > { %1567 = vmatpush1.msra.mxu0 %v1558_v29  ;;  %4216 = vmatpush3.msra.mxu1 %v1559_v22  ;;  %v1953_v22 = vld [vmem:[%s5393_s6] sm:$0xff] }
  0xc2   : > { %4217 = vmatprep.mubr.msk.f32.mxu1 %vm343_vm0, %v4052_v30  ;;  %1745 = vmatprep.subr.mxu0 %v1736_v31 }
  0xc3   : > { %3941 = vmatmul.mubr.msk.f32.gmra.mrb[2].mxu0 %vm343_vm0, %v4049_v27  ;;  %4220 = vmatprep.subr.mxu1 %v1738_v32 }
  0xc4   : > { %1630 = vmatprep.mubr.f32.mxu0 %v4669_v2 }
  0xc7   : > { %3946 = vmatmul.mubr.msk.f32.vlgmr.msra.gmra.mrb[0].mxu0 %vm343_vm0, %v4052_v30 }
  0xc8   : > { %4218 = vmatmul.mubr.msk.f32.vlgmr.msra.gmra.mrb[0].mxu1 %vm343_vm0, %v4053_v34  ;;  %1636 = vmatprep.mubr.f32.mxu0 %v4669_v2 }
  0xc9   : > { %1746 = vmatpush1.msra.mxu0 %v1737_v35  ;;  %4221 = vmatpush3.msra.mxu1 %v1738_v32 }
  0xca   : > { %4222 = vmatprep.mubr.msk.f32.mxu1 %vm343_vm0, %v4056_v36  ;;  %4225 = vmatprep.subr.mxu1 %v4754_v8 }
  0xcb   : > { %3947 = vmatmul.mubr.msk.f32.gmra.mrb[2].mxu0 %vm343_vm0, %v4053_v34  ;;  %1971 = vmatprep.subr.mxu0 %v4750_v5  ;;  %v1938_v5 = vsub.s32 2, %v1929_v38 }
  0xcc   : > { %1809 = vmatprep.mubr.f32.mxu0 %v4669_v2 }
  0xcf   : > { %3952 = vmatmul.mubr.msk.f32.vlgmr.msra.gmra.mrb[0].mxu0 %vm343_vm0, %v4056_v36  ;;  %v5050_v36 = vld [vmem:[%s5390_s3 + $0x8] sm:$0xff]  }
  0xd0   : > { %4223 = vmatmul.mubr.msk.f32.vlgmr.msra.gmra.mrb[0].mxu1 %vm343_vm0, %v4057_v37  ;;  %1815 = vmatprep.mubr.f32.mxu0 %v4669_v2  ;;  %v4068_v44 = vunpack.c.l.bf16 %v5050_v36 }
  0xd1   : > { %4226 = vmatpush3.msra.mxu1 %v4754_v8  ;;  %1972 = vmatpush1.msra.mxu0 %v4748_v4  ;;  %v4939_v4 = vrot.slane %v311_v40, %v1938_v5 }
  0xd2   : > { %4227 = vmatprep.mubr.msk.f32.mxu1 %vm343_vm0, %v4060_v50 }
  0xd3   : > { %3953 = vmatmul.mubr.msk.f32.gmra.mrb[2].mxu0 %vm343_vm0, %v4057_v37 }
  0xd4   : > { %2035 = vmatprep.mubr.f32.mxu0 %v4669_v2  ;;  %4228 = vmatmul.mubr.msk.f32.vlgmr.msra.gmra.mrb[2].mxu1 %vm343_vm0, %v4061_v51 }
  0xd5   : > { %4234 = vmatprep.mubr.msk.f32.mxu1 %vm2163_vm9, %v4064_v17 }
  0xd7   : > { %3956 = vmatmul.mubr.msk.f32.vlgmr.msra.gmra.mrb[4].mxu0 %vm343_vm0, %v4060_v50 }
  0xd8   : > { %2041 = vmatprep.mubr.f32.mxu0 %v4669_v2 }
  0xdb   : > { %3957 = vmatmul.mubr.msk.f32.gmra.mrb[6].mxu0 %vm343_vm0, %v4061_v51 }
  0xdc   : > { %2234 = vmatprep.mubr.f32.mxu0 %v4669_v2 }
 0x1a2   : > { %v1811_v43 = vpop.f32.mrb[0].mxu0 }
 0x1a3   : > { %v1915_v45 = vadd.f32 %v1908_v39, %v1811_v43  ;;  %v1813_v8 = vpop.f32.mrb[1].mxu0  ;;  %v4224_v46 = vpop.f32.mrb[0].mxu1 }
 0x1a4   : > { %v1916_v13 = vadd.f32 %v1908_v39, %v1813_v8  ;;  %v1920_v48 = vadd.f32 %v4224_v46, %v1913_v42  ;;  %v1888_v49 = vpop.f32.mrb[1].mxu1 }
 0x1a5   : > { %v1917_v53 = vadd.f32 %v1908_v39, %v1888_v49  ;;  %v1921_v54 = vmax.f32 %v1915_v45, 0.0 }
 0x1a6   : > { %v1922_v55 = vmax.f32 %v1916_v13, 0.0  ;;  %v1926_v57 = vmax.f32 %v1920_v48, 0.0  ;;  %v1817_v58 = vpop.f32.mrb[2].mxu0 }
 0x1a7   : > { %v1923_v59 = vmax.f32 %v1917_v53, 0.0  ;;  %v1918_v60 = vadd.f32 %v1913_v42, %v1817_v58  ;;  %v1819_v61 = vpop.f32.mrb[3].mxu0  ;;  %v4955_v3 = vmul.f32 %v4944_v52, %v1921_v54 }
 0x1a8   : > { %v1948_v62 = vmul.f32 %v4939_v4, %v1926_v57  ;;  %v1919_v63 = vadd.f32 %v1913_v42, %v1819_v61  ;;  %v4958_v6 = vmul.f32 %v4946_v56, %v1922_v55  ;;  %v5101_v55 = vld [vmem:[%s5390_s3 + $0x10] sm:$0xff]  }
 0x1a9   : > { %v1945_v0 = vmul.f32 %v4939_v4, %v1923_v59  ;;  %v1924_v1 = vmax.f32 %v1918_v60, 0.0 }
 0x1aa   : > { %v1925_v7 = vmax.f32 %v1919_v63, 0.0 }
 0x1ab   : > { %v4962_v9 = vmul.f32 %v4944_v52, %v1924_v1  ;;  %v4546_v10 = vpack.i.bf16 %v1948_v62, %v1945_v0  ;;  %v4985_v20 = vpack.c.bf16 %v1948_v62, %v1945_v0  ;;  %v4069_v62 = vunpack.c.h.bf16 %v5050_v36 }
 0x1ac   : > { %v4966_v11 = vmul.f32 %v4946_v56, %v1925_v7  ;;  %v4072_v1 = vunpack.c.l.bf16 %v5101_v55 }
 0x1ad   : > { %4547 = vrot.lane.b32.xlu0 %v4546_v10, %s4671_s14  ;;  %v4591_v12 = vpack.i.bf16 %v4962_v9, %v4955_v3  ;;  %v4327_v19 = vpack.c.bf16 %v4962_v9, %v4955_v3 }
 0x1ae   : > { %v4541_v15 = vpack.i.bf16 %v4966_v11, %v4958_v6  ;;  %v4325_v18 = vpack.c.bf16 %v4966_v11, %v4958_v6  ;;  %v5169_v11 = vld [vmem:[%s5390_s3 + $0x20] sm:$0xff]  }
 0x1b0   : > { %4542 = vrot.lane.b32.xlu1 %v4541_v15, %s4671_s14 }
 0x1b1   : > { %4557 = vrot.lane.b32.xlu0 %v4546_v10, %s4670_s13 }
 0x1b4   : > { %4552 = vrot.lane.b32.xlu1 %v4541_v15, %s4670_s13 }
 0x1b5   : > { %4567 = vrot.lane.b32.xlu0 %v4546_v10, %s4672_s15 }
 0x1b8   : > { %4562 = vrot.lane.b32.xlu1 %v4541_v15, %s4672_s15 }
 0x1b9   : > { %4577 = vrot.lane.b32.xlu0 %v4546_v10, %s4673_s16 }
 0x1bc   : > { %4572 = vrot.lane.b32.xlu1 %v4541_v15, %s4673_s16 }
 0x1bd   : > { %4582 = vrot.lane.b32.xlu0 %v4546_v10, %s4674_s17 }
 0x1c0   : > { %4587 = vrot.lane.b32.xlu1 %v4541_v15, %s4674_s17 }
 0x1c1   : > { %4602 = vrot.lane.b32.xlu0 %v4541_v15, %s4675_s18 }
 0x1c4   : > { %4592 = vrot.lane.b32.xlu1 %v4591_v12, %s4674_s17 }
 0x1c5   : > { %4607 = vrot.lane.b32.xlu0 %v4591_v12, %s4675_s18 }
 0x1c8   : > { %4597 = vrot.lane.b32.xlu1 %v4546_v10, %s4675_s18 }
 0x1c9   : > { %4617 = vrot.lane.b32.xlu0 %v4591_v12, %s4670_s13 }
 0x1cc   : > { %4612 = vrot.lane.b32.xlu1 %v4591_v12, %s4671_s14 }
 0x1cd   : > { %4622 = vrot.lane.b32.xlu0 %v4546_v10, %s4676_s19 }
 0x1d0   : > { %4627 = vrot.lane.b32.xlu1 %v4541_v15, %s4676_s19 }
 0x1d1   : > { %4637 = vrot.lane.b32.xlu0 %v4591_v12, %s4672_s15  ;;  %s4480_s15 = smul.u32 24, %s5399_s28 }
 0x1d3   : > { %s305_s24 = scalar_lea.vmem %s5395_s8, %s4480_s15 }
 0x1d4   : > { %4632 = vrot.lane.b32.xlu1 %v4591_v12, %s4676_s19 }
 0x1d5   : > { %4642 = vrot.lane.b32.xlu0 %v4546_v10, %s4677_s20 }
 0x1d8   : > { %4647 = vrot.lane.b32.xlu1 %v4541_v15, %s4677_s20 }
 0x1d9   : > { %4657 = vrot.lane.b32.xlu0 %v4591_v12, %s4673_s16 }
 0x1dc   : > { %4652 = vrot.lane.b32.xlu1 %v4591_v12, %s4677_s20 }
 0x1dd   : > { %1962 = vperm.xlu0 %4539, %v1954_v21   ;;  %v5138_v21 = vld [vmem:[%s5390_s3 + $0x18] sm:$0xff]  }
 0x1e0   : > { %1957 = vperm.xlu1 %4540, %v1953_v22  }
 0x1e1   : > { %2132 = vperm.xlu0 %4539, %v2124_v23   ;;  %v4073_v23 = vunpack.c.h.bf16 %v5101_v55 }
 0x1e4   : > { %2127 = vperm.xlu1 %4540, %v2123_v24   ;;  %v5396_v24 = vunpack.c.l.bf16 %v5138_v21 }
 0x21f   : > { %v5023_v25 = vpop.permute.xlu0 %4547 }
 0x220   : > { %v4550_v27 = vunpack.i.h.bf16 %v5023_v25  ;;  %v4549_v28 = vunpack.i.l.bf16 %v5023_v25 }
 0x222   : > { %v5025_v26 = vpop.permute.xlu1 %4542 }
 0x223   : > { %v4545_v29 = vunpack.i.h.bf16 %v5025_v26  ;;  %v4544_v30 = vunpack.i.l.bf16 %v5025_v26  ;;  %v5031_v31 = vpop.permute.xlu0 %4557 }
 0x224   : > { %v4560_v37 = vunpack.i.h.bf16 %v5031_v31  ;;  %v4559_v38 = vunpack.i.l.bf16 %v5031_v31 }
 0x225   : > { %v2157_v32 = vsel %vm324_vm2, %v4544_v30, %v4549_v28  ;;  %v2158_v33 = vsel %vm324_vm2, %v4545_v29, %v4550_v27 }
 0x226   : > { %v5045_v34 = vpop.permute.xlu1 %4552  ;;  %v4297_v35 = vpack.c.bf16 %v2158_v33, %v2157_v32 }
 0x227   : > { %v4555_v5 = vunpack.i.h.bf16 %v5045_v34  ;;  %v4554_v39 = vunpack.i.l.bf16 %v5045_v34  ;;  %v5056_v40 = vpop.permute.xlu0 %4567 }
 0x228   : > { %4298 = vmatprep.subr.bf16.mxu1 %v4297_v35  ;;  %v4570_v46 = vunpack.i.h.bf16 %v5056_v40  ;;  %v4569_v47 = vunpack.i.l.bf16 %v5056_v40 }
 0x229   : > { %4300 = vmatpush3.bf16.msra.mxu1 %v4297_v35  ;;  %v2345_v42 = vsel %vm339_vm1, %v4554_v39, %v4559_v38  ;;  %v2346_v43 = vsel %vm339_vm1, %v4555_v5, %v4560_v37 }
 0x22a   : > { %v5070_v45 = vpop.permute.xlu1 %4562  ;;  %v4305_v8 = vpack.c.bf16 %v2346_v43, %v2345_v42 }
 0x22b   : > { %v4565_v13 = vunpack.i.h.bf16 %v5070_v45  ;;  %v4564_v48 = vunpack.i.l.bf16 %v5070_v45  ;;  %v5076_v49 = vpop.permute.xlu0 %4577 }
 0x22c   : > { %4235 = vmatmul.mubr.msk.f32.vlgmr.msra.gmra.mrb[2].mxu1 %vm2163_vm9, %v4065_v41  ;;  %4306 = vmatprep.subr.bf16.mxu1 %v4305_v8  ;;  %v4580_v57 = vunpack.i.h.bf16 %v5076_v49  ;;  %v4579_v58 = vunpack.i.l.bf16 %v5076_v49 }
 0x22d   : > { %4308 = vmatpush3.bf16.msra.mxu1 %v4305_v8  ;;  %v2532_v50 = vsel %vm671_vm3, %v4564_v48, %v4569_v47  ;;  %v2533_v51 = vsel %vm671_vm3, %v4565_v13, %v4570_v46  ;;  %4241 = vmatprep.mubr.msk.f32.mxu1 %vm2163_vm9, %v4068_v44 }
 0x22e   : > { %v5096_v53 = vpop.permute.xlu1 %4572  ;;  %v4313_v54 = vpack.c.bf16 %v2533_v51, %v2532_v50 }
 0x22f   : > { %v4575_v59 = vunpack.i.h.bf16 %v5096_v53  ;;  %v4574_v60 = vunpack.i.l.bf16 %v5096_v53  ;;  %v5107_v61 = vpop.permute.xlu0 %4582 }
 0x230   : > { %4314 = vmatprep.subr.bf16.mxu1 %v4313_v54 }
 0x231   : > { %v2719_v63 = vsel %vm850_vm4, %v4574_v60, %v4579_v58  ;;  %v2720_v0 = vsel %vm850_vm4, %v4575_v59, %v4580_v57 }
 0x232   : > { %v5123_v7 = vpop.permute.xlu1 %4587  ;;  %v4321_v10 = vpack.c.bf16 %v2720_v0, %v2719_v63 }
 0x233   : > { %v5125_v12 = vpop.permute.xlu0 %4602  ;;  %v4590_v63 = vunpack.i.h.bf16 %v5123_v7  ;;  %v4589_v0 = vunpack.i.l.bf16 %v5123_v7 }
 0x234   : > { %4242 = vmatmul.mubr.msk.f32.vlgmr.msra.gmra.mrb[2].mxu1 %vm2163_vm9, %v4069_v62 }
 0x235   : > { %4316 = vmatpush3.bf16.msra.mxu1 %v4313_v54  ;;  %4248 = vmatprep.mubr.msk.f32.mxu1 %vm2163_vm9, %v4072_v1  ;;  %v4077_v54 = vunpack.c.h.bf16 %v5138_v21 }
 0x236   : > { %4322 = vmatprep.subr.bf16.mxu1 %v4321_v10  ;;  %v5133_v15 = vpop.permute.xlu1 %4592 }
 0x237   : > { %v5140_v22 = vpop.permute.xlu0 %4607  ;;  %v4594_v3 = vunpack.i.l.bf16 %v5133_v15 }
 0x239   : > { %v3077_v45 = vsel %vm1198_vm5, %v4594_v3, %v4589_v0 }
 0x23a   : > { %v5144_v32 = vpop.permute.xlu1 %4597 }
 0x23b   : > { %v4618_v33 = vpop.permute.xlu0 %4617 }
 0x23c   : > { %v4620_v35 = vunpack.i.h.bf16 %v4618_v33  ;;  %v4619_v42 = vunpack.i.l.bf16 %v4618_v33  ;;  %4249 = vmatmul.mubr.msk.f32.vlgmr.msra.gmra.mrb[2].mxu1 %vm2163_vm9, %v4073_v23 }
 0x23d   : > { %4324 = vmatpush3.bf16.msra.mxu1 %v4321_v10  ;;  %4255 = vmatprep.mubr.msk.f32.mxu1 %vm2163_vm9, %v5396_v24  ;;  %v4080_v24 = vunpack.c.l.bf16 %v5169_v11 }
 0x23e   : > { %4326 = vmatprep.subr.bf16.mxu1 %v4325_v18  ;;  %v4613_v43 = vpop.permute.xlu1 %4612  ;;  %v2347_v10 = vsel %vm339_vm1, %v4619_v42, %v4554_v39  ;;  %v2348_v6 = vsel %vm339_vm1, %v4620_v35, %v4555_v5  ;;  %v2350_v25 = vsel %vm339_vm1, %v4560_v37, %v4620_v35  ;;  %v2349_v26 = vsel %vm339_vm1, %v4559_v38, %v4619_v42 }
 0x23f   : > { %v4615_v8 = vunpack.i.h.bf16 %v4613_v43  ;;  %v4614_v50 = vunpack.i.l.bf16 %v4613_v43  ;;  %v5155_v51 = vpop.permute.xlu0 %4622  ;;  %v4585_v43 = vunpack.i.h.bf16 %v5107_v61  ;;  %v4595_v35 = vunpack.i.h.bf16 %v5133_v15 }
 0x240   : > { %v4303_v9 = vpack.c.bf16 %v2350_v25, %v2349_v26  ;;  %v4081_v15 = vunpack.c.h.bf16 %v5169_v11  ;;  %v4625_v26 = vunpack.i.h.bf16 %v5155_v51 }
 0x241   : > { %v2162_v18 = vsel %vm324_vm2, %v4550_v27, %v4615_v8  ;;  %v2161_v39 = vsel %vm324_vm2, %v4549_v28, %v4614_v50  ;;  %v2159_v34 = vsel %vm324_vm2, %v4614_v50, %v4544_v30  ;;  %v2160_v5 = vsel %vm324_vm2, %v4615_v8, %v4545_v29 }
 0x242   : > { %v4295_v7 = vpack.c.bf16 %v2162_v18, %v2161_v39  ;;  %v4293_v33 = vpack.c.bf16 %v2160_v5, %v2159_v34  ;;  %v4584_v27 = vunpack.i.l.bf16 %v5107_v61  ;;  %v4301_v61 = vpack.c.bf16 %v2348_v6, %v2347_v10 }
 0x243   : > { %v4638_v28 = vpop.permute.xlu0 %4637  ;;  %v3076_v31 = vsel %vm1198_vm5, %v4590_v63, %v4585_v43  ;;  %v4599_v6 = vunpack.i.l.bf16 %v5144_v32  ;;  %v4084_v5 = vunpack.c.l.bf16 %v4110_v16 }
 0x244   : > { %v4640_v29 = vunpack.i.h.bf16 %v4638_v28  ;;  %v4639_v30 = vunpack.i.l.bf16 %v4638_v28  ;;  %4294 = vmatprep.subr.bf16.mxu0 %v4293_v33  ;;  %4256 = vmatmul.mubr.msk.f32.vlgmr.msra.gmra.mrb[2].mxu1 %vm2163_vm9, %v4077_v54  ;;  %v3075_v37 = vsel %vm1198_vm5, %v4589_v0, %v4584_v27  ;;  %v3079_v40 = vsel %vm1198_vm5, %v4584_v27, %v4594_v3  ;;  %v4111_v28 = vld [vmem:[%s5390_s3 + $0x30] sm:$0xff]  }
 0x245   : > { %4328 = vmatpush1.bf16.msra.mxu1 %v4327_v19  ;;  %4296 = vmatpush1.bf16.msra.mxu0 %v4295_v7  ;;  %v4089_v3 = vunpack.c.h.bf16 %v4111_v28 }
 0x246   : > { %4330 = vmatprep.subr.bf16.mxu1 %v4985_v20  ;;  %4302 = vmatprep.subr.bf16.mxu0 %v4301_v61  ;;  %v2534_v38 = vsel %vm671_vm3, %v4639_v30, %v4564_v48  ;;  %v2535_v42 = vsel %vm671_vm3, %v4640_v29, %v4565_v13  ;;  %v4333_v48 = vpack.c.bf16 %v3076_v31, %v3075_v37  ;;  %v4088_v37 = vunpack.c.l.bf16 %v4111_v28 }
 0x247   : > { %v5215_v19 = vpop.permute.xlu0 %4642  ;;  %2964 = vmatprep.mubr.f32.mxu1 %v4669_v2  ;;  %v4309_v8 = vpack.c.bf16 %v2535_v42, %v2534_v38  ;;  %v3078_v13 = vsel %vm1198_vm5, %v4595_v35, %v4590_v63  ;;  %v4600_v63 = vunpack.i.h.bf16 %v5144_v32  ;;  %v4604_v32 = vunpack.i.l.bf16 %v5125_v12 }
 0x248   : > { %3960 = vmatmul.mubr.msk.f32.vlgmr.msra.gmra.mrb[4].mxu0 %vm2163_vm9, %v4064_v17  ;;  %3984 = vmatmul.mubr.msk.f32.vlgmr.msra.gmra.mrb[4].mxu1 %vm2163_vm9, %v4080_v24  ;;  %v2537_v17 = vsel %vm671_vm3, %v4570_v46, %v4640_v29  ;;  %v3080_v46 = vsel %vm1198_vm5, %v4585_v43, %v4595_v35  ;;  %v4335_v11 = vpack.c.bf16 %v3078_v13, %v3077_v45  ;;  %v4624_v29 = vunpack.i.l.bf16 %v5155_v51 }
 0x249   : > { %4332 = vmatpush3.bf16.msra.mxu1 %v4985_v20  ;;  %4304 = vmatpush1.bf16.msra.mxu0 %v4303_v9  ;;  %v2536_v20 = vsel %vm671_vm3, %v4569_v47, %v4639_v30  ;;  %v4337_v34 = vpack.c.bf16 %v3080_v46, %v3079_v40  ;;  %v3262_v53 = vsel %vm1377_vm6, %v4604_v32, %v4599_v6 }
 0x24a   : > { %4334 = vmatprep.subr.bf16.mxu1 %v4333_v48  ;;  %4310 = vmatprep.subr.bf16.mxu0 %v4309_v8  ;;  %v4311_v18 = vpack.c.bf16 %v2537_v17, %v2536_v20 }
 0x24b   : > { %v4658_v50 = vpop.permute.xlu0 %4657  ;;  %2240 = vmatprep.mubr.f32.mxu0 %v4669_v2  ;;  %2970 = vmatprep.mubr.f32.mxu1 %v4669_v2 }
 0x24c   : > { %v4660_v10 = vunpack.i.h.bf16 %v4658_v50  ;;  %v4659_v0 = vunpack.i.l.bf16 %v4658_v50  ;;  %3961 = vmatmul.mubr.msk.f32.gmra.mrb[6].mxu0 %vm2163_vm9, %v4065_v41  ;;  %3985 = vmatmul.mubr.msk.f32.gmra.mrb[6].mxu1 %vm2163_vm9, %v4081_v15  ;;  %v4605_v41 = vunpack.i.h.bf16 %v5125_v12  ;;  %v4609_v12 = vunpack.i.l.bf16 %v5140_v22  ;;  %v4112_v50 = vld [vmem:[%s5390_s3 + $0x38] sm:$0xff]  }
 0x24d   : > { %2421 = vmatprep.mubr.f32.mxu0 %v4669_v2  ;;  %4262 = vmatprep.mubr.msk.f32.mxu1 %vm2163_vm9, %v4080_v24 }
 0x24e   : > { %v2721_v47 = vsel %vm850_vm4, %v4659_v0, %v4574_v60  ;;  %v2722_v24 = vsel %vm850_vm4, %v4660_v10, %v4575_v59  ;;  %v3263_v59 = vsel %vm1377_vm6, %v4605_v41, %v4600_v63  ;;  %v4610_v60 = vunpack.i.h.bf16 %v5140_v22  ;;  %v4628_v22 = vpop.permute.xlu1 %4627 }
 0x24f   : > { %v4317_v39 = vpack.c.bf16 %v2722_v24, %v2721_v47  ;;  %v2724_v7 = vsel %vm850_vm4, %v4580_v57, %v4660_v10  ;;  %v2723_v33 = vsel %vm850_vm4, %v4579_v58, %v4659_v0  ;;  %v4341_v43 = vpack.c.bf16 %v3263_v59, %v3262_v53 }
 0x250   : > { %3966 = vmatmul.mubr.msk.f32.vlgmr.msra.gmra.mrb[4].mxu0 %vm2163_vm9, %v4068_v44  ;;  %4263 = vmatmul.mubr.msk.f32.vlgmr.msra.gmra.mrb[2].mxu1 %vm2163_vm9, %v4081_v15  ;;  %v4085_v44 = vunpack.c.h.bf16 %v4110_v16  ;;  %v4319_v57 = vpack.c.bf16 %v2724_v7, %v2723_v33  ;;  %v3264_v49 = vsel %vm1377_vm6, %v4609_v12, %v4604_v32  ;;  %v3265_v58 = vsel %vm1377_vm6, %v4610_v60, %v4605_v41 }
 0x251   : > { %4312 = vmatpush1.bf16.msra.mxu0 %v4311_v18  ;;  %4336 = vmatpush1.bf16.msra.mxu1 %v4335_v11  ;;  %v4630_v36 = vunpack.i.h.bf16 %v4628_v22  ;;  %v3266_v27 = vsel %vm1377_vm6, %v4599_v6, %v4609_v12  ;;  %v3267_v25 = vsel %vm1377_vm6, %v4600_v63, %v4610_v60  ;;  %v4092_v10 = vunpack.c.l.bf16 %v4112_v50  ;;  %v4113_v11 = vld [vmem:[%s5390_s3 + $0x40] sm:$0xff]  }
 0x252   : > { %4318 = vmatprep.subr.bf16.mxu0 %v4317_v39  ;;  %4338 = vmatprep.subr.bf16.mxu1 %v4337_v34  ;;  %v4633_v30 = vpop.permute.xlu1 %4632  ;;  %v4345_v61 = vpack.c.bf16 %v3267_v25, %v3266_v27  ;;  %v4093_v16 = vunpack.c.h.bf16 %v4112_v50 }
 0x253   : > { %2427 = vmatprep.mubr.f32.mxu0 %v4669_v2  ;;  %3151 = vmatprep.mubr.f32.mxu1 %v4669_v2  ;;  %v3450_v38 = vsel %vm1556_vm7, %v4630_v36, %v4625_v26  ;;  %v4635_v51 = vunpack.i.h.bf16 %v4633_v30  ;;  %v4634_v55 = vunpack.i.l.bf16 %v4633_v30 }
 0x254   : > { %3967 = vmatmul.mubr.msk.f32.gmra.mrb[6].mxu0 %vm2163_vm9, %v4069_v62  ;;  %3990 = vmatmul.mubr.msk.f32.vlgmr.msra.gmra.mrb[4].mxu1 %vm2163_vm9, %v4084_v5  ;;  %v4629_v62 = vunpack.i.l.bf16 %v4628_v22 }
 0x255   : > { %4340 = vmatpush3.bf16.msra.mxu1 %v4337_v34  ;;  %2608 = vmatprep.mubr.f32.mxu0 %v4669_v2  ;;  %v3452_v48 = vsel %vm1556_vm7, %v4635_v51, %v4630_v36  ;;  %v3453_v45 = vsel %vm1556_vm7, %v4624_v29, %v4634_v55  ;;  %v3454_v13 = vsel %vm1556_vm7, %v4625_v26, %v4635_v51  ;;  %v4096_v34 = vunpack.c.l.bf16 %v4113_v11 }
 0x256   : > { %4342 = vmatprep.subr.bf16.mxu1 %v4341_v43  ;;  %3157 = vmatprep.mubr.f32.mxu1 %v4669_v2  ;;  %v3449_v31 = vsel %vm1556_vm7, %v4629_v62, %v4624_v29  ;;  %v4648_v9 = vpop.permute.xlu1 %4647  ;;  %v3451_v42 = vsel %vm1556_vm7, %v4634_v55, %v4629_v62  ;;  %v4353_v20 = vpack.c.bf16 %v3454_v13, %v3453_v45 }
 0x257   : > { %v4349_v35 = vpack.c.bf16 %v3450_v38, %v3449_v31  ;;  %v4650_v8 = vunpack.i.h.bf16 %v4648_v9  ;;  %v4649_v15 = vunpack.i.l.bf16 %v4648_v9  ;;  %v4351_v17 = vpack.c.bf16 %v3452_v48, %v3451_v42 }
 0x258   : > { %3972 = vmatmul.mubr.msk.f32.vlgmr.msra.gmra.mrb[4].mxu0 %vm2163_vm9, %v4072_v1  ;;  %3991 = vmatmul.mubr.msk.f32.gmra.mrb[6].mxu1 %vm2163_vm9, %v4085_v44  ;;  %v4343_v1 = vpack.c.bf16 %v3265_v58, %v3264_v49 }
 0x259   : > { %4320 = vmatpush1.bf16.msra.mxu0 %v4319_v57  ;;  %2614 = vmatprep.mubr.f32.mxu0 %v4669_v2 }
 0x25a   : > { %4269 = vmatprep.mubr.msk.f32.mxu1 %vm2163_vm9, %v4084_v5  ;;  %v4653_v0 = vpop.permute.xlu1 %4652  ;;  %v4097_v5 = vunpack.c.h.bf16 %v4113_v11 }
 0x25b   : > { %v4655_v40 = vunpack.i.h.bf16 %v4653_v0  ;;  %v4654_v46 = vunpack.i.l.bf16 %v4653_v0 }
 0x25c   : > { %3973 = vmatmul.mubr.msk.f32.gmra.mrb[6].mxu0 %vm2163_vm9, %v4073_v23  ;;  %4270 = vmatmul.mubr.msk.f32.vlgmr.msra.gmra.mrb[2].mxu1 %vm2163_vm9, %v4085_v44  ;;  %v5397_v23 = vunpack.c.l.bf16 %v5138_v21  ;;  %v4645_v21 = vunpack.i.h.bf16 %v5215_v19  ;;  %v1963_v12 = vpop.permute.xlu0 %1962 }
 0x25d   : > { %4344 = vmatpush1.bf16.msra.mxu1 %v4343_v1  ;;  %2795 = vmatprep.mubr.f32.mxu0 %v4669_v2  ;;  %v3638_v41 = vsel %vm1735_vm8, %v4654_v46, %v4649_v15  ;;  %v3639_v47 = vsel %vm1735_vm8, %v4655_v40, %v4650_v8 }
 0x25e   : > { %4346 = vmatprep.subr.bf16.mxu1 %v4345_v61  ;;  %3338 = vmatprep.mubr.f32.mxu1 %v4669_v2  ;;  %v3637_v6 = vsel %vm1735_vm8, %v4650_v8, %v4645_v21  ;;  %v3641_v32 = vsel %vm1735_vm8, %v4645_v21, %v4655_v40  ;;  %v4359_v18 = vpack.c.bf16 %v3639_v47, %v3638_v41 }
 0x25f   : > { %v1958_v44 = vpop.permute.xlu1 %1957 }
 0x260   : > { %3978 = vmatmul.mubr.msk.f32.vlgmr.msra.gmra.mrb[4].mxu0 %vm2163_vm9, %v5397_v23  ;;  %3996 = vmatmul.mubr.msk.f32.vlgmr.msra.gmra.mrb[4].mxu1 %vm2163_vm9, %v4088_v37  ;;  %v2133_v43 = vpop.permute.xlu0 %2132 }
 0x261   : > { %4348 = vmatpush3.bf16.msra.mxu1 %v4345_v61  ;;  %2801 = vmatprep.mubr.f32.mxu0 %v4669_v2 }
 0x262   : > { %4350 = vmatprep.subr.bf16.mxu1 %v4349_v35  ;;  %3344 = vmatprep.mubr.f32.mxu1 %v4669_v2 }
 0x263   : > { %v2128_v7 = vpop.permute.xlu1 %2127 }
 0x264   : > { %3979 = vmatmul.mubr.msk.f32.gmra.mrb[6].mxu0 %vm2163_vm9, %v4077_v54  ;;  %3997 = vmatmul.mubr.msk.f32.gmra.mrb[6].mxu1 %vm2163_vm9, %v4089_v3  ;;  %v4644_v54 = vunpack.i.l.bf16 %v5215_v19  ;;  %v4365_v33 = vadd.f32 %v2128_v7, %v1958_v44 }
 0x265   : > { %4276 = vmatprep.mubr.msk.f32.mxu1 %vm2163_vm9, %v4088_v37 }
 0x266   : > { %v3636_v63 = vsel %vm1735_vm8, %v4649_v15, %v4644_v54  ;;  %v3640_v24 = vsel %vm1735_vm8, %v4644_v54, %v4654_v46 }
 0x267   : > { %v4357_v19 = vpack.c.bf16 %v3637_v6, %v3636_v63  ;;  %v4361_v39 = vpack.c.bf16 %v3641_v32, %v3640_v24 }
 0x268   : > { %4277 = vmatmul.mubr.msk.f32.vlgmr.msra.gmra.mrb[2].mxu1 %vm2163_vm9, %v4089_v3 }
 0x269   : > { %4352 = vmatpush1.bf16.msra.mxu1 %v4351_v17  ;;  %3525 = vmatprep.mubr.f32.mxu1 %v4669_v2 }
 0x26a   : > { %4354 = vmatprep.subr.bf16.mxu1 %v4353_v20 }
 0x26c   : > { %4002 = vmatmul.mubr.msk.f32.vlgmr.msra.gmra.mrb[4].mxu1 %vm2163_vm9, %v4092_v10 }
 0x26d   : > { %4356 = vmatpush3.bf16.msra.mxu1 %v4353_v20  ;;  %3531 = vmatprep.mubr.f32.mxu1 %v4669_v2 }
 0x26e   : > { %4358 = vmatprep.subr.bf16.mxu1 %v4357_v19 }
 0x270   : > { %4003 = vmatmul.mubr.msk.f32.gmra.mrb[6].mxu1 %vm2163_vm9, %v4093_v16 }
 0x271   : > { %4283 = vmatprep.mubr.msk.f32.mxu1 %vm2163_vm9, %v4092_v10 }
 0x274   : > { %4284 = vmatmul.mubr.msk.f32.vlgmr.msra.gmra.mrb[2].mxu1 %vm2163_vm9, %v4093_v16 }
 0x275   : > { %4360 = vmatpush1.bf16.msra.mxu1 %v4359_v18  ;;  %3712 = vmatprep.mubr.f32.mxu1 %v4669_v2 }
 0x276   : > { %4362 = vmatprep.subr.bf16.mxu1 %v4361_v39 }
 0x278   : > { %4008 = vmatmul.mubr.msk.f32.vlgmr.msra.gmra.mrb[4].mxu1 %vm2163_vm9, %v4096_v34 }
 0x279   : > { %4364 = vmatpush3.bf16.msra.mxu1 %v4361_v39  ;;  %3718 = vmatprep.mubr.f32.mxu1 %v4669_v2  ;;  %v4371_v2 = vadd.f32 %v2133_v43, %v1963_v12 }
 0x27c   : > { %4009 = vmatmul.mubr.msk.f32.gmra.mrb[6].mxu1 %vm2163_vm9, %v4097_v5 }
 0x27d   : > { %4290 = vmatprep.mubr.msk.f32.mxu1 %vm2163_vm9, %v4096_v34 }
 0x280   : > { %4291 = vmatmul.mubr.msk.f32.vlgmr.msra.gmra.mrb[2].mxu1 %vm2163_vm9, %v4097_v5 }
 0x333   : > { %v2797_v14 = vpop.f32.mrb[4].mxu0 }
 0x334   : > { %v2799_v53 = vpop.f32.mrb[5].mxu0  ;;  %v4366_v22 = vadd.f32 %v4365_v33, %v2797_v14 }
 0x335   : > { %v4369_v57 = vadd.f32 %v4365_v33, %v2799_v53 }
 0x337   : > { %v2803_v59 = vpop.f32.mrb[6].mxu0 }
 0x338   : > { %v2805_v60 = vpop.f32.mrb[7].mxu0  ;;  %v4372_v27 = vadd.f32 %v4371_v2, %v2803_v59 }
 0x339   : > { %v4375_v28 = vadd.f32 %v4371_v2, %v2805_v60 }
 0x34b   : > { %v3714_v49 = vpop.f32.mrb[4].mxu1 }
 0x34c   : > { %v4367_v58 = vadd.f32 %v4366_v22, %v3714_v49  ;;  %v3716_v36 = vpop.f32.mrb[5].mxu1 }
 0x34d   : > { %v4370_v62 = vadd.f32 %v4369_v57, %v3716_v36 }
 0x34e   : > { %v3806_v25 = vmax.f32 %v4367_v58, 0.0 }
 0x34f   : > { %v3807_v1 = vmax.f32 %v4370_v62, 0.0  ;;  %v3720_v26 = vpop.f32.mrb[6].mxu1 }
 0x350   : > { %v3812_v29 = vmul.f32 %v3806_v25, %v4944_v52  ;;  %v4373_v30 = vadd.f32 %v4372_v27, %v3720_v26  ;;  %v3722_v61 = vpop.f32.mrb[7].mxu1 }
 0x351   : > { %v3813_v37 = vmul.f32 %v3807_v1, %v4946_v56  ;;  %v4376_v31 = vadd.f32 %v4375_v28, %v3722_v61 }
 0x352   : > { %v3809_v38 = vmax.f32 %v4373_v30, 0.0 }
 0x353   : > { %v4018_v51 = vpack.c.bf16 %v3813_v37, %v3812_v29  ;;  %v3810_v55 = vmax.f32 %v4376_v31, 0.0  ;;  %v4292_v23 = vpop.f32.mrb[2].mxu1 }
 0x354   : > { %v3815_v35 = vmul.f32 %v3809_v38, %v4944_v52  ;;  %v4378_v3 = vadd.f32 %v4371_v2, %v4292_v23  ;;  %v3791_v9 = vpop.f32.mrb[3].mxu1 }
 0x355   : > { %3838 = vst [vmem:[%s305_s24] sm:$0xff] %v4018_v51  ;;  %v3816_v42 = vmul.f32 %v3810_v55, %v4946_v56  ;;  %v4380_v48 = vadd.f32 %v4365_v33, %v3791_v9 }
 0x356   : > { %v3811_v8 = vmax.f32 %v4378_v3, 0.0 }
 0x357   : > { %v4020_v15 = vpack.c.bf16 %v3816_v42, %v3815_v35  ;;  %v3808_v45 = vmax.f32 %v4380_v48, 0.0 }
 0x358   : > { %v3817_v13 = vmul.f32 %v3811_v8, %v4939_v4 }
 0x359   : > { %3840 = vst [vmem:[%s305_s24 + $0xc] sm:$0xff] %v4020_v15  ;;  %v3814_v50 = vmul.f32 %v3808_v45, %v4939_v4 }
 0x35a   : > { %v4021_v17 = vpack.c.bf16 %v3817_v13, %v3817_v13 }
 0x35b   : > { %v4019_v21 = vpack.c.bf16 %v3814_v50, %v3814_v50 }
 0x35c   : > { %3841 = vst [vmem:[%s305_s24 + $0x14] sm:$0xf] %v4021_v17 }
 0x35d   : > { %3839 = vst [vmem:[%s305_s24 + $0x8] sm:$0xf] %v4019_v21 }
 0x35e PF: > { %s18_s27 = sadd.s32 1, %s4667_s27  }
 0x35f   : > { %p15_p4 = scmp.ge.s32.totalorder %s18_s27, 4  }
 0x361   :  { %17 = sbr.rel (!%p15_p4) target bundleno = 1 (0x1), region = 98 }

// kernel: unet_forward.8
= control target key start
LH: loop header
LB: loop body
LE: loop exit
PB: predicated region body
PF: predicated region fallthrough
CT: control target
= control target key end

     0   :  { %s3776_s27 = smov 0   ;;  %s4120_s0 = inlined_call_operand.vmem [shape: bf16[2,16,128], index: 0, kind: input, shape index: {}]   ;;  %s4121_s1 = inlined_call_operand.vmem [shape: bf16[9,32,16], index: 1, kind: input, shape index: {}]   ;;  %s4122_s2 = inlined_call_operand.vmem [shape: f32[32,1], index: 2, kind: input, shape index: {}]   ;;  %s4123_s3 = inlined_call_operand.vmem [shape: bf16[9,32,32], index: 3, kind: input, shape index: {}]   ;;  %s4124_s4 = inlined_call_operand.vmem [shape: f32[32,1], index: 4, kind: input, shape index: {}]   ;;  %s4125_s5 = inlined_call_operand.vmem [shape: bf16[32,16], index: 5, kind: input, shape index: {}]   ;;  %s4126_s6 = inlined_call_operand.vmem [shape: f32[32,1], index: 6, kind: input, shape index: {}]   ;;  %s4127_s7 = inlined_call_operand.vmem [shape: f32[1,128], index: 7, kind: input, shape index: {}]   ;;  %s4128_s8 = inlined_call_operand.vmem [shape: bf16[2,32,128], index: 8, kind: output, shape index: {}]  }
   0x1 LB: > { %s2661_s28 = sadd.s32 4294967295, %s3720_s27   ;;  %p2665_p0 = scmp.ge.s32.totalorder %s3720_s27, 1  ;;  %s3720_s27 = sphi %s3776_s27, %s18_s27  }
   0x2   : > { %p262_p1 = scmp.lt.s32.totalorder %s3720_s27, 3 }
   0x4   : > { %p263_p2 = pnand %p2665_p0, %p262_p1 }
   0x5   : > { %p296_p3 = scmp.lt.s32.totalorder (!%p263_p2), %s2661_s28, 1  ;;  %v2990_v0 = vld [vmem:[%s4121_s1 + $0x10] sm:$0xff] (!%p263_p2)   ;;  %vm336_vm0 = vcmask (!%p263_p2), 130048   ;;  %s3722_s13 = smov (!%p263_p2), 10   ;;  %v1326_v6 = vld [vmem:[%s4122_s2 + $0x8] sm:$0xff] (!%p263_p2)  ;;  %v1325_v7 = vld [vmem:[%s4122_s2] sm:$0xff] (!%p263_p2) }
   0x6   : > { %266 = sbr.rel (%p263_p2) target bundleno = 846 (0x34e), region = 52  ;;  %v2837_v1 = vunpack.c.l.bf16 (!%p263_p2), %v2990_v0  ;;  %s3723_s14 = smov (!%p263_p2), 9   ;;  %v3730_v8 = vmov (!%p263_p2), 0   ;;  %v1327_v9 = vld [vmem:[%s4122_s2 + $0x10] sm:$0xff] (!%p263_p2)  ;;  %v1328_v10 = vld [vmem:[%s4122_s2 + $0x18] sm:$0xff] (!%p263_p2)  ;;  %v2838_v22 = vunpack.c.h.bf16 (!%p263_p2), %v2990_v0  ;;  %v2828_v26 = vld [vmem:[%s4121_s1] sm:$0xff] (!%p263_p2)  }
   0x7   : > { %s3724_s15 = smov (!%p263_p2), 11   ;;  %s3725_s16 = smov (!%p263_p2), 1   ;;  %3633 = vset.pattern.permute.xlu1 (!%p263_p2), %v3730_v8  ;;  %3632 = vset.pattern.permute.xlu0 (!%p263_p2), %v3730_v8  ;;  %v2991_v18 = vld [vmem:[%s4121_s1 + $0x18] sm:$0xff] (!%p263_p2)   ;;  %v2829_v29 = vunpack.c.l.bf16 (!%p263_p2), %v2828_v26  ;;  %v2989_v32 = vld [vmem:[%s4121_s1 + $0x8] sm:$0xff] (!%p263_p2)   ;;  %v2830_v33 = vunpack.c.h.bf16 (!%p263_p2), %v2828_v26  ;;  %v2992_v36 = vld [vmem:[%s4121_s1 + $0x20] sm:$0xff] (!%p263_p2)   ;;  %vm1540_vm1 = vcmask (!%p263_p2), 261120  }
   0x8   : > { %3161 = vmatprep.mubr.msk.f32.mxu0 (!%p263_p2), %vm336_vm0, %v2837_v1  ;;  %s3726_s17 = smov (!%p263_p2), 127   ;;  %s3727_s18 = smov (!%p263_p2), 119   ;;  %v2841_v23 = vunpack.c.l.bf16 (!%p263_p2), %v2991_v18  ;;  %v2842_v28 = vunpack.c.h.bf16 (!%p263_p2), %v2991_v18  ;;  %v2833_v34 = vunpack.c.l.bf16 (!%p263_p2), %v2989_v32  ;;  %v2834_v37 = vunpack.c.h.bf16 (!%p263_p2), %v2989_v32  ;;  %v2993_v39 = vld [vmem:[%s4121_s1 + $0x28] sm:$0xff] (!%p263_p2)   ;;  %v2994_v42 = vld [vmem:[%s4121_s1 + $0x30] sm:$0xff] (!%p263_p2)   ;;  %v2995_v48 = vld [vmem:[%s4121_s1 + $0x38] sm:$0xff] (!%p263_p2)  }
   0x9   : > { %s3728_s19 = smov (!%p263_p2), 118   ;;  %s3729_s20 = smov (!%p263_p2), 117   ;;  %v2845_v38 = vunpack.c.l.bf16 (!%p263_p2), %v2992_v36  ;;  %v2846_v40 = vunpack.c.h.bf16 (!%p263_p2), %v2992_v36  ;;  %v2849_v41 = vunpack.c.l.bf16 (!%p263_p2), %v2993_v39  ;;  %v2850_v44 = vunpack.c.h.bf16 (!%p263_p2), %v2993_v39  ;;  %v2996_v52 = vld [vmem:[%s4121_s1 + $0x40] sm:$0xff] (!%p263_p2)   ;;  %v2997_v58 = vld [vmem:[%s4121_s1 + $0x48] sm:$0xff] (!%p263_p2)   ;;  %v2998_v62 = vld [vmem:[%s4121_s1 + $0x50] sm:$0xff] (!%p263_p2)  }
   0xa   : > { %v2853_v45 = vunpack.c.l.bf16 (!%p263_p2), %v2994_v42  ;;  %v2854_v49 = vunpack.c.h.bf16 (!%p263_p2), %v2994_v42  ;;  %v2857_v50 = vunpack.c.l.bf16 (!%p263_p2), %v2995_v48  ;;  %v2858_v54 = vunpack.c.h.bf16 (!%p263_p2), %v2995_v48  ;;  %v3000_v8 = vld [vmem:[%s4121_s1 + $0x60] sm:$0xff] (!%p263_p2)   ;;  %v3002_v18 = vld [vmem:[%s4121_s1 + $0x70] sm:$0xff] (!%p263_p2)   ;;  %v3006_v42 = vld [vmem:[%s4125_s5 + $0x8] sm:$0xff] (!%p263_p2)  }
   0xb   : > { %v2861_v55 = vunpack.c.l.bf16 (!%p263_p2), %v2996_v52  ;;  %v2862_v59 = vunpack.c.h.bf16 (!%p263_p2), %v2996_v52  ;;  %v2865_v60 = vunpack.c.l.bf16 (!%p263_p2), %v2997_v58  ;;  %v2866_v0 = vunpack.c.h.bf16 (!%p263_p2), %v2997_v58  ;;  %v3914_v39 = vld [vmem:[%s4127_s7] ss:$0 sm:$0xff] (!%p263_p2) }
   0xc   : > { %v2869_v1 = vunpack.c.l.bf16 (!%p263_p2), %v2998_v62 }
   0xd   : > { %s4130_s28 = smov (!%p296_p3, %s2661_s28), 1 }
   0xe   : > { %s2817_s9 = sshll.u32 %s4130_s28, 3 }
   0xf   : > { %s300_s12 = scalar_lea.vmem %s4120_s0, %s2817_s9 }
  0x10   : > { %v3794_v2 = vld [vmem:[%s300_s12] sm:$0xff]  }
  0x11   : > { %v2825_v3 = vunpack.c.l.bf16 %v3794_v2  ;;  %v2826_v4 = vunpack.c.h.bf16 %v3794_v2  ;;  %3420 = vmatprep.subr.bf16.mxu1 %v3794_v2 }
  0x12   : > { %3422 = vmatpush3.bf16.msra.mxu1 %v3794_v2 }
  0x13   : > { %v3592_v5 = vpack.i.bf16 %v2826_v4, %v2825_v3  ;;  %v2999_v4 = vld [vmem:[%s4121_s1 + $0x58] sm:$0xff]  }
  0x15   : > { %3593 = vrot.lane.b32.xlu0 %v3592_v5, %s3722_s13  ;;  %3603 = vrot.lane.b32.xlu1 %v3592_v5, %s3723_s14 }
  0x19   : > { %3598 = vrot.lane.b32.xlu0 %v3592_v5, %s3724_s15  ;;  %3608 = vrot.lane.b32.xlu1 %v3592_v5, %s3725_s16 }
  0x1d   : > { %3613 = vrot.lane.b32.xlu0 %v3592_v5, %s3726_s17  ;;  %3618 = vrot.lane.b32.xlu1 %v3592_v5, %s3727_s18 }
  0x21   : > { %3623 = vrot.lane.b32.xlu0 %v3592_v5, %s3728_s19  ;;  %3628 = vrot.lane.b32.xlu1 %v3592_v5, %s3729_s20  ;;  %v2870_v5 = vunpack.c.h.bf16 %v2998_v62 }
  0x25   : > { %1336 = vperm.xlu1 %3633, %v1326_v6   ;;  %1331 = vperm.xlu0 %3632, %v1325_v7   ;;  %v2873_v6 = vunpack.c.l.bf16 %v2999_v4 }
  0x29   : > { %1341 = vperm.xlu1 %3633, %v1327_v9   ;;  %1346 = vperm.xlu0 %3632, %v1328_v10   ;;  %v2874_v10 = vunpack.c.h.bf16 %v2999_v4  ;;  %v1497_v4 = vld [vmem:[%s4124_s4 + $0x8] sm:$0xff] }
  0x87   : > { %v3594_v11 = vpop.permute.xlu0 %3593  ;;  %v3604_v12 = vpop.permute.xlu1 %3603 }
  0x88   : > { %v3596_v13 = vunpack.i.h.bf16 %v3594_v11  ;;  %v3595_v14 = vunpack.i.l.bf16 %v3594_v11  ;;  %v3606_v16 = vunpack.i.h.bf16 %v3604_v12  ;;  %v3605_v17 = vunpack.i.l.bf16 %v3604_v12 }
  0x89   : > { %v2877_v11 = vunpack.c.l.bf16 %v3000_v8 }
  0x8a   : > { %v3383_v15 = vpack.c.bf16 %v3596_v13, %v3595_v14  ;;  %v3391_v25 = vpack.c.bf16 %v3606_v16, %v3605_v17  ;;  %v3001_v14 = vld [vmem:[%s4121_s1 + $0x68] sm:$0xff]  }
  0x8b   : > { %v3599_v19 = vpop.permute.xlu0 %3598  ;;  %v3609_v27 = vpop.permute.xlu1 %3608  ;;  %v2881_v16 = vunpack.c.l.bf16 %v3001_v14 }
  0x8c   : > { %v3601_v20 = vunpack.i.h.bf16 %v3599_v19  ;;  %v3600_v21 = vunpack.i.l.bf16 %v3599_v19  ;;  %3384 = vmatprep.subr.bf16.mxu0 %v3383_v15  ;;  %v3611_v30 = vunpack.i.h.bf16 %v3609_v27  ;;  %v3610_v31 = vunpack.i.l.bf16 %v3609_v27  ;;  %v3005_v27 = vld [vmem:[%s4121_s1 + $0x88] sm:$0xff]  }
  0x8d   : > { %3386 = vmatpush3.bf16.msra.mxu0 %v3383_v15  ;;  %v2878_v15 = vunpack.c.h.bf16 %v3000_v8  ;;  %v2882_v19 = vunpack.c.h.bf16 %v3001_v14  ;;  %v3981_v8 = vld [vmem:[%s4123_s3 + $0x80] sm:$0xff]  }
  0x8e   : > { %v3387_v24 = vpack.c.bf16 %v3601_v20, %v3600_v21  ;;  %v3395_v35 = vpack.c.bf16 %v3611_v30, %v3610_v31  ;;  %v2885_v20 = vunpack.c.l.bf16 %v3002_v18  ;;  %v3003_v21 = vld [vmem:[%s4121_s1 + $0x78] sm:$0xff]   ;;  %v2898_v30 = vunpack.c.h.bf16 %v3005_v27 }
  0x8f   : > { %v3614_v43 = vpop.permute.xlu0 %3613  ;;  %v3619_v53 = vpop.permute.xlu1 %3618 }
  0x90   : > { %3162 = vmatmul.mubr.msk.f32.vlgmr.msra.gmra.mrb[0].mxu0 %vm336_vm0, %v2838_v22  ;;  %3388 = vmatprep.subr.bf16.mxu0 %v3387_v24  ;;  %v3616_v46 = vunpack.i.h.bf16 %v3614_v43  ;;  %v3615_v47 = vunpack.i.l.bf16 %v3614_v43  ;;  %v3621_v56 = vunpack.i.h.bf16 %v3619_v53  ;;  %v3620_v57 = vunpack.i.l.bf16 %v3619_v53 }
  0x91   : > { %3390 = vmatpush3.bf16.msra.mxu0 %v3387_v24  ;;  %3164 = vmatprep.mubr.msk.f32.mxu0 %vm336_vm0, %v2841_v23  ;;  %v2886_v22 = vunpack.c.h.bf16 %v3002_v18  ;;  %v2889_v23 = vunpack.c.l.bf16 %v3003_v21  ;;  %v3004_v24 = vld [vmem:[%s4121_s1 + $0x80] sm:$0xff]  }
  0x92   : > { %3392 = vmatprep.subr.bf16.mxu0 %v3391_v25  ;;  %v3403_v51 = vpack.c.bf16 %v3616_v46, %v3615_v47  ;;  %v3407_v61 = vpack.c.bf16 %v3621_v56, %v3620_v57  ;;  %v2893_v26 = vunpack.c.l.bf16 %v3004_v24  ;;  %v2905_v46 = vunpack.c.l.bf16 %v3006_v42 }
  0x93   : > { %v3624_v63 = vpop.permute.xlu0 %3623  ;;  %v3629_v9 = vpop.permute.xlu1 %3628 }
  0x94   : > { %3165 = vmatmul.mubr.msk.f32.gmra.mrb[2].mxu0 %vm336_vm0, %v2842_v28  ;;  %v3625_v3 = vunpack.i.l.bf16 %v3624_v63  ;;  %v3631_v12 = vunpack.i.h.bf16 %v3629_v9  ;;  %v3630_v13 = vunpack.i.l.bf16 %v3629_v9  ;;  %v2894_v28 = vunpack.c.h.bf16 %v3004_v24 }
  0x95   : > { %3171 = vmatprep.mubr.msk.f32.mxu0 %vm336_vm0, %v2829_v29  ;;  %v2897_v29 = vunpack.c.l.bf16 %v3005_v27  ;;  %v2973_v9 = vunpack.c.l.bf16 %v3981_v8 }
  0x96   : > { %v3415_v17 = vpack.c.bf16 %v3631_v12, %v3630_v13 }
  0x98   : > { %3172 = vmatmul.mubr.msk.f32.vlgmr.msra.gmra.mrb[0].mxu0 %vm336_vm0, %v2830_v33  ;;  %v2900_v33 = vld [vmem:[%s4125_s5] sm:$0xff]  }
  0x99   : > { %3394 = vmatpush3.bf16.msra.mxu0 %v3391_v25  ;;  %3174 = vmatprep.mubr.msk.f32.mxu0 %vm336_vm0, %v2833_v34  ;;  %v2890_v25 = vunpack.c.h.bf16 %v3003_v21  ;;  %v2902_v36 = vunpack.c.h.bf16 %v2900_v33  ;;  %v3007_v21 = vld [vmem:[%s4123_s3 + $0x8] sm:$0xff]  }
  0x9a   : > { %3396 = vmatprep.subr.bf16.mxu0 %v3395_v35 }
  0x9c   : > { %3175 = vmatmul.mubr.msk.f32.gmra.mrb[2].mxu0 %vm336_vm0, %v2834_v37 }
  0x9d   : > { %3181 = vmatprep.mubr.msk.f32.mxu0 %vm336_vm0, %v2845_v38 }
  0xa0   : > { %3182 = vmatmul.mubr.msk.f32.vlgmr.msra.gmra.mrb[0].mxu0 %vm336_vm0, %v2846_v40 }
  0xa1   : > { %3398 = vmatpush3.bf16.msra.mxu0 %v3395_v35  ;;  %3184 = vmatprep.mubr.msk.f32.mxu0 %vm336_vm0, %v2849_v41  ;;  %v2901_v35 = vunpack.c.l.bf16 %v2900_v33 }
  0xa2   : > { %3400 = vmatprep.subr.bf16.mxu0 %v3794_v2 }
  0xa3   : > { %3251 = vmatprep.mubr.msk.f32.mxu1 %vm336_vm0, %v2901_v35  ;;  %v2914_v35 = vunpack.c.h.bf16 %v3007_v21 }
  0xa4   : > { %3185 = vmatmul.mubr.msk.f32.gmra.mrb[2].mxu0 %vm336_vm0, %v2850_v44  ;;  %v1332_v31 = vpop.permute.xlu0 %1331  ;;  %v1337_v32 = vpop.permute.xlu1 %1336  ;;  %3252 = vmatmul.mubr.msk.f32.vlgmr.msra.gmra.mrb[0].mxu1 %vm336_vm0, %v2902_v36 }
  0xa5   : > { %3191 = vmatprep.mubr.msk.f32.mxu0 %vm336_vm0, %v2853_v45  ;;  %3254 = vmatprep.mubr.msk.f32.mxu1 %vm336_vm0, %v2905_v46  ;;  %v3010_v46 = vld [vmem:[%s4123_s3 + $0x20] sm:$0xff]  }
  0xa8   : > { %3192 = vmatmul.mubr.msk.f32.vlgmr.msra.gmra.mrb[0].mxu0 %vm336_vm0, %v2854_v49  ;;  %v1347_v43 = vpop.permute.xlu0 %1346  ;;  %v1342_v48 = vpop.permute.xlu1 %1341 }
  0xa9   : > { %3402 = vmatpush3.bf16.msra.mxu0 %v3794_v2  ;;  %3194 = vmatprep.mubr.msk.f32.mxu0 %vm336_vm0, %v2857_v50  ;;  %v3626_v2 = vunpack.i.h.bf16 %v3624_v63 }
  0xaa   : > { %3404 = vmatprep.subr.bf16.mxu0 %v3403_v51 }
  0xab   : > { %v3411_v7 = vpack.c.bf16 %v3626_v2, %v3625_v3  ;;  %v1376_v2 = vld [vmem:[%s4126_s6 + $0x8] sm:$0xff]  ;;  %v1377_v3 = vld [vmem:[%s4126_s6 + $0x10] sm:$0xff] }
  0xac   : > { %3195 = vmatmul.mubr.msk.f32.gmra.mrb[2].mxu0 %vm336_vm0, %v2858_v54 }
  0xad   : > { %3201 = vmatprep.mubr.msk.f32.mxu0 %vm336_vm0, %v2861_v55  ;;  %v3928_v55 = vld [vmem:[%s4123_s3] sm:$0xff]  }
  0xae   : > { %v2910_v27 = vunpack.c.h.bf16 %v3928_v55 }
  0xb0   : > { %3202 = vmatmul.mubr.msk.f32.vlgmr.msra.gmra.mrb[0].mxu0 %vm336_vm0, %v2862_v59 }
  0xb1   : > { %3406 = vmatpush3.bf16.msra.mxu0 %v3403_v51  ;;  %3204 = vmatprep.mubr.msk.f32.mxu0 %vm336_vm0, %v2865_v60  ;;  %v2906_v51 = vunpack.c.h.bf16 %v3006_v42  ;;  %v2909_v60 = vunpack.c.l.bf16 %v3928_v55 }
  0xb2   : > { %3408 = vmatprep.subr.bf16.mxu0 %v3407_v61 }
  0xb3   : > { %3255 = vmatmul.mubr.msk.f32.gmra.mrb[2].mxu1 %vm336_vm0, %v2906_v51 }
  0xb4   : > { %3205 = vmatmul.mubr.msk.f32.gmra.mrb[2].mxu0 %vm336_vm0, %v2866_v0  ;;  %3265 = vmatprep.mubr.msk.f32.mxu1 %vm1540_vm1, %v2909_v60  ;;  %v1375_v0 = vld [vmem:[%s4126_s6] sm:$0xff]  ;;  %v2926_v60 = vunpack.c.h.bf16 %v3010_v46 }
  0xb5   : > { %3211 = vmatprep.mubr.msk.f32.mxu0 %vm336_vm0, %v2869_v1  ;;  %v1496_v1 = vld [vmem:[%s4124_s4] sm:$0xff] }
  0xb8   : > { %3212 = vmatmul.mubr.msk.f32.vlgmr.msra.gmra.mrb[0].mxu0 %vm336_vm0, %v2870_v5  ;;  %v1498_v5 = vld [vmem:[%s4124_s4 + $0x10] sm:$0xff] }
  0xb9   : > { %3410 = vmatpush3.bf16.msra.mxu0 %v3407_v61  ;;  %3214 = vmatprep.mubr.msk.f32.mxu0 %vm336_vm0, %v2873_v6  ;;  %v1378_v6 = vld [vmem:[%s4126_s6 + $0x18] sm:$0xff] }
  0xba   : > { %3412 = vmatprep.subr.bf16.mxu0 %v3411_v7 }
  0xbc   : > { %3215 = vmatmul.mubr.msk.f32.gmra.mrb[2].mxu0 %vm336_vm0, %v2874_v10 }
  0xbd   : > { %3221 = vmatprep.mubr.msk.f32.mxu0 %vm336_vm0, %v2877_v11 }
  0xc0   : > { %3222 = vmatmul.mubr.msk.f32.vlgmr.msra.gmra.mrb[0].mxu0 %vm336_vm0, %v2878_v15 }
  0xc1   : > { %3414 = vmatpush3.bf16.msra.mxu0 %v3411_v7  ;;  %3224 = vmatprep.mubr.msk.f32.mxu0 %vm336_vm0, %v2881_v16  ;;  %v1499_v7 = vld [vmem:[%s4124_s4 + $0x18] sm:$0xff] }
  0xc2   : > { %3416 = vmatprep.subr.bf16.mxu0 %v3415_v17 }
  0xc4   : > { %3225 = vmatmul.mubr.msk.f32.gmra.mrb[2].mxu0 %vm336_vm0, %v2882_v19 }
  0xc5   : > { %3231 = vmatprep.mubr.msk.f32.mxu0 %vm336_vm0, %v2885_v20 }
  0xc8   : > { %3232 = vmatmul.mubr.msk.f32.vlgmr.msra.gmra.mrb[0].mxu0 %vm336_vm0, %v2886_v22 }
  0xc9   : > { %3418 = vmatpush3.bf16.msra.mxu0 %v3415_v17  ;;  %3234 = vmatprep.mubr.msk.f32.mxu0 %vm336_vm0, %v2889_v23 }
  0xcc   : > { %3235 = vmatmul.mubr.msk.f32.gmra.mrb[2].mxu0 %vm336_vm0, %v2890_v25 }
  0xcd   : > { %3241 = vmatprep.mubr.msk.f32.mxu0 %vm336_vm0, %v2893_v26 }
  0xd0   : > { %3242 = vmatmul.mubr.msk.f32.vlgmr.msra.gmra.mrb[0].mxu0 %vm336_vm0, %v2894_v28  ;;  %v2913_v28 = vunpack.c.l.bf16 %v3007_v21  ;;  %v2974_v21 = vunpack.c.h.bf16 %v3981_v8 }
  0xd1   : > { %3244 = vmatprep.mubr.msk.f32.mxu0 %vm336_vm0, %v2897_v29  ;;  %v3008_v29 = vld [vmem:[%s4123_s3 + $0x10] sm:$0xff]  }
  0xd2   : > { %v2917_v36 = vunpack.c.l.bf16 %v3008_v29 }
  0xd4   : > { %3245 = vmatmul.mubr.msk.f32.gmra.mrb[2].mxu0 %vm336_vm0, %v2898_v30 }
  0xd5   : > { %3377 = vmatprep.mubr.msk.f32.mxu0 %vm1540_vm1, %v2973_v9 }
 0x1a3   : > { %v3243_v34 = vpop.f32.mrb[0].mxu0 }
 0x1a4   : > { %v1350_v37 = vadd.f32 %v3243_v34, %v1337_v32  ;;  %v1302_v38 = vpop.f32.mrb[1].mxu0 }
 0x1a5   : > { %v1349_v40 = vadd.f32 %v1332_v31, %v1302_v38 }
 0x1a6   : > { %v1354_v41 = vmax.f32 %v1350_v37, 0.0  ;;  %v3009_v37 = vld [vmem:[%s4123_s3 + $0x18] sm:$0xff]  }
 0x1a7   : > { %v1353_v44 = vmax.f32 %v1349_v40, 0.0  ;;  %v3246_v45 = vpop.f32.mrb[2].mxu0 }
 0x1a8   : > { %v1364_v47 = vmul.f32 %v3914_v39, %v1354_v41  ;;  %v1352_v49 = vadd.f32 %v3246_v45, %v1347_v43  ;;  %v1312_v50 = vpop.f32.mrb[3].mxu0  ;;  %v2921_v45 = vunpack.c.l.bf16 %v3009_v37 }
 0x1a9   : > { %v1363_v52 = vmul.f32 %v3914_v39, %v1353_v44  ;;  %v1351_v53 = vadd.f32 %v1342_v48, %v1312_v50  ;;  %v2918_v44 = vunpack.c.h.bf16 %v3008_v29 }
 0x1aa   : > { %v1356_v54 = vmax.f32 %v1352_v49, 0.0 }
 0x1ab   : > { %v1355_v56 = vmax.f32 %v1351_v53, 0.0  ;;  %v3634_v57 = vpack.i.bf16 %v1364_v47, %v1363_v52  ;;  %v3934_v61 = vpack.c.bf16 %v1364_v47, %v1363_v52  ;;  %v2922_v52 = vunpack.c.h.bf16 %v3009_v37 }
 0x1ac   : > { %v1366_v58 = vmul.f32 %v3914_v39, %v1356_v54  ;;  %v2925_v53 = vunpack.c.l.bf16 %v3010_v46  ;;  %v3011_v54 = vld [vmem:[%s4123_s3 + $0x28] sm:$0xff]  }
 0x1ad   : > { %v1365_v59 = vmul.f32 %v3914_v39, %v1355_v56  ;;  %3635 = vrot.lane.b32.xlu1 %v3634_v57, %s3724_s15 }
 0x1af   : > { %v3639_v62 = vpack.i.bf16 %v1366_v58, %v1365_v59  ;;  %v3939_v63 = vpack.c.bf16 %v1366_v58, %v1365_v59 }
 0x1b1   : > { %3645 = vrot.lane.b32.xlu1 %v3634_v57, %s3722_s13  ;;  %3640 = vrot.lane.b32.xlu0 %v3639_v62, %s3724_s15 }
 0x1b5   : > { %3655 = vrot.lane.b32.xlu1 %v3634_v57, %s3723_s14  ;;  %3650 = vrot.lane.b32.xlu0 %v3639_v62, %s3722_s13 }
 0x1b9   : > { %3665 = vrot.lane.b32.xlu1 %v3634_v57, %s3725_s16  ;;  %3660 = vrot.lane.b32.xlu0 %v3639_v62, %s3723_s14 }
 0x1bd   : > { %3675 = vrot.lane.b32.xlu1 %v3634_v57, %s3726_s17  ;;  %3670 = vrot.lane.b32.xlu0 %v3639_v62, %s3725_s16 }
 0x1c1   : > { %3685 = vrot.lane.b32.xlu1 %v3634_v57, %s3727_s18  ;;  %3680 = vrot.lane.b32.xlu0 %v3639_v62, %s3726_s17 }
 0x1c5   : > { %3695 = vrot.lane.b32.xlu1 %v3634_v57, %s3728_s19  ;;  %3690 = vrot.lane.b32.xlu0 %v3639_v62, %s3727_s18 }
 0x1c9   : > { %3705 = vrot.lane.b32.xlu1 %v3634_v57, %s3729_s20  ;;  %3700 = vrot.lane.b32.xlu0 %v3639_v62, %s3728_s19 }
 0x1cd   : > { %1381 = vperm.xlu1 %3633, %v1375_v0   ;;  %3710 = vrot.lane.b32.xlu0 %v3639_v62, %s3729_s20  ;;  %v2929_v62 = vunpack.c.l.bf16 %v3011_v54  ;;  %s2818_s20 = sshll.u32 %s4130_s28, 4 }
 0x1ce   : > { %s305_s30 = scalar_lea.vmem %s4128_s8, %s2818_s20 }
 0x1d1   : > { %1502 = vperm.xlu1 %3633, %v1496_v1   ;;  %1386 = vperm.xlu0 %3632, %v1376_v2   ;;  %v3012_v2 = vld [vmem:[%s4123_s3 + $0x30] sm:$0xff]  }
 0x1d2   : > { %v2933_v9 = vunpack.c.l.bf16 %v3012_v2 }
 0x1d5   : > { %1391 = vperm.xlu1 %3633, %v1377_v3   ;;  %1507 = vperm.xlu0 %3632, %v1497_v4  }
 0x1d9   : > { %1512 = vperm.xlu1 %3633, %v1498_v5   ;;  %1396 = vperm.xlu0 %3632, %v1378_v6   ;;  %v2930_v6 = vunpack.c.h.bf16 %v3011_v54 }
 0x1dd   : > { %1517 = vperm.xlu0 %3632, %v1499_v7  }
 0x21f   : > { %v3636_v10 = vpop.permute.xlu1 %3635 }
 0x220   : > { %v3638_v11 = vunpack.i.h.bf16 %v3636_v10  ;;  %v3637_v12 = vunpack.i.l.bf16 %v3636_v10 }
 0x222   : > { %v3423_v13 = vpack.c.bf16 %v3638_v11, %v3637_v12  ;;  %v3013_v11 = vld [vmem:[%s4123_s3 + $0x38] sm:$0xff]  }
 0x223   : > { %v3646_v14 = vpop.permute.xlu1 %3645  ;;  %v3641_v15 = vpop.permute.xlu0 %3640 }
 0x224   : > { %v3648_v16 = vunpack.i.h.bf16 %v3646_v14  ;;  %v3647_v17 = vunpack.i.l.bf16 %v3646_v14  ;;  %v3643_v18 = vunpack.i.h.bf16 %v3641_v15  ;;  %v3642_v19 = vunpack.i.l.bf16 %v3641_v15  ;;  %3424 = vmatprep.subr.bf16.mxu1 %v3423_v13 }
 0x225   : > { %3426 = vmatpush3.bf16.msra.mxu1 %v3423_v13  ;;  %v2934_v14 = vunpack.c.h.bf16 %v3012_v2 }
 0x226   : > { %v3427_v20 = vpack.c.bf16 %v3643_v18, %v3642_v19  ;;  %v3431_v24 = vpack.c.bf16 %v3648_v16, %v3647_v17  ;;  %v2937_v16 = vunpack.c.l.bf16 %v3013_v11  ;;  %v3014_v17 = vld [vmem:[%s4123_s3 + $0x40] sm:$0xff]  }
 0x227   : > { %v3656_v22 = vpop.permute.xlu1 %3655  ;;  %v3651_v23 = vpop.permute.xlu0 %3650  ;;  %v2942_v8 = vunpack.c.h.bf16 %v3014_v17 }
 0x228   : > { %v3653_v25 = vunpack.i.h.bf16 %v3651_v23  ;;  %v3652_v26 = vunpack.i.l.bf16 %v3651_v23  ;;  %3428 = vmatprep.subr.bf16.mxu1 %v3427_v20  ;;  %v3658_v32 = vunpack.i.h.bf16 %v3656_v22  ;;  %v3657_v33 = vunpack.i.l.bf16 %v3656_v22  ;;  %v3015_v23 = vld [vmem:[%s4123_s3 + $0x48] sm:$0xff]  }
 0x229   : > { %3430 = vmatpush3.bf16.msra.mxu1 %v3427_v20  ;;  %v2938_v20 = vunpack.c.h.bf16 %v3013_v11  ;;  %v2941_v22 = vunpack.c.l.bf16 %v3014_v17 }
 0x22a   : > { %3432 = vmatprep.subr.bf16.mxu1 %v3431_v24  ;;  %v3435_v34 = vpack.c.bf16 %v3653_v25, %v3652_v26  ;;  %v3439_v41 = vpack.c.bf16 %v3658_v32, %v3657_v33  ;;  %v3017_v32 = vld [vmem:[%s4123_s3 + $0x58] sm:$0xff]  }
 0x22b   : > { %v3666_v30 = vpop.permute.xlu1 %3665  ;;  %v3661_v31 = vpop.permute.xlu0 %3660  ;;  %v2953_v37 = vunpack.c.l.bf16 %v3017_v32 }
 0x22c   : > { %3266 = vmatmul.mubr.msk.f32.vlgmr.msra.gmra.mrb[0].mxu1 %vm1540_vm1, %v2910_v27  ;;  %v3663_v42 = vunpack.i.h.bf16 %v3661_v31  ;;  %v3662_v43 = vunpack.i.l.bf16 %v3661_v31  ;;  %v3668_v49 = vunpack.i.h.bf16 %v3666_v30  ;;  %v3667_v50 = vunpack.i.l.bf16 %v3666_v30  ;;  %v3016_v27 = vld [vmem:[%s4123_s3 + $0x50] sm:$0xff]  }
 0x22d   : > { %3434 = vmatpush3.bf16.msra.mxu1 %v3431_v24  ;;  %3268 = vmatprep.mubr.msk.f32.mxu1 %vm1540_vm1, %v2913_v28  ;;  %v2946_v31 = vunpack.c.h.bf16 %v3015_v23 }
 0x22e   : > { %3436 = vmatprep.subr.bf16.mxu1 %v3435_v34  ;;  %v3443_v51 = vpack.c.bf16 %v3663_v42, %v3662_v43  ;;  %v3447_v57 = vpack.c.bf16 %v3668_v49, %v3667_v50  ;;  %v2954_v43 = vunpack.c.h.bf16 %v3017_v32 }
 0x22f   : > { %v3997_v38 = vpop.permute.xlu1 %3675  ;;  %v3671_v40 = vpop.permute.xlu0 %3670 }
 0x230   : > { %3269 = vmatmul.mubr.msk.f32.gmra.mrb[2].mxu1 %vm1540_vm1, %v2914_v35  ;;  %v3673_v58 = vunpack.i.h.bf16 %v3671_v40  ;;  %v3672_v59 = vunpack.i.l.bf16 %v3671_v40  ;;  %v3678_v18 = vunpack.i.h.bf16 %v3997_v38  ;;  %v3677_v19 = vunpack.i.l.bf16 %v3997_v38  ;;  %v3018_v38 = vld [vmem:[%s4123_s3 + $0x60] sm:$0xff]  }
 0x231   : > { %3438 = vmatpush3.bf16.msra.mxu1 %v3435_v34  ;;  %3279 = vmatprep.mubr.msk.f32.mxu1 %vm1540_vm1, %v2917_v36  ;;  %v2950_v36 = vunpack.c.h.bf16 %v3016_v27  ;;  %v2958_v49 = vunpack.c.h.bf16 %v3018_v38 }
 0x232   : > { %3440 = vmatprep.subr.bf16.mxu1 %v3439_v41  ;;  %v3451_v3 = vpack.c.bf16 %v3673_v58, %v3672_v59  ;;  %v3463_v24 = vpack.c.bf16 %v3678_v18, %v3677_v19  ;;  %v3023_v58 = vld [vmem:[%s4123_s3 + $0x88] sm:$0xff]  }
 0x233   : > { %v4004_v47 = vpop.permute.xlu1 %3685  ;;  %v4006_v48 = vpop.permute.xlu0 %3680 }
 0x234   : > { %3280 = vmatmul.mubr.msk.f32.vlgmr.msra.gmra.mrb[0].mxu1 %vm1540_vm1, %v2918_v44  ;;  %v3683_v25 = vunpack.i.h.bf16 %v4006_v48  ;;  %v3682_v26 = vunpack.i.l.bf16 %v4006_v48  ;;  %v3688_v28 = vunpack.i.h.bf16 %v4004_v47  ;;  %v3687_v29 = vunpack.i.l.bf16 %v4004_v47 }
 0x235   : > { %3442 = vmatpush3.bf16.msra.mxu1 %v3439_v41  ;;  %3282 = vmatprep.mubr.msk.f32.mxu1 %vm1540_vm1, %v2921_v45  ;;  %v2957_v44 = vunpack.c.l.bf16 %v3018_v38  ;;  %v3019_v45 = vld [vmem:[%s4123_s3 + $0x68] sm:$0xff]  }
 0x236   : > { %3444 = vmatprep.subr.bf16.mxu1 %v3443_v51  ;;  %v3467_v30 = vpack.c.bf16 %v3683_v25, %v3682_v26  ;;  %v3471_v33 = vpack.c.bf16 %v3688_v28, %v3687_v29  ;;  %v2961_v50 = vunpack.c.l.bf16 %v3019_v45 }
 0x237   : > { %v4013_v55 = vpop.permute.xlu1 %3695  ;;  %v4015_v56 = vpop.permute.xlu0 %3690 }
 0x238   : > { %3283 = vmatmul.mubr.msk.f32.gmra.mrb[2].mxu1 %vm1540_vm1, %v2922_v52  ;;  %v3693_v34 = vunpack.i.h.bf16 %v4015_v56  ;;  %v3692_v35 = vunpack.i.l.bf16 %v4015_v56  ;;  %v3698_v40 = vunpack.i.h.bf16 %v4013_v55  ;;  %v3697_v41 = vunpack.i.l.bf16 %v4013_v55  ;;  %v3021_v55 = vld [vmem:[%s4123_s3 + $0x78] sm:$0xff]  }
 0x239   : > { %3446 = vmatpush3.bf16.msra.mxu1 %v3443_v51  ;;  %3293 = vmatprep.mubr.msk.f32.mxu1 %vm1540_vm1, %v2925_v53  ;;  %v3020_v51 = vld [vmem:[%s4123_s3 + $0x70] sm:$0xff]   ;;  %v2962_v53 = vunpack.c.h.bf16 %v3019_v45  ;;  %v2970_v59 = vunpack.c.h.bf16 %v3021_v55 }
 0x23a   : > { %3448 = vmatprep.subr.bf16.mxu1 %v3447_v57  ;;  %v3475_v42 = vpack.c.bf16 %v3693_v34, %v3692_v35  ;;  %v3479_v46 = vpack.c.bf16 %v3698_v40, %v3697_v41  ;;  %v2965_v54 = vunpack.c.l.bf16 %v3020_v51  ;;  %v2966_v56 = vunpack.c.h.bf16 %v3020_v51 }
 0x23b   : > { %v3706_v0 = vpop.permute.xlu1 %3705  ;;  %v4019_v1 = vpop.permute.xlu0 %3700 }
 0x23c   : > { %v3708_v4 = vunpack.i.h.bf16 %v3706_v0  ;;  %v3707_v5 = vunpack.i.l.bf16 %v3706_v0  ;;  %3294 = vmatmul.mubr.msk.f32.vlgmr.msra.gmra.mrb[0].mxu1 %vm1540_vm1, %v2926_v60  ;;  %v3703_v47 = vunpack.i.h.bf16 %v4019_v1  ;;  %v3702_v48 = vunpack.i.l.bf16 %v4019_v1 }
 0x23d   : > { %3450 = vmatpush3.bf16.msra.mxu1 %v3447_v57  ;;  %3296 = vmatprep.mubr.msk.f32.mxu1 %vm1540_vm1, %v2929_v62  ;;  %v2969_v57 = vunpack.c.l.bf16 %v3021_v55  ;;  %v2977_v60 = vunpack.c.l.bf16 %v3023_v58  ;;  %v2978_v62 = vunpack.c.h.bf16 %v3023_v58 }
 0x23e   : > { %v4026_v7 = vpack.c.bf16 %v3708_v4, %v3707_v5  ;;  %3452 = vmatprep.subr.bf16.mxu1 %v3451_v3  ;;  %v3483_v52 = vpack.c.bf16 %v3703_v47, %v3702_v48 }
 0x23f   : > { %v3711_v10 = vpop.permute.xlu0 %3710 }
 0x240   : > { %v3713_v12 = vunpack.i.h.bf16 %v3711_v10  ;;  %v3712_v13 = vunpack.i.l.bf16 %v3711_v10  ;;  %3297 = vmatmul.mubr.msk.f32.gmra.mrb[2].mxu1 %vm1540_vm1, %v2930_v6  ;;  %3488 = vmatprep.subr.bf16.mxu0 %v4026_v7 }
 0x241   : > { %3454 = vmatpush3.bf16.msra.mxu1 %v3451_v3  ;;  %3490 = vmatpush3.bf16.msra.mxu0 %v4026_v7 }
 0x242   : > { %v4034_v15 = vpack.c.bf16 %v3713_v12, %v3712_v13  ;;  %3456 = vmatprep.subr.bf16.mxu1 %v3934_v61  ;;  %3307 = vmatprep.mubr.msk.f32.mxu1 %vm1540_vm1, %v2933_v9 }
 0x244   : > { %3308 = vmatmul.mubr.msk.f32.vlgmr.msra.gmra.mrb[0].mxu1 %vm1540_vm1, %v2934_v14  ;;  %3492 = vmatprep.subr.bf16.mxu0 %v4034_v15 }
 0x245   : > { %3458 = vmatpush3.bf16.msra.mxu1 %v3934_v61  ;;  %3494 = vmatpush3.bf16.msra.mxu0 %v4034_v15  ;;  %v2945_v61 = vunpack.c.l.bf16 %v3015_v23 }
 0x246   : > { %3460 = vmatprep.subr.bf16.mxu1 %v3939_v63  ;;  %3310 = vmatprep.mubr.msk.f32.mxu1 %vm1540_vm1, %v2937_v16 }
 0x248   : > { %3311 = vmatmul.mubr.msk.f32.gmra.mrb[2].mxu1 %vm1540_vm1, %v2938_v20  ;;  %3378 = vmatmul.mubr.msk.f32.vlgmr.msra.gmra.mrb[4].mxu0 %vm1540_vm1, %v2974_v21 }
 0x249   : > { %3462 = vmatpush3.bf16.msra.mxu1 %v3939_v63  ;;  %3321 = vmatprep.mubr.msk.f32.mxu1 %vm1540_vm1, %v2941_v22  ;;  %v2949_v63 = vunpack.c.l.bf16 %v3016_v27 }
 0x24a   : > { %3464 = vmatprep.subr.bf16.mxu1 %v3463_v24 }
 0x24c   : > { %3322 = vmatmul.mubr.msk.f32.vlgmr.msra.gmra.mrb[0].mxu1 %vm1540_vm1, %v2942_v8  ;;  %v1382_v3 = vpop.permute.xlu1 %1381 }
 0x24d   : > { %3466 = vmatpush3.bf16.msra.mxu1 %v3463_v24  ;;  %3324 = vmatprep.mubr.msk.f32.mxu1 %vm1540_vm1, %v2945_v61 }
 0x24e   : > { %3468 = vmatprep.subr.bf16.mxu1 %v3467_v30 }
 0x250   : > { %3325 = vmatmul.mubr.msk.f32.gmra.mrb[2].mxu1 %vm1540_vm1, %v2946_v31  ;;  %v1387_v2 = vpop.permute.xlu0 %1386  ;;  %v1503_v5 = vpop.permute.xlu1 %1502 }
 0x251   : > { %3470 = vmatpush3.bf16.msra.mxu1 %v3467_v30  ;;  %3335 = vmatprep.mubr.msk.f32.mxu1 %vm1540_vm1, %v2949_v63 }
 0x252   : > { %3472 = vmatprep.subr.bf16.mxu1 %v3471_v33 }
 0x254   : > { %3336 = vmatmul.mubr.msk.f32.vlgmr.msra.gmra.mrb[0].mxu1 %vm1540_vm1, %v2950_v36  ;;  %v1508_v4 = vpop.permute.xlu0 %1507  ;;  %v1392_v14 = vpop.permute.xlu1 %1391 }
 0x255   : > { %3474 = vmatpush3.bf16.msra.mxu1 %v3471_v33  ;;  %3338 = vmatprep.mubr.msk.f32.mxu1 %vm1540_vm1, %v2953_v37  ;;  %v3499_v6 = vadd.f32 %v1508_v4, %v1387_v2 }
 0x256   : > { %3476 = vmatprep.subr.bf16.mxu1 %v3475_v42 }
 0x258   : > { %3339 = vmatmul.mubr.msk.f32.gmra.mrb[2].mxu1 %vm1540_vm1, %v2954_v43  ;;  %v1397_v12 = vpop.permute.xlu0 %1396  ;;  %v1513_v22 = vpop.permute.xlu1 %1512 }
 0x259   : > { %3478 = vmatpush3.bf16.msra.mxu1 %v3475_v42  ;;  %3349 = vmatprep.mubr.msk.f32.mxu1 %vm1540_vm1, %v2957_v44  ;;  %v3507_v25 = vadd.f32 %v1513_v22, %v1392_v14 }
 0x25a   : > { %3480 = vmatprep.subr.bf16.mxu1 %v3479_v46 }
 0x25c   : > { %3350 = vmatmul.mubr.msk.f32.vlgmr.msra.gmra.mrb[0].mxu1 %vm1540_vm1, %v2958_v49  ;;  %v1518_v20 = vpop.permute.xlu0 %1517 }
 0x25d   : > { %3482 = vmatpush3.bf16.msra.mxu1 %v3479_v46  ;;  %3352 = vmatprep.mubr.msk.f32.mxu1 %vm1540_vm1, %v2961_v50  ;;  %v3505_v24 = vadd.f32 %v1518_v20, %v1397_v12 }
 0x25e   : > { %3484 = vmatprep.subr.bf16.mxu1 %v3483_v52 }
 0x260   : > { %3353 = vmatmul.mubr.msk.f32.gmra.mrb[2].mxu1 %vm1540_vm1, %v2962_v53 }
 0x261   : > { %3486 = vmatpush3.bf16.msra.mxu1 %v3483_v52  ;;  %3363 = vmatprep.mubr.msk.f32.mxu1 %vm1540_vm1, %v2965_v54 }
 0x262   : > { %3495 = vmatprep.subr.bf16.mxu1 %v4026_v7 }
 0x264   : > { %3364 = vmatmul.mubr.msk.f32.vlgmr.msra.gmra.mrb[0].mxu1 %vm1540_vm1, %v2966_v56 }
 0x265   : > { %3497 = vmatpush3.bf16.msra.mxu1 %v4026_v7  ;;  %3366 = vmatprep.mubr.msk.f32.mxu1 %vm1540_vm1, %v2969_v57  ;;  %v3502_v7 = vadd.f32 %v1503_v5, %v1382_v3 }
 0x266   : > { %3496 = vmatprep.subr.bf16.mxu1 %v4034_v15 }
 0x268   : > { %3367 = vmatmul.mubr.msk.f32.gmra.mrb[2].mxu1 %vm1540_vm1, %v2970_v59 }
 0x269   : > { %3498 = vmatpush3.bf16.msra.mxu1 %v4034_v15  ;;  %3380 = vmatprep.mubr.msk.f32.mxu1 %vm1540_vm1, %v2977_v60 }
 0x270   : > { %3381 = vmatmul.mubr.msk.f32.vlgmr.msra.gmra.mrb[2].mxu1 %vm1540_vm1, %v2978_v62 }
 0x31b   : > { %v3379_v0 = vpop.f32.mrb[4].mxu0 }
 0x31c   : > { %v2555_v1 = vpop.f32.mrb[5].mxu0 }
 0x337   : > { %v3365_v9 = vpop.f32.mrb[0].mxu1 }
 0x338   : > { %v3500_v10 = vadd.f32 %v3499_v6, %v3365_v9  ;;  %v2437_v11 = vpop.f32.mrb[1].mxu1 }
 0x339   : > { %v3503_v13 = vadd.f32 %v3502_v7, %v2437_v11 }
 0x33a   : > { %v3501_v15 = vadd.f32 %v3500_v10, %v3379_v0 }
 0x33b   : > { %v3504_v16 = vadd.f32 %v3503_v13, %v2555_v1 }
 0x33c   : > { %v2579_v17 = vmax.f32 %v3501_v15, 0.0 }
 0x33d   : > { %v2578_v18 = vmax.f32 %v3504_v16, 0.0 }
 0x33e   : > { %v2583_v19 = vmul.f32 %v3914_v39, %v2579_v17 }
 0x33f   : > { %v2582_v21 = vmul.f32 %v3914_v39, %v2578_v18 }
 0x341   : > { %v2982_v23 = vpack.c.bf16 %v2583_v19, %v2582_v21 }
 0x343   : > { %2983 = vst [vmem:[%s305_s30] sm:$0xff] %v2982_v23   ;;  %v3382_v26 = vpop.f32.mrb[2].mxu1 }
 0x344   : > { %v3506_v8 = vadd.f32 %v3505_v24, %v3382_v26  ;;  %v2565_v61 = vpop.f32.mrb[3].mxu1 }
 0x345   : > { %v3508_v27 = vadd.f32 %v3507_v25, %v2565_v61 }
 0x346   : > { %v2581_v28 = vmax.f32 %v3506_v8, 0.0 }
 0x347   : > { %v2580_v29 = vmax.f32 %v3508_v27, 0.0 }
 0x348   : > { %v2585_v30 = vmul.f32 %v3914_v39, %v2581_v28 }
 0x349   : > { %v2584_v31 = vmul.f32 %v3914_v39, %v2580_v29 }
 0x34b   : > { %v2987_v63 = vpack.c.bf16 %v2585_v30, %v2584_v31 }
 0x34d   : > { %3024 = vst [vmem:[%s305_s30 + $0x8] sm:$0xff] %v2987_v63  }
 0x34e PF: > { %s18_s27 = sadd.s32 1, %s3720_s27  }
 0x34f   : > { %p15_p4 = scmp.ge.s32.totalorder %s18_s27, 4  }
 0x351   :  { %17 = sbr.rel (!%p15_p4) target bundleno = 1 (0x1), region = 98 }

// kernel: unet_forward.9
= control target key start
LH: loop header
LB: loop body
LE: loop exit
PB: predicated region body
PF: predicated region fallthrough
CT: control target
= control target key end

     0   :  { %s5852_s27 = smov 0   ;;  %s6931_s0 = inlined_call_operand.vmem [shape: bf16[2,48,384], index: 0, kind: input, shape index: {}]   ;;  %s6932_s1 = inlined_call_operand.vmem [shape: bf16[9,16,48], index: 1, kind: input, shape index: {}]   ;;  %s6933_s2 = inlined_call_operand.vmem [shape: f32[16,1], index: 2, kind: input, shape index: {}]   ;;  %s6934_s3 = inlined_call_operand.vmem [shape: bf16[9,16,16], index: 3, kind: input, shape index: {}]   ;;  %s6935_s4 = inlined_call_operand.vmem [shape: f32[16,1], index: 4, kind: input, shape index: {}]   ;;  %s6936_s5 = inlined_call_operand.vmem [shape: bf16[16,48], index: 5, kind: input, shape index: {}]   ;;  %s6937_s6 = inlined_call_operand.vmem [shape: f32[16,1], index: 6, kind: input, shape index: {}]   ;;  %s6938_s7 = inlined_call_operand.vmem [shape: f32[1,384], index: 7, kind: input, shape index: {}]   ;;  %s6939_s8 = inlined_call_operand.vmem [shape: bf16[2,16,384], index: 8, kind: output, shape index: {}]  }
   0x1 LB: > { %s4282_s28 = sadd.s32 4294967295, %s5795_s27   ;;  %p4286_p0 = scmp.ge.s32.totalorder %s5795_s27, 1  ;;  %s5795_s27 = sphi %s5852_s27, %s18_s27  }
   0x2   : > { %p262_p1 = scmp.lt.s32.totalorder %s5795_s27, 3 }
   0x4   : > { %p263_p2 = pnand %p4286_p0, %p262_p1 }
   0x5   : > { %p296_p3 = scmp.lt.s32.totalorder (!%p263_p2), %s4282_s28, 1  ;;  %s5797_s11 = smov (!%p263_p2), 18   ;;  %v5799_v39 = vmov (!%p263_p2), 0.0   ;;  %v377_v40 = vlaneseq (!%p263_p2)  ;;  %vm458_vm2 = vcmask (!%p263_p2), 392192   ;;  %vm2548_vm9 = vcmask (!%p263_p2), 130048  }
   0x6   : > { %266 = sbr.rel (%p263_p2) target bundleno = 934 (0x3a6), region = 52  ;;  %s5798_s12 = smov (!%p263_p2), 19   ;;  %529 = vmatprep.mubr.f32.mxu1 (!%p263_p2), %v5799_v39  ;;  %687 = vmatprep.mubr.f32.mxu0 (!%p263_p2), %v5799_v39 }
   0x7   : > { %s5800_s13 = smov (!%p263_p2), 17   ;;  %s5801_s14 = smov (!%p263_p2), 1   ;;  %v6061_v42 = vand.u32 (!%p263_p2), 127, %v377_v40 }
   0x8   : > { %s5802_s15 = smov (!%p263_p2), 127   ;;  %s5803_s16 = smov (!%p263_p2), 111  }
   0x9   : > { %s5804_s17 = smov (!%p263_p2), 110   ;;  %vm439_vm0 = vcmp.lt.s32.totalorder (!%p263_p2), %v6061_v42, 18  ;;  %s5805_s18 = smov (!%p263_p2), 109   ;;  %vm379_vm1 = vcmp.lt.s32.totalorder (!%p263_p2), %v6061_v42, 19  ;;  %vm816_vm3 = vcmp.lt.s32.totalorder (!%p263_p2), %v6061_v42, 17  ;;  %vm1040_vm4 = vcmp.lt.s32.totalorder (!%p263_p2), %v6061_v42, 1 }
   0xa   : > { %vm1433_vm5 = vcmp.lt.s32.totalorder (!%p263_p2), %v6061_v42, 127  ;;  %vm1657_vm6 = vcmp.lt.s32.totalorder (!%p263_p2), %v6061_v42, 111  ;;  %vm1881_vm7 = vcmp.lt.s32.totalorder (!%p263_p2), %v6061_v42, 110  ;;  %vm2105_vm8 = vcmp.lt.s32.totalorder (!%p263_p2), %v6061_v42, 109 }
   0xd   : > { %s6941_s28 = smov (!%p296_p3, %s4282_s28), 1 }
   0xe   : > { %s5278_s29 = smul.u32 72, %s6941_s28 }
  0x10   : > { %s5866_s10 = scalar_lea.vmem %s6931_s0, %s5278_s29 }
  0x11   : > { %v5869_v0 = vld [vmem:[%s5866_s10 + $0x8] sm:$0xf]  ;;  %v5872_v1 = vld [vmem:[%s5866_s10 + $0x14] sm:$0xf]  ;;  %v5875_v2 = vld [vmem:[%s5866_s10] sm:$0xff] }
  0x12   : > { %v320_v3 = vunpack.c.l.bf16 %v5869_v0  ;;  %v323_v4 = vunpack.c.l.bf16 %v5872_v1  ;;  %v5880_v5 = vld [vmem:[%s5866_s10 + $0xc] sm:$0xff]  ;;  %v318_v6 = vunpack.c.l.bf16 %v5875_v2  ;;  %v5884_v7 = vld [vmem:[%s5866_s10 + $0x18] sm:$0xff]  ;;  %v5887_v8 = vld [vmem:[%s5866_s10 + $0x24] sm:$0xff]  ;;  %v319_v9 = vunpack.c.h.bf16 %v5875_v2 }
  0x13   : > { %v321_v10 = vunpack.c.l.bf16 %v5880_v5  ;;  %v324_v11 = vunpack.c.l.bf16 %v5884_v7  ;;  %v327_v12 = vunpack.c.l.bf16 %v5887_v8  ;;  %v322_v13 = vunpack.c.h.bf16 %v5880_v5  ;;  %v5895_v14 = vld [vmem:[%s5866_s10 + $0x20] sm:$0xf]  ;;  %v5898_v15 = vld [vmem:[%s5866_s10 + $0x2c] sm:$0xf]  ;;  %v5917_v24 = vld [vmem:[%s5866_s10 + $0x30] sm:$0xff] }
  0x14   : > { %v5900_v16 = vpack.i.bf16 %v323_v4, %v320_v3  ;;  %v326_v19 = vunpack.c.l.bf16 %v5895_v14  ;;  %v329_v20 = vunpack.c.l.bf16 %v5898_v15  ;;  %v325_v22 = vunpack.c.h.bf16 %v5884_v7  ;;  %v5920_v25 = vld [vmem:[%s5866_s10 + $0x3c] sm:$0xff]  ;;  %v5923_v26 = vld [vmem:[%s5866_s10 + $0x38] sm:$0xf]  ;;  %v5926_v27 = vld [vmem:[%s5866_s10 + $0x44] sm:$0xf] }
  0x15   : > { %v5902_v17 = vpack.i.bf16 %v321_v10, %v318_v6  ;;  %v5906_v18 = vpack.i.bf16 %v327_v12, %v324_v11  ;;  %v5912_v21 = vpack.i.bf16 %v322_v13, %v319_v9  ;;  %v328_v23 = vunpack.c.h.bf16 %v5887_v8 }
  0x16   : > { %5309 = vrot.lane.b32.xlu1 %v5900_v16, %s5797_s11  ;;  %v5930_v28 = vpack.i.bf16 %v329_v20, %v326_v19  ;;  %v331_v29 = vunpack.c.h.bf16 %v5917_v24  ;;  %v334_v30 = vunpack.c.h.bf16 %v5920_v25  ;;  %v330_v31 = vunpack.c.l.bf16 %v5917_v24 }
  0x17   : > { %5299 = vrot.lane.b32.xlu0 %v5902_v17, %s5797_s11  ;;  %v5937_v32 = vpack.i.bf16 %v328_v23, %v325_v22  ;;  %v333_v33 = vunpack.c.l.bf16 %v5920_v25  ;;  %v332_v34 = vunpack.c.l.bf16 %v5923_v26  ;;  %v335_v35 = vunpack.c.l.bf16 %v5926_v27 }
  0x18   : > { %v5944_v36 = vpack.i.bf16 %v334_v30, %v331_v29 }
  0x19   : > { %v5948_v37 = vpack.i.bf16 %v333_v33, %v330_v31  ;;  %v5950_v38 = vpack.i.bf16 %v335_v35, %v332_v34  ;;  %v6115_v34 = vld [vmem:[%s6932_s1 + $0x8] sm:$0xff]  }
  0x1a   : > { %5314 = vrot.lane.b32.xlu1 %v5906_v18, %s5797_s11 }
  0x1b   : > { %5304 = vrot.lane.b32.xlu0 %v5912_v21, %s5797_s11 }
  0x1e   : > { %5324 = vrot.lane.b32.xlu1 %v5930_v28, %s5797_s11 }
  0x1f   : > { %5319 = vrot.lane.b32.xlu0 %v5937_v32, %s5797_s11 }
  0x22   : > { %5334 = vrot.lane.b32.xlu1 %v5944_v36, %s5797_s11 }
  0x23   : > { %5329 = vrot.lane.b32.xlu0 %v5948_v37, %s5797_s11 }
  0x26   : > { %5344 = vrot.lane.b32.xlu1 %v5902_v17, %s5798_s12 }
  0x27   : > { %5339 = vrot.lane.b32.xlu0 %v5950_v38, %s5797_s11 }
  0x2a   : > { %5354 = vrot.lane.b32.xlu1 %v5900_v16, %s5798_s12 }
  0x2b   : > { %5349 = vrot.lane.b32.xlu0 %v5912_v21, %s5798_s12 }
  0x2e   : > { %5364 = vrot.lane.b32.xlu1 %v5937_v32, %s5798_s12 }
  0x2f   : > { %5359 = vrot.lane.b32.xlu0 %v5906_v18, %s5798_s12 }
  0x32   : > { %5374 = vrot.lane.b32.xlu1 %v5948_v37, %s5798_s12 }
  0x33   : > { %5369 = vrot.lane.b32.xlu0 %v5930_v28, %s5798_s12 }
  0x36   : > { %5384 = vrot.lane.b32.xlu1 %v5950_v38, %s5798_s12 }
  0x37   : > { %5379 = vrot.lane.b32.xlu0 %v5944_v36, %s5798_s12 }
  0x3a   : > { %5394 = vrot.lane.b32.xlu1 %v5912_v21, %s5800_s13 }
  0x3b   : > { %5389 = vrot.lane.b32.xlu0 %v5902_v17, %s5800_s13 }
  0x3e   : > { %5404 = vrot.lane.b32.xlu1 %v5906_v18, %s5800_s13 }
  0x3f   : > { %5399 = vrot.lane.b32.xlu0 %v5900_v16, %s5800_s13 }
  0x42   : > { %5414 = vrot.lane.b32.xlu1 %v5930_v28, %s5800_s13 }
  0x43   : > { %5409 = vrot.lane.b32.xlu0 %v5937_v32, %s5800_s13 }
  0x46   : > { %5424 = vrot.lane.b32.xlu1 %v5944_v36, %s5800_s13 }
  0x47   : > { %5419 = vrot.lane.b32.xlu0 %v5948_v37, %s5800_s13 }
  0x4a   : > { %5434 = vrot.lane.b32.xlu1 %v5902_v17, %s5801_s14 }
  0x4b   : > { %5429 = vrot.lane.b32.xlu0 %v5950_v38, %s5800_s13 }
  0x4e   : > { %5444 = vrot.lane.b32.xlu1 %v5900_v16, %s5801_s14 }
  0x4f   : > { %5439 = vrot.lane.b32.xlu0 %v5912_v21, %s5801_s14 }
  0x52   : > { %5454 = vrot.lane.b32.xlu1 %v5937_v32, %s5801_s14 }
  0x53   : > { %5449 = vrot.lane.b32.xlu0 %v5906_v18, %s5801_s14 }
  0x56   : > { %5464 = vrot.lane.b32.xlu1 %v5948_v37, %s5801_s14 }
  0x57   : > { %5459 = vrot.lane.b32.xlu0 %v5930_v28, %s5801_s14 }
  0x5a   : > { %5474 = vrot.lane.b32.xlu1 %v5950_v38, %s5801_s14 }
  0x5b   : > { %5469 = vrot.lane.b32.xlu0 %v5944_v36, %s5801_s14 }
  0x5e   : > { %5484 = vrot.lane.b32.xlu1 %v5900_v16, %s5802_s15 }
  0x5f   : > { %5479 = vrot.lane.b32.xlu0 %v5912_v21, %s5802_s15 }
  0x62   : > { %5494 = vrot.lane.b32.xlu1 %v5937_v32, %s5802_s15 }
  0x63   : > { %5489 = vrot.lane.b32.xlu0 %v5902_v17, %s5802_s15 }
  0x66   : > { %5504 = vrot.lane.b32.xlu1 %v5906_v18, %s5802_s15 }
  0x67   : > { %5499 = vrot.lane.b32.xlu0 %v5930_v28, %s5802_s15 }
  0x6a   : > { %5514 = vrot.lane.b32.xlu1 %v5950_v38, %s5802_s15 }
  0x6b   : > { %5509 = vrot.lane.b32.xlu0 %v5944_v36, %s5802_s15 }
  0x6e   : > { %5524 = vrot.lane.b32.xlu1 %v5912_v21, %s5803_s16 }
  0x6f   : > { %5519 = vrot.lane.b32.xlu0 %v5948_v37, %s5802_s15 }
  0x72   : > { %5534 = vrot.lane.b32.xlu1 %v5902_v17, %s5803_s16 }
  0x73   : > { %5529 = vrot.lane.b32.xlu0 %v5900_v16, %s5803_s16 }
  0x76   : > { %5544 = vrot.lane.b32.xlu1 %v5930_v28, %s5803_s16 }
  0x77   : > { %5539 = vrot.lane.b32.xlu0 %v5937_v32, %s5803_s16 }
  0x7a   : > { %5554 = vrot.lane.b32.xlu1 %v5944_v36, %s5803_s16 }
  0x7b   : > { %5549 = vrot.lane.b32.xlu0 %v5906_v18, %s5803_s16 }
  0x7e   : > { %5564 = vrot.lane.b32.xlu1 %v5948_v37, %s5803_s16 }
  0x7f   : > { %5559 = vrot.lane.b32.xlu0 %v5950_v38, %s5803_s16 }
  0x82   : > { %5574 = vrot.lane.b32.xlu1 %v5900_v16, %s5804_s17 }
  0x83   : > { %5569 = vrot.lane.b32.xlu0 %v5912_v21, %s5804_s17 }
  0x86   : > { %5584 = vrot.lane.b32.xlu1 %v5937_v32, %s5804_s17 }
  0x87   : > { %5579 = vrot.lane.b32.xlu0 %v5902_v17, %s5804_s17 }
  0x88   : > { %v6058_v41 = vpop.permute.xlu1 %5309 }
  0x89   : > { %v5300_v43 = vpop.permute.xlu0 %5299  ;;  %v5312_v44 = vunpack.i.h.bf16 %v6058_v41  ;;  %v5311_v45 = vunpack.i.l.bf16 %v6058_v41 }
  0x8a   : > { %5594 = vrot.lane.b32.xlu1 %v5906_v18, %s5804_s17  ;;  %v5302_v46 = vunpack.i.h.bf16 %v5300_v43  ;;  %v5301_v47 = vunpack.i.l.bf16 %v5300_v43 }
  0x8b   : > { %5589 = vrot.lane.b32.xlu0 %v5930_v28, %s5804_s17 }
  0x8c   : > { %v5315_v48 = vpop.permute.xlu1 %5314  ;;  %v452_v52 = vsel %vm439_vm0, %v5311_v45, %v5301_v47  ;;  %v453_v53 = vsel %vm439_vm0, %v5312_v44, %v5302_v46 }
  0x8d   : > { %v5305_v49 = vpop.permute.xlu0 %5304  ;;  %v5317_v54 = vunpack.i.h.bf16 %v5315_v48  ;;  %v5316_v58 = vunpack.i.l.bf16 %v5315_v48  ;;  %v4830_v4 = vpack.c.bf16 %v453_v53, %v452_v52 }
  0x8e   : > { %v5307_v50 = vunpack.i.h.bf16 %v5305_v49  ;;  %v5306_v51 = vunpack.i.l.bf16 %v5305_v49  ;;  %5604 = vrot.lane.b32.xlu1 %v5950_v38, %s5804_s17 }
  0x8f   : > { %5599 = vrot.lane.b32.xlu0 %v5944_v36, %s5804_s17 }
  0x90   : > { %v6078_v55 = vpop.permute.xlu1 %5324  ;;  %v446_v56 = vsel %vm439_vm0, %v5301_v47, %v5306_v51  ;;  %v447_v57 = vsel %vm439_vm0, %v5302_v46, %v5307_v50  ;;  %v440_v43 = vsel %vm439_vm0, %v5306_v51, %v5311_v45  ;;  %v441_v46 = vsel %vm439_vm0, %v5307_v50, %v5312_v44 }
  0x91   : > { %v5327_v59 = vunpack.i.h.bf16 %v6078_v55  ;;  %v5326_v60 = vunpack.i.l.bf16 %v6078_v55  ;;  %v5320_v61 = vpop.permute.xlu0 %5319  ;;  %v4828_v62 = vpack.c.bf16 %v447_v57, %v446_v56  ;;  %v4413_v47 = vunpack.c.l.bf16 %v6115_v34 }
  0x92   : > { %v5322_v63 = vunpack.i.h.bf16 %v5320_v61  ;;  %v5321_v3 = vunpack.i.l.bf16 %v5320_v61  ;;  %5614 = vrot.lane.b32.xlu1 %v5912_v21, %s5805_s18  ;;  %v4840_v44 = vpack.c.bf16 %v441_v46, %v440_v43 }
  0x93   : > { %5609 = vrot.lane.b32.xlu0 %v5948_v37, %s5804_s17  ;;  %4829 = vmatprep.subr.bf16.mxu1 %v4828_v62  ;;  %v454_v6 = vsel %vm439_vm0, %v5326_v60, %v5316_v58  ;;  %v455_v9 = vsel %vm439_vm0, %v5327_v59, %v5317_v54 }
  0x94   : > { %4831 = vmatpush1.bf16.msra.mxu1 %v4830_v4  ;;  %v6094_v10 = vpop.permute.xlu1 %5334  ;;  %v448_v11 = vsel %vm439_vm0, %v5316_v58, %v5321_v3  ;;  %v449_v12 = vsel %vm439_vm0, %v5317_v54, %v5322_v63  ;;  %v4834_v13 = vpack.c.bf16 %v455_v9, %v454_v6  ;;  %v442_v50 = vsel %vm439_vm0, %v5321_v3, %v5326_v60 }
  0x95   : > { %v5337_v19 = vunpack.i.h.bf16 %v6094_v10  ;;  %v5336_v20 = vunpack.i.l.bf16 %v6094_v10  ;;  %v5330_v21 = vpop.permute.xlu0 %5329  ;;  %v4832_v22 = vpack.c.bf16 %v449_v12, %v448_v11  ;;  %v443_v57 = vsel %vm439_vm0, %v5322_v63, %v5327_v59 }
  0x96   : > { %v5332_v23 = vunpack.i.h.bf16 %v5330_v21  ;;  %v5331_v29 = vunpack.i.l.bf16 %v5330_v21  ;;  %5624 = vrot.lane.b32.xlu1 %v5902_v17, %s5805_s18  ;;  %v4844_v11 = vpack.c.bf16 %v443_v57, %v442_v50  ;;  %v4414_v12 = vunpack.c.h.bf16 %v6115_v34 }
  0x97   : > { %5619 = vrot.lane.b32.xlu0 %v5900_v16, %s5805_s18  ;;  %4833 = vmatprep.subr.bf16.mxu1 %v4832_v22 }
  0x98   : > { %4835 = vmatpush1.bf16.msra.mxu1 %v4834_v13  ;;  %v5345_v30 = vpop.permute.xlu1 %5344  ;;  %v450_v31 = vsel %vm439_vm0, %v5331_v29, %v5336_v20  ;;  %v451_v33 = vsel %vm439_vm0, %v5332_v23, %v5337_v19 }
  0x99   : > { %v5340_v17 = vpop.permute.xlu0 %5339  ;;  %v4836_v35 = vpack.c.bf16 %v451_v33, %v450_v31  ;;  %v5347_v48 = vunpack.i.h.bf16 %v5345_v30  ;;  %v2289_v31 = vld [vmem:[%s6933_s2 + $0x8] sm:$0xff] }
  0x9a   : > { %v5342_v41 = vunpack.i.h.bf16 %v5340_v17  ;;  %v5341_v16 = vunpack.i.l.bf16 %v5340_v17  ;;  %5634 = vrot.lane.b32.xlu1 %v5930_v28, %s5805_s18 }
  0x9b   : > { %5629 = vrot.lane.b32.xlu0 %v5937_v32, %s5805_s18  ;;  %4837 = vmatprep.subr.bf16.mxu1 %v4836_v35  ;;  %v5346_v32 = vunpack.i.l.bf16 %v5345_v30  ;;  %v2288_v35 = vld [vmem:[%s6933_s2] sm:$0xff] }
  0x9c   : > { %v5355_v49 = vpop.permute.xlu1 %5354  ;;  %v456_v52 = vsel %vm439_vm0, %v5341_v16, %v5331_v29  ;;  %v457_v28 = vsel %vm439_vm0, %v5342_v41, %v5332_v23  ;;  %v444_v13 = vsel %vm439_vm0, %v5336_v20, %v5341_v16  ;;  %v445_v21 = vsel %vm439_vm0, %v5337_v19, %v5342_v41 }
  0x9d   : > { %v5357_v53 = vunpack.i.h.bf16 %v5355_v49  ;;  %v5356_v54 = vunpack.i.l.bf16 %v5355_v49  ;;  %v5350_v55 = vpop.permute.xlu0 %5349  ;;  %v4838_v45 = vpack.c.bf16 %v457_v28, %v456_v52  ;;  %v4848_v10 = vpack.c.bf16 %v445_v21, %v444_v13 }
  0x9e   : > { %v5352_v51 = vunpack.i.h.bf16 %v5350_v55  ;;  %v5351_v56 = vunpack.i.l.bf16 %v5350_v55  ;;  %5644 = vrot.lane.b32.xlu1 %v5944_v36, %s5805_s18  ;;  %v5806_v19 = vmov 0  }
  0x9f   : > { %5639 = vrot.lane.b32.xlu0 %v5906_v18, %s5805_s18  ;;  %4839 = vmatpush1.bf16.msra.mxu1 %v4838_v45  ;;  %v392_v58 = vsel %vm379_vm1, %v5356_v54, %v5346_v32  ;;  %v393_v61 = vsel %vm379_vm1, %v5357_v53, %v5347_v48 }
  0xa0   : > { %4841 = vmatprep.subr.bf16.mxu1 %v4840_v44  ;;  %v6143_v36 = vpop.permute.xlu1 %5364  ;;  %v386_v60 = vsel %vm379_vm1, %v5346_v32, %v5351_v56  ;;  %v387_v18 = vsel %vm379_vm1, %v5347_v48, %v5352_v51  ;;  %v4854_v4 = vpack.c.bf16 %v393_v61, %v392_v58  ;;  %5659 = vset.pattern.permute.xlu1 %v5806_v19  ;;  %v6203_v58 = vld [vmem:[%s6932_s1] sm:$0xff]  }
  0xa1   : > { %v5367_v62 = vunpack.i.h.bf16 %v6143_v36  ;;  %v5366_v3 = vunpack.i.l.bf16 %v6143_v36  ;;  %v5360_v59 = vpop.permute.xlu0 %5359  ;;  %v4852_v63 = vpack.c.bf16 %v387_v18, %v386_v60  ;;  %v380_v33 = vsel %vm379_vm1, %v5351_v56, %v5356_v54  ;;  %5658 = vset.pattern.permute.xlu0 %v5806_v19 }
  0xa2   : > { %v5362_v6 = vunpack.i.h.bf16 %v5360_v59  ;;  %v5361_v9 = vunpack.i.l.bf16 %v5360_v59  ;;  %5654 = vrot.lane.b32.xlu1 %v5948_v37, %s5805_s18  ;;  %4291 = vmatmul.mubr.msk.f32.vlgmr.msra.gmra.mrb[0].mxu1 %vm458_vm2, %v4413_v47  ;;  %v381_v17 = vsel %vm379_vm1, %v5352_v51, %v5357_v53 }
  0xa3   : > { %5649 = vrot.lane.b32.xlu0 %v5950_v38, %s5805_s18  ;;  %4843 = vmatpush3.bf16.msra.mxu1 %v4840_v44  ;;  %v4864_v55 = vpack.c.bf16 %v381_v17, %v380_v33 }
  0xa4   : > { %4853 = vmatprep.subr.bf16.mxu0 %v4852_v63  ;;  %4845 = vmatprep.subr.bf16.mxu1 %v4844_v11  ;;  %v5375_v37 = vpop.permute.xlu1 %5374  ;;  %v388_v22 = vsel %vm379_vm1, %v5361_v9, %v5366_v3  ;;  %v389_v23 = vsel %vm379_vm1, %v5362_v6, %v5367_v62 }
  0xa5   : > { %4855 = vmatpush1.bf16.msra.mxu0 %v4854_v4  ;;  %v5370_v38 = vpop.permute.xlu0 %5369  ;;  %v4856_v29 = vpack.c.bf16 %v389_v23, %v388_v22  ;;  %535 = vmatprep.mubr.f32.mxu1 %v5799_v39  ;;  %v5377_v41 = vunpack.i.h.bf16 %v5375_v37  ;;  %v5376_v48 = vunpack.i.l.bf16 %v5375_v37 }
  0xa6   : > { %v5372_v20 = vunpack.i.h.bf16 %v5370_v38  ;;  %v5371_v30 = vunpack.i.l.bf16 %v5370_v38  ;;  %4292 = vmatmul.mubr.msk.f32.gmra.mrb[2].mxu1 %vm458_vm2, %v4414_v12  ;;  %2297 = vperm.xlu1 %5659, %v2289_v31   ;;  %v6227_v31 = vld [vmem:[%s6932_s1 + $0x10] sm:$0xff]  }
  0xa7   : > { %4847 = vmatpush3.bf16.msra.mxu1 %v4844_v11  ;;  %4857 = vmatprep.subr.bf16.mxu0 %v4856_v29 }
  0xa8   : > { %4849 = vmatprep.subr.bf16.mxu1 %v4848_v10  ;;  %v5385_v16 = vpop.permute.xlu1 %5384  ;;  %v394_v43 = vsel %vm379_vm1, %v5371_v30, %v5361_v9  ;;  %v395_v46 = vsel %vm379_vm1, %v5372_v20, %v5362_v6  ;;  %4627 = vmatprep.mubr.msk.f32.mxu1 %vm458_vm2, %v4413_v47  ;;  %v382_v45 = vsel %vm379_vm1, %v5366_v3, %v5371_v30  ;;  %v4409_v6 = vunpack.c.l.bf16 %v6203_v58 }
  0xa9   : > { %v5387_v49 = vunpack.i.h.bf16 %v5385_v16  ;;  %v5386_v52 = vunpack.i.l.bf16 %v5385_v16  ;;  %v5380_v28 = vpop.permute.xlu0 %5379  ;;  %v4858_v32 = vpack.c.bf16 %v395_v46, %v394_v43  ;;  %2292 = vperm.xlu0 %5658, %v2288_v35   ;;  %v383_v51 = vsel %vm379_vm1, %v5367_v62, %v5372_v20 }
  0xaa   : > { %v5382_v53 = vunpack.i.h.bf16 %v5380_v28  ;;  %v5381_v54 = vunpack.i.l.bf16 %v5380_v28  ;;  %v4868_v59 = vpack.c.bf16 %v383_v51, %v382_v45 }
  0xab   : > { %4851 = vmatpush3.bf16.msra.mxu1 %v4848_v10  ;;  %4859 = vmatpush1.bf16.msra.mxu0 %v4858_v32  ;;  %v396_v34 = vsel %vm379_vm1, %v5386_v52, %v5376_v48  ;;  %v397_v47 = vsel %vm379_vm1, %v5387_v49, %v5377_v41  ;;  %v4417_v32 = vunpack.c.l.bf16 %v6227_v31 }
  0xac   : > { %4865 = vmatprep.subr.bf16.mxu1 %v4864_v55  ;;  %v5395_v56 = vpop.permute.xlu1 %5394  ;;  %v390_v44 = vsel %vm379_vm1, %v5376_v48, %v5381_v54  ;;  %v391_v50 = vsel %vm379_vm1, %v5377_v41, %v5382_v53  ;;  %v4862_v57 = vpack.c.bf16 %v397_v47, %v396_v34  ;;  %v384_v63 = vsel %vm379_vm1, %v5381_v54, %v5386_v52 }
  0xad   : > { %v5397_v61 = vunpack.i.h.bf16 %v5395_v56  ;;  %v5396_v36 = vunpack.i.l.bf16 %v5395_v56  ;;  %v5390_v60 = vpop.permute.xlu0 %5389  ;;  %v4860_v18 = vpack.c.bf16 %v391_v50, %v390_v44  ;;  %v385_v4 = vsel %vm379_vm1, %v5382_v53, %v5387_v49 }
  0xae   : > { %v5392_v62 = vunpack.i.h.bf16 %v5390_v60  ;;  %v5391_v3 = vunpack.i.l.bf16 %v5390_v60  ;;  %4628 = vmatmul.mubr.msk.f32.vlgmr.msra.gmra.mrb[4].mxu1 %vm458_vm2, %v4414_v12  ;;  %v4872_v23 = vpack.c.bf16 %v385_v4, %v384_v63  ;;  %v4410_v48 = vunpack.c.h.bf16 %v6203_v58 }
  0xaf   : > { %4861 = vmatprep.subr.bf16.mxu0 %v4860_v18  ;;  %4867 = vmatpush3.bf16.msra.mxu1 %v4864_v55 }
  0xb0   : > { %4863 = vmatpush1.bf16.msra.mxu0 %v4862_v57  ;;  %4869 = vmatprep.subr.bf16.mxu1 %v4868_v59  ;;  %v5405_v9 = vpop.permute.xlu1 %5404  ;;  %v823_v11 = vsel %vm816_vm3, %v5391_v3, %v5396_v36  ;;  %v824_v12 = vsel %vm816_vm3, %v5392_v62, %v5397_v61 }
  0xb1   : > { %v5400_v13 = vpop.permute.xlu0 %5399  ;;  %v4876_v21 = vpack.c.bf16 %v824_v12, %v823_v11  ;;  %4642 = vmatprep.mubr.msk.f32.mxu1 %vm458_vm2, %v4409_v6  ;;  %v5407_v38 = vunpack.i.h.bf16 %v5405_v9  ;;  %v5406_v29 = vunpack.i.l.bf16 %v5405_v9 }
  0xb2   : > { %v5402_v37 = vunpack.i.h.bf16 %v5400_v13  ;;  %v5401_v22 = vunpack.i.l.bf16 %v5400_v13 }
  0xb3   : > { %4871 = vmatpush3.bf16.msra.mxu1 %v4868_v59  ;;  %4877 = vmatprep.subr.bf16.mxu0 %v4876_v21 }
  0xb4   : > { %v829_v20 = vsel %vm816_vm3, %v5401_v22, %v5391_v3  ;;  %v830_v30 = vsel %vm816_vm3, %v5402_v37, %v5392_v62  ;;  %4873 = vmatprep.subr.bf16.mxu1 %v4872_v23  ;;  %v5415_v10 = vpop.permute.xlu1 %5414  ;;  %4295 = vmatmul.mubr.msk.f32.vlgmr.msra.gmra.mrb[0].mxu0 %vm458_vm2, %v4409_v6  ;;  %v817_v19 = vsel %vm816_vm3, %v5396_v36, %v5401_v22 }
  0xb5   : > { %v4878_v33 = vpack.c.bf16 %v830_v30, %v829_v20  ;;  %v5417_v17 = vunpack.i.h.bf16 %v5415_v10  ;;  %v5416_v35 = vunpack.i.l.bf16 %v5415_v10  ;;  %v5410_v41 = vpop.permute.xlu0 %5409  ;;  %v818_v16 = vsel %vm816_vm3, %v5397_v61, %v5402_v37  ;;  %693 = vmatprep.mubr.f32.mxu0 %v5799_v39 }
  0xb6   : > { %v5412_v43 = vunpack.i.h.bf16 %v5410_v41  ;;  %v5411_v46 = vunpack.i.l.bf16 %v5410_v41  ;;  %v4888_v49 = vpack.c.bf16 %v818_v16, %v817_v19 }
  0xb7   : > { %v831_v52 = vsel %vm816_vm3, %v5416_v35, %v5406_v29  ;;  %v832_v28 = vsel %vm816_vm3, %v5417_v17, %v5407_v38  ;;  %4875 = vmatpush3.bf16.msra.mxu1 %v4872_v23  ;;  %4879 = vmatpush1.bf16.msra.mxu0 %v4878_v33  ;;  %v4418_v33 = vunpack.c.h.bf16 %v6227_v31 }
  0xb8   : > { %v4882_v53 = vpack.c.bf16 %v832_v28, %v831_v52  ;;  %4889 = vmatprep.subr.bf16.mxu1 %v4888_v49  ;;  %v5425_v54 = vpop.permute.xlu1 %5424  ;;  %v825_v55 = vsel %vm816_vm3, %v5406_v29, %v5411_v46  ;;  %v826_v45 = vsel %vm816_vm3, %v5407_v38, %v5412_v43  ;;  %v819_v34 = vsel %vm816_vm3, %v5411_v46, %v5416_v35 }
  0xb9   : > { %v5427_v47 = vunpack.i.h.bf16 %v5425_v54  ;;  %v5426_v51 = vunpack.i.l.bf16 %v5425_v54  ;;  %v5420_v56 = vpop.permute.xlu0 %5419  ;;  %v4880_v44 = vpack.c.bf16 %v826_v45, %v825_v55  ;;  %v820_v50 = vsel %vm816_vm3, %v5412_v43, %v5417_v17  ;;  %4296 = vmatmul.mubr.msk.f32.gmra.mrb[2].mxu0 %vm458_vm2, %v4410_v48  ;;  %v6273_v17 = vld [vmem:[%s6932_s1 + $0x18] sm:$0xff]  }
  0xba   : > { %v5422_v57 = vunpack.i.h.bf16 %v5420_v56  ;;  %v5421_v58 = vunpack.i.l.bf16 %v5420_v56  ;;  %4643 = vmatmul.mubr.msk.f32.vlgmr.msra.gmra.mrb[4].mxu1 %vm458_vm2, %v4410_v48  ;;  %v4892_v61 = vpack.c.bf16 %v820_v50, %v819_v34  ;;  %905 = vmatprep.mubr.f32.mxu0 %v5799_v39  ;;  %v4421_v34 = vunpack.c.l.bf16 %v6273_v17 }
  0xbb   : > { %4881 = vmatprep.subr.bf16.mxu0 %v4880_v44  ;;  %4891 = vmatpush3.bf16.msra.mxu1 %v4888_v49 }
  0xbc   : > { %4883 = vmatpush1.bf16.msra.mxu0 %v4882_v53  ;;  %4893 = vmatprep.subr.bf16.mxu1 %v4892_v61  ;;  %v5435_v36 = vpop.permute.xlu1 %5434  ;;  %v827_v60 = vsel %vm816_vm3, %v5421_v58, %v5426_v51  ;;  %v828_v18 = vsel %vm816_vm3, %v5422_v57, %v5427_v47 }
  0xbd   : > { %v5430_v62 = vpop.permute.xlu0 %5429  ;;  %v4884_v3 = vpack.c.bf16 %v828_v18, %v827_v60  ;;  %4657 = vmatprep.mubr.msk.f32.mxu1 %vm458_vm2, %v4417_v32  ;;  %v5437_v4 = vunpack.i.h.bf16 %v5435_v36  ;;  %v5436_v6 = vunpack.i.l.bf16 %v5435_v36 }
  0xbe   : > { %v5432_v59 = vunpack.i.h.bf16 %v5430_v62  ;;  %v5431_v63 = vunpack.i.l.bf16 %v5430_v62 }
  0xbf   : > { %4885 = vmatprep.subr.bf16.mxu0 %v4884_v3  ;;  %4895 = vmatpush3.bf16.msra.mxu1 %v4892_v61 }
  0xc0   : > { %v833_v9 = vsel %vm816_vm3, %v5431_v63, %v5421_v58  ;;  %v834_v11 = vsel %vm816_vm3, %v5432_v59, %v5422_v57  ;;  %v5445_v12 = vpop.permute.xlu1 %5444  ;;  %v821_v13 = vsel %vm816_vm3, %v5426_v51, %v5431_v63  ;;  %v822_v21 = vsel %vm816_vm3, %v5427_v47, %v5432_v59 }
  0xc1   : > { %v4886_v37 = vpack.c.bf16 %v834_v11, %v833_v9  ;;  %v5447_v22 = vunpack.i.h.bf16 %v5445_v12  ;;  %v5446_v23 = vunpack.i.l.bf16 %v5445_v12  ;;  %v5440_v38 = vpop.permute.xlu0 %5439  ;;  %v4896_v29 = vpack.c.bf16 %v822_v21, %v821_v13 }
  0xc2   : > { %v5442_v20 = vunpack.i.h.bf16 %v5440_v38  ;;  %v5441_v30 = vunpack.i.l.bf16 %v5440_v38 }
  0xc3   : > { %v1053_v10 = vsel %vm1040_vm4, %v5446_v23, %v5436_v6  ;;  %v1054_v19 = vsel %vm1040_vm4, %v5447_v22, %v5437_v4  ;;  %4887 = vmatpush1.bf16.msra.mxu0 %v4886_v37  ;;  %4897 = vmatprep.subr.bf16.mxu1 %v4896_v29 }
  0xc4   : > { %v4902_v35 = vpack.c.bf16 %v1054_v19, %v1053_v10  ;;  %4899 = vmatpush3.bf16.msra.mxu1 %v4896_v29  ;;  %v5455_v41 = vpop.permute.xlu1 %5454  ;;  %v1047_v16 = vsel %vm1040_vm4, %v5436_v6, %v5441_v30  ;;  %v1048_v43 = vsel %vm1040_vm4, %v5437_v4, %v5442_v20  ;;  %v1041_v46 = vsel %vm1040_vm4, %v5441_v30, %v5446_v23 }
  0xc5   : > { %v5457_v48 = vunpack.i.h.bf16 %v5455_v41  ;;  %v5456_v49 = vunpack.i.l.bf16 %v5455_v41  ;;  %v5450_v52 = vpop.permute.xlu0 %5449  ;;  %v4900_v28 = vpack.c.bf16 %v1048_v43, %v1047_v16  ;;  %v1042_v53 = vsel %vm1040_vm4, %v5442_v20, %v5447_v22  ;;  %v6334_v43 = vld [vmem:[%s6932_s1 + $0x20] sm:$0xff]  }
  0xc6   : > { %v5452_v54 = vunpack.i.h.bf16 %v5450_v52  ;;  %v5451_v55 = vunpack.i.l.bf16 %v5450_v52  ;;  %v4912_v45 = vpack.c.bf16 %v1042_v53, %v1041_v46  ;;  %4301 = vmatmul.mubr.msk.f32.vlgmr.msra.gmra.mrb[0].mxu0 %vm458_vm2, %v4417_v32  ;;  %v6320_v10 = vcombine.high %v5875_v2, %v5880_v5 }
  0xc7   : > { %4901 = vmatprep.subr.bf16.mxu0 %v4900_v28  ;;  %4658 = vmatmul.mubr.msk.f32.vlgmr.msra.gmra.mrb[4].mxu1 %vm458_vm2, %v4418_v33  ;;  %v4422_v41 = vunpack.c.h.bf16 %v6273_v17  ;;  %v6329_v16 = vcombine.low %v5875_v2, %v5880_v5  ;;  %v4425_v53 = vunpack.c.l.bf16 %v6334_v43  ;;  %v6361_v17 = vcombine.high %v5917_v24, %v5920_v25 }
  0xc8   : > { %4913 = vmatprep.subr.bf16.mxu1 %v4912_v45  ;;  %4903 = vmatpush1.bf16.msra.mxu0 %v4902_v35  ;;  %v5465_v47 = vpop.permute.xlu1 %5464  ;;  %v1049_v51 = vsel %vm1040_vm4, %v5451_v55, %v5456_v49  ;;  %v1050_v56 = vsel %vm1040_vm4, %v5452_v54, %v5457_v48 }
  0xc9   : > { %4915 = vmatpush3.bf16.msra.mxu1 %v4912_v45  ;;  %v5460_v44 = vpop.permute.xlu0 %5459  ;;  %v4904_v50 = vpack.c.bf16 %v1050_v56, %v1049_v51  ;;  %911 = vmatprep.mubr.f32.mxu0 %v5799_v39  ;;  %v5467_v57 = vunpack.i.h.bf16 %v5465_v47  ;;  %v5466_v58 = vunpack.i.l.bf16 %v5465_v47 }
  0xca   : > { %v5462_v31 = vunpack.i.h.bf16 %v5460_v44  ;;  %v5461_v32 = vunpack.i.l.bf16 %v5460_v44  ;;  %4302 = vmatmul.mubr.msk.f32.gmra.mrb[2].mxu0 %vm458_vm2, %v4418_v33  ;;  %4672 = vmatprep.mubr.msk.f32.mxu1 %vm458_vm2, %v4421_v34  ;;  %v6324_v33 = vcombine.low %v5869_v0, %v5872_v1  ;;  %v6339_v0 = vcombine.high %v5884_v7, %v5887_v8 }
  0xcb   : > { %4905 = vmatprep.subr.bf16.mxu0 %v4904_v50  ;;  %1129 = vmatprep.mubr.f32.mxu0 %v5799_v39  ;;  %v6343_v1 = vcombine.low %v5895_v14, %v5898_v15  ;;  %v6355_v15 = vcombine.low %v5884_v7, %v5887_v8  ;;  %v6382_v44 = vcombine.low %v5917_v24, %v5920_v25 }
  0xcc   : > { %v1055_v61 = vsel %vm1040_vm4, %v5461_v32, %v5451_v55  ;;  %v1056_v36 = vsel %vm1040_vm4, %v5462_v31, %v5452_v54  ;;  %v5475_v60 = vpop.permute.xlu1 %5474  ;;  %v1043_v18 = vsel %vm1040_vm4, %v5456_v49, %v5461_v32  ;;  %v1044_v62 = vsel %vm1040_vm4, %v5457_v48, %v5462_v31 }
  0xcd   : > { %v4906_v3 = vpack.c.bf16 %v1056_v36, %v1055_v61  ;;  %v5477_v59 = vunpack.i.h.bf16 %v5475_v60  ;;  %v5476_v63 = vunpack.i.l.bf16 %v5475_v60  ;;  %v5470_v4 = vpop.permute.xlu0 %5469  ;;  %v4916_v6 = vpack.c.bf16 %v1044_v62, %v1043_v18 }
  0xce   : > { %v5472_v9 = vunpack.i.h.bf16 %v5470_v4  ;;  %v5471_v11 = vunpack.i.l.bf16 %v5470_v4  ;;  %v6365_v55 = vcombine.low %v5923_v26, %v5926_v27 }
  0xcf   : > { %v1057_v12 = vsel %vm1040_vm4, %v5476_v63, %v5466_v58  ;;  %v1058_v13 = vsel %vm1040_vm4, %v5477_v59, %v5467_v57  ;;  %4907 = vmatpush1.bf16.msra.mxu0 %v4906_v3  ;;  %4917 = vmatprep.subr.bf16.mxu1 %v4916_v6 }
  0xd0   : > { %v4910_v21 = vpack.c.bf16 %v1058_v13, %v1057_v12  ;;  %4919 = vmatpush3.bf16.msra.mxu1 %v4916_v6  ;;  %v5485_v37 = vpop.permute.xlu1 %5484  ;;  %v1051_v22 = vsel %vm1040_vm4, %v5466_v58, %v5471_v11  ;;  %v1052_v23 = vsel %vm1040_vm4, %v5467_v57, %v5472_v9  ;;  %v1045_v38 = vsel %vm1040_vm4, %v5471_v11, %v5476_v63 }
  0xd1   : > { %v5480_v29 = vpop.permute.xlu0 %5479  ;;  %v4908_v20 = vpack.c.bf16 %v1052_v23, %v1051_v22  ;;  %v1046_v30 = vsel %vm1040_vm4, %v5472_v9, %v5477_v59  ;;  %v5487_v46 = vunpack.i.h.bf16 %v5485_v37  ;;  %v5486_v2 = vunpack.i.l.bf16 %v5485_v37  ;;  %v6405_v9 = vld [vmem:[%s6932_s1 + $0x28] sm:$0xff]  }
  0xd2   : > { %v4920_v19 = vpack.c.bf16 %v1046_v30, %v1045_v38  ;;  %v5482_v5 = vunpack.i.h.bf16 %v5480_v29  ;;  %v5481_v49 = vunpack.i.l.bf16 %v5480_v29  ;;  %v4426_v57 = vunpack.c.h.bf16 %v6334_v43 }
  0xd3   : > { %4909 = vmatprep.subr.bf16.mxu0 %v4908_v20  ;;  %v4429_v29 = vunpack.c.l.bf16 %v6405_v9 }
  0xd4   : > { %4921 = vmatprep.subr.bf16.mxu1 %v4920_v19  ;;  %4911 = vmatpush1.bf16.msra.mxu0 %v4910_v21  ;;  %v5495_v35 = vpop.permute.xlu1 %5494  ;;  %v1434_v7 = vsel %vm1433_vm5, %v5481_v49, %v5486_v2  ;;  %v1435_v8 = vsel %vm1433_vm5, %v5482_v5, %v5487_v46 }
  0xd5   : > { %4923 = vmatpush3.bf16.msra.mxu1 %v4920_v19  ;;  %v5490_v48 = vpop.permute.xlu0 %5489  ;;  %4925 = vmatprep.subr.bf16.mxu0 %v6320_v10  ;;  %v5497_v50 = vunpack.i.h.bf16 %v5495_v35  ;;  %v5496_v31 = vunpack.i.l.bf16 %v5495_v35  ;;  %v4948_v24 = vpack.c.bf16 %v1435_v8, %v1434_v7 }
  0xd6   : > { %v5491_v52 = vunpack.i.l.bf16 %v5490_v48  ;;  %4937 = vmatprep.subr.bf16.mxu1 %v6324_v33  ;;  %v5492_v28 = vunpack.i.h.bf16 %v5490_v48 }
  0xd7   : > { %4307 = vmatmul.mubr.msk.f32.vlgmr.msra.gmra.mrb[0].mxu0 %vm458_vm2, %v4421_v34 }
  0xd8   : > { %4673 = vmatmul.mubr.msk.f32.vlgmr.msra.gmra.mrb[4].mxu1 %vm458_vm2, %v4422_v41  ;;  %4927 = vmatpush1.bf16.msra.mxu0 %v6329_v16  ;;  %v5505_v14 = vpop.permute.xlu1 %5504  ;;  %v1446_v34 = vsel %vm1433_vm5, %v5486_v2, %v5491_v52  ;;  %v1447_v26 = vsel %vm1433_vm5, %v5487_v46, %v5492_v28  ;;  %v1440_v58 = vsel %vm1433_vm5, %v5491_v52, %v5481_v49 }
  0xd9   : > { %4939 = vmatpush3.bf16.msra.mxu1 %v6324_v33  ;;  %v5500_v54 = vpop.permute.xlu0 %5499  ;;  %4929 = vmatprep.subr.bf16.mxu0 %v6339_v0  ;;  %v5507_v45 = vunpack.i.h.bf16 %v5505_v14  ;;  %v5506_v47 = vunpack.i.l.bf16 %v5505_v14  ;;  %v1441_v61 = vsel %vm1433_vm5, %v5492_v28, %v5482_v5  ;;  %v4960_v25 = vpack.c.bf16 %v1447_v26, %v1446_v34 }
  0xda   : > { %4941 = vmatprep.subr.bf16.mxu1 %v6343_v1  ;;  %1135 = vmatprep.mubr.f32.mxu0 %v5799_v39  ;;  %v5502_v51 = vunpack.i.h.bf16 %v5500_v54  ;;  %v5501_v56 = vunpack.i.l.bf16 %v5500_v54  ;;  %v4950_v21 = vpack.c.bf16 %v1441_v61, %v1440_v58 }
  0xdb   : > { %4308 = vmatmul.mubr.msk.f32.gmra.mrb[2].mxu0 %vm458_vm2, %v4422_v41  ;;  %4687 = vmatprep.mubr.msk.f32.mxu1 %vm458_vm2, %v4425_v53  ;;  %v1442_v36 = vsel %vm1433_vm5, %v5506_v47, %v5496_v31  ;;  %v1443_v60 = vsel %vm1433_vm5, %v5507_v45, %v5497_v50 }
  0xdc   : > { %4931 = vmatpush1.bf16.msra.mxu0 %v6355_v15  ;;  %v5515_v27 = vpop.permute.xlu1 %5514  ;;  %1298 = vmatprep.mubr.f32.mxu0 %v5799_v39  ;;  %v1436_v18 = vsel %vm1433_vm5, %v5496_v31, %v5501_v56  ;;  %v1437_v62 = vsel %vm1433_vm5, %v5497_v50, %v5502_v51  ;;  %v1448_v12 = vsel %vm1433_vm5, %v5501_v56, %v5506_v47 }
  0xdd   : > { %4943 = vmatpush3.bf16.msra.mxu1 %v6343_v1  ;;  %v5510_v32 = vpop.permute.xlu0 %5509  ;;  %4933 = vmatprep.subr.bf16.mxu0 %v6361_v17  ;;  %v5517_v3 = vunpack.i.h.bf16 %v5515_v27  ;;  %v5516_v59 = vunpack.i.l.bf16 %v5515_v27  ;;  %v1449_v13 = vsel %vm1433_vm5, %v5502_v51, %v5507_v45  ;;  %v4954_v23 = vpack.c.bf16 %v1443_v60, %v1442_v36 }
  0xde   : > { %4945 = vmatprep.subr.bf16.mxu1 %v6365_v55  ;;  %v5512_v63 = vunpack.i.h.bf16 %v5510_v32  ;;  %v5511_v4 = vunpack.i.l.bf16 %v5510_v32  ;;  %v4952_v38 = vpack.c.bf16 %v1437_v62, %v1436_v18  ;;  %v4964_v30 = vpack.c.bf16 %v1449_v13, %v1448_v12 }
  0xdf   : > { %v4430_v60 = vunpack.c.h.bf16 %v6405_v9 }
  0xe0   : > { %4935 = vmatpush1.bf16.msra.mxu0 %v6382_v44  ;;  %v5525_v6 = vpop.permute.xlu1 %5524  ;;  %v1438_v19 = vsel %vm1433_vm5, %v5511_v4, %v5516_v59  ;;  %v1439_v35 = vsel %vm1433_vm5, %v5512_v63, %v5517_v3 }
  0xe1   : > { %4947 = vmatpush3.bf16.msra.mxu1 %v6365_v55  ;;  %v5520_v11 = vpop.permute.xlu0 %5519  ;;  %4949 = vmatprep.subr.bf16.mxu0 %v4948_v24  ;;  %v5527_v5 = vunpack.i.h.bf16 %v5525_v6  ;;  %v5526_v49 = vunpack.i.l.bf16 %v5525_v6  ;;  %v4956_v54 = vpack.c.bf16 %v1439_v35, %v1438_v19  ;;  %v6447_v24 = vld [vmem:[%s6932_s1 + $0x30] sm:$0xff]  }
  0xe2   : > { %v5522_v37 = vunpack.i.h.bf16 %v5520_v11  ;;  %v5521_v22 = vunpack.i.l.bf16 %v5520_v11  ;;  %4961 = vmatprep.subr.bf16.mxu1 %v4960_v25  ;;  %v4433_v6 = vunpack.c.l.bf16 %v6447_v24 }
  0xe3   : > { %4313 = vmatmul.mubr.msk.f32.vlgmr.msra.gmra.mrb[0].mxu0 %vm458_vm2, %v4425_v53 }
  0xe4   : > { %4688 = vmatmul.mubr.msk.f32.vlgmr.msra.gmra.mrb[4].mxu1 %vm458_vm2, %v4426_v57  ;;  %4951 = vmatpush1.bf16.msra.mxu0 %v4950_v21  ;;  %v5535_v20 = vpop.permute.xlu1 %5534  ;;  %v1450_v48 = vsel %vm1433_vm5, %v5516_v59, %v5521_v22  ;;  %v1451_v2 = vsel %vm1433_vm5, %v5517_v3, %v5522_v37  ;;  %v1444_v53 = vsel %vm1433_vm5, %v5521_v22, %v5511_v4 }
  0xe5   : > { %4963 = vmatpush3.bf16.msra.mxu1 %v4960_v25  ;;  %v5537_v41 = vunpack.i.h.bf16 %v5535_v20  ;;  %v5536_v43 = vunpack.i.l.bf16 %v5535_v20  ;;  %v5530_v46 = vpop.permute.xlu0 %5529  ;;  %4953 = vmatprep.subr.bf16.mxu0 %v4952_v38  ;;  %v1445_v14 = vsel %vm1433_vm5, %v5522_v37, %v5512_v63  ;;  %v4968_v7 = vpack.c.bf16 %v1451_v2, %v1450_v48 }
  0xe6   : > { %v5532_v52 = vunpack.i.h.bf16 %v5530_v46  ;;  %v5531_v28 = vunpack.i.l.bf16 %v5530_v46  ;;  %4965 = vmatprep.subr.bf16.mxu1 %v4964_v30  ;;  %1304 = vmatprep.mubr.f32.mxu0 %v5799_v39  ;;  %v4958_v50 = vpack.c.bf16 %v1445_v14, %v1444_v53 }
  0xe7   : > { %4314 = vmatmul.mubr.msk.f32.gmra.mrb[2].mxu0 %vm458_vm2, %v4426_v57  ;;  %4702 = vmatprep.mubr.msk.f32.mxu1 %vm458_vm2, %v4429_v29  ;;  %v1664_v57 = vsel %vm1657_vm6, %v5536_v43, %v5526_v49  ;;  %v1665_v58 = vsel %vm1657_vm6, %v5537_v41, %v5527_v5 }
  0xe8   : > { %4955 = vmatpush1.bf16.msra.mxu0 %v4954_v23  ;;  %v5545_v45 = vpop.permute.xlu1 %5544  ;;  %v1658_v8 = vsel %vm1657_vm6, %v5526_v49, %v5531_v28  ;;  %v1659_v34 = vsel %vm1657_vm6, %v5527_v5, %v5532_v52  ;;  %v1670_v26 = vsel %vm1657_vm6, %v5531_v28, %v5536_v43  ;;  %v1671_v27 = vsel %vm1657_vm6, %v5532_v52, %v5537_v41 }
  0xe9   : > { %4967 = vmatpush3.bf16.msra.mxu1 %v4964_v30  ;;  %v5547_v47 = vunpack.i.h.bf16 %v5545_v45  ;;  %v5546_v51 = vunpack.i.l.bf16 %v5545_v45  ;;  %v5540_v56 = vpop.permute.xlu0 %5539  ;;  %4957 = vmatprep.subr.bf16.mxu0 %v4956_v54  ;;  %v4972_v61 = vpack.c.bf16 %v1659_v34, %v1658_v8  ;;  %v4984_v36 = vpack.c.bf16 %v1671_v27, %v1670_v26 }
  0xea   : > { %v5542_v31 = vunpack.i.h.bf16 %v5540_v56  ;;  %v5541_v32 = vunpack.i.l.bf16 %v5540_v56  ;;  %4969 = vmatprep.subr.bf16.mxu1 %v4968_v7  ;;  %1522 = vmatprep.mubr.f32.mxu0 %v5799_v39  ;;  %v4974_v59 = vpack.c.bf16 %v1665_v58, %v1664_v57 }
  0xec   : > { %4959 = vmatpush1.bf16.msra.mxu0 %v4958_v50  ;;  %v5555_v25 = vpop.permute.xlu1 %5554  ;;  %v1660_v18 = vsel %vm1657_vm6, %v5541_v32, %v5546_v51  ;;  %v1661_v62 = vsel %vm1657_vm6, %v5542_v31, %v5547_v47 }
  0xed   : > { %4971 = vmatpush3.bf16.msra.mxu1 %v4968_v7  ;;  %v5550_v3 = vpop.permute.xlu0 %5549  ;;  %4973 = vmatprep.subr.bf16.mxu0 %v4972_v61  ;;  %v5557_v11 = vunpack.i.h.bf16 %v5555_v25  ;;  %v4976_v12 = vpack.c.bf16 %v1661_v62, %v1660_v18  ;;  %v5556_v9 = vunpack.i.l.bf16 %v5555_v25 }
  0xee   : > { %v5552_v63 = vunpack.i.h.bf16 %v5550_v3  ;;  %v5551_v4 = vunpack.i.l.bf16 %v5550_v3  ;;  %4985 = vmatprep.subr.bf16.mxu1 %v4984_v36 }
  0xef   : > { %4319 = vmatmul.mubr.msk.f32.vlgmr.msra.gmra.mrb[0].mxu0 %vm458_vm2, %v4429_v29 }
  0xf0   : > { %v1666_v13 = vsel %vm1657_vm6, %v5551_v4, %v5541_v32  ;;  %v1667_v21 = vsel %vm1657_vm6, %v5552_v63, %v5542_v31  ;;  %4703 = vmatmul.mubr.msk.f32.vlgmr.msra.gmra.mrb[4].mxu1 %vm458_vm2, %v4430_v60  ;;  %4975 = vmatpush1.bf16.msra.mxu0 %v4974_v59  ;;  %v5565_v37 = vpop.permute.xlu1 %5564  ;;  %v1672_v22 = vsel %vm1657_vm6, %v5546_v51, %v5551_v4  ;;  %v4434_v31 = vunpack.c.h.bf16 %v6447_v24 }
  0xf1   : > { %v4978_v23 = vpack.c.bf16 %v1667_v21, %v1666_v13  ;;  %4987 = vmatpush3.bf16.msra.mxu1 %v4984_v36  ;;  %v5567_v38 = vunpack.i.h.bf16 %v5565_v37  ;;  %v5566_v20 = vunpack.i.l.bf16 %v5565_v37  ;;  %v5560_v29 = vpop.permute.xlu0 %5559  ;;  %4977 = vmatprep.subr.bf16.mxu0 %v4976_v12  ;;  %v1673_v30 = vsel %vm1657_vm6, %v5547_v47, %v5552_v63  ;;  %v6485_v47 = vld [vmem:[%s6932_s1 + $0x38] sm:$0xff]  }
  0xf2   : > { %v5562_v19 = vunpack.i.h.bf16 %v5560_v29  ;;  %v5561_v35 = vunpack.i.l.bf16 %v5560_v29  ;;  %v4988_v41 = vpack.c.bf16 %v1673_v30, %v1672_v22  ;;  %1528 = vmatprep.mubr.f32.mxu0 %v5799_v39  ;;  %4717 = vmatprep.mubr.msk.f32.mxu1 %vm458_vm2, %v4433_v6  ;;  %v4437_v58 = vunpack.c.l.bf16 %v6485_v47 }
  0xf3   : > { %v1668_v43 = vsel %vm1657_vm6, %v5566_v20, %v5556_v9  ;;  %v1669_v46 = vsel %vm1657_vm6, %v5567_v38, %v5557_v11  ;;  %4320 = vmatmul.mubr.msk.f32.gmra.mrb[2].mxu0 %vm458_vm2, %v4430_v60 }
  0xf4   : > { %v4982_v48 = vpack.c.bf16 %v1669_v46, %v1668_v43  ;;  %4989 = vmatprep.subr.bf16.mxu1 %v4988_v41  ;;  %4979 = vmatpush1.bf16.msra.mxu0 %v4978_v23  ;;  %v5575_v2 = vpop.permute.xlu1 %5574  ;;  %v1662_v5 = vsel %vm1657_vm6, %v5556_v9, %v5561_v35  ;;  %v1663_v49 = vsel %vm1657_vm6, %v5557_v11, %v5562_v19 }
  0xf5   : > { %4991 = vmatpush3.bf16.msra.mxu1 %v4988_v41  ;;  %v5577_v52 = vunpack.i.h.bf16 %v5575_v2  ;;  %v5576_v28 = vunpack.i.l.bf16 %v5575_v2  ;;  %v5570_v53 = vpop.permute.xlu0 %5569  ;;  %v4980_v14 = vpack.c.bf16 %v1663_v49, %v1662_v5  ;;  %v1674_v54 = vsel %vm1657_vm6, %v5561_v35, %v5566_v20  ;;  %1746 = vmatprep.mubr.f32.mxu0 %v5799_v39 }
  0xf6   : > { %v5572_v45 = vunpack.i.h.bf16 %v5570_v53  ;;  %v5571_v7 = vunpack.i.l.bf16 %v5570_v53  ;;  %v1675_v8 = vsel %vm1657_vm6, %v5562_v19, %v5567_v38 }
  0xf7   : > { %4981 = vmatprep.subr.bf16.mxu0 %v4980_v14  ;;  %v4992_v34 = vpack.c.bf16 %v1675_v8, %v1674_v54 }
  0xf8   : > { %4983 = vmatpush1.bf16.msra.mxu0 %v4982_v48  ;;  %v5585_v51 = vpop.permute.xlu1 %5584  ;;  %v1882_v56 = vsel %vm1881_vm7, %v5571_v7, %v5576_v28  ;;  %v1883_v26 = vsel %vm1881_vm7, %v5572_v45, %v5577_v52 }
  0xf9   : > { %4993 = vmatprep.subr.bf16.mxu1 %v4992_v34  ;;  %v5580_v27 = vpop.permute.xlu0 %5579  ;;  %v4996_v50 = vpack.c.bf16 %v1883_v26, %v1882_v56  ;;  %v5587_v61 = vunpack.i.h.bf16 %v5585_v51  ;;  %v5586_v25 = vunpack.i.l.bf16 %v5585_v51 }
  0xfa   : > { %4995 = vmatpush3.bf16.msra.mxu1 %v4992_v34  ;;  %v5582_v32 = vunpack.i.h.bf16 %v5580_v27  ;;  %v5581_v57 = vunpack.i.l.bf16 %v5580_v27 }
  0xfb   : > { %4997 = vmatprep.subr.bf16.mxu0 %v4996_v50  ;;  %4325 = vmatmul.mubr.msk.f32.vlgmr.msra.gmra.mrb[0].mxu0 %vm458_vm2, %v4433_v6 }
  0xfc   : > { %v1888_v36 = vsel %vm1881_vm7, %v5581_v57, %v5571_v7  ;;  %v1889_v60 = vsel %vm1881_vm7, %v5582_v32, %v5572_v45  ;;  %v5595_v18 = vpop.permute.xlu1 %5594  ;;  %v1894_v24 = vsel %vm1881_vm7, %v5576_v28, %v5581_v57  ;;  %v1895_v62 = vsel %vm1881_vm7, %v5577_v52, %v5582_v32  ;;  %1752 = vmatprep.mubr.f32.mxu0 %v5799_v39 }
  0xfd   : > { %v4998_v3 = vpack.c.bf16 %v1889_v60, %v1888_v36  ;;  %v5597_v59 = vunpack.i.h.bf16 %v5595_v18  ;;  %v5596_v63 = vunpack.i.l.bf16 %v5595_v18  ;;  %v5590_v4 = vpop.permute.xlu0 %5589  ;;  %v5008_v6 = vpack.c.bf16 %v1895_v62, %v1894_v24  ;;  %4718 = vmatmul.mubr.msk.f32.vlgmr.msra.gmra.mrb[4].mxu1 %vm458_vm2, %v4434_v31  ;;  %v6542_v60 = vld [vmem:[%s6932_s1 + $0x40] sm:$0xff]  }
  0xfe   : > { %v5592_v11 = vunpack.i.h.bf16 %v5590_v4  ;;  %v5591_v12 = vunpack.i.l.bf16 %v5590_v4  ;;  %4732 = vmatprep.mubr.msk.f32.mxu1 %vm458_vm2, %v4437_v58  ;;  %v4438_v36 = vunpack.c.h.bf16 %v6485_v47 }
  0xff   : > { %v1890_v9 = vsel %vm1881_vm7, %v5596_v63, %v5586_v25  ;;  %v1891_v13 = vsel %vm1881_vm7, %v5597_v59, %v5587_v61  ;;  %4999 = vmatpush1.bf16.msra.mxu0 %v4998_v3  ;;  %5009 = vmatprep.subr.bf16.mxu1 %v5008_v6 }
 0x100   : > { %v5002_v21 = vpack.c.bf16 %v1891_v13, %v1890_v9  ;;  %5011 = vmatpush3.bf16.msra.mxu1 %v5008_v6  ;;  %v5605_v37 = vpop.permute.xlu1 %5604  ;;  %v1884_v22 = vsel %vm1881_vm7, %v5586_v25, %v5591_v12  ;;  %v1885_v23 = vsel %vm1881_vm7, %v5587_v61, %v5592_v11  ;;  %v1896_v38 = vsel %vm1881_vm7, %v5591_v12, %v5596_v63 }
 0x101   : > { %v5607_v20 = vunpack.i.h.bf16 %v5605_v37  ;;  %v5606_v29 = vunpack.i.l.bf16 %v5605_v37  ;;  %v5600_v30 = vpop.permute.xlu0 %5599  ;;  %v5000_v19 = vpack.c.bf16 %v1885_v23, %v1884_v22  ;;  %v1897_v35 = vsel %vm1881_vm7, %v5592_v11, %v5597_v59  ;;  %4326 = vmatmul.mubr.msk.f32.gmra.mrb[2].mxu0 %vm458_vm2, %v4434_v31 }
 0x102   : > { %v5602_v41 = vunpack.i.h.bf16 %v5600_v30  ;;  %v5601_v43 = vunpack.i.l.bf16 %v5600_v30  ;;  %v5012_v46 = vpack.c.bf16 %v1897_v35, %v1896_v38  ;;  %1970 = vmatprep.mubr.f32.mxu0 %v5799_v39  ;;  %v4441_v37 = vunpack.c.l.bf16 %v6542_v60 }
 0x103   : > { %5001 = vmatprep.subr.bf16.mxu0 %v5000_v19 }
 0x104   : > { %5013 = vmatprep.subr.bf16.mxu1 %v5012_v46  ;;  %5003 = vmatpush1.bf16.msra.mxu0 %v5002_v21  ;;  %v5615_v48 = vpop.permute.xlu1 %5614  ;;  %v1886_v2 = vsel %vm1881_vm7, %v5601_v43, %v5606_v29  ;;  %v1887_v5 = vsel %vm1881_vm7, %v5602_v41, %v5607_v20 }
 0x105   : > { %5015 = vmatpush3.bf16.msra.mxu1 %v5012_v46  ;;  %v5610_v49 = vpop.permute.xlu0 %5609  ;;  %v5004_v52 = vpack.c.bf16 %v1887_v5, %v1886_v2  ;;  %v5617_v14 = vunpack.i.h.bf16 %v5615_v48  ;;  %v5616_v54 = vunpack.i.l.bf16 %v5615_v48 }
 0x106   : > { %v5612_v28 = vunpack.i.h.bf16 %v5610_v49  ;;  %v5611_v53 = vunpack.i.l.bf16 %v5610_v49 }
 0x107   : > { %5005 = vmatprep.subr.bf16.mxu0 %v5004_v52 }
 0x108   : > { %v1892_v45 = vsel %vm1881_vm7, %v5611_v53, %v5601_v43  ;;  %v1893_v7 = vsel %vm1881_vm7, %v5612_v28, %v5602_v41  ;;  %v5625_v8 = vpop.permute.xlu1 %5624  ;;  %v1898_v34 = vsel %vm1881_vm7, %v5606_v29, %v5611_v53  ;;  %v1899_v51 = vsel %vm1881_vm7, %v5607_v20, %v5612_v28 }
 0x109   : > { %v5006_v56 = vpack.c.bf16 %v1893_v7, %v1892_v45  ;;  %v5627_v26 = vunpack.i.h.bf16 %v5625_v8  ;;  %v5626_v27 = vunpack.i.l.bf16 %v5625_v8  ;;  %v5620_v50 = vpop.permute.xlu0 %5619  ;;  %v5016_v31 = vpack.c.bf16 %v1899_v51, %v1898_v34 }
 0x10a   : > { %v5622_v32 = vunpack.i.h.bf16 %v5620_v50  ;;  %v5621_v57 = vunpack.i.l.bf16 %v5620_v50  ;;  %v4442_v50 = vunpack.c.h.bf16 %v6542_v60 }
 0x10b   : > { %v2112_v61 = vsel %vm2105_vm8, %v5626_v27, %v5616_v54  ;;  %v2113_v25 = vsel %vm2105_vm8, %v5627_v26, %v5617_v14  ;;  %5007 = vmatpush1.bf16.msra.mxu0 %v5006_v56  ;;  %5017 = vmatprep.subr.bf16.mxu1 %v5016_v31 }
 0x10c   : > { %v5022_v18 = vpack.c.bf16 %v2113_v25, %v2112_v61  ;;  %5019 = vmatpush3.bf16.msra.mxu1 %v5016_v31  ;;  %v5635_v24 = vpop.permute.xlu1 %5634  ;;  %v2106_v62 = vsel %vm2105_vm8, %v5616_v54, %v5621_v57  ;;  %v2107_v3 = vsel %vm2105_vm8, %v5617_v14, %v5622_v32  ;;  %v2118_v59 = vsel %vm2105_vm8, %v5621_v57, %v5626_v27  ;;  %v4444_v31 = vld [vmem:[%s6936_s5] sm:$0xff]  }
 0x10d   : > { %v5637_v63 = vunpack.i.h.bf16 %v5635_v24  ;;  %v5636_v4 = vunpack.i.l.bf16 %v5635_v24  ;;  %v5630_v6 = vpop.permute.xlu0 %5629  ;;  %v5020_v11 = vpack.c.bf16 %v2107_v3, %v2106_v62  ;;  %v2119_v12 = vsel %vm2105_vm8, %v5622_v32, %v5627_v26 }
 0x10e   : > { %v5632_v9 = vunpack.i.h.bf16 %v5630_v6  ;;  %v5631_v13 = vunpack.i.l.bf16 %v5630_v6  ;;  %v5032_v21 = vpack.c.bf16 %v2119_v12, %v2118_v59  ;;  %4331 = vmatmul.mubr.msk.f32.vlgmr.msra.gmra.mrb[0].mxu0 %vm458_vm2, %v4437_v58  ;;  %v4445_v32 = vunpack.c.l.bf16 %v4444_v31 }
 0x10f   : > { %5021 = vmatprep.subr.bf16.mxu0 %v5020_v11  ;;  %4733 = vmatmul.mubr.msk.f32.vlgmr.msra.gmra.mrb[4].mxu1 %vm458_vm2, %v4438_v36 }
 0x110   : > { %5033 = vmatprep.subr.bf16.mxu1 %v5032_v21  ;;  %5023 = vmatpush1.bf16.msra.mxu0 %v5022_v18  ;;  %v5645_v22 = vpop.permute.xlu1 %5644  ;;  %v2108_v23 = vsel %vm2105_vm8, %v5631_v13, %v5636_v4  ;;  %v2109_v38 = vsel %vm2105_vm8, %v5632_v9, %v5637_v63 }
 0x111   : > { %5035 = vmatpush3.bf16.msra.mxu1 %v5032_v21  ;;  %v5640_v20 = vpop.permute.xlu0 %5639  ;;  %v5024_v29 = vpack.c.bf16 %v2109_v38, %v2108_v23  ;;  %1976 = vmatprep.mubr.f32.mxu0 %v5799_v39  ;;  %v5647_v30 = vunpack.i.h.bf16 %v5645_v22  ;;  %v5646_v19 = vunpack.i.l.bf16 %v5645_v22 }
 0x112   : > { %v5642_v47 = vunpack.i.h.bf16 %v5640_v20  ;;  %v5641_v58 = vunpack.i.l.bf16 %v5640_v20  ;;  %4332 = vmatmul.mubr.msk.f32.gmra.mrb[2].mxu0 %vm458_vm2, %v4438_v36  ;;  %4747 = vmatprep.mubr.msk.f32.mxu1 %vm458_vm2, %v4441_v37 }
 0x113   : > { %5025 = vmatprep.subr.bf16.mxu0 %v5024_v29  ;;  %2194 = vmatprep.mubr.f32.mxu0 %v5799_v39 }
 0x114   : > { %v2114_v35 = vsel %vm2105_vm8, %v5641_v58, %v5631_v13  ;;  %v2115_v41 = vsel %vm2105_vm8, %v5642_v47, %v5632_v9  ;;  %v5655_v43 = vpop.permute.xlu1 %5654  ;;  %v2120_v46 = vsel %vm2105_vm8, %v5636_v4, %v5641_v58  ;;  %v2121_v48 = vsel %vm2105_vm8, %v5637_v63, %v5642_v47 }
 0x115   : > { %v5026_v2 = vpack.c.bf16 %v2115_v41, %v2114_v35  ;;  %v5657_v5 = vunpack.i.h.bf16 %v5655_v43  ;;  %v5656_v49 = vunpack.i.l.bf16 %v5655_v43  ;;  %v5650_v52 = vpop.permute.xlu0 %5649  ;;  %v5036_v28 = vpack.c.bf16 %v2121_v48, %v2120_v46 }
 0x116   : > { %v5652_v53 = vunpack.i.h.bf16 %v5650_v52  ;;  %v5651_v14 = vunpack.i.l.bf16 %v5650_v52 }
 0x117   : > { %v2116_v54 = vsel %vm2105_vm8, %v5656_v49, %v5646_v19  ;;  %v2117_v45 = vsel %vm2105_vm8, %v5657_v5, %v5647_v30  ;;  %5027 = vmatpush1.bf16.msra.mxu0 %v5026_v2  ;;  %5037 = vmatprep.subr.bf16.mxu1 %v5036_v28 }
 0x118   : > { %v5030_v7 = vpack.c.bf16 %v2117_v45, %v2116_v54  ;;  %5039 = vmatpush3.bf16.msra.mxu1 %v5036_v28  ;;  %v2110_v8 = vsel %vm2105_vm8, %v5646_v19, %v5651_v14  ;;  %v2111_v34 = vsel %vm2105_vm8, %v5647_v30, %v5652_v53  ;;  %v2122_v51 = vsel %vm2105_vm8, %v5651_v14, %v5656_v49  ;;  %v2338_v14 = vld [vmem:[%s6937_s6] sm:$0xff]  ;;  %v2339_v45 = vld [vmem:[%s6937_s6 + $0x8] sm:$0xff] }
 0x119   : > { %v5028_v56 = vpack.c.bf16 %v2111_v34, %v2110_v8  ;;  %v2123_v26 = vsel %vm2105_vm8, %v5652_v53, %v5657_v5 }
 0x11a   : > { %v5040_v27 = vpack.c.bf16 %v2123_v26, %v2122_v51  ;;  %v2508_v51 = vld [vmem:[%s6935_s4] sm:$0xff] }
 0x11b   : > { %5029 = vmatprep.subr.bf16.mxu0 %v5028_v56  ;;  %v2509_v56 = vld [vmem:[%s6935_s4 + $0x8] sm:$0xff] }
 0x11c   : > { %5041 = vmatprep.subr.bf16.mxu1 %v5040_v27  ;;  %5031 = vmatpush1.bf16.msra.mxu0 %v5030_v7 }
 0x11d   : > { %5043 = vmatpush3.bf16.msra.mxu1 %v5040_v27  ;;  %5045 = vmatprep.subr.bf16.mxu0 %v6320_v10  ;;  %v4446_v10 = vunpack.c.h.bf16 %v4444_v31 }
 0x11e   : > { %5057 = vmatprep.subr.bf16.mxu1 %v6324_v33 }
 0x11f   : > { %4337 = vmatmul.mubr.msk.f32.vlgmr.msra.gmra.mrb[0].mxu0 %vm458_vm2, %v4441_v37 }
 0x120   : > { %4748 = vmatmul.mubr.msk.f32.vlgmr.msra.gmra.mrb[4].mxu1 %vm458_vm2, %v4442_v50  ;;  %2200 = vmatprep.mubr.f32.mxu0 %v5799_v39 }
 0x121   : > { %5047 = vmatpush1.bf16.msra.mxu0 %v6329_v16  ;;  %5059 = vmatpush3.bf16.msra.mxu1 %v6324_v33 }
 0x122   : > { %5049 = vmatprep.subr.bf16.mxu0 %v6339_v0  ;;  %5061 = vmatprep.subr.bf16.mxu1 %v6343_v1 }
 0x123   : > { %4338 = vmatmul.mubr.msk.f32.gmra.mrb[2].mxu0 %vm458_vm2, %v4442_v50  ;;  %4762 = vmatprep.mubr.msk.f32.mxu1 %vm458_vm2, %v4445_v32 }
 0x124   : > { %2420 = vmatprep.mubr.f32.mxu0 %v5799_v39 }
 0x125   : > { %5051 = vmatpush1.bf16.msra.mxu0 %v6355_v15  ;;  %5063 = vmatpush3.bf16.msra.mxu1 %v6343_v1  ;;  %v2314_v15 = vshrl.u32 %v377_v40, 7 }
 0x126   : > { %5053 = vmatprep.subr.bf16.mxu0 %v6361_v17  ;;  %5065 = vmatprep.subr.bf16.mxu1 %v6365_v55 }
 0x127   : > { %v2323_v17 = vsub.s32 2, %v2314_v15  ;;  %v2315_v61 = vsub.s32 0, %v2314_v15  ;;  %v2319_v12 = vsub.s32 1, %v2314_v15 }
 0x128   : > { %v2293_v25 = vpop.permute.xlu0 %2292 }
 0x129   : > { %5055 = vmatpush1.bf16.msra.mxu0 %v6382_v44  ;;  %5067 = vmatpush3.bf16.msra.mxu1 %v6365_v55  ;;  %v2298_v55 = vpop.permute.xlu1 %2297  ;;  %v336_v44 = vld [vmem:[%s6938_s7] sm:$0x7] }
 0x12a   : > { %v6617_v62 = vrot.slane %v336_v44, %v2323_v17  ;;  %v6619_v6 = vrot.slane %v336_v44, %v2315_v61  ;;  %v6626_v30 = vrot.slane %v336_v44, %v2319_v12  ;;  %v6698_v44 = vld [vmem:[%s6934_s3] sm:$0xff]  }
 0x12c   : > { %4341 = vmatmul.mubr.msk.f32.vlgmr.msra.gmra.mrb[4].mxu0 %vm458_vm2, %v4445_v32  ;;  %4763 = vmatmul.mubr.msk.f32.vlgmr.msra.gmra.mrb[6].mxu1 %vm458_vm2, %v4446_v10 }
 0x12d   : > { %2426 = vmatprep.mubr.f32.mxu0 %v5799_v39  ;;  %2619 = vmatprep.mubr.f32.mxu1 %v5799_v39 }
 0x130   : > { %4342 = vmatmul.mubr.msk.f32.gmra.mrb[6].mxu0 %vm458_vm2, %v4446_v10 }
 0x131   : > { %2806 = vmatprep.mubr.f32.mxu0 %v5799_v39 }
 0x175   : > { %v531_v33 = vpop.f32.mrb[0].mxu1 }
 0x176   : > { %v533_v16 = vpop.f32.mrb[1].mxu1 }
 0x179   : > { %v537_v0 = vpop.f32.mrb[2].mxu1 }
 0x17a   : > { %v539_v1 = vpop.f32.mrb[3].mxu1 }
 0x1f2   : > { %v2196_v57 = vpop.f32.mrb[0].mxu0 }
 0x1f3   : > { %v5140_v36 = vadd.f32 %v2196_v57, %v531_v33  ;;  %v4749_v60 = vpop.f32.mrb[4].mxu1  ;;  %v2198_v18 = vpop.f32.mrb[1].mxu0 }
 0x1f4   : > { %v2305_v24 = vadd.f32 %v4749_v60, %v2298_v55  ;;  %v5141_v3 = vadd.f32 %v2198_v18, %v533_v16  ;;  %v2273_v59 = vpop.f32.mrb[5].mxu1 }
 0x1f5   : > { %v2300_v63 = vadd.f32 %v5140_v36, %v2293_v25  ;;  %v2302_v4 = vadd.f32 %v2293_v25, %v2273_v59 }
 0x1f6   : > { %v2311_v40 = vmax.f32 %v2305_v24, 0.0  ;;  %v2301_v11 = vadd.f32 %v5141_v3, %v2293_v25  ;;  %v2202_v9 = vpop.f32.mrb[2].mxu0  ;;  %v4449_v3 = vunpack.c.l.bf16 %v6698_v44 }
 0x1f7   : > { %v2306_v13 = vmax.f32 %v2300_v63, 0.0  ;;  %v2308_v21 = vmax.f32 %v2302_v4, 0.0  ;;  %v5142_v37 = vadd.f32 %v2202_v9, %v537_v0  ;;  %v2204_v22 = vpop.f32.mrb[3].mxu0 }
 0x1f8   : > { %v2333_v23 = vmul.f32 %v6617_v62, %v2311_v40  ;;  %v5143_v38 = vadd.f32 %v2204_v22, %v539_v1  ;;  %v2307_v58 = vmax.f32 %v2301_v11, 0.0  ;;  %v6717_v22 = vld [vmem:[%s6934_s3 + $0x8] sm:$0xff]  }
 0x1f9   : > { %v2330_v20 = vmul.f32 %v6617_v62, %v2308_v21  ;;  %v2303_v29 = vadd.f32 %v5142_v37, %v2298_v55  ;;  %v6624_v47 = vmul.f32 %v6619_v6, %v2306_v13  ;;  %v4450_v37 = vunpack.c.h.bf16 %v6698_v44 }
 0x1fa   : > { %v2304_v19 = vadd.f32 %v5143_v38, %v2298_v55  ;;  %v6634_v2 = vmul.f32 %v6626_v30, %v2307_v58 }
 0x1fb   : > { %v2309_v35 = vmax.f32 %v2303_v29, 0.0  ;;  %v5670_v41 = vpack.i.bf16 %v2333_v23, %v2330_v20  ;;  %v6631_v48 = vpack.c.bf16 %v2333_v23, %v2330_v20 }
 0x1fc   : > { %v2310_v43 = vmax.f32 %v2304_v19, 0.0 }
 0x1fd   : > { %v6629_v46 = vmul.f32 %v6619_v6, %v2309_v35 }
 0x1fe   : > { %v6637_v5 = vmul.f32 %v6626_v30, %v2310_v43 }
 0x1ff   : > { %v5660_v49 = vpack.i.bf16 %v6629_v46, %v6624_v47  ;;  %v5102_v53 = vpack.c.bf16 %v6629_v46, %v6624_v47  ;;  %v6674_v54 = vpop.f32.mrb[4].mxu0 }
 0x200   : > { %v5665_v52 = vpack.i.bf16 %v6637_v5, %v6634_v2  ;;  %v5100_v28 = vpack.c.bf16 %v6637_v5, %v6634_v2  ;;  %v6679_v7 = vpop.f32.mrb[5].mxu0 }
 0x201   : > { %5661 = vrot.lane.b32.xlu1 %v5660_v49, %s5798_s12 }
 0x202   : > { %5666 = vrot.lane.b32.xlu0 %v5665_v52, %s5798_s12 }
 0x203   : > { %v6681_v8 = vpop.f32.mrb[6].mxu0 }
 0x204   : > { %v6683_v34 = vpop.f32.mrb[7].mxu0 }
 0x205   : > { %5671 = vrot.lane.b32.xlu1 %v5670_v41, %s5798_s12 }
 0x206   : > { %5676 = vrot.lane.b32.xlu0 %v5660_v49, %s5797_s11 }
 0x209   : > { %5681 = vrot.lane.b32.xlu1 %v5665_v52, %s5797_s11 }
 0x20a   : > { %5686 = vrot.lane.b32.xlu0 %v5670_v41, %s5797_s11 }
 0x20d   : > { %5691 = vrot.lane.b32.xlu1 %v5660_v49, %s5800_s13 }
 0x20e   : > { %5696 = vrot.lane.b32.xlu0 %v5665_v52, %s5800_s13 }
 0x211   : > { %5701 = vrot.lane.b32.xlu1 %v5670_v41, %s5800_s13 }
 0x212   : > { %5706 = vrot.lane.b32.xlu0 %v5660_v49, %s5801_s14 }
 0x215   : > { %5711 = vrot.lane.b32.xlu1 %v5665_v52, %s5801_s14 }
 0x216   : > { %5716 = vrot.lane.b32.xlu0 %v5670_v41, %s5801_s14 }
 0x219   : > { %5721 = vrot.lane.b32.xlu1 %v5665_v52, %s5802_s15 }
 0x21a   : > { %5726 = vrot.lane.b32.xlu0 %v5670_v41, %s5802_s15 }
 0x21d   : > { %5731 = vrot.lane.b32.xlu1 %v5660_v49, %s5802_s15 }
 0x21e   : > { %5736 = vrot.lane.b32.xlu0 %v5665_v52, %s5803_s16 }
 0x221   : > { %5741 = vrot.lane.b32.xlu1 %v5670_v41, %s5803_s16 }
 0x222   : > { %5746 = vrot.lane.b32.xlu0 %v5660_v49, %s5803_s16 }
 0x225   : > { %5751 = vrot.lane.b32.xlu1 %v5665_v52, %s5804_s17 }
 0x226   : > { %5756 = vrot.lane.b32.xlu0 %v5670_v41, %s5804_s17 }
 0x229   : > { %5761 = vrot.lane.b32.xlu1 %v5660_v49, %s5804_s17  ;;  %s5279_s17 = smul.u32 24, %s6941_s28 }
 0x22a   : > { %5766 = vrot.lane.b32.xlu0 %v5665_v52, %s5805_s18 }
 0x22b   : > { %s305_s22 = scalar_lea.vmem %s6939_s8, %s5279_s17 }
 0x22d   : > { %5771 = vrot.lane.b32.xlu1 %v5670_v41, %s5805_s18 }
 0x22e   : > { %5776 = vrot.lane.b32.xlu0 %v5660_v49, %s5805_s18 }
 0x231   : > { %2342 = vperm.xlu1 %5659, %v2338_v14  }
 0x232   : > { %2347 = vperm.xlu0 %5658, %v2339_v45  }
 0x235   : > { %2512 = vperm.xlu1 %5659, %v2508_v51   ;;  %v4453_v51 = vunpack.c.l.bf16 %v6717_v22 }
 0x236   : > { %2517 = vperm.xlu0 %5658, %v2509_v56  }
 0x273   : > { %v5662_v26 = vpop.permute.xlu1 %5661 }
 0x274   : > { %v5664_v27 = vunpack.i.h.bf16 %v5662_v26  ;;  %v5663_v50 = vunpack.i.l.bf16 %v5662_v26  ;;  %v5667_v31 = vpop.permute.xlu0 %5666 }
 0x275   : > { %v5669_v32 = vunpack.i.h.bf16 %v5667_v31  ;;  %v5668_v10 = vunpack.i.l.bf16 %v5667_v31 }
 0x277   : > { %v5672_v33 = vpop.permute.xlu1 %5671  ;;  %v2544_v16 = vsel %vm379_vm1, %v5663_v50, %v5668_v10  ;;  %v2545_v0 = vsel %vm379_vm1, %v5664_v27, %v5669_v32 }
 0x278   : > { %v5674_v1 = vunpack.i.h.bf16 %v5672_v33  ;;  %v5673_v15 = vunpack.i.l.bf16 %v5672_v33  ;;  %v5677_v17 = vpop.permute.xlu0 %5676  ;;  %v5068_v55 = vpack.c.bf16 %v2545_v0, %v2544_v16  ;;  %v4454_v33 = vunpack.c.h.bf16 %v6717_v22 }
 0x279   : > { %v5679_v59 = vunpack.i.h.bf16 %v5677_v17  ;;  %v5678_v63 = vunpack.i.l.bf16 %v5677_v17 }
 0x27a   : > { %v2547_v57 = vsel %vm379_vm1, %v5674_v1, %v5664_v27  ;;  %v2546_v61 = vsel %vm379_vm1, %v5673_v15, %v5663_v50  ;;  %5069 = vmatprep.subr.bf16.mxu1 %v5068_v55  ;;  %v2542_v25 = vsel %vm379_vm1, %v5668_v10, %v5673_v15  ;;  %v2543_v36 = vsel %vm379_vm1, %v5669_v32, %v5674_v1  ;;  %v6748_v15 = vld [vmem:[%s6934_s3 + $0x10] sm:$0xff]  }
 0x27b   : > { %v5070_v60 = vpack.c.bf16 %v2547_v57, %v2546_v61  ;;  %v5682_v18 = vpop.permute.xlu1 %5681  ;;  %v5072_v24 = vpack.c.bf16 %v2543_v36, %v2542_v25 }
 0x27c   : > { %v5684_v4 = vunpack.i.h.bf16 %v5682_v18  ;;  %v5683_v40 = vunpack.i.l.bf16 %v5682_v18  ;;  %v5687_v11 = vpop.permute.xlu0 %5686 }
 0x27d   : > { %v5689_v12 = vunpack.i.h.bf16 %v5687_v11  ;;  %v5688_v9 = vunpack.i.l.bf16 %v5687_v11  ;;  %5071 = vmatpush1.bf16.msra.mxu1 %v5070_v60 }
 0x27e   : > { %5073 = vmatprep.subr.bf16.mxu1 %v5072_v24  ;;  %v2732_v13 = vsel %vm439_vm0, %v5678_v63, %v5683_v40  ;;  %v2733_v21 = vsel %vm439_vm0, %v5679_v59, %v5684_v4 }
 0x27f   : > { %v2735_v23 = vsel %vm439_vm0, %v5689_v12, %v5679_v59  ;;  %v2734_v38 = vsel %vm439_vm0, %v5688_v9, %v5678_v63  ;;  %v5692_v20 = vpop.permute.xlu1 %5691  ;;  %v5076_v29 = vpack.c.bf16 %v2733_v21, %v2732_v13  ;;  %v2730_v58 = vsel %vm439_vm0, %v5683_v40, %v5688_v9 }
 0x280   : > { %v5078_v19 = vpack.c.bf16 %v2735_v23, %v2734_v38  ;;  %v5694_v35 = vunpack.i.h.bf16 %v5692_v20  ;;  %v5693_v41 = vunpack.i.l.bf16 %v5692_v20  ;;  %v5697_v43 = vpop.permute.xlu0 %5696  ;;  %4345 = vmatmul.mubr.msk.f32.vlgmr.msra.gmra.mrb[8].mxu1 %vm2548_vm9, %v4449_v3  ;;  %v2731_v49 = vsel %vm439_vm0, %v5684_v4, %v5689_v12 }
 0x281   : > { %v5699_v52 = vunpack.i.h.bf16 %v5697_v43  ;;  %v5698_v14 = vunpack.i.l.bf16 %v5697_v43  ;;  %5075 = vmatpush3.bf16.msra.mxu1 %v5072_v24  ;;  %5077 = vmatprep.subr.bf16.mxu0 %v5076_v29  ;;  %v5080_v45 = vpack.c.bf16 %v2731_v49, %v2730_v58  ;;  %v4457_v59 = vunpack.c.l.bf16 %v6748_v15 }
 0x282   : > { %5079 = vmatpush1.bf16.msra.mxu0 %v5078_v19  ;;  %2625 = vmatprep.mubr.f32.mxu1 %v5799_v39  ;;  %v4493_v19 = vld [vmem:[%s6934_s3 + $0x18] sm:$0xff]  }
 0x283   : > { %5081 = vmatprep.subr.bf16.mxu1 %v5080_v45  ;;  %v5702_v56 = vpop.permute.xlu1 %5701  ;;  %v2919_v26 = vsel %vm816_vm3, %v5693_v41, %v5698_v14  ;;  %v2920_v27 = vsel %vm816_vm3, %v5694_v35, %v5699_v52  ;;  %v4461_v49 = vunpack.c.l.bf16 %v4493_v19 }
 0x284   : > { %v5704_v50 = vunpack.i.h.bf16 %v5702_v56  ;;  %v5703_v31 = vunpack.i.l.bf16 %v5702_v56  ;;  %v5707_v32 = vpop.permute.xlu0 %5706  ;;  %4346 = vmatmul.mubr.msk.f32.gmra.mrb[10].mxu1 %vm2548_vm9, %v4450_v37  ;;  %v5084_v10 = vpack.c.bf16 %v2920_v27, %v2919_v26  ;;  %v4462_v56 = vunpack.c.h.bf16 %v4493_v19  ;;  %v4496_v19 = vld [vmem:[%s6934_s3 + $0x30] sm:$0xff]  }
 0x285   : > { %4351 = vmatmul.mubr.msk.f32.vlgmr.msra.gmra.mrb[8].mxu0 %vm2548_vm9, %v4453_v51  ;;  %4769 = vmatprep.mubr.msk.f32.mxu1 %vm2548_vm9, %v4449_v3  ;;  %v5709_v55 = vunpack.i.h.bf16 %v5707_v32  ;;  %v5708_v61 = vunpack.i.l.bf16 %v5707_v32 }
 0x286   : > { %v2921_v16 = vsel %vm816_vm3, %v5703_v31, %v5693_v41  ;;  %v2922_v0 = vsel %vm816_vm3, %v5704_v50, %v5694_v35  ;;  %5085 = vmatprep.subr.bf16.mxu0 %v5084_v10  ;;  %2812 = vmatprep.mubr.f32.mxu0 %v5799_v39  ;;  %v2917_v1 = vsel %vm816_vm3, %v5698_v14, %v5703_v31 }
 0x287   : > { %v5086_v17 = vpack.c.bf16 %v2922_v0, %v2921_v16  ;;  %v5712_v44 = vpop.permute.xlu1 %5711  ;;  %v2918_v57 = vsel %vm816_vm3, %v5699_v52, %v5704_v50  ;;  %v6804_v50 = vld [vmem:[%s6934_s3 + $0x20] sm:$0xff]  }
 0x288   : > { %v5714_v25 = vunpack.i.h.bf16 %v5712_v44  ;;  %v5713_v36 = vunpack.i.l.bf16 %v5712_v44  ;;  %v5717_v60 = vpop.permute.xlu0 %5716  ;;  %4770 = vmatmul.mubr.msk.f32.vlgmr.msra.gmra.mrb[6].mxu1 %vm2548_vm9, %v4450_v37  ;;  %v5088_v18 = vpack.c.bf16 %v2918_v57, %v2917_v1  ;;  %v4458_v37 = vunpack.c.h.bf16 %v6748_v15 }
 0x289   : > { %v5719_v24 = vunpack.i.h.bf16 %v5717_v60  ;;  %v5718_v3 = vunpack.i.l.bf16 %v5717_v60  ;;  %5083 = vmatpush3.bf16.msra.mxu1 %v5080_v45  ;;  %4352 = vmatmul.mubr.msk.f32.gmra.mrb[10].mxu0 %vm2548_vm9, %v4454_v33  ;;  %v4465_v46 = vunpack.c.l.bf16 %v6804_v50  ;;  %v4466_v15 = vunpack.c.h.bf16 %v6804_v50 }
 0x28a   : > { %5087 = vmatpush1.bf16.msra.mxu0 %v5086_v17  ;;  %5089 = vmatprep.subr.bf16.mxu1 %v5088_v18  ;;  %v3106_v63 = vsel %vm1040_vm4, %v5708_v61, %v5713_v36  ;;  %v3107_v4 = vsel %vm1040_vm4, %v5709_v55, %v5714_v25 }
 0x28b   : > { %v3108_v40 = vsel %vm1040_vm4, %v5718_v3, %v5708_v61  ;;  %v3109_v11 = vsel %vm1040_vm4, %v5719_v24, %v5709_v55  ;;  %v5722_v12 = vpop.permute.xlu1 %5721  ;;  %2993 = vmatprep.mubr.f32.mxu0 %v5799_v39  ;;  %v5092_v9 = vpack.c.bf16 %v3107_v4, %v3106_v63  ;;  %4776 = vmatprep.mubr.msk.f32.mxu1 %vm2548_vm9, %v4453_v51 }
 0x28c   : > { %v5094_v13 = vpack.c.bf16 %v3109_v11, %v3108_v40  ;;  %v6765_v21 = vpop.permute.xlu0 %5726  ;;  %v3104_v22 = vsel %vm1040_vm4, %v5713_v36, %v5718_v3  ;;  %v3105_v23 = vsel %vm1040_vm4, %v5714_v25, %v5719_v24  ;;  %v5724_v38 = vunpack.i.h.bf16 %v5722_v12  ;;  %v4495_v3 = vld [vmem:[%s6934_s3 + $0x28] sm:$0xff]  }
 0x28d   : > { %4357 = vmatmul.mubr.msk.f32.vlgmr.msra.gmra.mrb[8].mxu0 %vm2548_vm9, %v4457_v59  ;;  %5093 = vmatprep.subr.bf16.mxu0 %v5092_v9  ;;  %v5723_v20 = vunpack.i.l.bf16 %v5722_v12  ;;  %v5729_v29 = vunpack.i.h.bf16 %v6765_v21  ;;  %v5728_v58 = vunpack.i.l.bf16 %v6765_v21  ;;  %v5096_v43 = vpack.c.bf16 %v3105_v23, %v3104_v22 }
 0x28e   : > { %5095 = vmatpush1.bf16.msra.mxu0 %v5094_v13  ;;  %2999 = vmatprep.mubr.f32.mxu0 %v5799_v39  ;;  %v4469_v40 = vunpack.c.l.bf16 %v4495_v3 }
 0x28f   : > { %v5732_v35 = vpop.permute.xlu1 %5731  ;;  %5101 = vmatprep.subr.bf16.mxu0 %v5100_v28  ;;  %v3460_v52 = vsel %vm1433_vm5, %v5723_v20, %v5728_v58  ;;  %v3461_v14 = vsel %vm1433_vm5, %v5724_v38, %v5729_v29 }
 0x290   : > { %v5737_v41 = vpop.permute.xlu0 %5736  ;;  %4777 = vmatmul.mubr.msk.f32.vlgmr.msra.gmra.mrb[6].mxu1 %vm2548_vm9, %v4454_v33  ;;  %v5734_v2 = vunpack.i.h.bf16 %v5732_v35  ;;  %v5733_v5 = vunpack.i.l.bf16 %v5732_v35  ;;  %v5108_v51 = vpack.c.bf16 %v3461_v14, %v3460_v52  ;;  %v4473_v14 = vunpack.c.l.bf16 %v4496_v19 }
 0x291   : > { %5091 = vmatpush3.bf16.msra.mxu1 %v5088_v18  ;;  %4358 = vmatmul.mubr.msk.f32.gmra.mrb[10].mxu0 %vm2548_vm9, %v4458_v37  ;;  %v5739_v32 = vunpack.i.h.bf16 %v5737_v41  ;;  %v5738_v10 = vunpack.i.l.bf16 %v5737_v41 }
 0x292   : > { %5097 = vmatprep.subr.bf16.mxu1 %v5096_v43  ;;  %3180 = vmatprep.mubr.f32.mxu0 %v5799_v39  ;;  %v3462_v33 = vsel %vm1433_vm5, %v5733_v5, %v5723_v20  ;;  %v3463_v47 = vsel %vm1433_vm5, %v5734_v2, %v5724_v38  ;;  %v3464_v17 = vsel %vm1433_vm5, %v5728_v58, %v5733_v5 }
 0x293   : > { %v6789_v45 = vpop.permute.xlu1 %5741  ;;  %4783 = vmatprep.mubr.msk.f32.mxu1 %vm2548_vm9, %v4457_v59  ;;  %v5110_v1 = vpack.c.bf16 %v3463_v47, %v3462_v33  ;;  %v3465_v25 = vsel %vm1433_vm5, %v5729_v29, %v5734_v2 }
 0x294   : > { %v6792_v28 = vpop.permute.xlu0 %5746  ;;  %v5744_v26 = vunpack.i.h.bf16 %v6789_v45  ;;  %v5743_v27 = vunpack.i.l.bf16 %v6789_v45  ;;  %v5112_v59 = vpack.c.bf16 %v3465_v25, %v3464_v17 }
 0x295   : > { %4363 = vmatmul.mubr.msk.f32.vlgmr.msra.gmra.mrb[8].mxu0 %vm2548_vm9, %v4461_v49  ;;  %v5749_v55 = vunpack.i.h.bf16 %v6792_v28  ;;  %v5748_v44 = vunpack.i.l.bf16 %v6792_v28 }
 0x296   : > { %5103 = vmatpush1.bf16.msra.mxu0 %v5102_v53  ;;  %3186 = vmatprep.mubr.f32.mxu0 %v5799_v39  ;;  %v3647_v53 = vsel %vm1657_vm6, %v5738_v10, %v5743_v27  ;;  %v3648_v16 = vsel %vm1657_vm6, %v5739_v32, %v5744_v26 }
 0x297   : > { %5109 = vmatprep.subr.bf16.mxu0 %v5108_v51  ;;  %v6806_v31 = vpop.permute.xlu1 %5751  ;;  %v5116_v61 = vpack.c.bf16 %v3648_v16, %v3647_v53  ;;  %v3649_v63 = vsel %vm1657_vm6, %v5748_v44, %v5738_v10  ;;  %v3650_v4 = vsel %vm1657_vm6, %v5749_v55, %v5739_v32  ;;  %v3652_v20 = vsel %vm1657_vm6, %v5744_v26, %v5749_v55  ;;  %v4497_v32 = vld [vmem:[%s6934_s3 + $0x38] sm:$0xff]  }
 0x298   : > { %4784 = vmatmul.mubr.msk.f32.vlgmr.msra.gmra.mrb[6].mxu1 %vm2548_vm9, %v4458_v37  ;;  %v6821_v0 = vpop.permute.xlu0 %5756  ;;  %v5754_v36 = vunpack.i.h.bf16 %v6806_v31  ;;  %v5753_v60 = vunpack.i.l.bf16 %v6806_v31  ;;  %v5118_v13 = vpack.c.bf16 %v3650_v4, %v3649_v63  ;;  %v4470_v37 = vunpack.c.h.bf16 %v4495_v3 }
 0x299   : > { %5099 = vmatpush3.bf16.msra.mxu1 %v5096_v43  ;;  %4364 = vmatmul.mubr.msk.f32.gmra.mrb[10].mxu0 %vm2548_vm9, %v4462_v56  ;;  %v5759_v18 = vunpack.i.h.bf16 %v6821_v0  ;;  %v5758_v24 = vunpack.i.l.bf16 %v6821_v0  ;;  %v4474_v51 = vunpack.c.h.bf16 %v4496_v19  ;;  %v4478_v16 = vunpack.c.h.bf16 %v4497_v32 }
 0x29a   : > { %5105 = vmatprep.subr.bf16.mxu1 %v6631_v48  ;;  %3349 = vmatprep.mubr.f32.mxu0 %v5799_v39 }
 0x29b   : > { %4790 = vmatprep.mubr.msk.f32.mxu1 %vm2548_vm9, %v4461_v49  ;;  %v6829_v57 = vpop.permute.xlu1 %5761  ;;  %v3834_v11 = vsel %vm1881_vm7, %v5753_v60, %v5758_v24  ;;  %v3835_v12 = vsel %vm1881_vm7, %v5754_v36, %v5759_v18 }
 0x29c   : > { %v5767_v21 = vpop.permute.xlu0 %5766  ;;  %v5764_v22 = vunpack.i.h.bf16 %v6829_v57  ;;  %v5763_v23 = vunpack.i.l.bf16 %v6829_v57  ;;  %v5124_v38 = vpack.c.bf16 %v3835_v12, %v3834_v11 }
 0x29d   : > { %4369 = vmatmul.mubr.msk.f32.vlgmr.msra.gmra.mrb[8].mxu0 %vm2548_vm9, %v4465_v46  ;;  %v5769_v35 = vunpack.i.h.bf16 %v5767_v21  ;;  %v5768_v41 = vunpack.i.l.bf16 %v5767_v21 }
 0x29e   : > { %5111 = vmatpush1.bf16.msra.mxu0 %v5110_v1  ;;  %3355 = vmatprep.mubr.f32.mxu0 %v5799_v39  ;;  %v3836_v49 = vsel %vm1881_vm7, %v5763_v23, %v5753_v60  ;;  %v3837_v52 = vsel %vm1881_vm7, %v5764_v22, %v5754_v36  ;;  %v3839_v31 = vsel %vm1881_vm7, %v5759_v18, %v5764_v22 }
 0x29f   : > { %5117 = vmatprep.subr.bf16.mxu0 %v5116_v61  ;;  %v5772_v9 = vpop.permute.xlu1 %5771  ;;  %v5126_v28 = vpack.c.bf16 %v3837_v52, %v3836_v49 }
 0x2a0   : > { %4791 = vmatmul.mubr.msk.f32.vlgmr.msra.gmra.mrb[6].mxu1 %vm2548_vm9, %v4462_v56  ;;  %v5774_v29 = vunpack.i.h.bf16 %v5772_v9  ;;  %v5773_v58 = vunpack.i.l.bf16 %v5772_v9  ;;  %v5777_v45 = vpop.permute.xlu0 %5776  ;;  %v3838_v56 = vsel %vm1881_vm7, %v5758_v24, %v5763_v23 }
 0x2a1   : > { %5107 = vmatpush3.bf16.msra.mxu1 %v6631_v48  ;;  %4370 = vmatmul.mubr.msk.f32.gmra.mrb[10].mxu0 %vm2548_vm9, %v4466_v15  ;;  %v3651_v48 = vsel %vm1657_vm6, %v5743_v27, %v5748_v44  ;;  %v5779_v26 = vunpack.i.h.bf16 %v5777_v45  ;;  %v5778_v27 = vunpack.i.l.bf16 %v5777_v45  ;;  %v5128_v10 = vpack.c.bf16 %v3839_v31, %v3838_v56 }
 0x2a2   : > { %5113 = vmatprep.subr.bf16.mxu1 %v5112_v59  ;;  %3536 = vmatprep.mubr.f32.mxu0 %v5799_v39  ;;  %v5120_v43 = vpack.c.bf16 %v3652_v20, %v3651_v48  ;;  %v4021_v2 = vsel %vm2105_vm8, %v5768_v41, %v5773_v58  ;;  %v4022_v5 = vsel %vm2105_vm8, %v5769_v35, %v5774_v29 }
 0x2a3   : > { %4797 = vmatprep.mubr.msk.f32.mxu1 %vm2548_vm9, %v4465_v46  ;;  %v5132_v50 = vpack.c.bf16 %v4022_v5, %v4021_v2  ;;  %v4023_v33 = vsel %vm2105_vm8, %v5778_v27, %v5768_v41  ;;  %v4024_v47 = vsel %vm2105_vm8, %v5779_v26, %v5769_v35  ;;  %v4477_v46 = vunpack.c.l.bf16 %v4497_v32 }
 0x2a4   : > { %v5134_v53 = vpack.c.bf16 %v4024_v47, %v4023_v33  ;;  %v4025_v0 = vsel %vm2105_vm8, %v5773_v58, %v5778_v27  ;;  %v4026_v1 = vsel %vm2105_vm8, %v5774_v29, %v5779_v26 }
 0x2a5   : > { %4375 = vmatmul.mubr.msk.f32.vlgmr.msra.gmra.mrb[8].mxu0 %vm2548_vm9, %v4469_v40  ;;  %v5136_v17 = vpack.c.bf16 %v4026_v1, %v4025_v0 }
 0x2a6   : > { %5119 = vmatpush1.bf16.msra.mxu0 %v5118_v13  ;;  %3542 = vmatprep.mubr.f32.mxu0 %v5799_v39 }
 0x2a7   : > { %5125 = vmatprep.subr.bf16.mxu0 %v5124_v38 }
 0x2a8   : > { %4798 = vmatmul.mubr.msk.f32.vlgmr.msra.gmra.mrb[6].mxu1 %vm2548_vm9, %v4466_v15  ;;  %v4498_v15 = vld [vmem:[%s6934_s3 + $0x40] sm:$0xff]  }
 0x2a9   : > { %5115 = vmatpush3.bf16.msra.mxu1 %v5112_v59  ;;  %4376 = vmatmul.mubr.msk.f32.gmra.mrb[10].mxu0 %vm2548_vm9, %v4470_v37  ;;  %v4481_v55 = vunpack.c.l.bf16 %v4498_v15  ;;  %v4482_v42 = vunpack.c.h.bf16 %v4498_v15 }
 0x2aa   : > { %5121 = vmatprep.subr.bf16.mxu1 %v5120_v43  ;;  %3723 = vmatprep.mubr.f32.mxu0 %v5799_v39 }
 0x2ab   : > { %4804 = vmatprep.mubr.msk.f32.mxu1 %vm2548_vm9, %v4469_v40 }
 0x2ad   : > { %4381 = vmatmul.mubr.msk.f32.vlgmr.msra.gmra.mrb[8].mxu0 %vm2548_vm9, %v4473_v14 }
 0x2ae   : > { %5127 = vmatpush1.bf16.msra.mxu0 %v5126_v28  ;;  %3729 = vmatprep.mubr.f32.mxu0 %v5799_v39 }
 0x2af   : > { %5133 = vmatprep.subr.bf16.mxu0 %v5132_v50 }
 0x2b0   : > { %4805 = vmatmul.mubr.msk.f32.vlgmr.msra.gmra.mrb[6].mxu1 %vm2548_vm9, %v4470_v37  ;;  %v2343_v44 = vpop.permute.xlu1 %2342 }
 0x2b1   : > { %5123 = vmatpush3.bf16.msra.mxu1 %v5120_v43  ;;  %4382 = vmatmul.mubr.msk.f32.gmra.mrb[10].mxu0 %vm2548_vm9, %v4474_v51  ;;  %v2348_v57 = vpop.permute.xlu0 %2347  ;;  %v2423_v25 = vadd.f32 %v6674_v54, %v2343_v44  ;;  %v2425_v36 = vadd.f32 %v6679_v7, %v2343_v44 }
 0x2b2   : > { %5129 = vmatprep.subr.bf16.mxu1 %v5128_v10  ;;  %3910 = vmatprep.mubr.f32.mxu0 %v5799_v39  ;;  %v2429_v3 = vadd.f32 %v6681_v8, %v2348_v57  ;;  %v2431_v4 = vadd.f32 %v6683_v34, %v2348_v57 }
 0x2b3   : > { %4811 = vmatprep.mubr.msk.f32.mxu1 %vm2548_vm9, %v4473_v14 }
 0x2b4   : > { %v2513_v61 = vpop.permute.xlu1 %2512 }
 0x2b5   : > { %4387 = vmatmul.mubr.msk.f32.vlgmr.msra.gmra.mrb[8].mxu0 %vm2548_vm9, %v4477_v46  ;;  %v2520_v60 = vadd.f32 %v2513_v61, %v2423_v25  ;;  %v2521_v18 = vadd.f32 %v2513_v61, %v2425_v36  ;;  %v2518_v24 = vpop.permute.xlu0 %2517  ;;  %v5162_v45 = vadd.f32 %v2513_v61, %v2343_v44 }
 0x2b6   : > { %5135 = vmatpush1.bf16.msra.mxu0 %v5134_v53  ;;  %3916 = vmatprep.mubr.f32.mxu0 %v5799_v39  ;;  %v2523_v11 = vadd.f32 %v2518_v24, %v2429_v3  ;;  %v2524_v12 = vadd.f32 %v2518_v24, %v2431_v4  ;;  %v5160_v52 = vadd.f32 %v2518_v24, %v2348_v57 }
 0x2b8   : > { %4812 = vmatmul.mubr.msk.f32.vlgmr.msra.gmra.mrb[6].mxu1 %vm2548_vm9, %v4474_v51 }
 0x2b9   : > { %5131 = vmatpush3.bf16.msra.mxu1 %v5128_v10  ;;  %4388 = vmatmul.mubr.msk.f32.gmra.mrb[10].mxu0 %vm2548_vm9, %v4478_v16 }
 0x2ba   : > { %5137 = vmatprep.subr.bf16.mxu1 %v5136_v17  ;;  %4097 = vmatprep.mubr.f32.mxu0 %v5799_v39 }
 0x2bb   : > { %4818 = vmatprep.mubr.msk.f32.mxu1 %vm2548_vm9, %v4477_v46 }
 0x2bd   : > { %4393 = vmatmul.mubr.msk.f32.vlgmr.msra.gmra.mrb[8].mxu0 %vm2548_vm9, %v4481_v55 }
 0x2be   : > { %4103 = vmatprep.mubr.f32.mxu0 %v5799_v39 }
 0x2c0   : > { %4819 = vmatmul.mubr.msk.f32.vlgmr.msra.gmra.mrb[6].mxu1 %vm2548_vm9, %v4478_v16 }
 0x2c1   : > { %5139 = vmatpush3.bf16.msra.mxu1 %v5136_v17  ;;  %4394 = vmatmul.mubr.msk.f32.gmra.mrb[10].mxu0 %vm2548_vm9, %v4482_v42 }
 0x2c2   : > { %4825 = vmatprep.mubr.msk.f32.mxu1 %vm2548_vm9, %v4481_v55 }
 0x2c8   : > { %4826 = vmatmul.mubr.msk.f32.vlgmr.msra.gmra.mrb[6].mxu1 %vm2548_vm9, %v4482_v42 }
 0x353   : > { %v2621_v39 = vpop.f32.mrb[8].mxu1 }
 0x354   : > { %v2707_v59 = vadd.f32 %v2621_v39, %v2520_v60  ;;  %v2623_v63 = vpop.f32.mrb[9].mxu1 }
 0x355   : > { %v2708_v40 = vadd.f32 %v2623_v63, %v2521_v18 }
 0x357   : > { %v2627_v9 = vpop.f32.mrb[10].mxu1 }
 0x358   : > { %v2710_v13 = vadd.f32 %v2627_v9, %v2523_v11  ;;  %v2629_v21 = vpop.f32.mrb[11].mxu1 }
 0x359   : > { %v2711_v54 = vadd.f32 %v2629_v21, %v2524_v12 }
 0x390   : > { %v4099_v37 = vpop.f32.mrb[8].mxu0 }
 0x391   : > { %v5147_v7 = vadd.f32 %v4099_v37, %v2707_v59  ;;  %v4101_v48 = vpop.f32.mrb[9].mxu0 }
 0x392   : > { %v5151_v22 = vadd.f32 %v4101_v48, %v2708_v40 }
 0x393   : > { %v4191_v23 = vmax.f32 %v5147_v7, 0.0 }
 0x394   : > { %v4192_v38 = vmax.f32 %v5151_v22, 0.0  ;;  %v4105_v8 = vpop.f32.mrb[10].mxu0 }
 0x395   : > { %v4197_v20 = vmul.f32 %v4191_v23, %v6619_v6  ;;  %v5155_v29 = vadd.f32 %v4105_v8, %v2710_v13  ;;  %v4107_v58 = vpop.f32.mrb[11].mxu0 }
 0x396   : > { %v4198_v34 = vmul.f32 %v4192_v38, %v6626_v30  ;;  %v5159_v19 = vadd.f32 %v4107_v58, %v2711_v54 }
 0x397   : > { %v4194_v35 = vmax.f32 %v5155_v29, 0.0 }
 0x398   : > { %v4403_v41 = vpack.c.bf16 %v4198_v34, %v4197_v20  ;;  %v4195_v43 = vmax.f32 %v5159_v19, 0.0 }
 0x399   : > { %v4200_v49 = vmul.f32 %v4194_v35, %v6619_v6 }
 0x39a   : > { %4223 = vst [vmem:[%s305_s22] sm:$0xff] %v4403_v41  ;;  %v4201_v14 = vmul.f32 %v4195_v43, %v6626_v30 }
 0x39b   : > { %v4827_v2 = vpop.f32.mrb[6].mxu1 }
 0x39c   : > { %v4405_v5 = vpack.c.bf16 %v4201_v14, %v4200_v49  ;;  %v5161_v28 = vadd.f32 %v5160_v52, %v4827_v2  ;;  %v4176_v51 = vpop.f32.mrb[7].mxu1 }
 0x39d   : > { %v5163_v56 = vadd.f32 %v5162_v45, %v4176_v51 }
 0x39e   : > { %4225 = vst [vmem:[%s305_s22 + $0xc] sm:$0xff] %v4405_v5  ;;  %v4196_v26 = vmax.f32 %v5161_v28, 0.0 }
 0x39f   : > { %v4193_v27 = vmax.f32 %v5163_v56, 0.0 }
 0x3a0   : > { %v4202_v50 = vmul.f32 %v4196_v26, %v6617_v62 }
 0x3a1   : > { %v4199_v31 = vmul.f32 %v4193_v27, %v6617_v62 }
 0x3a2   : > { %v4406_v32 = vpack.c.bf16 %v4202_v50, %v4202_v50 }
 0x3a3   : > { %v4404_v10 = vpack.c.bf16 %v4199_v31, %v4199_v31 }
 0x3a4   : > { %4226 = vst [vmem:[%s305_s22 + $0x14] sm:$0xf] %v4406_v32 }
 0x3a5   : > { %4224 = vst [vmem:[%s305_s22 + $0x8] sm:$0xf] %v4404_v10 }
 0x3a6 PF: > { %s18_s27 = sadd.s32 1, %s5795_s27  }
 0x3a7   : > { %p15_p4 = scmp.ge.s32.totalorder %s18_s27, 4  }
 0x3a9   :  { %17 = sbr.rel (!%p15_p4) target bundleno = 1 (0x1), region = 98 }

// kernel: unet_forward.11
= control target key start
LH: loop header
LB: loop body
LE: loop exit
PB: predicated region body
PF: predicated region fallthrough
CT: control target
= control target key end

     0   :  { %s779_s12 = smov 0   ;;  %s814_s0 = inlined_call_operand.vmem [shape: bf16[2,8,1280], index: 0, kind: input, shape index: {}]   ;;  %s815_s1 = inlined_call_operand.vmem [shape: bf16[4,8], index: 1, kind: input, shape index: {}]   ;;  %s816_s2 = inlined_call_operand.vmem [shape: f32[4,1], index: 2, kind: input, shape index: {}]   ;;  %s817_s3 = inlined_call_operand.vmem [shape: f32[2,4,1280], index: 3, kind: output, shape index: {}]  }
   0x1 LB: > { %s683_s13 = sadd.s32 4294967295, %s755_s12   ;;  %p687_p0 = scmp.ge.s32.totalorder %s755_s12, 1  ;;  %s755_s12 = sphi %s779_s12, %s13_s12  }
   0x2   : > { %p137_p1 = scmp.lt.s32.totalorder %s755_s12, 3 }
   0x4   : > { %p138_p2 = pnand %p687_p0, %p137_p1 }
   0x5   : > { %p161_p3 = scmp.lt.s32.totalorder (!%p138_p2), %s683_s13, 1  ;;  %v757_v0 = vmov (!%p138_p2), 0.0   ;;  %v188_v1 = vld [vmem:[%s816_s2] sm:$0xf] (!%p138_p2)  ;;  %v758_v2 = vmov (!%p138_p2), 0   ;;  %vm194_vm0 = vcmask (!%p138_p2), 64512  }
   0x6   : > { %141 = sbr.rel (%p138_p2) target bundleno = 276 (0x114), region = 32  ;;  %262 = vmatprep.mubr.f32.mxu0 (!%p138_p2), %v757_v0  ;;  %333 = vmatprep.mubr.f32.mxu1 (!%p138_p2), %v757_v0  ;;  %v171_v3 = vld [vmem:[%s815_s1] sm:$0x3] (!%p138_p2) }
   0x7   : > { %708 = vset.pattern.permute.xlu0 (!%p138_p2), %v758_v2  ;;  %v172_v9 = vunpack.c.l.bf16 (!%p138_p2), %v171_v3 }
   0x8   : > { %191 = vperm.xlu0 (!%p138_p2), %708, %v188_v1  }
   0xd   : > { %s819_s13 = smov (!%p161_p3, %s683_s13), 1 }
   0xe   : > { %s697_s16 = smul.u32 40, %s819_s13 }
  0x10   : > { %s165_s21 = scalar_lea.vmem %s814_s0, %s697_s16  ;;  %s170_s24 = scalar_lea.vmem %s817_s3, %s697_s16 }
  0x11   : > { %v173_v4 = vld [vmem:[%s165_s21] sm:$0xff]  ;;  %v175_v5 = vld [vmem:[%s165_s21 + $0x10] sm:$0xff]  ;;  %v174_v6 = vld [vmem:[%s165_s21 + $0x8] sm:$0xff] }
  0x12   : > { %v179_v7 = vunpack.c.h.bf16 %v173_v4  ;;  %v178_v8 = vunpack.c.l.bf16 %v173_v4  ;;  %v183_v10 = vunpack.c.h.bf16 %v175_v5  ;;  %v176_v11 = vld [vmem:[%s165_s21 + $0x18] sm:$0xff]  ;;  %v177_v12 = vld [vmem:[%s165_s21 + $0x20] sm:$0xff]  ;;  %v182_v13 = vunpack.c.l.bf16 %v175_v5 }
  0x13   : > { %v181_v14 = vunpack.c.h.bf16 %v174_v6  ;;  %v180_v15 = vunpack.c.l.bf16 %v174_v6  ;;  %v185_v16 = vunpack.c.h.bf16 %v176_v11  ;;  %v187_v17 = vunpack.c.h.bf16 %v177_v12 }
  0x14   : > { %198 = vmatprep.subr.mxu0 %v179_v7  ;;  %v184_v18 = vunpack.c.l.bf16 %v176_v11  ;;  %v186_v19 = vunpack.c.l.bf16 %v177_v12 }
  0x15   : > { %199 = vmatpush1.msra.mxu0 %v178_v8  ;;  %269 = vmatprep.subr.mxu1 %v181_v14 }
  0x16   : > { %690 = vmatmul.mubr.msk.f32.vlgmr.msra.gmra.mrb[0].mxu0 %vm194_vm0, %v172_v9  ;;  %340 = vmatprep.subr.mxu0 %v183_v10 }
  0x17   : > { %341 = vmatpush1.msra.mxu0 %v182_v13  ;;  %270 = vmatpush1.msra.mxu1 %v180_v15 }
  0x18   : > { %404 = vmatprep.mubr.f32.mxu0 %v757_v0  ;;  %691 = vmatmul.mubr.msk.f32.vlgmr.msra.gmra.mrb[0].mxu1 %vm194_vm0, %v172_v9 }
  0x19   : > { %411 = vmatprep.subr.mxu1 %v185_v16  ;;  %482 = vmatprep.subr.mxu0 %v187_v17 }
  0x1a   : > { %692 = vmatmul.mubr.msk.f32.vlgmr.msra.gmra.mrb[2].mxu0 %vm194_vm0, %v172_v9  ;;  %412 = vmatpush1.msra.mxu1 %v184_v18 }
  0x1b   : > { %483 = vmatpush1.msra.mxu0 %v186_v19  ;;  %475 = vmatprep.mubr.f32.mxu1 %v757_v0 }
  0x1c   : > { %546 = vmatprep.mubr.f32.mxu0 %v757_v0  ;;  %693 = vmatmul.mubr.msk.f32.vlgmr.msra.gmra.mrb[2].mxu1 %vm194_vm0, %v172_v9 }
  0x1e   : > { %694 = vmatmul.mubr.msk.f32.vlgmr.msra.gmra.mrb[4].mxu0 %vm194_vm0, %v172_v9 }
  0x87   : > { %v192_v20 = vpop.permute.xlu0 %191 }
  0xe9   : > { %v264_v21 = vpop.f32.mrb[0].mxu0 }
  0xea   : > { %v265_v22 = vadd.f32 %v264_v21, %v192_v20  ;;  %v266_v23 = vpop.f32.mrb[1].mxu0 }
  0xeb   : > { %v267_v24 = vadd.f32 %v266_v23, %v192_v20  ;;  %v335_v25 = vpop.f32.mrb[0].mxu1 }
  0xec   : > { %v553_v26 = vsub.f32 0.0, %v265_v22  ;;  %v336_v27 = vadd.f32 %v335_v25, %v192_v20  ;;  %v337_v28 = vpop.f32.mrb[1].mxu1 }
  0xed   : > { %v554_v29 = vsub.f32 0.0, %v267_v24  ;;  %v406_v30 = vpop.f32.mrb[2].mxu0  ;;  %v338_v31 = vadd.f32 %v337_v28, %v192_v20 }
  0xee   : > { %v563_v32 = vmul.f32 1.442695, %v553_v26  ;;  %v555_v33 = vsub.f32 0.0, %v336_v27  ;;  %v407_v34 = vadd.f32 %v406_v30, %v192_v20  ;;  %v408_v35 = vpop.f32.mrb[3].mxu0 }
  0xef   : > { %v565_v36 = vmul.f32 1.442695, %v554_v29  ;;  %v556_v37 = vsub.f32 0.0, %v338_v31  ;;  %v409_v38 = vadd.f32 %v408_v35, %v192_v20  ;;  %v477_v39 = vpop.f32.mrb[2].mxu1 }
  0xf0   : > { %709 = vpow2.f32 %v563_v32  ;;  %v567_v40 = vmul.f32 1.442695, %v555_v33  ;;  %v557_v41 = vsub.f32 0.0, %v407_v34  ;;  %v478_v42 = vadd.f32 %v477_v39, %v192_v20  ;;  %v479_v43 = vpop.f32.mrb[3].mxu1 }
  0xf1   : > { %711 = vpow2.f32 %v565_v36  ;;  %v569_v44 = vmul.f32 1.442695, %v556_v37  ;;  %v558_v45 = vsub.f32 0.0, %v409_v38  ;;  %v548_v46 = vpop.f32.mrb[4].mxu0  ;;  %v480_v47 = vadd.f32 %v479_v43, %v192_v20 }
  0xf2   : > { %713 = vpow2.f32 %v567_v40  ;;  %v571_v48 = vmul.f32 1.442695, %v557_v41  ;;  %v559_v49 = vsub.f32 0.0, %v478_v42  ;;  %v549_v50 = vadd.f32 %v548_v46, %v192_v20  ;;  %v550_v51 = vpop.f32.mrb[5].mxu0 }
  0xf3   : > { %715 = vpow2.f32 %v569_v44  ;;  %v573_v52 = vmul.f32 1.442695, %v558_v45  ;;  %v560_v53 = vsub.f32 0.0, %v480_v47  ;;  %v551_v54 = vadd.f32 %v550_v51, %v192_v20 }
  0xf4   : > { %717 = vpow2.f32 %v571_v48  ;;  %v575_v55 = vmul.f32 1.442695, %v559_v49  ;;  %v561_v56 = vsub.f32 0.0, %v549_v50 }
  0xf5   : > { %719 = vpow2.f32 %v573_v52  ;;  %v577_v57 = vmul.f32 1.442695, %v560_v53  ;;  %v562_v58 = vsub.f32 0.0, %v551_v54 }
  0xf6   : > { %721 = vpow2.f32 %v575_v55  ;;  %v579_v59 = vmul.f32 1.442695, %v561_v56 }
  0xf7   : > { %723 = vpow2.f32 %v577_v57  ;;  %v581_v60 = vmul.f32 1.442695, %v562_v58 }
  0xf8   : > { %725 = vpow2.f32 %v579_v59 }
  0xf9   : > { %727 = vpow2.f32 %v581_v60 }
  0xfa   : > { %v710_v61 = vpop.eup %709 }
  0xfb   : > { %v712_v62 = vpop.eup %711  ;;  %v583_v63 = vadd.f32 1.0, %v710_v61 }
  0xfc   : > { %v714_v0 = vpop.eup %713  ;;  %v584_v1 = vadd.f32 1.0, %v712_v62 }
  0xfd   : > { %v716_v2 = vpop.eup %715  ;;  %729 = vrcp.f32 %v583_v63  ;;  %v585_v3 = vadd.f32 1.0, %v714_v0 }
  0xfe   : > { %v718_v4 = vpop.eup %717  ;;  %731 = vrcp.f32 %v584_v1  ;;  %v586_v5 = vadd.f32 1.0, %v716_v2 }
  0xff   : > { %v720_v6 = vpop.eup %719  ;;  %733 = vrcp.f32 %v585_v3  ;;  %v587_v7 = vadd.f32 1.0, %v718_v4 }
 0x100   : > { %v722_v8 = vpop.eup %721  ;;  %735 = vrcp.f32 %v586_v5  ;;  %v588_v9 = vadd.f32 1.0, %v720_v6 }
 0x101   : > { %v724_v10 = vpop.eup %723  ;;  %737 = vrcp.f32 %v587_v7  ;;  %v589_v11 = vadd.f32 1.0, %v722_v8 }
 0x102   : > { %v726_v12 = vpop.eup %725  ;;  %739 = vrcp.f32 %v588_v9  ;;  %v590_v13 = vadd.f32 1.0, %v724_v10 }
 0x103   : > { %v728_v14 = vpop.eup %727  ;;  %741 = vrcp.f32 %v589_v11  ;;  %v591_v15 = vadd.f32 1.0, %v726_v12 }
 0x104   : > { %743 = vrcp.f32 %v590_v13  ;;  %v592_v16 = vadd.f32 1.0, %v728_v14 }
 0x105   : > { %745 = vrcp.f32 %v591_v15 }
 0x106   : > { %747 = vrcp.f32 %v592_v16 }
 0x107   : > { %v730_v17 = vpop.eup %729 }
 0x108   : > { %v732_v18 = vpop.eup %731 }
 0x109   : > { %v734_v19 = vpop.eup %733  ;;  %v613_v20 = vcombine.low %v730_v17, %v732_v18 }
 0x10a   : > { %v736_v21 = vpop.eup %735 }
 0x10b   : > { %v738_v22 = vpop.eup %737  ;;  %623 = vst [vmem:[%s170_s24] sm:$0xff] %v613_v20  ;;  %v614_v23 = vcombine.low %v734_v19, %v736_v21 }
 0x10c   : > { %v740_v24 = vpop.eup %739 }
 0x10d   : > { %v742_v25 = vpop.eup %741  ;;  %624 = vst [vmem:[%s170_s24 + $0x8] sm:$0xff] %v614_v23  ;;  %v615_v26 = vcombine.low %v738_v22, %v740_v24 }
 0x10e   : > { %v744_v27 = vpop.eup %743 }
 0x10f   : > { %v746_v28 = vpop.eup %745  ;;  %625 = vst [vmem:[%s170_s24 + $0x10] sm:$0xff] %v615_v26  ;;  %v616_v29 = vcombine.low %v742_v25, %v744_v27 }
 0x110   : > { %v748_v30 = vpop.eup %747 }
 0x111   : > { %626 = vst [vmem:[%s170_s24 + $0x18] sm:$0xff] %v616_v29  ;;  %v617_v31 = vcombine.low %v746_v28, %v748_v30 }
 0x113   : > { %627 = vst [vmem:[%s170_s24 + $0x20] sm:$0xff] %v617_v31 }
 0x114 PF: > { %s13_s12 = sadd.s32 1, %s755_s12  }
 0x115   : > { %p10_p4 = scmp.ge.s32.totalorder %s13_s12, 4  }
 0x117   :  { %12 = sbr.rel (!%p10_p4) target bundleno = 1 (0x1), region = 62 }

// kernel: unet_forward.10
= control target key start
LH: loop header
LB: loop body
LE: loop exit
PB: predicated region body
PF: predicated region fallthrough
CT: control target
= control target key end

     0   :  { %s9811_s27 = smov 0   ;;  %s12136_s0 = inlined_call_operand.vmem [shape: bf16[2,24,1280], index: 0, kind: input, shape index: {}]   ;;  %s12137_s1 = inlined_call_operand.vmem [shape: bf16[9,8,24], index: 1, kind: input, shape index: {}]   ;;  %s12138_s2 = inlined_call_operand.vmem [shape: f32[8,1], index: 2, kind: input, shape index: {}]   ;;  %s12139_s3 = inlined_call_operand.vmem [shape: bf16[9,8,8], index: 3, kind: input, shape index: {}]   ;;  %s12140_s4 = inlined_call_operand.vmem [shape: f32[8,1], index: 4, kind: input, shape index: {}]   ;;  %s12141_s5 = inlined_call_operand.vmem [shape: bf16[8,24], index: 5, kind: input, shape index: {}]   ;;  %s12142_s6 = inlined_call_operand.vmem [shape: f32[8,1], index: 6, kind: input, shape index: {}]   ;;  %s12143_s7 = inlined_call_operand.vmem [shape: f32[1,1280], index: 7, kind: input, shape index: {}]   ;;  %s12144_s8 = inlined_call_operand.vmem [shape: bf16[2,8,1280], index: 8, kind: output, shape index: {}]  }
   0x1 LB: > { %s8571_s28 = sadd.s32 4294967295, %s9754_s27   ;;  %p8575_p0 = scmp.ge.s32.totalorder %s9754_s27, 1  ;;  %s9754_s27 = sphi %s9811_s27, %s18_s27  }
   0x2   : > { %p262_p1 = scmp.lt.s32.totalorder %s9754_s27, 3 }
   0x4   : > { %p263_p2 = pnand %p8575_p0, %p262_p1 }
   0x6   : > { %266 = sbr.rel (%p263_p2) target bundleno = 1135 (0x46f), region = 52 }
   0xd   : > { %p296_p3 = scmp.lt.s32.totalorder %s8571_s28, 1  ;;  %s9756_s11 = smov 34   ;;  %v12154_v59 = vmov 0.0   ;;  %v12145_v61 = vlaneseq  ;;  %vm542_vm1 = vcmask 195584   ;;  %vm4904_vm9 = vcmask 64512  }
   0xe   : > { %610 = vmatprep.mubr.f32.mxu0 %v12154_v59  ;;  %3390 = vmatprep.mubr.f32.mxu1 %v12154_v59  ;;  %s9758_s12 = smov 35   ;;  %s9759_s13 = smov 33  }
   0xf   : > { %s12203_s28 = smov (!%p296_p3, %s8571_s28), 1  ;;  %s9760_s14 = smov 1   ;;  %v10052_v63 = vand.u32 127, %v12145_v61 }
  0x10   : > { %s9111_s29 = smul.u32 120, %s12203_s28  ;;  %s9761_s15 = smov 127  }
  0x11   : > { %vm511_vm0 = vcmp.lt.s32.totalorder %v10052_v63, 34  ;;  %vm417_vm2 = vcmp.lt.s32.totalorder %v10052_v63, 35  ;;  %s9762_s18 = smov 95   ;;  %s9763_s19 = smov 94   ;;  %vm1322_vm3 = vcmp.lt.s32.totalorder %v10052_v63, 33  ;;  %vm1784_vm4 = vcmp.lt.s32.totalorder %v10052_v63, 1 }
  0x12   : > { %s9825_s10 = scalar_lea.vmem %s12136_s0, %s9111_s29  ;;  %s9764_s22 = smov 93   ;;  %vm2617_vm5 = vcmp.lt.s32.totalorder %v10052_v63, 127  ;;  %vm3079_vm6 = vcmp.lt.s32.totalorder %v10052_v63, 95  ;;  %vm3541_vm7 = vcmp.lt.s32.totalorder %v10052_v63, 94  ;;  %vm4003_vm8 = vcmp.lt.s32.totalorder %v10052_v63, 93 }
  0x13   : > { %v310_v0 = vld [vmem:[%s9825_s10 + $0x20] sm:$0xff]  ;;  %v9829_v1 = vld [vmem:[%s9825_s10 + $0x48] sm:$0xff]  ;;  %v316_v7 = vld [vmem:[%s9825_s10 + $0x50] sm:$0xff]  ;;  %s9112_s16 = smul.u32 40, %s12203_s28 }
  0x14   : > { %v306_v2 = vld [vmem:[%s9825_s10] sm:$0xff]  ;;  %v9832_v3 = vunpack.c.h.bf16 %v310_v0  ;;  %v9835_v4 = vunpack.c.h.bf16 %v9829_v1  ;;  %v311_v5 = vld [vmem:[%s9825_s10 + $0x28] sm:$0xff]  ;;  %v9839_v10 = vunpack.c.l.bf16 %v316_v7  ;;  %v9841_v11 = vunpack.c.h.bf16 %v316_v7  ;;  %v312_v14 = vld [vmem:[%s9825_s10 + $0x30] sm:$0xff] }
  0x15   : > { %v321_v6 = vunpack.c.l.bf16 %v306_v2  ;;  %v322_v8 = vunpack.c.h.bf16 %v306_v2  ;;  %v331_v9 = vunpack.c.l.bf16 %v311_v5  ;;  %v332_v12 = vunpack.c.h.bf16 %v311_v5  ;;  %v307_v13 = vld [vmem:[%s9825_s10 + $0x8] sm:$0xff]  ;;  %v308_v23 = vld [vmem:[%s9825_s10 + $0x10] sm:$0xff]  ;;  %v317_v24 = vld [vmem:[%s9825_s10 + $0x58] sm:$0xff]  ;;  %s12118_s21 = scalar_lea.vmem %s12144_s8, %s9112_s16 }
  0x16   : > { %v9847_v15 = vpack.i.bf16 %v9835_v4, %v9832_v3  ;;  %v9855_v17 = vpack.i.bf16 %v9841_v11, %v9839_v10  ;;  %v9857_v18 = vunpack.c.h.bf16 %v307_v13  ;;  %v9859_v19 = vunpack.c.h.bf16 %v312_v14  ;;  %v320_v25 = vld [vmem:[%s9825_s10 + $0x70] sm:$0xff]  ;;  %v313_v32 = vld [vmem:[%s9825_s10 + $0x38] sm:$0xff]  ;;  %v318_v33 = vld [vmem:[%s9825_s10 + $0x60] sm:$0xff] }
  0x17   : > { %v9849_v16 = vpack.i.bf16 %v331_v9, %v321_v6  ;;  %v9863_v20 = vpack.i.bf16 %v332_v12, %v322_v8  ;;  %v323_v21 = vunpack.c.l.bf16 %v307_v13  ;;  %v333_v22 = vunpack.c.l.bf16 %v312_v14  ;;  %v309_v40 = vld [vmem:[%s9825_s10 + $0x18] sm:$0xff]  ;;  %v314_v41 = vld [vmem:[%s9825_s10 + $0x40] sm:$0xff]  ;;  %v319_v48 = vld [vmem:[%s9825_s10 + $0x68] sm:$0xff] }
  0x18   : > { %9142 = vrot.lane.b32.xlu1 %v9847_v15, %s9756_s11  ;;  %v9872_v26 = vpack.i.bf16 %v9859_v19, %v9857_v18  ;;  %v9874_v27 = vunpack.c.l.bf16 %v308_v23  ;;  %v9876_v28 = vunpack.c.h.bf16 %v317_v24  ;;  %v9882_v30 = vunpack.c.l.bf16 %v317_v24 }
  0x19   : > { %9132 = vrot.lane.b32.xlu0 %v9849_v16, %s9756_s11  ;;  %v9880_v29 = vpack.i.bf16 %v333_v22, %v323_v21  ;;  %v9884_v31 = vunpack.c.h.bf16 %v320_v25  ;;  %v9894_v35 = vunpack.c.h.bf16 %v313_v32  ;;  %v9896_v36 = vunpack.c.l.bf16 %v318_v33 }
  0x1a   : > { %v9892_v34 = vpack.i.bf16 %v9874_v27, %v9876_v28  ;;  %v9904_v38 = vunpack.c.h.bf16 %v308_v23  ;;  %v9906_v39 = vunpack.c.l.bf16 %v313_v32  ;;  %v9916_v43 = vunpack.c.h.bf16 %v309_v40 }
  0x1b   : > { %12167 = vst [vmem:[#allocation2_spill] sm:$0xff] %v9884_v31  ;;  %v9902_v37 = vpack.i.bf16 %v9882_v30, %v9884_v31  ;;  %v9914_v42 = vpack.i.bf16 %v9896_v36, %v9894_v35  ;;  %v9918_v44 = vunpack.c.l.bf16 %v314_v41  ;;  %v9926_v46 = vunpack.c.l.bf16 %v309_v40 }
  0x1c   : > { %9147 = vrot.lane.b32.xlu1 %v9855_v17, %s9756_s11  ;;  %v9924_v45 = vpack.i.bf16 %v9904_v38, %v9906_v39  ;;  %v9928_v47 = vunpack.c.h.bf16 %v318_v33  ;;  %v9937_v50 = vunpack.c.l.bf16 %v310_v0  ;;  %v9939_v51 = vunpack.c.h.bf16 %v319_v48 }
  0x1d   : > { %9137 = vrot.lane.b32.xlu0 %v9863_v20, %s9756_s11  ;;  %v9935_v49 = vpack.i.bf16 %v9916_v43, %v9918_v44  ;;  %v9945_v53 = vunpack.c.h.bf16 %v314_v41  ;;  %v9947_v54 = vunpack.c.l.bf16 %v319_v48  ;;  %v9959_v57 = vunpack.c.l.bf16 %v9829_v1 }
  0x1e   : > { %12168 = vst [vmem:[#allocation3_spill] sm:$0xff] %v9939_v51  ;;  %v9181_v52 = vpack.i.bf16 %v9926_v46, %v9928_v47  ;;  %v9953_v55 = vpack.i.bf16 %v9937_v50, %v9939_v51  ;;  %v9961_v58 = vunpack.c.l.bf16 %v320_v25  ;;  %v10066_v13 = vpack.i.bf16 %v9882_v30, %v9841_v11 }
  0x1f   : > { %12169 = vst [vmem:[#allocation4_spill] sm:$0xff] %v9947_v54  ;;  %v9191_v56 = vpack.i.bf16 %v9947_v54, %v9945_v53 }
  0x20   : > { %9157 = vrot.lane.b32.xlu1 %v9872_v26, %s9756_s11  ;;  %12170 = vst [vmem:[#allocation5_spill] sm:$0xff] %v9961_v58  ;;  %v9201_v60 = vpack.i.bf16 %v9961_v58, %v9959_v57 }
  0x21   : > { %9152 = vrot.lane.b32.xlu0 %v9880_v29, %s9756_s11 }
  0x24   : > { %9167 = vrot.lane.b32.xlu1 %v9892_v34, %s9756_s11 }
  0x25   : > { %9162 = vrot.lane.b32.xlu0 %v9902_v37, %s9756_s11 }
  0x28   : > { %9177 = vrot.lane.b32.xlu1 %v9914_v42, %s9756_s11 }
  0x29   : > { %9172 = vrot.lane.b32.xlu0 %v9924_v45, %s9756_s11 }
  0x2c   : > { %9187 = vrot.lane.b32.xlu1 %v9935_v49, %s9756_s11 }
  0x2d   : > { %9182 = vrot.lane.b32.xlu0 %v9181_v52, %s9756_s11 }
  0x30   : > { %9197 = vrot.lane.b32.xlu1 %v9953_v55, %s9756_s11 }
  0x31   : > { %9192 = vrot.lane.b32.xlu0 %v9191_v56, %s9756_s11 }
  0x34   : > { %9207 = vrot.lane.b32.xlu1 %v9849_v16, %s9758_s12 }
  0x35   : > { %9202 = vrot.lane.b32.xlu0 %v9201_v60, %s9756_s11 }
  0x38   : > { %9217 = vrot.lane.b32.xlu1 %v9847_v15, %s9758_s12 }
  0x39   : > { %9212 = vrot.lane.b32.xlu0 %v9863_v20, %s9758_s12 }
  0x3c   : > { %9227 = vrot.lane.b32.xlu1 %v9880_v29, %s9758_s12 }
  0x3d   : > { %9222 = vrot.lane.b32.xlu0 %v9855_v17, %s9758_s12 }
  0x40   : > { %9237 = vrot.lane.b32.xlu1 %v9902_v37, %s9758_s12 }
  0x41   : > { %9232 = vrot.lane.b32.xlu0 %v9872_v26, %s9758_s12 }
  0x44   : > { %9247 = vrot.lane.b32.xlu1 %v9924_v45, %s9758_s12 }
  0x45   : > { %9242 = vrot.lane.b32.xlu0 %v9892_v34, %s9758_s12 }
  0x48   : > { %9257 = vrot.lane.b32.xlu1 %v9181_v52, %s9758_s12 }
  0x49   : > { %9252 = vrot.lane.b32.xlu0 %v9914_v42, %s9758_s12 }
  0x4c   : > { %9267 = vrot.lane.b32.xlu1 %v9191_v56, %s9758_s12 }
  0x4d   : > { %9262 = vrot.lane.b32.xlu0 %v9935_v49, %s9758_s12 }
  0x50   : > { %9277 = vrot.lane.b32.xlu1 %v9201_v60, %s9758_s12 }
  0x51   : > { %9272 = vrot.lane.b32.xlu0 %v9953_v55, %s9758_s12 }
  0x54   : > { %9287 = vrot.lane.b32.xlu1 %v9863_v20, %s9759_s13 }
  0x55   : > { %9282 = vrot.lane.b32.xlu0 %v9849_v16, %s9759_s13 }
  0x58   : > { %9297 = vrot.lane.b32.xlu1 %v9855_v17, %s9759_s13 }
  0x59   : > { %9292 = vrot.lane.b32.xlu0 %v9847_v15, %s9759_s13 }
  0x5c   : > { %9307 = vrot.lane.b32.xlu1 %v9872_v26, %s9759_s13 }
  0x5d   : > { %9302 = vrot.lane.b32.xlu0 %v9880_v29, %s9759_s13 }
  0x60   : > { %9317 = vrot.lane.b32.xlu1 %v9892_v34, %s9759_s13 }
  0x61   : > { %9312 = vrot.lane.b32.xlu0 %v9902_v37, %s9759_s13 }
  0x64   : > { %9327 = vrot.lane.b32.xlu1 %v9914_v42, %s9759_s13 }
  0x65   : > { %9322 = vrot.lane.b32.xlu0 %v9924_v45, %s9759_s13 }
  0x68   : > { %9337 = vrot.lane.b32.xlu1 %v9935_v49, %s9759_s13 }
  0x69   : > { %9332 = vrot.lane.b32.xlu0 %v9181_v52, %s9759_s13 }
  0x6c   : > { %9347 = vrot.lane.b32.xlu1 %v9953_v55, %s9759_s13 }
  0x6d   : > { %9342 = vrot.lane.b32.xlu0 %v9191_v56, %s9759_s13 }
  0x70   : > { %9357 = vrot.lane.b32.xlu1 %v9849_v16, %s9760_s14 }
  0x71   : > { %9352 = vrot.lane.b32.xlu0 %v9201_v60, %s9759_s13 }
  0x74   : > { %9367 = vrot.lane.b32.xlu1 %v9847_v15, %s9760_s14 }
  0x75   : > { %9362 = vrot.lane.b32.xlu0 %v9863_v20, %s9760_s14 }
  0x78   : > { %9377 = vrot.lane.b32.xlu1 %v9880_v29, %s9760_s14 }
  0x79   : > { %9372 = vrot.lane.b32.xlu0 %v9855_v17, %s9760_s14 }
  0x7c   : > { %9387 = vrot.lane.b32.xlu1 %v9902_v37, %s9760_s14 }
  0x7d   : > { %9382 = vrot.lane.b32.xlu0 %v9872_v26, %s9760_s14 }
  0x80   : > { %9397 = vrot.lane.b32.xlu1 %v9924_v45, %s9760_s14 }
  0x81   : > { %9392 = vrot.lane.b32.xlu0 %v9892_v34, %s9760_s14 }
  0x84   : > { %9407 = vrot.lane.b32.xlu1 %v9181_v52, %s9760_s14 }
  0x85   : > { %9402 = vrot.lane.b32.xlu0 %v9914_v42, %s9760_s14  ;;  %v10092_v42 = vpack.i.bf16 %v9906_v39, %v9874_v27 }
  0x88   : > { %9417 = vrot.lane.b32.xlu1 %v9191_v56, %s9760_s14 }
  0x89   : > { %9412 = vrot.lane.b32.xlu0 %v9935_v49, %s9760_s14  ;;  %v10105_v49 = vld [vmem:[%s12137_s1] sm:$0xff]  }
  0x8a   : > { %v10049_v62 = vpop.permute.xlu1 %9142 }
  0x8b   : > { %v9133_v0 = vpop.permute.xlu0 %9132  ;;  %v12148_v1 = vunpack.i.h.bf16 %v10049_v62  ;;  %v12147_v2 = vunpack.i.l.bf16 %v10049_v62 }
  0x8c   : > { %9427 = vrot.lane.b32.xlu1 %v9201_v60, %s9760_s14  ;;  %v9135_v5 = vunpack.i.h.bf16 %v9133_v0  ;;  %v9134_v6 = vunpack.i.l.bf16 %v9133_v0  ;;  %v10118_v0 = vpack.i.bf16 %v9904_v38, %v9896_v36 }
  0x8d   : > { %9422 = vrot.lane.b32.xlu0 %v9953_v55, %s9760_s14 }
  0x8e   : > { %v10059_v7 = vpop.permute.xlu1 %9147  ;;  %v539_v14 = vsel %vm511_vm0, %v12147_v2, %v9134_v6  ;;  %v540_v15 = vsel %vm511_vm0, %v12148_v1, %v9135_v5 }
  0x8f   : > { %v9138_v8 = vpop.permute.xlu0 %9137  ;;  %v9150_v17 = vunpack.i.h.bf16 %v10059_v7  ;;  %v9149_v21 = vunpack.i.l.bf16 %v10059_v7  ;;  %v8703_v41 = vpack.c.bf16 %v540_v15, %v539_v14  ;;  %v10131_v14 = vunpack.c.h.bf16 %v10105_v49 }
  0x90   : > { %v9140_v9 = vunpack.i.h.bf16 %v9138_v8  ;;  %v9139_v12 = vunpack.i.l.bf16 %v9138_v8  ;;  %9437 = vrot.lane.b32.xlu1 %v9880_v29, %s9761_s15 }
  0x91   : > { %9432 = vrot.lane.b32.xlu0 %v9863_v20, %s9761_s15  ;;  %v538_v48 = vsel %vm511_vm0, %v9149_v21, %v9150_v17 }
  0x92   : > { %v10080_v22 = vpop.permute.xlu1 %9157  ;;  %v536_v23 = vsel %vm511_vm0, %v9134_v6, %v9139_v12  ;;  %v537_v24 = vsel %vm511_vm0, %v9135_v5, %v9140_v9  ;;  %v10122_v5 = vpack.i.bf16 %v9876_v28, %v9839_v10 }
  0x93   : > { %v9160_v25 = vunpack.i.h.bf16 %v10080_v22  ;;  %v9159_v32 = vunpack.i.l.bf16 %v10080_v22  ;;  %v9153_v33 = vpop.permute.xlu0 %9152  ;;  %v8701_v34 = vpack.c.bf16 %v537_v24, %v536_v23 }
  0x94   : > { %v9155_v37 = vunpack.i.h.bf16 %v9153_v33  ;;  %v9154_v40 = vunpack.i.l.bf16 %v9153_v33  ;;  %9447 = vrot.lane.b32.xlu1 %v10066_v13, %s9761_s15 }
  0x95   : > { %9442 = vrot.lane.b32.xlu0 %v9849_v16, %s9761_s15  ;;  %8702 = vmatprep.subr.bf16.mxu0 %v8701_v34  ;;  %v10141_v34 = vpack.i.bf16 %v9928_v47, %v9918_v44 }
  0x96   : > { %8704 = vmatpush1.bf16.msra.mxu0 %v8703_v41  ;;  %v10096_v45 = vpop.permute.xlu1 %9167  ;;  %v530_v55 = vsel %vm511_vm0, %v9154_v40, %v9159_v32  ;;  %v531_v56 = vsel %vm511_vm0, %v9155_v37, %v9160_v25  ;;  %v533_v6 = vsel %vm511_vm0, %v9139_v12, %v9154_v40  ;;  %v534_v8 = vsel %vm511_vm0, %v9140_v9, %v9155_v37 }
  0x97   : > { %v10107_v52 = vpop.permute.xlu0 %9162  ;;  %550 = vmatprep.subr.mxu0 %v538_v48  ;;  %v9169_v15 = vunpack.i.l.bf16 %v10096_v45  ;;  %v8705_v24 = vpack.c.bf16 %v531_v56, %v530_v55  ;;  %v9170_v37 = vunpack.i.h.bf16 %v10096_v45  ;;  %v8707_v48 = vpack.c.bf16 %v534_v8, %v533_v6 }
  0x98   : > { %v12146_v60 = vunpack.i.l.bf16 %v10107_v52  ;;  %9457 = vrot.lane.b32.xlu1 %v10092_v42, %s9761_s15  ;;  %v9165_v22 = vunpack.i.h.bf16 %v10107_v52 }
  0x99   : > { %9452 = vrot.lane.b32.xlu0 %v9872_v26, %s9761_s15  ;;  %v527_v2 = vsel %vm511_vm0, %v9159_v32, %v9170_v37 }
  0x9a   : > { %v9178_v23 = vpop.permute.xlu1 %9177  ;;  %v541_v12 = vsel %vm511_vm0, %v12146_v60, %v9149_v21  ;;  %v10152_v21 = vpack.i.bf16 %v9926_v46, %v9894_v35  ;;  %v532_v55 = vsel %vm511_vm0, %v9165_v22, %v9169_v15  ;;  %v9486_v60 = vpack.i.bf16 %v9937_v50, %v9945_v53 }
  0x9b   : > { %v9179_v33 = vunpack.i.l.bf16 %v9178_v23  ;;  %v9173_v9 = vpop.permute.xlu0 %9172  ;;  %551 = vmatpush1.msra.mxu0 %v541_v12 }
  0x9c   : > { %v9175_v40 = vunpack.i.h.bf16 %v9173_v9  ;;  %v9174_v41 = vunpack.i.l.bf16 %v9173_v9  ;;  %8706 = vmatprep.subr.bf16.mxu0 %v8705_v24  ;;  %9467 = vrot.lane.b32.xlu1 %v10118_v0, %s9761_s15 }
  0x9d   : > { %9462 = vrot.lane.b32.xlu0 %v10122_v5, %s9761_s15  ;;  %8579 = vmatmul.mubr.msk.f32.vlgmr.msra.gmra.mrb[0].mxu0 %vm542_vm1, %v10131_v14 }
  0x9e   : > { %8708 = vmatpush1.bf16.msra.mxu0 %v8707_v48  ;;  %v10158_v56 = vpop.permute.xlu1 %9187  ;;  %681 = vmatprep.mubr.f32.mxu0 %v12154_v59  ;;  %v524_v6 = vsel %vm511_vm0, %v9170_v37, %v9175_v40  ;;  %v525_v8 = vsel %vm511_vm0, %v9174_v41, %v9179_v33  ;;  %v528_v12 = vsel %vm511_vm0, %v9160_v25, %v9174_v41  ;;  %v9180_v48 = vunpack.i.h.bf16 %v9178_v23 }
  0x9f   : > { %621 = vmatprep.subr.mxu0 %v532_v55  ;;  %v10167_v24 = vpop.permute.xlu0 %9182  ;;  %v8709_v9 = vpack.c.bf16 %v525_v8, %v524_v6  ;;  %v9190_v1 = vunpack.i.h.bf16 %v10158_v56  ;;  %v535_v25 = vsel %vm511_vm0, %v9150_v17, %v9165_v22  ;;  %v9481_v23 = vpack.i.bf16 %v9916_v43, %v9947_v54 }
  0xa0   : > { %v12149_v61 = vunpack.i.l.bf16 %v10167_v24  ;;  %9477 = vrot.lane.b32.xlu1 %v10141_v34, %s9761_s15  ;;  %v9189_v41 = vunpack.i.l.bf16 %v10158_v56  ;;  %v9185_v55 = vunpack.i.h.bf16 %v10167_v24  ;;  %v8711_v32 = vpack.c.bf16 %v528_v12, %v527_v2 }
  0xa1   : > { %9472 = vrot.lane.b32.xlu0 %v10152_v21, %s9761_s15  ;;  %v9496_v22 = vpack.i.bf16 %v9832_v3, %v9961_v58  ;;  %v9491_v2 = vpack.i.bf16 %v9939_v51, %v9959_v57 }
  0xa2   : > { %622 = vmatpush1.msra.mxu0 %v535_v25  ;;  %v10187_v6 = vpop.permute.xlu1 %9197  ;;  %v526_v37 = vsel %vm511_vm0, %v9180_v48, %v12149_v61  ;;  %v522_v56 = vsel %vm511_vm0, %v9179_v33, %v9189_v41  ;;  %v521_v8 = vsel %vm511_vm0, %v9175_v40, %v9185_v55  ;;  %v529_v33 = vsel %vm511_vm0, %v9169_v15, %v9180_v48 }
  0xa3   : > { %8710 = vmatprep.subr.bf16.mxu0 %v8709_v9  ;;  %v9193_v7 = vpop.permute.xlu0 %9192  ;;  %8580 = vmatmul.mubr.msk.f32.vlgmr.msra.gmra.mrb[2].mxu0 %vm542_vm1, %v10131_v14  ;;  %v9199_v25 = vunpack.i.l.bf16 %v10187_v6  ;;  %v9200_v61 = vunpack.i.h.bf16 %v10187_v6  ;;  %v12171_v6 = vunpack.i.h.bf16 %v10049_v62 }
  0xa4   : > { %v9194_v17 = vunpack.i.l.bf16 %v9193_v7  ;;  %8712 = vmatpush1.bf16.msra.mxu0 %v8711_v32  ;;  %9487 = vrot.lane.b32.xlu1 %v9486_v60, %s9761_s15  ;;  %v518_v60 = vsel %vm511_vm0, %v9185_v55, %v9190_v1  ;;  %v9501_v55 = vpack.i.bf16 %v9884_v31, %v9835_v4 }
  0xa5   : > { %692 = vmatprep.subr.mxu0 %v526_v37  ;;  %9482 = vrot.lane.b32.xlu0 %v9481_v23, %s9761_s15  ;;  %v9195_v23 = vunpack.i.h.bf16 %v9193_v7 }
  0xa6   : > { %v9208_v12 = vpop.permute.xlu1 %9207  ;;  %752 = vmatprep.mubr.f32.mxu0 %v12154_v59  ;;  %v519_v9 = vsel %vm511_vm0, %v9189_v41, %v9194_v17  ;;  %v8715_v41 = vpack.c.bf16 %v522_v56, %v521_v8  ;;  %v515_v8 = vsel %vm511_vm0, %v9190_v1, %v9200_v61 }
  0xa7   : > { %v9203_v32 = vpop.permute.xlu0 %9202  ;;  %v8713_v37 = vpack.c.bf16 %v519_v9, %v518_v60  ;;  %v520_v48 = vsel %vm511_vm0, %v9195_v23, %v9199_v25  ;;  %v12172_v9 = vunpack.i.l.bf16 %v10049_v62 }
  0xa8   : > { %v9204_v40 = vunpack.i.l.bf16 %v9203_v32  ;;  %693 = vmatpush1.msra.mxu0 %v529_v33  ;;  %9497 = vrot.lane.b32.xlu1 %v9496_v22, %s9761_s15  ;;  %v9205_v60 = vunpack.i.h.bf16 %v9203_v32  ;;  %v9210_v33 = vunpack.i.h.bf16 %v9208_v12 }
  0xa9   : > { %9492 = vrot.lane.b32.xlu0 %v9491_v2, %s9761_s15  ;;  %8714 = vmatprep.subr.bf16.mxu0 %v8713_v37  ;;  %v9209_v37 = vunpack.i.l.bf16 %v9208_v12  ;;  %v12174_v12 = vunpack.i.l.bf16 %v10107_v52 }
  0xaa   : > { %8581 = vmatmul.mubr.msk.f32.vlgmr.msra.gmra.mrb[4].mxu0 %vm542_vm1, %v10131_v14  ;;  %v10222_v45 = vpop.permute.xlu1 %9217  ;;  %v513_v7 = vsel %vm511_vm0, %v9204_v40, %v12171_v6  ;;  %v516_v22 = vsel %vm511_vm0, %v9194_v17, %v9204_v40  ;;  %v512_v17 = vsel %vm511_vm0, %v9200_v61, %v12172_v9  ;;  %v12173_v40 = vunpack.i.l.bf16 %v10167_v24 }
  0xab   : > { %8716 = vmatpush1.bf16.msra.mxu0 %v8715_v41  ;;  %v10225_v15 = vpop.permute.xlu0 %9212  ;;  %823 = vmatprep.mubr.f32.mxu0 %v12154_v59  ;;  %v9220_v6 = vunpack.i.h.bf16 %v10222_v45  ;;  %v9219_v1 = vunpack.i.l.bf16 %v10222_v45  ;;  %v8719_v62 = vpack.c.bf16 %v516_v22, %v515_v8  ;;  %v517_v8 = vsel %vm511_vm0, %v9199_v25, %v9205_v60 }
  0xac   : > { %v9215_v2 = vunpack.i.h.bf16 %v10225_v15  ;;  %v9214_v56 = vunpack.i.l.bf16 %v10225_v15  ;;  %763 = vmatprep.subr.mxu0 %v520_v48  ;;  %9507 = vrot.lane.b32.xlu1 %v9863_v20, %s9762_s18  ;;  %v523_v41 = vsel %vm511_vm0, %v12173_v40, %v9195_v23  ;;  %v8717_v48 = vpack.c.bf16 %v513_v7, %v512_v17 }
  0xad   : > { %9502 = vrot.lane.b32.xlu0 %v9501_v55, %s9761_s15  ;;  %v514_v23 = vsel %vm511_vm0, %v9205_v60, %v12174_v12  ;;  %v445_v7 = vsel %vm417_vm2, %v9219_v1, %v9209_v37  ;;  %v446_v22 = vsel %vm417_vm2, %v9220_v6, %v9210_v33  ;;  %v10309_v12 = vunpack.c.l.bf16 %v10105_v49 }
  0xae   : > { %v9228_v15 = vpop.permute.xlu1 %9227  ;;  %v442_v61 = vsel %vm417_vm2, %v9209_v37, %v9214_v56  ;;  %v443_v24 = vsel %vm417_vm2, %v9210_v33, %v9215_v2  ;;  %v8723_v25 = vpack.c.bf16 %v446_v22, %v445_v7 }
  0xaf   : > { %764 = vmatpush1.msra.mxu0 %v523_v41  ;;  %v10253_v32 = vpop.permute.xlu0 %9222  ;;  %v8721_v9 = vpack.c.bf16 %v443_v24, %v442_v61  ;;  %v9229_v37 = vunpack.i.l.bf16 %v9228_v15 }
  0xb0   : > { %8718 = vmatprep.subr.bf16.mxu0 %v8717_v48  ;;  %8582 = vmatmul.mubr.msk.f32.vlgmr.msra.gmra.mrb[6].mxu0 %vm542_vm1, %v10131_v14  ;;  %v9225_v17 = vunpack.i.h.bf16 %v10253_v32  ;;  %v9224_v40 = vunpack.i.l.bf16 %v10253_v32 }
  0xb1   : > { %8720 = vmatpush1.bf16.msra.mxu0 %v8719_v62  ;;  %9517 = vrot.lane.b32.xlu1 %v9849_v16, %s9762_s18  ;;  %v9230_v62 = vunpack.i.h.bf16 %v9228_v15  ;;  %v439_v24 = vsel %vm417_vm2, %v9214_v56, %v9229_v37 }
  0xb2   : > { %9512 = vrot.lane.b32.xlu0 %v9880_v29, %s9762_s18  ;;  %834 = vmatprep.subr.mxu0 %v514_v23  ;;  %v10269_v55 = vpop.permute.xlu1 %9237  ;;  %v444_v15 = vsel %vm417_vm2, %v9224_v40, %v9225_v17 }
  0xb3   : > { %v9233_v52 = vpop.permute.xlu0 %9232  ;;  %894 = vmatprep.mubr.f32.mxu0 %v12154_v59  ;;  %v9239_v33 = vunpack.i.l.bf16 %v10269_v55  ;;  %v9240_v49 = vunpack.i.h.bf16 %v10269_v55 }
  0xb4   : > { %v9235_v41 = vunpack.i.h.bf16 %v9233_v52  ;;  %v9234_v48 = vunpack.i.l.bf16 %v9233_v52 }
  0xb5   : > { %835 = vmatpush1.msra.mxu0 %v517_v8  ;;  %9527 = vrot.lane.b32.xlu1 %v9872_v26, %s9762_s18 }
  0xb6   : > { %9522 = vrot.lane.b32.xlu0 %v10066_v13, %s9762_s18  ;;  %8722 = vmatprep.subr.bf16.mxu0 %v8721_v9  ;;  %v10288_v60 = vpop.permute.xlu1 %9247  ;;  %v436_v26 = vsel %vm417_vm2, %v9229_v37, %v9234_v48  ;;  %v437_v61 = vsel %vm417_vm2, %v9230_v62, %v9235_v41 }
  0xb7   : > { %8583 = vmatmul.mubr.msk.f32.vlgmr.msra.gmra.mrb[8].mxu0 %vm542_vm1, %v10131_v14  ;;  %v10293_v32 = vpop.permute.xlu0 %9242  ;;  %v440_v14 = vsel %vm417_vm2, %v9215_v2, %v9230_v62  ;;  %v9250_v23 = vunpack.i.h.bf16 %v10288_v60  ;;  %v447_v2 = vsel %vm417_vm2, %v9239_v33, %v9224_v40  ;;  %v8725_v52 = vpack.c.bf16 %v437_v61, %v436_v26 }
  0xb8   : > { %8724 = vmatpush1.bf16.msra.mxu0 %v8723_v25  ;;  %968 = vmatprep.mubr.f32.mxu0 %v12154_v59  ;;  %v9245_v7 = vunpack.i.h.bf16 %v10293_v32  ;;  %v9244_v22 = vunpack.i.l.bf16 %v10293_v32  ;;  %v9249_v8 = vunpack.i.l.bf16 %v10288_v60  ;;  %v8727_v62 = vpack.c.bf16 %v440_v14, %v439_v24 }
  0xb9   : > { %908 = vmatprep.subr.mxu0 %v444_v15  ;;  %9537 = vrot.lane.b32.xlu1 %v10122_v5, %s9762_s18  ;;  %v441_v61 = vsel %vm417_vm2, %v9225_v17, %v9240_v49 }
  0xba   : > { %9532 = vrot.lane.b32.xlu0 %v10092_v42, %s9762_s18  ;;  %v10316_v56 = vpop.permute.xlu1 %9257  ;;  %v10328_v42 = vpack.i.bf16 %v9832_v3, %v9947_v54  ;;  %v438_v40 = vsel %vm417_vm2, %v9240_v49, %v9244_v22  ;;  %v430_v25 = vsel %vm417_vm2, %v9245_v7, %v9250_v23  ;;  %v433_v15 = vsel %vm417_vm2, %v9234_v48, %v9245_v7 }
  0xbb   : > { %v9253_v5 = vpop.permute.xlu0 %9252  ;;  %v9259_v26 = vunpack.i.l.bf16 %v10316_v56  ;;  %v9566_v48 = vpack.i.bf16 %v9884_v31, %v9959_v57  ;;  %v9260_v7 = vunpack.i.h.bf16 %v10316_v56 }
  0xbc   : > { %909 = vmatpush1.msra.mxu0 %v447_v2  ;;  %v9254_v9 = vunpack.i.l.bf16 %v9253_v5  ;;  %v9255_v24 = vunpack.i.h.bf16 %v9253_v5 }
  0xbd   : > { %8726 = vmatprep.subr.bf16.mxu0 %v8725_v52  ;;  %8584 = vmatmul.mubr.msk.f32.vlgmr.msra.gmra.mrb[0].mxu0 %vm542_vm1, %v10309_v12  ;;  %v9561_v52 = vpack.i.bf16 %v9937_v50, %v9835_v4 }
  0xbe   : > { %8728 = vmatpush1.bf16.msra.mxu0 %v8727_v62  ;;  %9547 = vrot.lane.b32.xlu1 %v10152_v21, %s9762_s18  ;;  %v10334_v37 = vpop.permute.xlu1 %9267  ;;  %v431_v60 = vsel %vm417_vm2, %v9249_v8, %v9254_v9  ;;  %v434_v21 = vsel %vm417_vm2, %v9235_v41, %v9249_v8  ;;  %v432_v49 = vsel %vm417_vm2, %v9255_v24, %v9259_v26 }
  0xbf   : > { %9542 = vrot.lane.b32.xlu0 %v10118_v0, %s9762_s18  ;;  %979 = vmatprep.subr.mxu0 %v438_v40  ;;  %v9263_v3 = vpop.permute.xlu0 %9262  ;;  %v8729_v32 = vpack.c.bf16 %v431_v60, %v430_v25  ;;  %v9269_v14 = vunpack.i.l.bf16 %v10334_v37  ;;  %v8731_v17 = vpack.c.bf16 %v434_v21, %v433_v15  ;;  %v9270_v21 = vunpack.i.h.bf16 %v10334_v37 }
  0xc0   : > { %1039 = vmatprep.mubr.f32.mxu0 %v12154_v59  ;;  %v9265_v0 = vunpack.i.h.bf16 %v9263_v3  ;;  %v9264_v2 = vunpack.i.l.bf16 %v9263_v3 }
  0xc2   : > { %980 = vmatpush1.msra.mxu0 %v441_v61  ;;  %9557 = vrot.lane.b32.xlu1 %v10328_v42, %s9762_s18  ;;  %v10353_v41 = vpop.permute.xlu1 %9277  ;;  %v424_v56 = vsel %vm417_vm2, %v9260_v7, %v9265_v0  ;;  %v428_v8 = vsel %vm417_vm2, %v9254_v9, %v9264_v2  ;;  %v435_v9 = vsel %vm417_vm2, %v9244_v22, %v9255_v24 }
  0xc3   : > { %9552 = vrot.lane.b32.xlu0 %v10141_v34, %s9762_s18  ;;  %8730 = vmatprep.subr.bf16.mxu0 %v8729_v32  ;;  %v10360_v5 = vpop.permute.xlu0 %9272  ;;  %v425_v34 = vsel %vm417_vm2, %v9264_v2, %v9269_v14  ;;  %v9279_v40 = vunpack.i.l.bf16 %v10353_v41  ;;  %v427_v32 = vsel %vm417_vm2, %v9250_v23, %v9260_v7  ;;  %v10413_v7 = vpack.i.bf16 %v9916_v43, %v9961_v58 }
  0xc4   : > { %8585 = vmatmul.mubr.msk.f32.vlgmr.msra.gmra.mrb[2].mxu0 %vm542_vm1, %v10309_v12  ;;  %v9275_v25 = vunpack.i.h.bf16 %v10360_v5  ;;  %v9274_v60 = vunpack.i.l.bf16 %v10360_v5  ;;  %v8733_v15 = vpack.c.bf16 %v425_v34, %v424_v56  ;;  %v8735_v61 = vpack.c.bf16 %v428_v8, %v427_v32 }
  0xc5   : > { %8732 = vmatpush1.bf16.msra.mxu0 %v8731_v17  ;;  %1110 = vmatprep.mubr.f32.mxu0 %v12154_v59  ;;  %v419_v24 = vsel %vm417_vm2, %v9279_v40, %v9220_v6  ;;  %v9280_v17 = vunpack.i.h.bf16 %v10353_v41  ;;  %v10432_v8 = vpack.i.bf16 %v9894_v35, %v9904_v38 }
  0xc6   : > { %1050 = vmatprep.subr.mxu0 %v432_v49  ;;  %9567 = vrot.lane.b32.xlu1 %v9566_v48, %s9762_s18  ;;  %v10376_v62 = vpop.permute.xlu1 %9287  ;;  %v426_v23 = vsel %vm417_vm2, %v9270_v21, %v9274_v60  ;;  %v418_v37 = vsel %vm417_vm2, %v9275_v25, %v9219_v1  ;;  %v429_v48 = vsel %vm417_vm2, %v9259_v26, %v9270_v21 }
  0xc7   : > { %9562 = vrot.lane.b32.xlu0 %v9561_v52, %s9762_s18  ;;  %v9283_v3 = vpop.permute.xlu0 %9282  ;;  %v422_v1 = vsel %vm417_vm2, %v9269_v14, %v9279_v40  ;;  %v421_v45 = vsel %vm417_vm2, %v9265_v0, %v9275_v25  ;;  %v9290_v6 = vunpack.i.h.bf16 %v10376_v62  ;;  %v9289_v52 = vunpack.i.l.bf16 %v10376_v62 }
  0xc8   : > { %v9285_v49 = vunpack.i.h.bf16 %v9283_v3  ;;  %v9284_v26 = vunpack.i.l.bf16 %v9283_v3  ;;  %v8737_v56 = vpack.c.bf16 %v419_v24, %v418_v37  ;;  %v8739_v62 = vpack.c.bf16 %v422_v1, %v421_v45 }
  0xc9   : > { %1051 = vmatpush1.msra.mxu0 %v435_v9  ;;  %v10440_v40 = vpack.i.bf16 %v9874_v27, %v9839_v10  ;;  %v420_v25 = vsel %vm417_vm2, %v9280_v17, %v9239_v33  ;;  %v423_v37 = vsel %vm417_vm2, %v9274_v60, %v9280_v17  ;;  %v10478_v1 = vpack.i.bf16 %v9918_v44, %v9926_v46 }
  0xca   : > { %8734 = vmatprep.subr.bf16.mxu0 %v8733_v15  ;;  %8586 = vmatmul.mubr.msk.f32.vlgmr.msra.gmra.mrb[4].mxu0 %vm542_vm1, %v10309_v12  ;;  %v10389_v2 = vpop.permute.xlu1 %9297  ;;  %v1347_v38 = vsel %vm1322_vm3, %v9284_v26, %v9289_v52  ;;  %v1348_v3 = vsel %vm1322_vm3, %v9285_v49, %v9290_v6  ;;  %v10511_v17 = vpack.i.bf16 %v9928_v47, %v9906_v39 }
  0xcb   : > { %8736 = vmatpush1.bf16.msra.mxu0 %v8735_v61  ;;  %9577 = vrot.lane.b32.xlu1 %v9880_v29, %s9763_s19  ;;  %v10397_v22 = vpop.permute.xlu0 %9292  ;;  %v9300_v32 = vunpack.i.h.bf16 %v10389_v2  ;;  %v9299_v27 = vunpack.i.l.bf16 %v10389_v2 }
  0xcc   : > { %9572 = vrot.lane.b32.xlu0 %v9863_v20, %s9763_s19  ;;  %1121 = vmatprep.subr.mxu0 %v426_v23  ;;  %v9295_v41 = vunpack.i.h.bf16 %v10397_v22  ;;  %v12151_v14 = vunpack.i.l.bf16 %v10397_v22 }
  0xcd   : > { %1181 = vmatprep.mubr.f32.mxu0 %v12154_v59  ;;  %v1349_v44 = vsel %vm1322_vm3, %v9299_v27, %v9300_v32 }
  0xce   : > { %v10423_v34 = vpop.permute.xlu1 %9307  ;;  %v1350_v55 = vsel %vm1322_vm3, %v12151_v14, %v9284_v26  ;;  %v1351_v33 = vsel %vm1322_vm3, %v9295_v41, %v9285_v49  ;;  %v10485_v26 = vld [vmem:[%s12137_s1 + $0x8] sm:$0xff]  }
  0xcf   : > { %1122 = vmatpush1.msra.mxu0 %v429_v48  ;;  %9587 = vrot.lane.b32.xlu1 %v9849_v16, %s9763_s19  ;;  %v9303_v0 = vpop.permute.xlu0 %9302  ;;  %v9310_v9 = vunpack.i.h.bf16 %v10423_v34  ;;  %v9309_v15 = vunpack.i.l.bf16 %v10423_v34  ;;  %v8741_v48 = vpack.c.bf16 %v1348_v3, %v1347_v38  ;;  %v8743_v45 = vpack.c.bf16 %v1351_v33, %v1350_v55 }
  0xd0   : > { %9582 = vrot.lane.b32.xlu0 %v10413_v7, %s9762_s18  ;;  %8738 = vmatprep.subr.bf16.mxu0 %v8737_v56  ;;  %v9305_v61 = vunpack.i.h.bf16 %v9303_v0  ;;  %v9304_v23 = vunpack.i.l.bf16 %v9303_v0  ;;  %v10514_v56 = vunpack.c.l.bf16 %v10485_v26 }
  0xd1   : > { %8587 = vmatmul.mubr.msk.f32.vlgmr.msra.gmra.mrb[6].mxu0 %vm542_vm1, %v10309_v12 }
  0xd2   : > { %8740 = vmatpush1.bf16.msra.mxu0 %v8739_v62  ;;  %v10446_v35 = vpop.permute.xlu1 %9317  ;;  %1252 = vmatprep.mubr.f32.mxu0 %v12154_v59  ;;  %v1341_v46 = vsel %vm1322_vm3, %v9304_v23, %v9309_v15  ;;  %v1342_v60 = vsel %vm1322_vm3, %v9305_v61, %v9310_v9  ;;  %v1345_v0 = vsel %vm1322_vm3, %v9290_v6, %v9305_v61 }
  0xd3   : > { %1192 = vmatprep.subr.mxu0 %v420_v25  ;;  %9597 = vrot.lane.b32.xlu1 %v10432_v8, %s9763_s19  ;;  %v10465_v21 = vpop.permute.xlu0 %9312  ;;  %v1344_v62 = vsel %vm1322_vm3, %v9289_v52, %v9304_v23  ;;  %v9319_v25 = vunpack.i.l.bf16 %v10446_v35  ;;  %v8745_v33 = vpack.c.bf16 %v1342_v60, %v1341_v46  ;;  %v10534_v6 = vpack.i.bf16 %v9939_v51, %v9945_v53 }
  0xd4   : > { %9592 = vrot.lane.b32.xlu0 %v10066_v13, %s9763_s19  ;;  %v12150_v24 = vunpack.i.l.bf16 %v10465_v21  ;;  %v9315_v38 = vunpack.i.h.bf16 %v10465_v21  ;;  %v9320_v52 = vunpack.i.h.bf16 %v10446_v35  ;;  %v8747_v61 = vpack.c.bf16 %v1345_v0, %v1344_v62 }
  0xd5   : > { %v9621_v23 = vpack.i.bf16 %v9896_v36, %v9835_v4  ;;  %v9636_v0 = vpack.i.bf16 %v9857_v18, %v9884_v31 }
  0xd6   : > { %1193 = vmatpush1.msra.mxu0 %v423_v37  ;;  %v10480_v49 = vpop.permute.xlu1 %9327 }
  0xd7   : > { %8742 = vmatprep.subr.bf16.mxu0 %v8741_v48  ;;  %8588 = vmatmul.mubr.msk.f32.vlgmr.msra.gmra.mrb[8].mxu0 %vm542_vm1, %v10309_v12  ;;  %v10489_v5 = vpop.permute.xlu0 %9322  ;;  %v1352_v12 = vsel %vm1322_vm3, %v12150_v24, %v9299_v27  ;;  %v9329_v39 = vunpack.i.l.bf16 %v10480_v49 }
  0xd8   : > { %8744 = vmatpush1.bf16.msra.mxu0 %v8743_v45  ;;  %9607 = vrot.lane.b32.xlu1 %v10440_v40, %s9763_s19  ;;  %v9325_v27 = vunpack.i.h.bf16 %v10489_v5  ;;  %v9324_v55 = vunpack.i.l.bf16 %v10489_v5  ;;  %v1343_v45 = vsel %vm1322_vm3, %v9315_v38, %v9319_v25 }
  0xd9   : > { %9602 = vrot.lane.b32.xlu0 %v10478_v1, %s9763_s19  ;;  %1360 = vmatprep.subr.mxu0 %v1349_v44 }
  0xda   : > { %1420 = vmatprep.mubr.f32.mxu0 %v12154_v59  ;;  %v10523_v3 = vpop.permute.xlu1 %9337  ;;  %v1335_v44 = vsel %vm1322_vm3, %v9320_v52, %v9325_v27  ;;  %v1336_v46 = vsel %vm1322_vm3, %v9324_v55, %v9329_v39  ;;  %v1339_v60 = vsel %vm1322_vm3, %v9310_v9, %v9324_v55  ;;  %v1338_v9 = vsel %vm1322_vm3, %v9309_v15, %v9320_v52 }
  0xdb   : > { %v10528_v37 = vpop.permute.xlu0 %9332  ;;  %v9340_v62 = vunpack.i.h.bf16 %v10523_v3  ;;  %v1346_v55 = vsel %vm1322_vm3, %v9300_v32, %v9315_v38 }
  0xdc   : > { %1361 = vmatpush1.msra.mxu0 %v1352_v12  ;;  %9617 = vrot.lane.b32.xlu1 %v10328_v42, %s9763_s19  ;;  %v9334_v24 = vunpack.i.l.bf16 %v10528_v37 }
  0xdd   : > { %9612 = vrot.lane.b32.xlu0 %v10511_v17, %s9763_s19  ;;  %8746 = vmatprep.subr.bf16.mxu0 %v8745_v33  ;;  %v9339_v33 = vunpack.i.l.bf16 %v10523_v3  ;;  %v10578_v3 = vpack.i.bf16 %v9959_v57, %v9937_v50 }
  0xde   : > { %8590 = vmatmul.mubr.msk.f32.vlgmr.msra.gmra.mrb[0].mxu0 %vm542_vm1, %v10514_v56  ;;  %v10543_v48 = vpop.permute.xlu1 %9347 }
  0xdf   : > { %8748 = vmatpush1.bf16.msra.mxu0 %v8747_v61  ;;  %v10549_v5 = vpop.permute.xlu0 %9342  ;;  %1491 = vmatprep.mubr.f32.mxu0 %v12154_v59  ;;  %v9335_v61 = vunpack.i.h.bf16 %v10528_v37  ;;  %v9330_v37 = vunpack.i.h.bf16 %v10480_v49  ;;  %v1333_v49 = vsel %vm1322_vm3, %v9329_v39, %v9339_v33  ;;  %v9350_v39 = vunpack.i.h.bf16 %v10543_v48 }
  0xe0   : > { %1431 = vmatprep.subr.mxu0 %v1343_v45  ;;  %9627 = vrot.lane.b32.xlu1 %v10534_v6, %s9762_s18  ;;  %v9344_v12 = vunpack.i.l.bf16 %v10549_v5  ;;  %v8749_v45 = vpack.c.bf16 %v1336_v46, %v1335_v44  ;;  %v9349_v44 = vunpack.i.l.bf16 %v10543_v48  ;;  %v9345_v46 = vunpack.i.h.bf16 %v10549_v5 }
  0xe1   : > { %9622 = vrot.lane.b32.xlu0 %v9621_v23, %s9763_s19  ;;  %v8751_v23 = vpack.c.bf16 %v1339_v60, %v1338_v9  ;;  %v1337_v50 = vsel %vm1322_vm3, %v9330_v37, %v9334_v24  ;;  %v1329_v57 = vsel %vm1322_vm3, %v9335_v61, %v9340_v62  ;;  %v1332_v38 = vsel %vm1322_vm3, %v9325_v27, %v9335_v61 }
  0xe2   : > { %v10580_v14 = vpop.permute.xlu1 %9357  ;;  %v1330_v15 = vsel %vm1322_vm3, %v9339_v33, %v9344_v12  ;;  %v8755_v27 = vpack.c.bf16 %v1333_v49, %v1332_v38  ;;  %v9651_v5 = vpack.i.bf16 %v9961_v58, %v9859_v19  ;;  %v1326_v9 = vsel %vm1322_vm3, %v9340_v62, %v9350_v39 }
  0xe3   : > { %1432 = vmatpush1.msra.mxu0 %v1346_v55  ;;  %v10583_v34 = vpop.permute.xlu0 %9352  ;;  %v8753_v2 = vpack.c.bf16 %v1330_v15, %v1329_v57  ;;  %v9676_v49 = vpack.i.bf16 %v9916_v43, %v9876_v28 }
  0xe4   : > { %8750 = vmatprep.subr.bf16.mxu0 %v8749_v45  ;;  %8591 = vmatmul.mubr.msk.f32.vlgmr.msra.gmra.mrb[2].mxu0 %vm542_vm1, %v10514_v56  ;;  %v9354_v60 = vunpack.i.l.bf16 %v10583_v34  ;;  %v9355_v55 = vunpack.i.h.bf16 %v10583_v34 }
  0xe5   : > { %8752 = vmatpush1.bf16.msra.mxu0 %v8751_v23  ;;  %9637 = vrot.lane.b32.xlu1 %v9636_v0, %s9763_s19  ;;  %v1340_v0 = vsel %vm1322_vm3, %v9319_v25, %v9330_v37  ;;  %v9360_v37 = vunpack.i.h.bf16 %v10580_v14  ;;  %v9359_v23 = vunpack.i.l.bf16 %v10580_v14 }
  0xe6   : > { %9632 = vrot.lane.b32.xlu0 %v10578_v3, %s9763_s19  ;;  %1502 = vmatprep.subr.mxu0 %v1337_v50  ;;  %v10596_v32 = vpop.permute.xlu1 %9367  ;;  %v1327_v25 = vsel %vm1322_vm3, %v9344_v12, %v9354_v60  ;;  %v1328_v43 = vsel %vm1322_vm3, %v9349_v44, %v9355_v55 }
  0xe7   : > { %1562 = vmatprep.mubr.f32.mxu0 %v12154_v59  ;;  %v10603_v52 = vpop.permute.xlu0 %9362  ;;  %v9370_v34 = vunpack.i.h.bf16 %v10596_v32  ;;  %v9369_v50 = vunpack.i.l.bf16 %v10596_v32 }
  0xe8   : > { %v9365_v48 = vunpack.i.h.bf16 %v10603_v52  ;;  %v9364_v61 = vunpack.i.l.bf16 %v10603_v52 }
  0xe9   : > { %1503 = vmatpush1.msra.mxu0 %v1340_v0  ;;  %9647 = vrot.lane.b32.xlu1 %v9880_v29, %s9764_s22  ;;  %v1331_v29 = vsel %vm1322_vm3, %v9345_v46, %v9349_v44 }
  0xea   : > { %9642 = vrot.lane.b32.xlu0 %v9863_v20, %s9764_s22  ;;  %8754 = vmatprep.subr.bf16.mxu0 %v8753_v2  ;;  %v10619_v33 = vpop.permute.xlu1 %9377  ;;  %v1324_v20 = vsel %vm1322_vm3, %v9354_v60, %v9295_v41  ;;  %v12175_v41 = vunpack.i.l.bf16 %v10397_v22  ;;  %v8759_v22 = vpack.c.bf16 %v1327_v25, %v1326_v9  ;;  %v1809_v57 = vsel %vm1784_vm4, %v9359_v23, %v9364_v61 }
  0xeb   : > { %8592 = vmatmul.mubr.msk.f32.vlgmr.msra.gmra.mrb[4].mxu0 %vm542_vm1, %v10514_v56  ;;  %v10623_v35 = vpop.permute.xlu0 %9372  ;;  %v1810_v14 = vsel %vm1784_vm4, %v9360_v37, %v9365_v48 }
  0xec   : > { %8756 = vmatpush1.bf16.msra.mxu0 %v8755_v27  ;;  %1633 = vmatprep.mubr.f32.mxu0 %v12154_v59  ;;  %v1323_v12 = vsel %vm1322_vm3, %v9350_v39, %v12175_v41  ;;  %v9374_v60 = vunpack.i.l.bf16 %v10623_v35  ;;  %v9380_v27 = vunpack.i.h.bf16 %v10619_v33  ;;  %v10719_v41 = vunpack.c.h.bf16 %v10485_v26 }
  0xed   : > { %1573 = vmatprep.subr.mxu0 %v1331_v29  ;;  %9657 = vrot.lane.b32.xlu1 %v9849_v16, %s9764_s22  ;;  %v1334_v16 = vsel %vm1322_vm3, %v9334_v24, %v9345_v46  ;;  %v8757_v15 = vpack.c.bf16 %v1324_v20, %v1323_v12  ;;  %v12176_v24 = vunpack.i.l.bf16 %v10465_v21  ;;  %v1813_v21 = vsel %vm1784_vm4, %v9370_v34, %v9360_v37 }
  0xee   : > { %9652 = vrot.lane.b32.xlu0 %v9651_v5, %s9763_s19  ;;  %v10647_v45 = vpop.permute.xlu1 %9387  ;;  %v8761_v46 = vpack.c.bf16 %v1810_v14, %v1809_v57  ;;  %v9379_v5 = vunpack.i.l.bf16 %v10619_v33  ;;  %v9706_v14 = vpack.i.bf16 %v9896_v36, %v9859_v19 }
  0xef   : > { %v10653_v62 = vpop.permute.xlu0 %9382  ;;  %v1325_v2 = vsel %vm1322_vm3, %v9355_v55, %v12176_v24 }
  0xf0   : > { %1574 = vmatpush1.msra.mxu0 %v1334_v16  ;;  %v9385_v0 = vunpack.i.h.bf16 %v10653_v62  ;;  %v9384_v39 = vunpack.i.l.bf16 %v10653_v62  ;;  %v1806_v55 = vsel %vm1784_vm4, %v9364_v61, %v9379_v5 }
  0xf1   : > { %8758 = vmatprep.subr.bf16.mxu0 %v8757_v15  ;;  %8593 = vmatmul.mubr.msk.f32.vlgmr.msra.gmra.mrb[6].mxu0 %vm542_vm1, %v10514_v56  ;;  %v9390_v15 = vunpack.i.h.bf16 %v10647_v45 }
  0xf2   : > { %8760 = vmatpush1.bf16.msra.mxu0 %v8759_v22  ;;  %9667 = vrot.lane.b32.xlu1 %v10432_v8, %s9764_s22  ;;  %v10671_v38 = vpop.permute.xlu1 %9397  ;;  %v1812_v8 = vsel %vm1784_vm4, %v9369_v50, %v9359_v23  ;;  %v1804_v9 = vsel %vm1784_vm4, %v9380_v27, %v9385_v0 }
  0xf3   : > { %9662 = vrot.lane.b32.xlu0 %v10066_v13, %s9764_s22  ;;  %1644 = vmatprep.subr.mxu0 %v1325_v2  ;;  %v10675_v52 = vpop.permute.xlu0 %9392  ;;  %v9375_v13 = vunpack.i.h.bf16 %v10623_v35  ;;  %v8763_v44 = vpack.c.bf16 %v1813_v21, %v1812_v8  ;;  %v9389_v35 = vunpack.i.l.bf16 %v10647_v45  ;;  %v9400_v37 = vunpack.i.h.bf16 %v10671_v38 }
  0xf4   : > { %1704 = vmatprep.mubr.f32.mxu0 %v12154_v59  ;;  %v9399_v23 = vunpack.i.l.bf16 %v10671_v38  ;;  %v9395_v16 = vunpack.i.h.bf16 %v10675_v52  ;;  %v9394_v61 = vunpack.i.l.bf16 %v10675_v52 }
  0xf5   : > { %v1811_v33 = vsel %vm1784_vm4, %v9374_v60, %v9375_v13  ;;  %v1808_v8 = vsel %vm1784_vm4, %v9375_v13, %v9390_v15 }
  0xf6   : > { %1645 = vmatpush1.msra.mxu0 %v1328_v43  ;;  %9677 = vrot.lane.b32.xlu1 %v9676_v49, %s9763_s19  ;;  %v10695_v29 = vpop.permute.xlu1 %9407  ;;  %v1805_v57 = vsel %vm1784_vm4, %v9390_v15, %v9394_v61  ;;  %v1797_v24 = vsel %vm1784_vm4, %v9395_v16, %v9400_v37  ;;  %v9701_v49 = vpack.i.bf16 %v9857_v18, %v9835_v4 }
  0xf7   : > { %9672 = vrot.lane.b32.xlu0 %v10478_v1, %s9764_s22  ;;  %8762 = vmatprep.subr.bf16.mxu0 %v8761_v46  ;;  %v10699_v20 = vpop.permute.xlu0 %9402  ;;  %v1803_v1 = vsel %vm1784_vm4, %v9379_v5, %v9384_v39  ;;  %v1800_v52 = vsel %vm1784_vm4, %v9384_v39, %v9395_v16  ;;  %v9409_v19 = vunpack.i.l.bf16 %v10695_v29  ;;  %v9716_v46 = vpack.i.bf16 %v9876_v28, %v9884_v31 }
  0xf8   : > { %8594 = vmatmul.mubr.msk.f32.vlgmr.msra.gmra.mrb[8].mxu0 %vm542_vm1, %v10514_v56  ;;  %v9404_v25 = vunpack.i.l.bf16 %v10699_v20  ;;  %v1807_v56 = vsel %vm1784_vm4, %v9365_v48, %v9380_v27  ;;  %v8765_v26 = vpack.c.bf16 %v1804_v9, %v1803_v1  ;;  %v9410_v13 = vunpack.i.h.bf16 %v10695_v29 }
  0xf9   : > { %8764 = vmatpush1.bf16.msra.mxu0 %v8763_v44  ;;  %1882 = vmatprep.mubr.f32.mxu0 %v12154_v59  ;;  %v8767_v62 = vpack.c.bf16 %v1807_v56, %v1806_v55 }
  0xfa   : > { %1822 = vmatprep.subr.mxu0 %v1811_v33  ;;  %9687 = vrot.lane.b32.xlu1 %v10440_v40, %s9764_s22  ;;  %v10721_v12 = vpop.permute.xlu1 %9417  ;;  %v1814_v40 = vsel %vm1784_vm4, %v9389_v35, %v9374_v60  ;;  %v1798_v22 = vsel %vm1784_vm4, %v9399_v23, %v9404_v25  ;;  %v1794_v55 = vsel %vm1784_vm4, %v9400_v37, %v9410_v13 }
  0xfb   : > { %9682 = vrot.lane.b32.xlu0 %v10534_v6, %s9763_s19  ;;  %v10729_v48 = vpop.permute.xlu0 %9412  ;;  %v8769_v38 = vpack.c.bf16 %v1798_v22, %v1797_v24  ;;  %v9419_v21 = vunpack.i.l.bf16 %v10721_v12  ;;  %v9738_v24 = vld [vmem:[%s9825_s10] sm:$0xff] }
  0xfc   : > { %v9415_v4 = vunpack.i.h.bf16 %v10729_v48  ;;  %v9414_v18 = vunpack.i.l.bf16 %v10729_v48 }
  0xfd   : > { %1823 = vmatpush1.msra.mxu0 %v1814_v40 }
  0xfe   : > { %8766 = vmatprep.subr.bf16.mxu0 %v8765_v26  ;;  %8596 = vmatmul.mubr.msk.f32.vlgmr.msra.gmra.mrb[0].mxu0 %vm542_vm1, %v10719_v41  ;;  %v10740_v6 = vpop.permute.xlu1 %9427  ;;  %v1791_v27 = vsel %vm1784_vm4, %v9410_v13, %v9415_v4  ;;  %v1792_v5 = vsel %vm1784_vm4, %v9414_v18, %v9419_v21  ;;  %v1795_v44 = vsel %vm1784_vm4, %v9404_v25, %v9414_v18 }
  0xff   : > { %8768 = vmatpush1.bf16.msra.mxu0 %v8767_v62  ;;  %9697 = vrot.lane.b32.xlu1 %v10328_v42, %s9764_s22  ;;  %v10750_v2 = vpop.permute.xlu0 %9422  ;;  %v1801_v42 = vsel %vm1784_vm4, %v9385_v0, %v9399_v23  ;;  %v9429_v33 = vunpack.i.l.bf16 %v10740_v6  ;;  %v8773_v56 = vpack.c.bf16 %v1792_v5, %v1791_v27  ;;  %v9420_v23 = vunpack.i.h.bf16 %v10721_v12  ;;  %v4402_v62 = vld [vmem:[%s12138_s2] sm:$0xff] }
 0x100   : > { %9692 = vrot.lane.b32.xlu0 %v10511_v17, %s9764_s22  ;;  %1893 = vmatprep.subr.mxu0 %v1805_v57  ;;  %v9405_v17 = vunpack.i.h.bf16 %v10699_v20  ;;  %v8771_v0 = vpack.c.bf16 %v1801_v42, %v1800_v52  ;;  %v9425_v1 = vunpack.i.h.bf16 %v10750_v2  ;;  %v9424_v9 = vunpack.i.l.bf16 %v10750_v2  ;;  %v9739_v2 = vld [vmem:[%s9825_s10 + $0x28] sm:$0xff] }
 0x101   : > { %1953 = vmatprep.mubr.f32.mxu0 %v12154_v59  ;;  %v8775_v16 = vpack.c.bf16 %v1795_v44, %v1794_v55  ;;  %v1786_v37 = vsel %vm1784_vm4, %v9429_v33, %v9370_v34  ;;  %v1796_v32 = vsel %vm1784_vm4, %v9409_v19, %v9420_v23 }
 0x102   : > { %v10768_v43 = vpop.permute.xlu1 %9437  ;;  %v1799_v39 = vsel %vm1784_vm4, %v9405_v17, %v9409_v19  ;;  %v1802_v25 = vsel %vm1784_vm4, %v9394_v61, %v9405_v17  ;;  %v1785_v12 = vsel %vm1784_vm4, %v9425_v1, %v9369_v50  ;;  %v1788_v61 = vsel %vm1784_vm4, %v9415_v4, %v9425_v1  ;;  %v9740_v19 = vld [vmem:[%s9825_s10 + $0x8] sm:$0xff]  ;;  %v9744_v1 = vld [vmem:[%s9825_s10 + $0x18] sm:$0xff] }
 0x103   : > { %1894 = vmatpush1.msra.mxu0 %v1808_v8  ;;  %9707 = vrot.lane.b32.xlu1 %v9706_v14, %s9764_s22  ;;  %v10773_v60 = vpop.permute.xlu0 %9432  ;;  %v9430_v50 = vunpack.i.h.bf16 %v10740_v6  ;;  %v8777_v34 = vpack.c.bf16 %v1786_v37, %v1785_v12  ;;  %v9765_v6 = vmov 0   ;;  %v9741_v8 = vld [vmem:[%s9825_s10 + $0x30] sm:$0xff]  ;;  %v9747_v12 = vld [vmem:[%s9825_s10 + $0x48] sm:$0xff] }
 0x104   : > { %9702 = vrot.lane.b32.xlu0 %v9701_v49, %s9764_s22  ;;  %8770 = vmatprep.subr.bf16.mxu0 %v8769_v38  ;;  %v10853_v49 = vcombine.high %v9738_v24, %v9739_v2  ;;  %v10855_v38 = vcombine.low %v9738_v24, %v9739_v2  ;;  %v10876_v17 = vcombine.high %v9740_v19, %v9741_v8 }
 0x105   : > { %8597 = vmatmul.mubr.msk.f32.vlgmr.msra.gmra.mrb[2].mxu0 %vm542_vm1, %v10719_v41  ;;  %9726 = vset.pattern.permute.xlu1 %v9765_v6  ;;  %v1787_v57 = vsel %vm1784_vm4, %v9430_v50, %v9389_v35  ;;  %v1790_v45 = vsel %vm1784_vm4, %v9424_v9, %v9430_v50  ;;  %v10864_v35 = vld [vmem:[%s12137_s1 + $0x10] sm:$0xff]   ;;  %v10883_v18 = vcombine.low %v9740_v19, %v9741_v8  ;;  %v9440_v50 = vunpack.i.h.bf16 %v10768_v43 }
 0x106   : > { %8772 = vmatpush1.bf16.msra.mxu0 %v8771_v0  ;;  %2024 = vmatprep.mubr.f32.mxu0 %v12154_v59  ;;  %v10786_v29 = vpop.permute.xlu1 %9447  ;;  %v9742_v0 = vld [vmem:[%s9825_s10 + $0x10] sm:$0xff] }
 0x107   : > { %1964 = vmatprep.subr.mxu0 %v1799_v39  ;;  %9717 = vrot.lane.b32.xlu1 %v9716_v46, %s9764_s22  ;;  %v10791_v20 = vpop.permute.xlu0 %9442  ;;  %v9743_v39 = vld [vmem:[%s9825_s10 + $0x38] sm:$0xff]  ;;  %v9450_v19 = vunpack.i.h.bf16 %v10786_v29  ;;  %v9449_v8 = vunpack.i.l.bf16 %v10786_v29 }
 0x108   : > { %9712 = vrot.lane.b32.xlu0 %v10578_v3, %s9764_s22  ;;  %v1793_v3 = vsel %vm1784_vm4, %v9420_v23, %v9424_v9  ;;  %v10900_v27 = vcombine.high %v9742_v0, %v9743_v39  ;;  %v10902_v5 = vcombine.low %v9742_v0, %v9743_v39  ;;  %v9745_v9 = vld [vmem:[%s9825_s10 + $0x40] sm:$0xff] }
 0x109   : > { %9727 = vset.pattern.permute.xlu0 %v9765_v6  ;;  %v10917_v55 = vcombine.high %v9744_v1, %v9745_v9  ;;  %v12152_v6 = vunpack.i.l.bf16 %v10791_v20  ;;  %v2641_v29 = vsel %vm2617_vm5, %v9449_v8, %v9450_v19 }
 0x10a   : > { %1965 = vmatpush1.msra.mxu0 %v1802_v25  ;;  %v10803_v48 = vpop.permute.xlu1 %9457  ;;  %v10919_v25 = vcombine.low %v9744_v1, %v9745_v9 }
 0x10b   : > { %8774 = vmatprep.subr.bf16.mxu0 %v8773_v56  ;;  %8598 = vmatmul.mubr.msk.f32.vlgmr.msra.gmra.mrb[4].mxu0 %vm542_vm1, %v10719_v41  ;;  %v10807_v40 = vpop.permute.xlu0 %9452  ;;  %12177 = vst [vmem:[#allocation6_spill] sm:$0xff] %v10917_v55  ;;  %v9460_v0 = vunpack.i.h.bf16 %v10803_v48  ;;  %v9459_v39 = vunpack.i.l.bf16 %v10803_v48 }
 0x10c   : > { %8776 = vmatpush1.bf16.msra.mxu0 %v8775_v16  ;;  %3987 = vrot.lane.b32.xlu1 %v9945_v53, %s9764_s22  ;;  %v1789_v53 = vsel %vm1784_vm4, %v9419_v21, %v9429_v33  ;;  %v10879_v21 = vunpack.c.l.bf16 %v10864_v35  ;;  %12178 = vst [vmem:[#allocation7_spill] sm:$0xff] %v10919_v25  ;;  %v9455_v1 = vunpack.i.h.bf16 %v10807_v40  ;;  %v9454_v9 = vunpack.i.l.bf16 %v10807_v40 }
 0x10d   : > { %9722 = vrot.lane.b32.xlu0 %v10413_v7, %s9764_s22  ;;  %2035 = vmatprep.subr.mxu0 %v1793_v3  ;;  %v8779_v7 = vpack.c.bf16 %v1789_v53, %v1788_v61  ;;  %v9746_v3 = vld [vmem:[%s9825_s10 + $0x20] sm:$0xff] }
 0x10e   : > { %2095 = vmatprep.mubr.f32.mxu0 %v12154_v59  ;;  %v10828_v26 = vpop.permute.xlu1 %9467  ;;  %v10936_v37 = vcombine.high %v9746_v3, %v9747_v12  ;;  %v10938_v53 = vcombine.low %v9746_v3, %v9747_v12  ;;  %v2633_v48 = vsel %vm2617_vm5, %v9454_v9, %v9459_v39  ;;  %v2634_v40 = vsel %vm2617_vm5, %v9455_v1, %v9460_v0 }
 0x10f   : > { %v10833_v15 = vpop.permute.xlu0 %9462 }
 0x110   : > { %2036 = vmatpush1.msra.mxu0 %v1796_v32  ;;  %4405 = vperm.xlu1 %9726, %v4402_v62   ;;  %12179 = vst [vmem:[#allocation8_spill] sm:$0xff] %v10936_v37  ;;  %12180 = vst [vmem:[#allocation9_spill] sm:$0xff] %v10938_v53  ;;  %v9439_v32 = vunpack.i.l.bf16 %v10768_v43  ;;  %v12153_v62 = vunpack.i.h.bf16 %v10791_v20 }
 0x111   : > { %3989 = vrot.lane.b32.xlu0 %v9939_v51, %s9764_s22  ;;  %8778 = vmatprep.subr.bf16.mxu0 %v8777_v34  ;;  %v9435_v34 = vunpack.i.h.bf16 %v10773_v60 }
 0x112   : > { %8599 = vmatmul.mubr.msk.f32.vlgmr.msra.gmra.mrb[6].mxu0 %vm542_vm1, %v10719_v41  ;;  %v10842_v22 = vpop.permute.xlu1 %9477 }
 0x113   : > { %8780 = vmatpush1.bf16.msra.mxu0 %v8779_v7  ;;  %2166 = vmatprep.mubr.f32.mxu0 %v12154_v59  ;;  %v10849_v14 = vpop.permute.xlu0 %9472  ;;  %v9434_v7 = vunpack.i.l.bf16 %v10773_v60  ;;  %v2640_v60 = vsel %vm2617_vm5, %v9435_v34, %v9440_v50 }
 0x114   : > { %2106 = vmatprep.subr.mxu0 %v1787_v57 }
 0x115   : > { %v2639_v43 = vsel %vm2617_vm5, %v9434_v7, %v9439_v32  ;;  %v2642_v2 = vsel %vm2617_vm5, %v12152_v6, %v9434_v7  ;;  %v12156_v6 = vunpack.i.l.bf16 %v10833_v15 }
 0x116   : > { %v10859_v42 = vpop.permute.xlu1 %9487  ;;  %v8801_v3 = vpack.c.bf16 %v2640_v60, %v2639_v43  ;;  %v2637_v43 = vsel %vm2617_vm5, %v9440_v50, %v9455_v1  ;;  %v2636_v60 = vsel %vm2617_vm5, %v9439_v32, %v9454_v9  ;;  %v9474_v50 = vunpack.i.l.bf16 %v10849_v14 }
 0x117   : > { %2107 = vmatpush1.msra.mxu0 %v1790_v45  ;;  %v10866_v52 = vpop.permute.xlu0 %9482  ;;  %v2643_v45 = vsel %vm2617_vm5, %v12153_v62, %v9435_v34  ;;  %v8805_v32 = vpack.c.bf16 %v2634_v40, %v2633_v48  ;;  %v9465_v1 = vunpack.i.h.bf16 %v10833_v15  ;;  %v8807_v9 = vpack.c.bf16 %v2637_v43, %v2636_v60 }
 0x118   : > { %8782 = vmatprep.subr.bf16.mxu0 %v10853_v49  ;;  %8600 = vmatmul.mubr.msk.f32.vlgmr.msra.gmra.mrb[8].mxu0 %vm542_vm1, %v10719_v41  ;;  %v8803_v34 = vpack.c.bf16 %v2643_v45, %v2642_v2  ;;  %v9469_v45 = vunpack.i.l.bf16 %v10828_v26  ;;  %v2631_v43 = vsel %vm2617_vm5, %v9460_v0, %v9474_v50 }
 0x119   : > { %8784 = vmatpush1.bf16.msra.mxu0 %v10855_v38  ;;  %2253 = vmatprep.mubr.f32.mxu0 %v12154_v59 }
 0x11a   : > { %2193 = vmatprep.subr.mxu0 %v9841_v11  ;;  %v10881_v4 = vpop.permute.xlu1 %9497 }
 0x11b   : > { %v10885_v41 = vpop.permute.xlu0 %9492 }
 0x11d   : > { %2194 = vmatpush1.msra.mxu0 %v9839_v10 }
 0x11e   : > { %8786 = vmatprep.subr.bf16.mxu0 %v10876_v17  ;;  %8602 = vmatmul.mubr.msk.f32.vlgmr.msra.gmra.mrb[0].mxu0 %vm542_vm1, %v10879_v21  ;;  %v10891_v46 = vpop.permute.xlu1 %9507 }
 0x11f   : > { %8788 = vmatpush1.bf16.msra.mxu0 %v10883_v18  ;;  %2324 = vmatprep.mubr.f32.mxu0 %v12154_v59  ;;  %v10895_v13 = vpop.permute.xlu0 %9502 }
 0x120   : > { %2264 = vmatprep.subr.mxu0 %v9876_v28 }
 0x123   : > { %2265 = vmatpush1.msra.mxu0 %v9882_v30  ;;  %v10905_v44 = vpop.permute.xlu1 %9517 }
 0x124   : > { %8790 = vmatprep.subr.bf16.mxu0 %v10900_v27  ;;  %8603 = vmatmul.mubr.msk.f32.vlgmr.msra.gmra.mrb[2].mxu0 %vm542_vm1, %v10879_v21  ;;  %v10910_v33 = vpop.permute.xlu0 %9512 }
 0x125   : > { %8792 = vmatpush1.bf16.msra.mxu0 %v10902_v5  ;;  %2395 = vmatprep.mubr.f32.mxu0 %v12154_v59 }
 0x126   : > { %2335 = vmatprep.subr.mxu0 %v9928_v47 }
 0x127   : > { %v10921_v56 = vpop.permute.xlu1 %9527 }
 0x128   : > { %v10923_v23 = vpop.permute.xlu0 %9522 }
 0x129   : > { %2336 = vmatpush1.msra.mxu0 %v9896_v36 }
 0x12a   : > { %8794 = vmatprep.subr.bf16.mxu0 %v10917_v55  ;;  %8604 = vmatmul.mubr.msk.f32.vlgmr.msra.gmra.mrb[4].mxu0 %vm542_vm1, %v10879_v21 }
 0x12b   : > { %8796 = vmatpush1.bf16.msra.mxu0 %v10919_v25  ;;  %2466 = vmatprep.mubr.f32.mxu0 %v12154_v59  ;;  %v10931_v16 = vpop.permute.xlu1 %9537 }
 0x12c   : > { %2406 = vmatprep.subr.mxu0 %v9939_v51  ;;  %v10940_v61 = vpop.permute.xlu0 %9532  ;;  %v12187_v51 = vunpack.i.l.bf16 %v10931_v16 }
 0x12f   : > { %2407 = vmatpush1.msra.mxu0 %v9947_v54  ;;  %v9540_v54 = vunpack.i.h.bf16 %v10931_v16 }
 0x130   : > { %8798 = vmatprep.subr.bf16.mxu0 %v10936_v37  ;;  %8605 = vmatmul.mubr.msk.f32.vlgmr.msra.gmra.mrb[6].mxu0 %vm542_vm1, %v10879_v21  ;;  %v10953_v57 = vpop.permute.xlu1 %9547 }
 0x131   : > { %8800 = vmatpush1.bf16.msra.mxu0 %v10938_v53  ;;  %2537 = vmatprep.mubr.f32.mxu0 %v12154_v59  ;;  %v10961_v24 = vpop.permute.xlu0 %9542  ;;  %v9550_v53 = vunpack.i.h.bf16 %v10953_v57 }
 0x132   : > { %2477 = vmatprep.subr.mxu0 %v9884_v31  ;;  %v2638_v31 = vsel %vm2617_vm5, %v9450_v19, %v9465_v1 }
 0x134   : > { %v10978_v12 = vpop.permute.xlu1 %9557 }
 0x135   : > { %2478 = vmatpush1.msra.mxu0 %v9961_v58  ;;  %v10981_v7 = vpop.permute.xlu0 %9552  ;;  %v9485_v58 = vunpack.i.h.bf16 %v10866_v52 }
 0x136   : > { %8802 = vmatprep.subr.bf16.mxu0 %v8801_v3  ;;  %8606 = vmatmul.mubr.msk.f32.vlgmr.msra.gmra.mrb[8].mxu0 %vm542_vm1, %v10879_v21  ;;  %v10998_v21 = vunpack.c.h.bf16 %v10864_v35  ;;  %v9479_v3 = vunpack.i.l.bf16 %v10842_v22  ;;  %v2644_v35 = vsel %vm2617_vm5, %v12156_v6, %v9449_v8  ;;  %v9489_v6 = vunpack.i.l.bf16 %v10859_v42 }
 0x137   : > { %8804 = vmatpush1.bf16.msra.mxu0 %v8803_v34  ;;  %2715 = vmatprep.mubr.f32.mxu0 %v12154_v59  ;;  %v9475_v34 = vunpack.i.h.bf16 %v10849_v14  ;;  %v9470_v59 = vunpack.i.h.bf16 %v10828_v26  ;;  %v2635_v26 = vsel %vm2617_vm5, %v9465_v1, %v9469_v45  ;;  %v9499_v1 = vunpack.i.l.bf16 %v10881_v4 }
 0x138   : > { %2655 = vmatprep.subr.mxu0 %v2641_v29  ;;  %v11000_v2 = vpop.permute.xlu1 %9567  ;;  %v12181_v29 = vmov 0.0   ;;  %v2628_v8 = vsel %vm2617_vm5, %v9474_v50, %v9479_v3 }
 0x139   : > { %v11005_v62 = vpop.permute.xlu0 %9562  ;;  %v2627_v14 = vsel %vm2617_vm5, %v9470_v59, %v9475_v34  ;;  %v2630_v40 = vsel %vm2617_vm5, %v9459_v39, %v9470_v59  ;;  %v9480_v39 = vunpack.i.h.bf16 %v10842_v22  ;;  %v2625_v22 = vsel %vm2617_vm5, %v9479_v3, %v9489_v6 }
 0x13a   : > { %v8809_v59 = vpack.c.bf16 %v2628_v8, %v2627_v14  ;;  %v8811_v0 = vpack.c.bf16 %v2631_v43, %v2630_v40  ;;  %v2624_v19 = vsel %vm2617_vm5, %v9475_v34, %v9485_v58  ;;  %v9504_v14 = vunpack.i.l.bf16 %v10895_v13 }
 0x13b   : > { %2656 = vmatpush1.msra.mxu0 %v2644_v35  ;;  %v9490_v35 = vunpack.i.h.bf16 %v10859_v42  ;;  %v9495_v40 = vunpack.i.h.bf16 %v10885_v41  ;;  %v2632_v43 = vsel %vm2617_vm5, %v9469_v45, %v9480_v39  ;;  %v8815_v3 = vpack.c.bf16 %v2625_v22, %v2624_v19 }
 0x13c   : > { %8806 = vmatprep.subr.bf16.mxu0 %v8805_v32  ;;  %8608 = vmatmul.mubr.msk.f32.vlgmr.msra.gmra.mrb[0].mxu0 %vm542_vm1, %v10998_v21  ;;  %v9484_v32 = vunpack.i.l.bf16 %v10866_v52  ;;  %v12159_v45 = vunpack.i.h.bf16 %v10905_v44  ;;  %v9505_v22 = vunpack.i.h.bf16 %v10895_v13  ;;  %v9515_v19 = vunpack.i.h.bf16 %v10910_v33 }
 0x13d   : > { %8808 = vmatpush1.bf16.msra.mxu0 %v8807_v9  ;;  %2786 = vmatprep.mubr.f32.mxu0 %v12181_v29  ;;  %v11023_v48 = vpop.permute.xlu1 %9577  ;;  %v9494_v9 = vunpack.i.l.bf16 %v10885_v41  ;;  %v2621_v52 = vsel %vm2617_vm5, %v9485_v58, %v9490_v35  ;;  %v9510_v58 = vunpack.i.h.bf16 %v10891_v46  ;;  %v2623_v34 = vsel %vm2617_vm5, %v9495_v40, %v9499_v1 }
 0x13e   : > { %2726 = vmatprep.subr.mxu0 %v2635_v26  ;;  %v11029_v60 = vpop.permute.xlu0 %9572  ;;  %v2629_v42 = vsel %vm2617_vm5, %v9480_v39, %v9484_v32  ;;  %v9509_v41 = vunpack.i.l.bf16 %v10891_v46  ;;  %v12160_v39 = vunpack.i.l.bf16 %v10905_v44 }
 0x140   : > { %v3104_v13 = vsel %vm3079_vm6, %v12160_v39, %v9509_v41 }
 0x141   : > { %2727 = vmatpush1.msra.mxu0 %v2638_v31  ;;  %v11039_v50 = vpop.permute.xlu1 %9587  ;;  %v2622_v31 = vsel %vm2617_vm5, %v9489_v6, %v9494_v9  ;;  %v9500_v6 = vunpack.i.h.bf16 %v10881_v4  ;;  %v12182_v4 = vunpack.i.h.bf16 %v10791_v20 }
 0x142   : > { %8810 = vmatprep.subr.bf16.mxu0 %v8809_v59  ;;  %8609 = vmatmul.mubr.msk.f32.vlgmr.msra.gmra.mrb[2].mxu0 %vm542_vm1, %v10998_v21  ;;  %v11043_v26 = vpop.permute.xlu0 %9582  ;;  %v8813_v59 = vpack.c.bf16 %v2622_v31, %v2621_v52  ;;  %v2619_v31 = vsel %vm2617_vm5, %v9494_v9, %v9504_v14  ;;  %v2626_v9 = vsel %vm2617_vm5, %v9484_v32, %v9495_v40  ;;  %v9524_v32 = vunpack.i.l.bf16 %v10923_v23 }
 0x143   : > { %8812 = vmatpush1.bf16.msra.mxu0 %v8811_v0  ;;  %2857 = vmatprep.mubr.f32.mxu0 %v12181_v29  ;;  %v2618_v52 = vsel %vm2617_vm5, %v9490_v35, %v9500_v6 }
 0x144   : > { %2797 = vmatprep.subr.mxu0 %v2629_v42  ;;  %v2646_v42 = vsel %vm2617_vm5, %v9504_v14, %v12182_v4 }
 0x145   : > { %v11058_v8 = vpop.permute.xlu1 %9597 }
 0x146   : > { %v11063_v0 = vpop.permute.xlu0 %9592 }
 0x147   : > { %2798 = vmatpush1.msra.mxu0 %v2632_v43  ;;  %v9514_v43 = vunpack.i.l.bf16 %v10910_v33  ;;  %v3105_v33 = vsel %vm3079_vm6, %v12159_v45, %v9510_v58 }
 0x148   : > { %8814 = vmatprep.subr.bf16.mxu0 %v8813_v59  ;;  %8610 = vmatmul.mubr.msk.f32.vlgmr.msra.gmra.mrb[4].mxu0 %vm542_vm1, %v10998_v21  ;;  %v12183_v59 = vunpack.i.l.bf16 %v10791_v20  ;;  %v8819_v20 = vpack.c.bf16 %v2619_v31, %v2618_v52  ;;  %v12184_v52 = vunpack.i.l.bf16 %v10833_v15  ;;  %v9585_v15 = vunpack.i.h.bf16 %v11043_v26 }
 0x149   : > { %8816 = vmatpush1.bf16.msra.mxu0 %v8815_v3  ;;  %2928 = vmatprep.mubr.f32.mxu0 %v12181_v29  ;;  %v8823_v45 = vpack.c.bf16 %v3105_v33, %v3104_v13 }
 0x14a   : > { %2868 = vmatprep.subr.mxu0 %v2623_v34  ;;  %v11084_v46 = vpop.permute.xlu1 %9607  ;;  %v2645_v3 = vsel %vm2617_vm5, %v9500_v6, %v12183_v59  ;;  %v9530_v6 = vunpack.i.h.bf16 %v10921_v56  ;;  %v9529_v34 = vunpack.i.l.bf16 %v10921_v56  ;;  %v2647_v56 = vsel %vm2617_vm5, %v9505_v22, %v12184_v52 }
 0x14b   : > { %v11093_v35 = vpop.permute.xlu0 %9602  ;;  %v8817_v14 = vpack.c.bf16 %v2646_v42, %v2645_v3  ;;  %v11116_v42 = vld [vmem:[%s12137_s1 + $0x18] sm:$0xff]   ;;  %v3101_v59 = vsel %vm3079_vm6, %v9509_v41, %v9514_v43  ;;  %v3102_v3 = vsel %vm3079_vm6, %v9510_v58, %v9515_v19  ;;  %v2620_v52 = vsel %vm2617_vm5, %v9499_v1, %v9505_v22 }
 0x14c   : > { %v11136_v39 = vunpack.c.l.bf16 %v11116_v42  ;;  %v3098_v41 = vsel %vm3079_vm6, %v9514_v43, %v9529_v34  ;;  %v3099_v58 = vsel %vm3079_vm6, %v9515_v19, %v9530_v6  ;;  %v8821_v4 = vpack.c.bf16 %v3102_v3, %v3101_v59 }
 0x14d   : > { %2869 = vmatpush1.msra.mxu0 %v2626_v9  ;;  %v9535_v9 = vunpack.i.h.bf16 %v10940_v61  ;;  %v9554_v1 = vunpack.i.l.bf16 %v10981_v7  ;;  %v9569_v22 = vunpack.i.l.bf16 %v11000_v2  ;;  %v12186_v3 = vunpack.i.h.bf16 %v11005_v62 }
 0x14e   : > { %8611 = vmatmul.mubr.msk.f32.vlgmr.msra.gmra.mrb[6].mxu0 %vm542_vm1, %v10998_v21  ;;  %8818 = vmatprep.subr.bf16.mxu0 %v8817_v14  ;;  %v11111_v40 = vpop.permute.xlu1 %9617  ;;  %v9534_v14 = vunpack.i.l.bf16 %v10940_v61  ;;  %v12185_v61 = vunpack.i.h.bf16 %v10923_v23  ;;  %v9544_v43 = vunpack.i.l.bf16 %v10961_v24 }
 0x14f   : > { %8820 = vmatpush1.bf16.msra.mxu0 %v8819_v20  ;;  %v11122_v31 = vpop.permute.xlu0 %9612  ;;  %2999 = vmatprep.mubr.f32.mxu0 %v12181_v29  ;;  %v3096_v59 = vsel %vm3079_vm6, %v9530_v6, %v9535_v9  ;;  %v9545_v6 = vunpack.i.h.bf16 %v10961_v24 }
 0x150   : > { %2939 = vmatprep.subr.mxu0 %v2647_v56  ;;  %v3103_v20 = vsel %vm3079_vm6, %v9524_v32, %v12185_v61  ;;  %v3095_v19 = vsel %vm3079_vm6, %v9529_v34, %v9534_v14  ;;  %v9549_v61 = vunpack.i.l.bf16 %v10953_v57 }
 0x151   : > { %v8825_v25 = vpack.c.bf16 %v3096_v59, %v3095_v19  ;;  %v12189_v59 = vunpack.i.h.bf16 %v11005_v62 }
 0x152   : > { %v9628_v56 = vpop.permute.xlu1 %9627 }
 0x153   : > { %2940 = vmatpush1.msra.mxu0 %v2620_v52  ;;  %v9629_v13 = vunpack.i.l.bf16 %v9628_v56  ;;  %v11149_v33 = vpop.permute.xlu0 %9622  ;;  %v3083_v52 = vsel %vm3079_vm6, %v9585_v15, %v12186_v3  ;;  %v9630_v57 = vunpack.i.h.bf16 %v9628_v56  ;;  %v8827_v56 = vpack.c.bf16 %v3099_v58, %v3098_v41 }
 0x154   : > { %8822 = vmatprep.subr.bf16.mxu0 %v8821_v4  ;;  %8612 = vmatmul.mubr.msk.f32.vlgmr.msra.gmra.mrb[8].mxu0 %vm542_vm1, %v10998_v21  ;;  %v3086_v21 = vsel %vm3079_vm6, %v9550_v53, %v9585_v15  ;;  %v3106_v15 = vsel %vm3079_vm6, %v12187_v51, %v9524_v32  ;;  %v3097_v51 = vsel %vm3079_vm6, %v9540_v54, %v9544_v43  ;;  %v9564_v32 = vunpack.i.l.bf16 %v11005_v62 }
 0x155   : > { %8824 = vmatpush1.bf16.msra.mxu0 %v8823_v45  ;;  %3177 = vmatprep.mubr.f32.mxu0 %v12181_v29  ;;  %v3084_v4 = vsel %vm3079_vm6, %v9629_v13, %v9569_v22  ;;  %v3087_v34 = vsel %vm3079_vm6, %v9554_v1, %v9629_v13  ;;  %v3093_v13 = vsel %vm3079_vm6, %v9535_v9, %v9549_v61 }
 0x156   : > { %3117 = vmatprep.subr.mxu0 %v3103_v20  ;;  %v8833_v3 = vpack.c.bf16 %v3084_v4, %v3083_v52  ;;  %v8835_v37 = vpack.c.bf16 %v3087_v34, %v3086_v21  ;;  %v9584_v20 = vunpack.i.l.bf16 %v11043_v26  ;;  %v3092_v52 = vsel %vm3079_vm6, %v9534_v14, %v9545_v6 }
 0x157   : > { %v11172_v45 = vpop.permute.xlu1 %9637  ;;  %v9560_v4 = vunpack.i.h.bf16 %v10978_v12  ;;  %v9559_v21 = vunpack.i.l.bf16 %v10978_v12  ;;  %v3089_v9 = vsel %vm3079_vm6, %v9545_v6, %v9550_v53  ;;  %v9555_v14 = vunpack.i.h.bf16 %v10981_v7 }
 0x158   : > { %v11179_v55 = vpop.permute.xlu0 %9632  ;;  %8834 = vmatprep.subr.bf16.mxu1 %v8833_v3  ;;  %v3085_v12 = vsel %vm3079_vm6, %v9630_v57, %v9584_v20  ;;  %v12188_v53 = vunpack.i.h.bf16 %v10923_v23  ;;  %v8831_v19 = vpack.c.bf16 %v3093_v13, %v3092_v52  ;;  %v12190_v6 = vunpack.i.l.bf16 %v10905_v44 }
 0x159   : > { %3118 = vmatpush1.msra.mxu0 %v3106_v15  ;;  %8836 = vmatpush1.bf16.msra.mxu1 %v8835_v37  ;;  %v3088_v58 = vsel %vm3079_vm6, %v9559_v21, %v9630_v57  ;;  %v3080_v7 = vsel %vm3079_vm6, %v12189_v59, %v9560_v4  ;;  %v3091_v34 = vsel %vm3079_vm6, %v9555_v14, %v9559_v21  ;;  %v9580_v23 = vunpack.i.h.bf16 %v11023_v48 }
 0x15a   : > { %8826 = vmatprep.subr.bf16.mxu0 %v8825_v25  ;;  %8614 = vmatmul.mubr.msk.f32.vlgmr.msra.gmra.mrb[0].mxu0 %vm542_vm1, %v11136_v39  ;;  %v3090_v25 = vsel %vm3079_vm6, %v9549_v61, %v9554_v1  ;;  %v3100_v1 = vsel %vm3079_vm6, %v12188_v53, %v9540_v54  ;;  %v3107_v3 = vsel %vm3079_vm6, %v9560_v4, %v12190_v6  ;;  %v9640_v62 = vunpack.i.h.bf16 %v11172_v45 }
 0x15b   : > { %8828 = vmatpush1.bf16.msra.mxu0 %v8827_v56  ;;  %3248 = vmatprep.mubr.f32.mxu0 %v12181_v29  ;;  %v11196_v37 = vpop.permute.xlu1 %9647  ;;  %v8829_v61 = vpack.c.bf16 %v3090_v25, %v3089_v9  ;;  %v3081_v54 = vsel %vm3079_vm6, %v9569_v22, %v9564_v32  ;;  %v12191_v15 = vunpack.i.h.bf16 %v10905_v44  ;;  %v9579_v56 = vunpack.i.l.bf16 %v11023_v48 }
 0x15c   : > { %3188 = vmatprep.subr.mxu0 %v3097_v51  ;;  %v11207_v41 = vpop.permute.xlu0 %9642  ;;  %3330 = vmatprep.subr.mxu1 %v3085_v12  ;;  %v9575_v52 = vunpack.i.h.bf16 %v11029_v60  ;;  %v9574_v22 = vunpack.i.l.bf16 %v11029_v60  ;;  %v9590_v4 = vunpack.i.h.bf16 %v11039_v50  ;;  %v9589_v44 = vunpack.i.l.bf16 %v11039_v50 }
 0x15d   : > { %3331 = vmatpush1.msra.mxu1 %v3088_v58  ;;  %v3108_v13 = vsel %vm3079_vm6, %v9564_v32, %v12191_v15  ;;  %v9610_v51 = vunpack.i.h.bf16 %v11084_v46  ;;  %v9614_v32 = vunpack.i.l.bf16 %v11122_v31  ;;  %v9570_v60 = vunpack.i.h.bf16 %v11000_v2 }
 0x15e   : > { %8617 = vmatmul.mubr.msk.f32.vlgmr.msra.gmra.mrb[0].mxu1 %vm542_vm1, %v11136_v39  ;;  %v3094_v9 = vsel %vm3079_vm6, %v9544_v43, %v9555_v14  ;;  %v8837_v25 = vpack.c.bf16 %v3108_v13, %v3107_v3  ;;  %v8839_v12 = vpack.c.bf16 %v3081_v54, %v3080_v7  ;;  %v3560_v58 = vsel %vm3541_vm7, %v9579_v56, %v9640_v62 }
 0x15f   : > { %3189 = vmatpush1.msra.mxu0 %v3100_v1  ;;  %v11232_v57 = vpop.permute.xlu1 %9657  ;;  %3710 = vmatprep.mubr.f32.mxu1 %v12181_v29  ;;  %v3557_v1 = vsel %vm3541_vm7, %v9640_v62, %v9610_v51  ;;  %v3563_v43 = vsel %vm3541_vm7, %v9574_v22, %v9579_v56  ;;  %v3564_v14 = vsel %vm3541_vm7, %v9575_v52, %v9580_v23  ;;  %v9604_v6 = vunpack.i.l.bf16 %v11093_v35 }
 0x160   : > { %8615 = vmatmul.mubr.msk.f32.vlgmr.msra.gmra.mrb[2].mxu0 %vm542_vm1, %v11136_v39  ;;  %8830 = vmatprep.subr.bf16.mxu0 %v8829_v61  ;;  %v11245_v21 = vpop.permute.xlu0 %9652  ;;  %v3566_v7 = vsel %vm3541_vm7, %v9589_v44, %v9574_v22  ;;  %v3567_v61 = vsel %vm3541_vm7, %v9590_v4, %v9575_v52  ;;  %v9600_v54 = vunpack.i.h.bf16 %v11058_v8  ;;  %v12192_v62 = vunpack.i.l.bf16 %v10931_v16 }
 0x161   : > { %8832 = vmatpush1.bf16.msra.mxu0 %v8831_v19  ;;  %v9654_v48 = vunpack.i.l.bf16 %v11245_v21  ;;  %3319 = vmatprep.mubr.f32.mxu0 %v12181_v29  ;;  %v3082_v13 = vsel %vm3079_vm6, %v9584_v20, %v9570_v60  ;;  %v8841_v56 = vpack.c.bf16 %v3564_v14, %v3563_v43  ;;  %v9609_v52 = vunpack.i.l.bf16 %v11084_v46 }
 0x162   : > { %3259 = vmatprep.subr.mxu0 %v3091_v34  ;;  %v9599_v34 = vunpack.i.l.bf16 %v11058_v8  ;;  %v3109_v15 = vsel %vm3079_vm6, %v9570_v60, %v12192_v62  ;;  %v9595_v8 = vunpack.i.h.bf16 %v11063_v0  ;;  %v8843_v16 = vpack.c.bf16 %v3567_v61, %v3566_v7 }
 0x163   : > { %v3561_v53 = vsel %vm3541_vm7, %v9580_v23, %v9654_v48  ;;  %v3558_v2 = vsel %vm3541_vm7, %v9654_v48, %v9614_v32  ;;  %v9605_v23 = vunpack.i.h.bf16 %v11093_v35  ;;  %v9594_v35 = vunpack.i.l.bf16 %v11063_v0 }
 0x164   : > { %v11265_v19 = vpop.permute.xlu1 %9667  ;;  %v8845_v24 = vpack.c.bf16 %v3558_v2, %v3557_v1  ;;  %v8847_v59 = vpack.c.bf16 %v3561_v53, %v3560_v58  ;;  %v3554_v48 = vsel %vm3541_vm7, %v9610_v51, %v9599_v34  ;;  %v3551_v20 = vsel %vm3541_vm7, %v9599_v34, %v9604_v6 }
 0x165   : > { %3260 = vmatpush1.msra.mxu0 %v3094_v9  ;;  %v11281_v3 = vpop.permute.xlu0 %9662  ;;  %v9625_v9 = vunpack.i.h.bf16 %v11149_v33  ;;  %v3555_v0 = vsel %vm3541_vm7, %v9614_v32, %v9600_v54  ;;  %v9624_v60 = vunpack.i.l.bf16 %v11149_v33  ;;  %v3552_v51 = vsel %vm3541_vm7, %v9600_v54, %v9605_v23 }
 0x166   : > { %8838 = vmatprep.subr.bf16.mxu0 %v8837_v25  ;;  %8616 = vmatmul.mubr.msk.f32.vlgmr.msra.gmra.mrb[4].mxu0 %vm542_vm1, %v11136_v39  ;;  %v9634_v58 = vunpack.i.l.bf16 %v11179_v55  ;;  %v3565_v32 = vsel %vm3541_vm7, %v9594_v35, %v9595_v8  ;;  %v9619_v43 = vunpack.i.l.bf16 %v11111_v40  ;;  %v8849_v7 = vpack.c.bf16 %v3552_v51, %v3551_v20 }
 0x167   : > { %8840 = vmatpush1.bf16.msra.mxu0 %v8839_v12  ;;  %8846 = vmatprep.subr.bf16.mxu1 %v8845_v24  ;;  %v9635_v12 = vunpack.i.h.bf16 %v11179_v55  ;;  %v11327_v24 = vunpack.c.h.bf16 %v11116_v42  ;;  %v9615_v61 = vunpack.i.h.bf16 %v11122_v31  ;;  %v8851_v34 = vpack.c.bf16 %v3555_v0, %v3554_v48 }
 0x168   : > { %3401 = vmatprep.subr.mxu0 %v3109_v15  ;;  %8848 = vmatpush1.bf16.msra.mxu1 %v8847_v59  ;;  %v9678_v22 = vpop.permute.xlu1 %9677  ;;  %v9620_v59 = vunpack.i.h.bf16 %v11111_v40  ;;  %v3570_v54 = vsel %vm3541_vm7, %v9624_v60, %v9590_v4  ;;  %v9639_v62 = vunpack.i.l.bf16 %v11172_v45  ;;  %v9650_v20 = vunpack.i.h.bf16 %v11196_v37 }
 0x169   : > { %v9679_v26 = vunpack.i.l.bf16 %v9678_v22  ;;  %v11301_v25 = vpop.permute.xlu0 %9672  ;;  %3461 = vmatprep.mubr.f32.mxu0 %v12181_v29  ;;  %v9680_v53 = vunpack.i.h.bf16 %v9678_v22  ;;  %v9644_v22 = vunpack.i.l.bf16 %v11207_v41  ;;  %v9659_v0 = vunpack.i.l.bf16 %v11232_v57 }
 0x16a   : > { %v3542_v15 = vsel %vm3541_vm7, %v9634_v58, %v9620_v59  ;;  %v9660_v51 = vunpack.i.h.bf16 %v11232_v57  ;;  %v3571_v33 = vsel %vm3541_vm7, %v9639_v62, %v9609_v52 }
 0x16b   : > { %3402 = vmatpush1.msra.mxu0 %v3082_v13  ;;  %v3559_v1 = vsel %vm3541_vm7, %v9679_v26, %v9625_v9  ;;  %v3562_v2 = vsel %vm3541_vm7, %v9595_v8, %v9679_v26  ;;  %v3543_v13 = vsel %vm3541_vm7, %v9635_v12, %v9624_v60  ;;  %v3548_v31 = vsel %vm3541_vm7, %v9604_v6, %v9680_v53 }
 0x16c   : > { %8842 = vmatprep.subr.bf16.mxu0 %v8841_v56  ;;  %8618 = vmatmul.mubr.msk.f32.vlgmr.msra.gmra.mrb[8].mxu0 %vm542_vm1, %v11136_v39  ;;  %v11324_v55 = vpop.permute.xlu1 %9687  ;;  %v3568_v39 = vsel %vm3541_vm7, %v9609_v52, %v9594_v35  ;;  %v3545_v8 = vsel %vm3541_vm7, %v9680_v53, %v9634_v58  ;;  %v9649_v6 = vunpack.i.l.bf16 %v11196_v37  ;;  %v9655_v60 = vunpack.i.h.bf16 %v11245_v21 }
 0x16d   : > { %8844 = vmatpush1.bf16.msra.mxu0 %v8843_v16  ;;  %v11331_v14 = vpop.permute.xlu0 %9682  ;;  %3650 = vmatprep.subr.mxu1 %v3559_v1  ;;  %v3553_v37 = vsel %vm3541_vm7, %v9615_v61, %v9619_v43  ;;  %v3556_v21 = vsel %vm3541_vm7, %v9625_v9, %v9615_v61  ;;  %v8859_v50 = vpack.c.bf16 %v3543_v13, %v3542_v15  ;;  %v9669_v15 = vunpack.i.l.bf16 %v11265_v19 }
 0x16e   : > { %3579 = vmatprep.subr.mxu0 %v3565_v32  ;;  %v9684_v42 = vunpack.i.l.bf16 %v11331_v14  ;;  %3651 = vmatpush1.msra.mxu1 %v3562_v2  ;;  %v9685_v56 = vunpack.i.h.bf16 %v11331_v14  ;;  %v4028_v9 = vsel %vm4003_vm8, %v9659_v0, %v9644_v22  ;;  %v9670_v14 = vunpack.i.h.bf16 %v11265_v19 }
 0x16f   : > { %3639 = vmatprep.mubr.f32.mxu0 %v12181_v29  ;;  %8621 = vmatmul.mubr.msk.f32.vlgmr.msra.gmra.mrb[2].mxu1 %vm542_vm1, %v11327_v24  ;;  %v9675_v13 = vunpack.i.h.bf16 %v11301_v25 }
 0x170   : > { %v3549_v4 = vsel %vm3541_vm7, %v9605_v23, %v9684_v42  ;;  %v3546_v35 = vsel %vm3541_vm7, %v9684_v42, %v9635_v12  ;;  %3852 = vmatprep.mubr.f32.mxu1 %v12181_v29  ;;  %v9645_v23 = vunpack.i.h.bf16 %v11207_v41  ;;  %v3569_v41 = vsel %vm3541_vm7, %v9620_v59, %v9589_v44 }
 0x171   : > { %v8855_v16 = vpack.c.bf16 %v3549_v4, %v3548_v31  ;;  %3580 = vmatpush1.msra.mxu0 %v3568_v39  ;;  %v11363_v48 = vpop.permute.xlu1 %9697  ;;  %v8853_v26 = vpack.c.bf16 %v3546_v35, %v3545_v8  ;;  %v3547_v58 = vsel %vm3541_vm7, %v9685_v56, %v9655_v60  ;;  %v8857_v53 = vpack.c.bf16 %v3570_v54, %v3569_v41 }
 0x172   : > { %8850 = vmatprep.subr.bf16.mxu0 %v8849_v7  ;;  %8620 = vmatmul.mubr.msk.f32.vlgmr.msra.gmra.mrb[0].mxu0 %vm542_vm1, %v11327_v24  ;;  %v11371_v12 = vpop.permute.xlu0 %9692  ;;  %v4025_v44 = vsel %vm4003_vm8, %v9644_v22, %v9649_v6  ;;  %v4026_v46 = vsel %vm4003_vm8, %v9645_v23, %v9650_v20  ;;  %v4029_v52 = vsel %vm4003_vm8, %v9660_v51, %v9645_v23  ;;  %v9690_v39 = vunpack.i.h.bf16 %v11324_v55 }
 0x173   : > { %8852 = vmatpush1.bf16.msra.mxu0 %v8851_v34  ;;  %8854 = vmatprep.subr.bf16.mxu1 %v8853_v26  ;;  %v9694_v2 = vunpack.i.l.bf16 %v11371_v12  ;;  %v3550_v34 = vsel %vm3541_vm7, %v9619_v43, %v9685_v56  ;;  %v9674_v8 = vunpack.i.l.bf16 %v11301_v25  ;;  %v9665_v22 = vunpack.i.h.bf16 %v11281_v3 }
 0x174   : > { %3721 = vmatprep.subr.mxu0 %v3553_v37  ;;  %8856 = vmatpush1.bf16.msra.mxu1 %v8855_v16  ;;  %v9664_v16 = vunpack.i.l.bf16 %v11281_v3  ;;  %v3544_v26 = vsel %vm3541_vm7, %v9655_v60, %v9639_v62  ;;  %v8863_v3 = vpack.c.bf16 %v4029_v52, %v4028_v9  ;;  %v9689_v41 = vunpack.i.l.bf16 %v11324_v55 }
 0x175   : > { %v11388_v1 = vpop.permute.xlu1 %9707  ;;  %3781 = vmatprep.mubr.f32.mxu0 %v12181_v29  ;;  %3792 = vmatprep.subr.mxu1 %v3547_v58  ;;  %v4013_v62 = vsel %vm4003_vm8, %v9669_v15, %v9674_v8  ;;  %v4014_v60 = vsel %vm4003_vm8, %v9670_v14, %v9675_v13  ;;  %v4017_v58 = vsel %vm4003_vm8, %v9694_v2, %v9670_v14 }
 0x176   : > { %v9709_v32 = vunpack.i.l.bf16 %v11388_v1  ;;  %v11405_v59 = vpop.permute.xlu0 %9702  ;;  %v9710_v61 = vunpack.i.h.bf16 %v11388_v1  ;;  %v8869_v52 = vpack.c.bf16 %v4014_v60, %v4013_v62 }
 0x177   : > { %3722 = vmatpush1.msra.mxu0 %v3556_v21  ;;  %v9705_v7 = vunpack.i.h.bf16 %v11405_v59  ;;  %v4016_v21 = vsel %vm4003_vm8, %v9690_v39, %v9669_v15 }
 0x178   : > { %v4023_v42 = vsel %vm4003_vm8, %v9650_v20, %v9709_v32  ;;  %8858 = vmatprep.subr.bf16.mxu0 %v8857_v53  ;;  %8622 = vmatmul.mubr.msk.f32.vlgmr.msra.gmra.mrb[4].mxu0 %vm542_vm1, %v11327_v24  ;;  %v4020_v54 = vsel %vm4003_vm8, %v9709_v32, %v9694_v2  ;;  %v8861_v20 = vpack.c.bf16 %v4026_v46, %v4025_v44  ;;  %v9699_v2 = vunpack.i.l.bf16 %v11363_v48 }
 0x179   : > { %v4022_v31 = vsel %vm4003_vm8, %v9649_v6, %v9705_v7  ;;  %8860 = vmatpush1.bf16.msra.mxu0 %v8859_v50  ;;  %3793 = vmatpush1.msra.mxu1 %v3550_v34  ;;  %v11431_v4 = vpop.permute.xlu1 %9717  ;;  %v4019_v40 = vsel %vm4003_vm8, %v9705_v7, %v9690_v39  ;;  %v8625_v6 = vld [vmem:[%s12137_s1 + $0x20] sm:$0xf]  ;;  %v4027_v50 = vsel %vm4003_vm8, %v9664_v16, %v9665_v22  ;;  %v9695_v32 = vunpack.i.h.bf16 %v11371_v12 }
 0x17a   : > { %v8867_v43 = vpack.c.bf16 %v4023_v42, %v4022_v31  ;;  %3863 = vmatprep.subr.mxu0 %v3571_v33  ;;  %v9720_v56 = vunpack.i.h.bf16 %v11431_v4  ;;  %v11437_v35 = vpop.permute.xlu0 %9712  ;;  %3923 = vmatprep.mubr.f32.mxu0 %v12181_v29  ;;  %v8865_v19 = vpack.c.bf16 %v4020_v54, %v4019_v40  ;;  %v11457_v37 = vunpack.c.l.bf16 %v8625_v6 }
 0x17b   : > { %8623 = vmatmul.mubr.msk.f32.vlgmr.msra.gmra.mrb[0].mxu1 %vm542_vm1, %v11327_v24  ;;  %v9715_v25 = vunpack.i.h.bf16 %v11437_v35  ;;  %v9714_v45 = vunpack.i.l.bf16 %v11437_v35  ;;  %v9704_v46 = vunpack.i.l.bf16 %v11405_v59  ;;  %v4030_v7 = vsel %vm4003_vm8, %v9689_v41, %v9664_v16 }
 0x17c   : > { %8866 = vmatprep.subr.bf16.mxu1 %v8865_v19  ;;  %v4021_v23 = vsel %vm4003_vm8, %v9720_v56, %v9710_v61  ;;  %4172 = vmatprep.mubr.f32.mxu1 %v12181_v29  ;;  %v4024_v9 = vsel %vm4003_vm8, %v9665_v22, %v9720_v56  ;;  %v9700_v12 = vunpack.i.h.bf16 %v11363_v48  ;;  %v8871_v59 = vpack.c.bf16 %v4017_v58, %v4016_v21 }
 0x17d   : > { %3864 = vmatpush1.msra.mxu0 %v3544_v26  ;;  %8868 = vmatpush1.bf16.msra.mxu1 %v8867_v43  ;;  %v4015_v31 = vsel %vm4003_vm8, %v9695_v32, %v9699_v2  ;;  %v4032_v48 = vsel %vm4003_vm8, %v9704_v46, %v9660_v51  ;;  %v9719_v43 = vunpack.i.l.bf16 %v11431_v4  ;;  %v4018_v51 = vsel %vm4003_vm8, %v9710_v61, %v9695_v32  ;;  %v11574_v26 = vld [vmem:[%s12143_s7] sm:$0xff] }
 0x17e   : > { %8862 = vmatprep.subr.bf16.mxu0 %v8861_v20  ;;  %8624 = vmatmul.mubr.msk.f32.vlgmr.msra.gmra.mrb[8].mxu0 %vm542_vm1, %v11327_v24  ;;  %v3988_v55 = vpop.permute.xlu1 %3987  ;;  %v4004_v40 = vsel %vm4003_vm8, %v9714_v45, %v9700_v12  ;;  %v4031_v56 = vsel %vm4003_vm8, %v9700_v12, %v9659_v0 }
 0x17f   : > { %8864 = vmatpush1.bf16.msra.mxu0 %v8863_v3  ;;  %v9723_v53 = vpop.permute.xlu0 %9722  ;;  %4112 = vmatprep.subr.mxu1 %v4021_v23  ;;  %v4008_v24 = vsel %vm4003_vm8, %v3988_v55, %v9715_v25  ;;  %v4011_v14 = vsel %vm4003_vm8, %v9675_v13, %v3988_v55  ;;  %v8877_v35 = vpack.c.bf16 %v4032_v48, %v4031_v56 }
 0x180   : > { %v9725_v33 = vunpack.i.h.bf16 %v9723_v53  ;;  %v9724_v44 = vunpack.i.l.bf16 %v9723_v53  ;;  %4041 = vmatprep.subr.mxu0 %v4027_v50  ;;  %4101 = vmatprep.mubr.f32.mxu0 %v12181_v29  ;;  %v4033_v57 = vsel %vm4003_vm8, %v9719_v43, %v9689_v41 }
 0x181   : > { %4113 = vmatpush1.msra.mxu1 %v4024_v9 }
 0x182   : > { %v4010_v39 = vsel %vm4003_vm8, %v9674_v8, %v9725_v33  ;;  %8627 = vmatmul.mubr.msk.f32.vlgmr.msra.gmra.mrb[2].mxu1 %vm542_vm1, %v11457_v37  ;;  %v4007_v42 = vsel %vm4003_vm8, %v9725_v33, %v9714_v45  ;;  %v4005_v8 = vsel %vm4003_vm8, %v9715_v25, %v9704_v46  ;;  %v4006_v0 = vsel %vm4003_vm8, %v9724_v44, %v9719_v43 }
 0x183   : > { %v8875_v34 = vpack.c.bf16 %v4011_v14, %v4010_v39  ;;  %4042 = vmatpush1.msra.mxu0 %v4030_v7  ;;  %v3990_v54 = vpop.permute.xlu0 %3989  ;;  %v8873_v15 = vpack.c.bf16 %v4008_v24, %v4007_v42  ;;  %4314 = vmatprep.mubr.f32.mxu1 %v12181_v29  ;;  %v8879_v19 = vpack.c.bf16 %v4005_v8, %v4004_v40 }
 0x184   : > { %8626 = vmatmul.mubr.msk.f32.vlgmr.msra.gmra.mrb[0].mxu0 %vm542_vm1, %v11457_v37  ;;  %8870 = vmatprep.subr.bf16.mxu0 %v8869_v52  ;;  %v4009_v13 = vsel %vm4003_vm8, %v3990_v54, %v9724_v44  ;;  %v4012_v6 = vsel %vm4003_vm8, %v9699_v2, %v3990_v54 }
 0x185   : > { %8872 = vmatpush1.bf16.msra.mxu0 %v8871_v59  ;;  %8874 = vmatprep.subr.bf16.mxu1 %v8873_v15 }
 0x186   : > { %4183 = vmatprep.subr.mxu0 %v4015_v31  ;;  %8876 = vmatpush1.bf16.msra.mxu1 %v8875_v34  ;;  %v352_v31 = vld [vmem:[%s12143_s7 + $0x8] sm:$0x3] }
 0x187   : > { %4243 = vmatprep.mubr.f32.mxu0 %v12181_v29  ;;  %4254 = vmatprep.subr.mxu1 %v4009_v13 }
 0x189   : > { %4184 = vmatpush1.msra.mxu0 %v4018_v51 }
 0x18a   : > { %8628 = vmatmul.mubr.msk.f32.vlgmr.msra.gmra.mrb[4].mxu0 %vm542_vm1, %v11457_v37  ;;  %8878 = vmatprep.subr.bf16.mxu0 %v8877_v35 }
 0x18b   : > { %4255 = vmatpush1.msra.mxu1 %v4012_v6  ;;  %8880 = vmatpush1.bf16.msra.mxu0 %v8879_v19 }
 0x18c   : > { %8629 = vmatmul.mubr.msk.f32.vlgmr.msra.gmra.mrb[0].mxu1 %vm542_vm1, %v11457_v37  ;;  %4325 = vmatprep.subr.mxu0 %v4033_v57 }
 0x18d   : > { %4385 = vmatprep.mubr.f32.mxu0 %v12181_v29  ;;  %8882 = vmatprep.subr.bf16.mxu1 %v10853_v49  ;;  %v4490_v49 = vld [vmem:[%s12141_s5] sm:$0xf] }
 0x18e   : > { %8884 = vmatpush1.bf16.msra.mxu1 %v10855_v38  ;;  %4565 = vmatprep.mubr.f32.mxu1 %v12181_v29  ;;  %v4491_v38 = vunpack.c.l.bf16 %v4490_v49 }
 0x18f   : > { %4326 = vmatpush1.msra.mxu0 %v4006_v0  ;;  %4505 = vmatprep.subr.mxu1 %v9841_v11  ;;  %v12194_v11 = vld [vmem:[#allocation7_spill] sm:$0xff]  ;;  %v11569_v25 = vpop.permute.xlu1 %4405 }
 0x190   : > { %8630 = vmatmul.mubr.msk.f32.vlgmr.msra.gmra.mrb[8].mxu0 %vm542_vm1, %v11457_v37 }
 0x192   : > { %4506 = vmatpush1.msra.mxu1 %v9839_v10  ;;  %v12193_v10 = vld [vmem:[#allocation6_spill] sm:$0xff] }
 0x193   : > { %8886 = vmatprep.subr.bf16.mxu1 %v10876_v17  ;;  %8631 = vmatmul.mubr.msk.f32.vlgmr.msra.gmra.mrb[4].mxu1 %vm542_vm1, %v4491_v38  ;;  %v12197_v17 = vld [vmem:[#allocation8_spill] sm:$0xff] }
 0x194   : > { %8888 = vmatpush1.bf16.msra.mxu1 %v10883_v18  ;;  %4636 = vmatprep.mubr.f32.mxu1 %v12181_v29  ;;  %v12198_v18 = vld [vmem:[#allocation9_spill] sm:$0xff] }
 0x195   : > { %4576 = vmatprep.subr.mxu1 %v9876_v28  ;;  %v12195_v28 = vld [vmem:[#allocation3_spill] sm:$0xff] }
 0x198   : > { %4577 = vmatpush1.msra.mxu1 %v9882_v30  ;;  %v12196_v30 = vld [vmem:[#allocation4_spill] sm:$0xff] }
 0x199   : > { %8890 = vmatprep.subr.bf16.mxu1 %v10900_v27  ;;  %8632 = vmatmul.mubr.msk.f32.vlgmr.msra.gmra.mrb[6].mxu1 %vm542_vm1, %v4491_v38  ;;  %v12200_v27 = vld [vmem:[#allocation2_spill] sm:$0xff] }
 0x19a   : > { %8892 = vmatpush1.bf16.msra.mxu1 %v10902_v5  ;;  %4707 = vmatprep.mubr.f32.mxu1 %v12181_v29  ;;  %v12201_v5 = vld [vmem:[#allocation5_spill] sm:$0xff] }
 0x19b   : > { %4647 = vmatprep.subr.mxu1 %v9928_v47 }
 0x19e   : > { %4648 = vmatpush1.msra.mxu1 %v9896_v36  ;;  %v12199_v36 = vlaneseq }
 0x19f   : > { %8894 = vmatprep.subr.bf16.mxu1 %v12193_v10  ;;  %8633 = vmatmul.mubr.msk.f32.vlgmr.msra.gmra.mrb[8].mxu1 %vm542_vm1, %v4491_v38 }
 0x1a0   : > { %8896 = vmatpush1.bf16.msra.mxu1 %v12194_v11  ;;  %4778 = vmatprep.mubr.f32.mxu1 %v12181_v29  ;;  %v11563_v47 = vshrl.u32 %v12199_v36, 7 }
 0x1a1   : > { %4718 = vmatprep.subr.mxu1 %v12195_v28 }
 0x1a2   : > { %v4432_v16 = vsub.s32 0, %v11563_v47  ;;  %v4436_v23 = vsub.s32 1, %v11563_v47  ;;  %v4440_v55 = vsub.s32 2, %v11563_v47  ;;  %v4448_v52 = vsub.s32 4, %v11563_v47 }
 0x1a3   : > { %v4456_v12 = vsub.s32 6, %v11563_v47  ;;  %v4444_v43 = vsub.s32 3, %v11563_v47 }
 0x1a4   : > { %4719 = vmatpush1.msra.mxu1 %v12196_v30  ;;  %v11580_v60 = vrot.slane %v11574_v26, %v4432_v16  ;;  %v11586_v50 = vrot.slane %v11574_v26, %v4436_v23  ;;  %v11592_v2 = vrot.slane %v11574_v26, %v4440_v55  ;;  %v11608_v15 = vrot.slane %v11574_v26, %v4448_v52 }
 0x1a5   : > { %8898 = vmatprep.subr.bf16.mxu1 %v12197_v17  ;;  %8634 = vmatmul.mubr.msk.f32.vlgmr.msra.gmra.mrb[10].mxu1 %vm542_vm1, %v4491_v38  ;;  %v11620_v56 = vrot.slane %v11574_v26, %v4456_v12  ;;  %v11622_v35 = vrot.slane %v352_v31, %v4436_v23  ;;  %v11635_v49 = vrot.slane %v352_v31, %v4432_v16  ;;  %v4460_v17 = vsub.s32 7, %v11563_v47 }
 0x1a6   : > { %8900 = vmatpush1.bf16.msra.mxu1 %v12198_v18  ;;  %4849 = vmatprep.mubr.f32.mxu1 %v12181_v29 }
 0x1a7   : > { %4789 = vmatprep.subr.mxu1 %v12200_v27 }
 0x1aa   : > { %4790 = vmatpush1.msra.mxu1 %v12201_v5 }
 0x1ab   : > { %8635 = vmatmul.mubr.msk.f32.vlgmr.msra.gmra.mrb[12].mxu1 %vm542_vm1, %v4491_v38 }
 0x1ac   : > { %4972 = vmatprep.mubr.f32.mxu1 %v12181_v29 }
 0x221   : > { %v2930_v1 = vpop.f32.mrb[6].mxu0 }
 0x222   : > { %v11536_v61 = vpop.f32.mrb[7].mxu0 }
 0x233   : > { %v3250_v4 = vpop.f32.mrb[2].mxu0 }
 0x234   : > { %v3252_v22 = vpop.f32.mrb[3].mxu0 }
 0x255   : > { %v4174_v20 = vpop.f32.mrb[2].mxu1 }
 0x256   : > { %v8901_v3 = vadd.f32 %v4174_v20, %v3250_v4  ;;  %v4176_v37 = vpop.f32.mrb[3].mxu1  ;;  %v11632_v4 = vrot.slane %v11574_v26, %v4444_v43 }
 0x257   : > { %v4103_v41 = vpop.f32.mrb[0].mxu0  ;;  %v8902_v45 = vadd.f32 %v4176_v37, %v3252_v22  ;;  %v4452_v22 = vsub.s32 5, %v11563_v47  ;;  %v11667_v47 = vrot.slane %v11574_v26, %v4460_v17 }
 0x258   : > { %v4408_v62 = vadd.f32 %v11569_v25, %v4103_v41  ;;  %v4105_v21 = vpop.f32.mrb[1].mxu0  ;;  %v4410_v58 = vadd.f32 %v8901_v3, %v11569_v25 }
 0x259   : > { %v4409_v53 = vadd.f32 %v11569_v25, %v4105_v21  ;;  %v4411_v8 = vadd.f32 %v8902_v45, %v11569_v25  ;;  %v11649_v30 = vrot.slane %v11574_v26, %v4452_v22  ;;  %v4872_v45 = vld [vmem:[%s12139_s3] sm:$0xff]  }
 0x25a   : > { %v4418_v24 = vmax.f32 %v4408_v62, 0.0  ;;  %v4420_v9 = vmax.f32 %v4410_v58, 0.0  ;;  %v4873_v62 = vunpack.c.l.bf16 %v4872_v45 }
 0x25b   : > { %v4419_v33 = vmax.f32 %v4409_v53, 0.0 }
 0x25c   : > { %v11589_v44 = vmul.f32 %v11580_v60, %v4418_v24  ;;  %v11605_v34 = vmul.f32 %v11592_v2, %v4420_v9 }
 0x25d   : > { %v11595_v32 = vmul.f32 %v11586_v50, %v4419_v33  ;;  %v4245_v46 = vpop.f32.mrb[4].mxu0 }
 0x25e   : > { %v4412_v14 = vadd.f32 %v11569_v25, %v4245_v46  ;;  %4874 = vrot.lane.b32.xlu0 %v11589_v44, %s9758_s12  ;;  %v4247_v39 = vpop.f32.mrb[5].mxu0 }
 0x25f   : > { %v4316_v7 = vpop.f32.mrb[0].mxu1  ;;  %4876 = vrot.lane.b32.xlu1 %v11595_v32, %s9758_s12  ;;  %v4413_v38 = vadd.f32 %v11569_v25, %v4247_v39 }
 0x260   : > { %v8903_v42 = vadd.f32 %v4316_v7, %v2930_v1  ;;  %v4318_v59 = vpop.f32.mrb[1].mxu1  ;;  %v4422_v54 = vmax.f32 %v4412_v14, 0.0 }
 0x261   : > { %v8904_v13 = vadd.f32 %v4318_v59, %v11536_v61  ;;  %v4421_v61 = vmax.f32 %v4411_v8, 0.0  ;;  %v4423_v36 = vmax.f32 %v4413_v38, 0.0 }
 0x262   : > { %v4414_v48 = vadd.f32 %v8903_v42, %v11569_v25  ;;  %v11625_v19 = vmul.f32 %v11608_v15, %v4422_v54 }
 0x263   : > { %4878 = vrot.lane.b32.xlu1 %v11605_v34, %s9758_s12  ;;  %v4387_v40 = vpop.f32.mrb[8].mxu0  ;;  %v11653_v18 = vmul.f32 %v11632_v4, %v4421_v61  ;;  %v4415_v27 = vadd.f32 %v8904_v13, %v11569_v25  ;;  %v11664_v16 = vmul.f32 %v11649_v30, %v4423_v36  ;;  %v4856_v36 = vld [vmem:[%s12140_s4] sm:$0xff] }
 0x264   : > { %v4389_v51 = vpop.f32.mrb[9].mxu0  ;;  %v4424_v6 = vmax.f32 %v4414_v48, 0.0  ;;  %v4416_v57 = vadd.f32 %v11569_v25, %v4387_v40 }
 0x265   : > { %v4417_v0 = vadd.f32 %v11569_v25, %v4389_v51  ;;  %v4425_v20 = vmax.f32 %v4415_v27, 0.0  ;;  %v5275_v51 = vunpack.c.h.bf16 %v4872_v45 }
 0x266   : > { %v11639_v10 = vmul.f32 %v11620_v56, %v4424_v6  ;;  %v4426_v11 = vmax.f32 %v4416_v57, 0.0 }
 0x267   : > { %v4427_v1 = vmax.f32 %v4417_v0, 0.0  ;;  %4882 = vrot.lane.b32.xlu1 %v11625_v19, %s9758_s12  ;;  %v11674_v25 = vmul.f32 %v11667_v47, %v4425_v20 }
 0x268   : > { %v11657_v5 = vmul.f32 %v11635_v49, %v4426_v11 }
 0x269   : > { %v11642_v28 = vmul.f32 %v11622_v35, %v4427_v1 }
 0x26b   : > { %4886 = vrot.lane.b32.xlu1 %v11639_v10, %s9758_s12  ;;  %4892 = vrot.lane.b32.xlu0 %v11642_v28, %s9758_s12 }
 0x26f   : > { %4890 = vrot.lane.b32.xlu1 %v11657_v5, %s9758_s12  ;;  %4880 = vrot.lane.b32.xlu0 %v11653_v18, %s9758_s12 }
 0x273   : > { %5278 = vrot.lane.b32.xlu1 %v11595_v32, %s9756_s11  ;;  %4884 = vrot.lane.b32.xlu0 %v11664_v16, %s9758_s12 }
 0x277   : > { %5280 = vrot.lane.b32.xlu1 %v11605_v34, %s9756_s11  ;;  %4888 = vrot.lane.b32.xlu0 %v11674_v25, %s9758_s12 }
 0x27b   : > { %5284 = vrot.lane.b32.xlu1 %v11625_v19, %s9756_s11  ;;  %5276 = vrot.lane.b32.xlu0 %v11589_v44, %s9756_s11 }
 0x27f   : > { %5288 = vrot.lane.b32.xlu1 %v11639_v10, %s9756_s11  ;;  %5294 = vrot.lane.b32.xlu0 %v11642_v28, %s9756_s11 }
 0x283   : > { %5292 = vrot.lane.b32.xlu1 %v11657_v5, %s9756_s11  ;;  %5282 = vrot.lane.b32.xlu0 %v11653_v18, %s9756_s11 }
 0x287   : > { %5679 = vrot.lane.b32.xlu1 %v11595_v32, %s9759_s13  ;;  %5286 = vrot.lane.b32.xlu0 %v11664_v16, %s9756_s11 }
 0x28b   : > { %5681 = vrot.lane.b32.xlu1 %v11605_v34, %s9759_s13  ;;  %5290 = vrot.lane.b32.xlu0 %v11674_v25, %s9756_s11 }
 0x28f   : > { %5685 = vrot.lane.b32.xlu1 %v11625_v19, %s9759_s13  ;;  %5677 = vrot.lane.b32.xlu0 %v11589_v44, %s9759_s13 }
 0x293   : > { %5689 = vrot.lane.b32.xlu1 %v11639_v10, %s9759_s13  ;;  %5695 = vrot.lane.b32.xlu0 %v11642_v28, %s9759_s13 }
 0x297   : > { %5693 = vrot.lane.b32.xlu1 %v11657_v5, %s9759_s13  ;;  %5683 = vrot.lane.b32.xlu0 %v11653_v18, %s9759_s13 }
 0x29b   : > { %6080 = vrot.lane.b32.xlu1 %v11595_v32, %s9760_s14  ;;  %5687 = vrot.lane.b32.xlu0 %v11664_v16, %s9759_s13 }
 0x29f   : > { %6082 = vrot.lane.b32.xlu1 %v11605_v34, %s9760_s14  ;;  %5691 = vrot.lane.b32.xlu0 %v11674_v25, %s9759_s13 }
 0x2a3   : > { %6086 = vrot.lane.b32.xlu1 %v11625_v19, %s9760_s14  ;;  %6078 = vrot.lane.b32.xlu0 %v11589_v44, %s9760_s14 }
 0x2a7   : > { %6090 = vrot.lane.b32.xlu1 %v11639_v10, %s9760_s14  ;;  %6096 = vrot.lane.b32.xlu0 %v11642_v28, %s9760_s14 }
 0x2ab   : > { %6094 = vrot.lane.b32.xlu1 %v11657_v5, %s9760_s14  ;;  %6084 = vrot.lane.b32.xlu0 %v11653_v18, %s9760_s14 }
 0x2af   : > { %6854 = vrot.lane.b32.xlu1 %v11605_v34, %s9761_s15  ;;  %6088 = vrot.lane.b32.xlu0 %v11664_v16, %s9760_s14 }
 0x2b3   : > { %6856 = vrot.lane.b32.xlu1 %v11653_v18, %s9761_s15  ;;  %6092 = vrot.lane.b32.xlu0 %v11674_v25, %s9760_s14 }
 0x2b7   : > { %6860 = vrot.lane.b32.xlu1 %v11664_v16, %s9761_s15  ;;  %6852 = vrot.lane.b32.xlu0 %v11595_v32, %s9761_s15 }
 0x2bb   : > { %6864 = vrot.lane.b32.xlu1 %v11674_v25, %s9761_s15  ;;  %6850 = vrot.lane.b32.xlu0 %v11589_v44, %s9761_s15 }
 0x2bf   : > { %6868 = vrot.lane.b32.xlu1 %v11642_v28, %s9761_s15  ;;  %6858 = vrot.lane.b32.xlu0 %v11625_v19, %s9761_s15 }
 0x2c3   : > { %7255 = vrot.lane.b32.xlu1 %v11605_v34, %s9762_s18  ;;  %6862 = vrot.lane.b32.xlu0 %v11639_v10, %s9761_s15 }
 0x2c7   : > { %7257 = vrot.lane.b32.xlu1 %v11653_v18, %s9762_s18  ;;  %6866 = vrot.lane.b32.xlu0 %v11657_v5, %s9761_s15 }
 0x2cb   : > { %7261 = vrot.lane.b32.xlu1 %v11664_v16, %s9762_s18  ;;  %7253 = vrot.lane.b32.xlu0 %v11595_v32, %s9762_s18 }
 0x2cf   : > { %7265 = vrot.lane.b32.xlu1 %v11674_v25, %s9762_s18  ;;  %7251 = vrot.lane.b32.xlu0 %v11589_v44, %s9762_s18 }
 0x2d0   : > { %v4875_v26 = vpop.permute.xlu0 %4874 }
 0x2d1   : > { %v4877_v23 = vpop.permute.xlu1 %4876 }
 0x2d2   : > { %v4902_v3 = vsel %vm417_vm2, %v4875_v26, %v4877_v23 }
 0x2d3   : > { %4908 = vmatprep.subr.mxu1 %v4902_v3  ;;  %7269 = vrot.lane.b32.xlu1 %v11642_v28, %s9762_s18 }
 0x2d4   : > { %7259 = vrot.lane.b32.xlu0 %v11625_v19, %s9762_s18 }
 0x2d5   : > { %v4879_v37 = vpop.permute.xlu1 %4878 }
 0x2d6   : > { %v4901_v9 = vsel %vm417_vm2, %v4877_v23, %v4879_v37 }
 0x2d7   : > { %7656 = vrot.lane.b32.xlu1 %v11605_v34, %s9763_s19 }
 0x2d8   : > { %7263 = vrot.lane.b32.xlu0 %v11639_v10, %s9762_s18 }
 0x2d9   : > { %v4883_v41 = vpop.permute.xlu1 %4882 }
 0x2db   : > { %7658 = vrot.lane.b32.xlu1 %v11653_v18, %s9763_s19 }
 0x2dc   : > { %7267 = vrot.lane.b32.xlu0 %v11657_v5, %s9762_s18 }
 0x2dd   : > { %v4887_v21 = vpop.permute.xlu1 %4886  ;;  %v4893_v58 = vpop.permute.xlu0 %4892 }
 0x2de   : > { %v4903_v55 = vsel %vm417_vm2, %v4893_v58, %v4875_v26 }
 0x2df   : > { %7662 = vrot.lane.b32.xlu1 %v11664_v16, %s9763_s19  ;;  %4909 = vmatpush1.msra.mxu1 %v4903_v55 }
 0x2e0   : > { %7654 = vrot.lane.b32.xlu0 %v11595_v32, %s9763_s19  ;;  %8636 = vmatmul.mubr.msk.f32.vlgmr.msra.gmra.mrb[4].mxu1 %vm4904_vm9, %v4873_v62 }
 0x2e1   : > { %v4891_v53 = vpop.permute.xlu1 %4890  ;;  %v4881_v24 = vpop.permute.xlu0 %4880  ;;  %5043 = vmatprep.mubr.f32.mxu1 %v12181_v29 }
 0x2e2   : > { %v4900_v33 = vsel %vm417_vm2, %v4879_v37, %v4881_v24  ;;  %v4899_v39 = vsel %vm417_vm2, %v4881_v24, %v4883_v41  ;;  %v4894_v54 = vsel %vm417_vm2, %v4891_v53, %v4893_v58 }
 0x2e3   : > { %7666 = vrot.lane.b32.xlu1 %v11674_v25, %s9763_s19  ;;  %4979 = vmatprep.subr.mxu1 %v4900_v33 }
 0x2e4   : > { %7652 = vrot.lane.b32.xlu0 %v11589_v44, %s9763_s19  ;;  %4980 = vmatpush1.msra.mxu1 %v4901_v9 }
 0x2e5   : > { %v5279_v46 = vpop.permute.xlu1 %5278  ;;  %8637 = vmatmul.mubr.msk.f32.vlgmr.msra.gmra.mrb[6].mxu1 %vm4904_vm9, %v4873_v62  ;;  %v4885_v52 = vpop.permute.xlu0 %4884 }
 0x2e6   : > { %v4898_v14 = vsel %vm417_vm2, %v4883_v41, %v4885_v52  ;;  %5114 = vmatprep.mubr.f32.mxu1 %v12181_v29  ;;  %v4897_v59 = vsel %vm417_vm2, %v4885_v52, %v4887_v21 }
 0x2e7   : > { %7670 = vrot.lane.b32.xlu1 %v11642_v28, %s9763_s19  ;;  %5050 = vmatprep.subr.mxu1 %v4898_v14 }
 0x2e8   : > { %7660 = vrot.lane.b32.xlu0 %v11625_v19, %s9763_s19  ;;  %5051 = vmatpush1.msra.mxu1 %v4899_v39 }
 0x2e9   : > { %v5281_v7 = vpop.permute.xlu1 %5280  ;;  %8638 = vmatmul.mubr.msk.f32.vlgmr.msra.gmra.mrb[8].mxu1 %vm4904_vm9, %v4873_v62  ;;  %v4889_v42 = vpop.permute.xlu0 %4888 }
 0x2ea   : > { %v4896_v12 = vsel %vm417_vm2, %v4887_v21, %v4889_v42  ;;  %5185 = vmatprep.mubr.f32.mxu1 %v12181_v29  ;;  %v4895_v13 = vsel %vm417_vm2, %v4889_v42, %v4891_v53  ;;  %v5303_v61 = vsel %vm511_vm0, %v5279_v46, %v5281_v7  ;;  %v8647_v21 = vld [vmem:[%s12139_s3 + $0x8] sm:$0xff]   ;;  %v4492_v53 = vld [vmem:[%s12142_s6] sm:$0xff] }
 0x2eb   : > { %8057 = vrot.lane.b32.xlu1 %v11605_v34, %s9764_s22  ;;  %5121 = vmatprep.subr.mxu1 %v4896_v12  ;;  %v5676_v24 = vunpack.c.l.bf16 %v8647_v21 }
 0x2ec   : > { %7664 = vrot.lane.b32.xlu0 %v11639_v10, %s9763_s19  ;;  %5122 = vmatpush1.msra.mxu1 %v4897_v59 }
 0x2ed   : > { %v5285_v31 = vpop.permute.xlu1 %5284  ;;  %8639 = vmatmul.mubr.msk.f32.vlgmr.msra.gmra.mrb[10].mxu1 %vm4904_vm9, %v4873_v62  ;;  %5192 = vmatprep.subr.mxu1 %v4894_v54  ;;  %v5277_v48 = vpop.permute.xlu0 %5276 }
 0x2ee   : > { %5193 = vmatpush1.msra.mxu1 %v4895_v13  ;;  %v5304_v40 = vsel %vm511_vm0, %v5277_v48, %v5279_v46  ;;  %5256 = vmatprep.mubr.f32.mxu1 %v12181_v29 }
 0x2ef   : > { %8059 = vrot.lane.b32.xlu1 %v11653_v18, %s9764_s22  ;;  %5309 = vmatprep.subr.mxu1 %v5304_v40 }
 0x2f0   : > { %7668 = vrot.lane.b32.xlu0 %v11657_v5, %s9763_s19 }
 0x2f1   : > { %v5289_v8 = vpop.permute.xlu1 %5288  ;;  %8640 = vmatmul.mubr.msk.f32.vlgmr.msra.gmra.mrb[12].mxu1 %vm4904_vm9, %v4873_v62  ;;  %v5295_v43 = vpop.permute.xlu0 %5294 }
 0x2f2   : > { %v5305_v6 = vsel %vm511_vm0, %v5295_v43, %v5277_v48  ;;  %5373 = vmatprep.mubr.f32.mxu1 %v12181_v29 }
 0x2f3   : > { %8063 = vrot.lane.b32.xlu1 %v11664_v16, %s9764_s22  ;;  %5310 = vmatpush1.msra.mxu1 %v5305_v6 }
 0x2f4   : > { %8055 = vrot.lane.b32.xlu0 %v11595_v32, %s9764_s22 }
 0x2f5   : > { %v5293_v57 = vpop.permute.xlu1 %5292  ;;  %8642 = vmatmul.mubr.msk.f32.vlgmr.msra.gmra.mrb[4].mxu1 %vm4904_vm9, %v5275_v51  ;;  %v5283_v0 = vpop.permute.xlu0 %5282 }
 0x2f6   : > { %v5302_v1 = vsel %vm511_vm0, %v5281_v7, %v5283_v0  ;;  %5444 = vmatprep.mubr.f32.mxu1 %v12181_v29  ;;  %v5301_v17 = vsel %vm511_vm0, %v5283_v0, %v5285_v31  ;;  %v5296_v3 = vsel %vm511_vm0, %v5293_v57, %v5295_v43  ;;  %v6077_v0 = vunpack.c.h.bf16 %v8647_v21 }
 0x2f7   : > { %8067 = vrot.lane.b32.xlu1 %v11674_v25, %s9764_s22  ;;  %5380 = vmatprep.subr.mxu1 %v5302_v1 }
 0x2f8   : > { %8053 = vrot.lane.b32.xlu0 %v11589_v44, %s9764_s22  ;;  %5381 = vmatpush1.msra.mxu1 %v5303_v61 }
 0x2f9   : > { %v5680_v22 = vpop.permute.xlu1 %5679  ;;  %8643 = vmatmul.mubr.msk.f32.vlgmr.msra.gmra.mrb[6].mxu1 %vm4904_vm9, %v5275_v51  ;;  %v5287_v38 = vpop.permute.xlu0 %5286 }
 0x2fa   : > { %v5300_v11 = vsel %vm511_vm0, %v5285_v31, %v5287_v38  ;;  %5515 = vmatprep.mubr.f32.mxu1 %v12181_v29  ;;  %v5299_v23 = vsel %vm511_vm0, %v5287_v38, %v5289_v8 }
 0x2fb   : > { %8071 = vrot.lane.b32.xlu1 %v11642_v28, %s9764_s22  ;;  %5451 = vmatprep.subr.mxu1 %v5300_v11 }
 0x2fc   : > { %8061 = vrot.lane.b32.xlu0 %v11625_v19, %s9764_s22  ;;  %5452 = vmatpush1.msra.mxu1 %v5301_v17 }
 0x2fd   : > { %v5682_v27 = vpop.permute.xlu1 %5681  ;;  %8644 = vmatmul.mubr.msk.f32.vlgmr.msra.gmra.mrb[8].mxu1 %vm4904_vm9, %v5275_v51  ;;  %v5291_v20 = vpop.permute.xlu0 %5290 }
 0x2fe   : > { %v5298_v26 = vsel %vm511_vm0, %v5289_v8, %v5291_v20  ;;  %5586 = vmatprep.mubr.f32.mxu1 %v12181_v29  ;;  %v5297_v37 = vsel %vm511_vm0, %v5291_v20, %v5293_v57  ;;  %v5704_v14 = vsel %vm1322_vm3, %v5680_v22, %v5682_v27 }
 0x2ff   : > { %4859 = vperm.xlu1 %9726, %v4856_v36   ;;  %5522 = vmatprep.subr.mxu1 %v5298_v26 }
 0x300   : > { %8065 = vrot.lane.b32.xlu0 %v11639_v10, %s9764_s22  ;;  %5523 = vmatpush1.msra.mxu1 %v5299_v23 }
 0x301   : > { %v5686_v41 = vpop.permute.xlu1 %5685  ;;  %8645 = vmatmul.mubr.msk.f32.vlgmr.msra.gmra.mrb[10].mxu1 %vm4904_vm9, %v5275_v51  ;;  %5593 = vmatprep.subr.mxu1 %v5296_v3  ;;  %v5678_v45 = vpop.permute.xlu0 %5677 }
 0x302   : > { %5594 = vmatpush1.msra.mxu1 %v5297_v37  ;;  %v5705_v62 = vsel %vm1322_vm3, %v5678_v45, %v5680_v22  ;;  %5657 = vmatprep.mubr.f32.mxu1 %v12181_v29 }
 0x303   : > { %5710 = vmatprep.subr.mxu1 %v5705_v62 }
 0x304   : > { %8069 = vrot.lane.b32.xlu0 %v11657_v5, %s9764_s22 }
 0x305   : > { %v5690_v58 = vpop.permute.xlu1 %5689  ;;  %8646 = vmatmul.mubr.msk.f32.vlgmr.msra.gmra.mrb[12].mxu1 %vm4904_vm9, %v5275_v51  ;;  %v5696_v55 = vpop.permute.xlu0 %5695 }
 0x306   : > { %v5706_v33 = vsel %vm1322_vm3, %v5696_v55, %v5678_v45  ;;  %5774 = vmatprep.mubr.f32.mxu1 %v12181_v29 }
 0x307   : > { %5711 = vmatpush1.msra.mxu1 %v5706_v33 }
 0x308   : > { %4495 = vperm.xlu0 %9727, %v4492_v53  }
 0x309   : > { %v5694_v9 = vpop.permute.xlu1 %5693  ;;  %8648 = vmatmul.mubr.msk.f32.vlgmr.msra.gmra.mrb[4].mxu1 %vm4904_vm9, %v5676_v24  ;;  %v5684_v46 = vpop.permute.xlu0 %5683 }
 0x30a   : > { %v5703_v52 = vsel %vm1322_vm3, %v5682_v27, %v5684_v46  ;;  %5845 = vmatprep.mubr.f32.mxu1 %v12181_v29  ;;  %v5702_v12 = vsel %vm1322_vm3, %v5684_v46, %v5686_v41  ;;  %v5697_v48 = vsel %vm1322_vm3, %v5694_v9, %v5696_v55 }
 0x30b   : > { %5781 = vmatprep.subr.mxu1 %v5703_v52 }
 0x30c   : > { %5782 = vmatpush1.msra.mxu1 %v5704_v14 }
 0x30d   : > { %v6081_v39 = vpop.permute.xlu1 %6080  ;;  %8649 = vmatmul.mubr.msk.f32.vlgmr.msra.gmra.mrb[6].mxu1 %vm4904_vm9, %v5676_v24  ;;  %v5688_v7 = vpop.permute.xlu0 %5687 }
 0x30e   : > { %v5701_v42 = vsel %vm1322_vm3, %v5686_v41, %v5688_v7  ;;  %5916 = vmatprep.mubr.f32.mxu1 %v12181_v29  ;;  %v5700_v31 = vsel %vm1322_vm3, %v5688_v7, %v5690_v58 }
 0x30f   : > { %5852 = vmatprep.subr.mxu1 %v5701_v42 }
 0x310   : > { %5853 = vmatpush1.msra.mxu1 %v5702_v12 }
 0x311   : > { %v6083_v59 = vpop.permute.xlu1 %6082  ;;  %8650 = vmatmul.mubr.msk.f32.vlgmr.msra.gmra.mrb[8].mxu1 %vm4904_vm9, %v5676_v24  ;;  %v5692_v54 = vpop.permute.xlu0 %5691 }
 0x312   : > { %v5699_v13 = vsel %vm1322_vm3, %v5690_v58, %v5692_v54  ;;  %5987 = vmatprep.mubr.f32.mxu1 %v12181_v29  ;;  %v5698_v40 = vsel %vm1322_vm3, %v5692_v54, %v5694_v9  ;;  %v6105_v11 = vsel %vm1784_vm4, %v6081_v39, %v6083_v59  ;;  %v8659_v58 = vld [vmem:[%s12139_s3 + $0x10] sm:$0xff]  }
 0x313   : > { %5923 = vmatprep.subr.mxu1 %v5699_v13 }
 0x314   : > { %5924 = vmatpush1.msra.mxu1 %v5700_v31 }
 0x315   : > { %v6087_v8 = vpop.permute.xlu1 %6086  ;;  %8651 = vmatmul.mubr.msk.f32.vlgmr.msra.gmra.mrb[10].mxu1 %vm4904_vm9, %v5676_v24  ;;  %5994 = vmatprep.subr.mxu1 %v5697_v48  ;;  %v6079_v43 = vpop.permute.xlu0 %6078 }
 0x316   : > { %5995 = vmatpush1.msra.mxu1 %v5698_v40  ;;  %v6106_v51 = vsel %vm1784_vm4, %v6079_v43, %v6081_v39  ;;  %6058 = vmatprep.mubr.f32.mxu1 %v12181_v29 }
 0x317   : > { %6111 = vmatprep.subr.mxu1 %v6106_v51 }
 0x319   : > { %v6091_v6 = vpop.permute.xlu1 %6090  ;;  %8652 = vmatmul.mubr.msk.f32.vlgmr.msra.gmra.mrb[12].mxu1 %vm4904_vm9, %v5676_v24  ;;  %v6097_v57 = vpop.permute.xlu0 %6096  ;;  %v6478_v24 = vunpack.c.l.bf16 %v8659_v58 }
 0x31a   : > { %v6107_v1 = vsel %vm1784_vm4, %v6097_v57, %v6079_v43  ;;  %6175 = vmatprep.mubr.f32.mxu1 %v12181_v29 }
 0x31b   : > { %6112 = vmatpush1.msra.mxu1 %v6107_v1 }
 0x31d   : > { %v6095_v61 = vpop.permute.xlu1 %6094  ;;  %8654 = vmatmul.mubr.msk.f32.vlgmr.msra.gmra.mrb[4].mxu1 %vm4904_vm9, %v6077_v0  ;;  %v6085_v22 = vpop.permute.xlu0 %6084 }
 0x31e   : > { %v6104_v38 = vsel %vm1784_vm4, %v6083_v59, %v6085_v22  ;;  %6246 = vmatprep.mubr.f32.mxu1 %v12181_v29  ;;  %v6103_v20 = vsel %vm1784_vm4, %v6085_v22, %v6087_v8  ;;  %v6098_v41 = vsel %vm1784_vm4, %v6095_v61, %v6097_v57 }
 0x31f   : > { %6182 = vmatprep.subr.mxu1 %v6104_v38 }
 0x320   : > { %6183 = vmatpush1.msra.mxu1 %v6105_v11 }
 0x321   : > { %v11928_v17 = vpop.permute.xlu1 %6854  ;;  %8655 = vmatmul.mubr.msk.f32.vlgmr.msra.gmra.mrb[6].mxu1 %vm4904_vm9, %v6077_v0  ;;  %v6089_v36 = vpop.permute.xlu0 %6088 }
 0x322   : > { %v6102_v27 = vsel %vm1784_vm4, %v6087_v8, %v6089_v36  ;;  %6317 = vmatprep.mubr.f32.mxu1 %v12181_v29  ;;  %v6101_v37 = vsel %vm1784_vm4, %v6089_v36, %v6091_v6 }
 0x323   : > { %6253 = vmatprep.subr.mxu1 %v6102_v27 }
 0x324   : > { %6254 = vmatpush1.msra.mxu1 %v6103_v20 }
 0x325   : > { %v6857_v26 = vpop.permute.xlu1 %6856  ;;  %8656 = vmatmul.mubr.msk.f32.vlgmr.msra.gmra.mrb[8].mxu1 %vm4904_vm9, %v6077_v0  ;;  %v6093_v23 = vpop.permute.xlu0 %6092 }
 0x326   : > { %v6100_v3 = vsel %vm1784_vm4, %v6091_v6, %v6093_v23  ;;  %6388 = vmatprep.mubr.f32.mxu1 %v12181_v29  ;;  %v6099_v45 = vsel %vm1784_vm4, %v6093_v23, %v6095_v61  ;;  %v6876_v52 = vsel %vm2617_vm5, %v11928_v17, %v6857_v26  ;;  %v8671_v6 = vld [vmem:[%s12139_s3 + $0x18] sm:$0xff]  }
 0x327   : > { %6324 = vmatprep.subr.mxu1 %v6100_v3 }
 0x328   : > { %6325 = vmatpush1.msra.mxu1 %v6101_v37 }
 0x329   : > { %v6861_v62 = vpop.permute.xlu1 %6860  ;;  %8657 = vmatmul.mubr.msk.f32.vlgmr.msra.gmra.mrb[10].mxu1 %vm4904_vm9, %v6077_v0  ;;  %6395 = vmatprep.subr.mxu1 %v6098_v41  ;;  %v6853_v21 = vpop.permute.xlu0 %6852 }
 0x32a   : > { %6396 = vmatpush1.msra.mxu1 %v6099_v45  ;;  %6459 = vmatprep.mubr.f32.mxu1 %v12181_v29 }
 0x32b   : > { %6482 = vmatprep.subr.mxu1 %v11595_v32 }
 0x32d   : > { %v6865_v55 = vpop.permute.xlu1 %6864  ;;  %8658 = vmatmul.mubr.msk.f32.vlgmr.msra.gmra.mrb[12].mxu1 %vm4904_vm9, %v6077_v0  ;;  %v6851_v53 = vpop.permute.xlu0 %6850  ;;  %v7250_v0 = vunpack.c.l.bf16 %v8671_v6 }
 0x32e   : > { %6483 = vmatpush1.msra.mxu1 %v11589_v44  ;;  %6546 = vmatprep.mubr.f32.mxu1 %v12181_v29 }
 0x32f   : > { %6553 = vmatprep.subr.mxu1 %v11653_v18 }
 0x331   : > { %v6869_v33 = vpop.permute.xlu1 %6868  ;;  %8660 = vmatmul.mubr.msk.f32.vlgmr.msra.gmra.mrb[4].mxu1 %vm4904_vm9, %v6478_v24  ;;  %v6859_v9 = vpop.permute.xlu0 %6858 }
 0x332   : > { %6554 = vmatpush1.msra.mxu1 %v11605_v34  ;;  %6617 = vmatprep.mubr.f32.mxu1 %v12181_v29  ;;  %v6874_v42 = vsel %vm2617_vm5, %v6859_v9, %v6861_v62  ;;  %v6879_v48 = vsel %vm2617_vm5, %v6869_v33, %v6851_v53 }
 0x333   : > { %6624 = vmatprep.subr.mxu1 %v11664_v16 }
 0x335   : > { %v11960_v32 = vpop.permute.xlu1 %7255  ;;  %8661 = vmatmul.mubr.msk.f32.vlgmr.msra.gmra.mrb[6].mxu1 %vm4904_vm9, %v6478_v24  ;;  %v6863_v46 = vpop.permute.xlu0 %6862 }
 0x336   : > { %6625 = vmatpush1.msra.mxu1 %v11625_v19  ;;  %6688 = vmatprep.mubr.f32.mxu1 %v12181_v29  ;;  %v6877_v19 = vsel %vm2617_vm5, %v6853_v21, %v11928_v17  ;;  %v6873_v7 = vsel %vm2617_vm5, %v6861_v62, %v6863_v46  ;;  %v6872_v13 = vsel %vm2617_vm5, %v6863_v46, %v6865_v55 }
 0x337   : > { %6695 = vmatprep.subr.mxu1 %v11674_v25 }
 0x339   : > { %v11966_v44 = vpop.permute.xlu1 %7257  ;;  %8662 = vmatmul.mubr.msk.f32.vlgmr.msra.gmra.mrb[8].mxu1 %vm4904_vm9, %v6478_v24  ;;  %v6867_v34 = vpop.permute.xlu0 %6866 }
 0x33a   : > { %6696 = vmatpush1.msra.mxu1 %v11639_v10  ;;  %6759 = vmatprep.mubr.f32.mxu1 %v12181_v29  ;;  %v6878_v10 = vsel %vm2617_vm5, %v6851_v53, %v6853_v21  ;;  %v6871_v59 = vsel %vm2617_vm5, %v6865_v55, %v6867_v34  ;;  %v6870_v40 = vsel %vm2617_vm5, %v6867_v34, %v6869_v33  ;;  %v7651_v55 = vunpack.c.h.bf16 %v8671_v6 }
 0x33b   : > { %6766 = vmatprep.subr.mxu1 %v11642_v28  ;;  %v6849_v28 = vunpack.c.h.bf16 %v8659_v58  ;;  %v7277_v38 = vsel %vm3079_vm6, %v11960_v32, %v11966_v44 }
 0x33d   : > { %8663 = vmatmul.mubr.msk.f32.vlgmr.msra.gmra.mrb[10].mxu1 %vm4904_vm9, %v6478_v24  ;;  %v7254_v18 = vpop.permute.xlu0 %7253  ;;  %v7262_v16 = vpop.permute.xlu1 %7261 }
 0x33e   : > { %6767 = vmatpush1.msra.mxu1 %v11657_v5  ;;  %6830 = vmatprep.mubr.f32.mxu1 %v12181_v29  ;;  %v6875_v5 = vsel %vm2617_vm5, %v6857_v26, %v6859_v9  ;;  %v7278_v51 = vsel %vm3079_vm6, %v7254_v18, %v11960_v32 }
 0x33f   : > { %6883 = vmatprep.subr.mxu1 %v6877_v19 }
 0x341   : > { %8664 = vmatmul.mubr.msk.f32.vlgmr.msra.gmra.mrb[12].mxu1 %vm4904_vm9, %v6478_v24  ;;  %v11981_v25 = vpop.permute.xlu0 %7251  ;;  %v7266_v14 = vpop.permute.xlu1 %7265 }
 0x342   : > { %6884 = vmatpush1.msra.mxu1 %v6878_v10  ;;  %6947 = vmatprep.mubr.f32.mxu1 %v12181_v29  ;;  %v7279_v57 = vsel %vm3079_vm6, %v11981_v25, %v7254_v18 }
 0x343   : > { %6954 = vmatprep.subr.mxu1 %v6875_v5  ;;  %v8683_v5 = vld [vmem:[%s12139_s3 + $0x20] sm:$0xf] }
 0x345   : > { %8666 = vmatmul.mubr.msk.f32.vlgmr.msra.gmra.mrb[4].mxu1 %vm4904_vm9, %v6849_v28  ;;  %v7270_v54 = vpop.permute.xlu1 %7269 }
 0x346   : > { %6955 = vmatpush1.msra.mxu1 %v6876_v52  ;;  %v7260_v39 = vpop.permute.xlu0 %7259  ;;  %7018 = vmatprep.mubr.f32.mxu1 %v12181_v29  ;;  %v7280_v3 = vsel %vm3079_vm6, %v7270_v54, %v11981_v25 }
 0x347   : > { %7025 = vmatprep.subr.mxu1 %v6873_v7  ;;  %v7276_v61 = vsel %vm3079_vm6, %v11966_v44, %v7260_v39  ;;  %v7275_v36 = vsel %vm3079_vm6, %v7260_v39, %v7262_v16  ;;  %v8052_v7 = vunpack.c.l.bf16 %v8683_v5 }
 0x349   : > { %8667 = vmatmul.mubr.msk.f32.vlgmr.msra.gmra.mrb[6].mxu1 %vm4904_vm9, %v6849_v28  ;;  %v7657_v8 = vpop.permute.xlu1 %7656 }
 0x34a   : > { %7026 = vmatpush1.msra.mxu1 %v6874_v42  ;;  %v7264_v12 = vpop.permute.xlu0 %7263  ;;  %7089 = vmatprep.mubr.f32.mxu1 %v12181_v29 }
 0x34b   : > { %7096 = vmatprep.subr.mxu1 %v6871_v59  ;;  %v7274_v17 = vsel %vm3079_vm6, %v7262_v16, %v7264_v12  ;;  %v7273_v23 = vsel %vm3079_vm6, %v7264_v12, %v7266_v14 }
 0x34d   : > { %8668 = vmatmul.mubr.msk.f32.vlgmr.msra.gmra.mrb[8].mxu1 %vm4904_vm9, %v6849_v28  ;;  %v7659_v22 = vpop.permute.xlu1 %7658 }
 0x34e   : > { %7097 = vmatpush1.msra.mxu1 %v6872_v13  ;;  %v7268_v31 = vpop.permute.xlu0 %7267  ;;  %7160 = vmatprep.mubr.f32.mxu1 %v12181_v29  ;;  %v7678_v33 = vsel %vm3541_vm7, %v7657_v8, %v7659_v22 }
 0x34f   : > { %7167 = vmatprep.subr.mxu1 %v6879_v48  ;;  %v7272_v20 = vsel %vm3079_vm6, %v7266_v14, %v7268_v31  ;;  %v7271_v41 = vsel %vm3079_vm6, %v7268_v31, %v7270_v54 }
 0x351   : > { %8669 = vmatmul.mubr.msk.f32.vlgmr.msra.gmra.mrb[10].mxu1 %vm4904_vm9, %v6849_v28  ;;  %v7663_v27 = vpop.permute.xlu1 %7662 }
 0x352   : > { %7168 = vmatpush1.msra.mxu1 %v6870_v40  ;;  %v7655_v43 = vpop.permute.xlu0 %7654  ;;  %7231 = vmatprep.mubr.f32.mxu1 %v12181_v29 }
 0x353   : > { %7284 = vmatprep.subr.mxu1 %v7278_v51  ;;  %v7679_v62 = vsel %vm3541_vm7, %v7655_v43, %v7657_v8 }
 0x355   : > { %8670 = vmatmul.mubr.msk.f32.vlgmr.msra.gmra.mrb[12].mxu1 %vm4904_vm9, %v6849_v28  ;;  %v7667_v37 = vpop.permute.xlu1 %7666 }
 0x356   : > { %7285 = vmatpush1.msra.mxu1 %v7279_v57  ;;  %v7653_v1 = vpop.permute.xlu0 %7652  ;;  %7348 = vmatprep.mubr.f32.mxu1 %v12181_v29 }
 0x357   : > { %7355 = vmatprep.subr.mxu1 %v7276_v61  ;;  %v7680_v21 = vsel %vm3541_vm7, %v7653_v1, %v7655_v43 }
 0x359   : > { %8672 = vmatmul.mubr.msk.f32.vlgmr.msra.gmra.mrb[4].mxu1 %vm4904_vm9, %v7250_v0  ;;  %v7671_v58 = vpop.permute.xlu1 %7670 }
 0x35a   : > { %7356 = vmatpush1.msra.mxu1 %v7277_v38  ;;  %v7661_v11 = vpop.permute.xlu0 %7660  ;;  %7419 = vmatprep.mubr.f32.mxu1 %v12181_v29  ;;  %v7681_v16 = vsel %vm3541_vm7, %v7671_v58, %v7653_v1 }
 0x35b   : > { %7426 = vmatprep.subr.mxu1 %v7274_v17  ;;  %v7677_v53 = vsel %vm3541_vm7, %v7659_v22, %v7661_v11  ;;  %v7676_v46 = vsel %vm3541_vm7, %v7661_v11, %v7663_v27 }
 0x35d   : > { %8673 = vmatmul.mubr.msk.f32.vlgmr.msra.gmra.mrb[6].mxu1 %vm4904_vm9, %v7250_v0  ;;  %v8058_v32 = vpop.permute.xlu1 %8057 }
 0x35e   : > { %7427 = vmatpush1.msra.mxu1 %v7275_v36  ;;  %7490 = vmatprep.mubr.f32.mxu1 %v12181_v29  ;;  %v7665_v26 = vpop.permute.xlu0 %7664 }
 0x35f   : > { %7497 = vmatprep.subr.mxu1 %v7272_v20  ;;  %v7675_v9 = vsel %vm3541_vm7, %v7663_v27, %v7665_v26  ;;  %v7674_v18 = vsel %vm3541_vm7, %v7665_v26, %v7667_v37 }
 0x361   : > { %8674 = vmatmul.mubr.msk.f32.vlgmr.msra.gmra.mrb[8].mxu1 %vm4904_vm9, %v7250_v0  ;;  %v8060_v19 = vpop.permute.xlu1 %8059 }
 0x362   : > { %7498 = vmatpush1.msra.mxu1 %v7273_v23  ;;  %7561 = vmatprep.mubr.f32.mxu1 %v12181_v29  ;;  %v7669_v45 = vpop.permute.xlu0 %7668  ;;  %v8079_v12 = vsel %vm4003_vm8, %v8058_v32, %v8060_v19 }
 0x363   : > { %7568 = vmatprep.subr.mxu1 %v7280_v3  ;;  %v7673_v34 = vsel %vm3541_vm7, %v7667_v37, %v7669_v45  ;;  %v7672_v25 = vsel %vm3541_vm7, %v7669_v45, %v7671_v58 }
 0x365   : > { %8675 = vmatmul.mubr.msk.f32.vlgmr.msra.gmra.mrb[10].mxu1 %vm4904_vm9, %v7250_v0  ;;  %v8064_v52 = vpop.permute.xlu1 %8063 }
 0x366   : > { %7569 = vmatpush1.msra.mxu1 %v7271_v41  ;;  %7632 = vmatprep.mubr.f32.mxu1 %v12181_v29  ;;  %v8056_v24 = vpop.permute.xlu0 %8055 }
 0x367   : > { %7685 = vmatprep.subr.mxu1 %v7679_v62  ;;  %v8080_v28 = vsel %vm4003_vm8, %v8056_v24, %v8058_v32 }
 0x369   : > { %8676 = vmatmul.mubr.msk.f32.vlgmr.msra.gmra.mrb[12].mxu1 %vm4904_vm9, %v7250_v0  ;;  %v8068_v59 = vpop.permute.xlu1 %8067 }
 0x36a   : > { %7686 = vmatpush1.msra.mxu1 %v7680_v21  ;;  %7749 = vmatprep.mubr.f32.mxu1 %v12181_v29  ;;  %v8054_v44 = vpop.permute.xlu0 %8053 }
 0x36b   : > { %7756 = vmatprep.subr.mxu1 %v7677_v53  ;;  %v8081_v14 = vsel %vm4003_vm8, %v8054_v44, %v8056_v24 }
 0x36d   : > { %8678 = vmatmul.mubr.msk.f32.vlgmr.msra.gmra.mrb[4].mxu1 %vm4904_vm9, %v7651_v55  ;;  %v8072_v40 = vpop.permute.xlu1 %8071 }
 0x36e   : > { %7757 = vmatpush1.msra.mxu1 %v7678_v33  ;;  %7820 = vmatprep.mubr.f32.mxu1 %v12181_v29  ;;  %v8062_v10 = vpop.permute.xlu0 %8061  ;;  %v8082_v43 = vsel %vm4003_vm8, %v8072_v40, %v8054_v44 }
 0x36f   : > { %7827 = vmatprep.subr.mxu1 %v7675_v9  ;;  %v8078_v42 = vsel %vm4003_vm8, %v8060_v19, %v8062_v10  ;;  %v8077_v31 = vsel %vm4003_vm8, %v8062_v10, %v8064_v52 }
 0x371   : > { %8679 = vmatmul.mubr.msk.f32.vlgmr.msra.gmra.mrb[6].mxu1 %vm4904_vm9, %v7651_v55 }
 0x372   : > { %7828 = vmatpush1.msra.mxu1 %v7676_v46  ;;  %7891 = vmatprep.mubr.f32.mxu1 %v12181_v29  ;;  %v8066_v39 = vpop.permute.xlu0 %8065 }
 0x373   : > { %7898 = vmatprep.subr.mxu1 %v7673_v34  ;;  %v8076_v54 = vsel %vm4003_vm8, %v8064_v52, %v8066_v39  ;;  %v8075_v8 = vsel %vm4003_vm8, %v8066_v39, %v8068_v59 }
 0x375   : > { %8680 = vmatmul.mubr.msk.f32.vlgmr.msra.gmra.mrb[8].mxu1 %vm4904_vm9, %v7651_v55 }
 0x376   : > { %7899 = vmatpush1.msra.mxu1 %v7674_v18  ;;  %7962 = vmatprep.mubr.f32.mxu1 %v12181_v29  ;;  %v8070_v13 = vpop.permute.xlu0 %8069 }
 0x377   : > { %7969 = vmatprep.subr.mxu1 %v7681_v16  ;;  %v8074_v48 = vsel %vm4003_vm8, %v8068_v59, %v8070_v13  ;;  %v8073_v51 = vsel %vm4003_vm8, %v8070_v13, %v8072_v40 }
 0x379   : > { %8681 = vmatmul.mubr.msk.f32.vlgmr.msra.gmra.mrb[10].mxu1 %vm4904_vm9, %v7651_v55 }
 0x37a   : > { %7970 = vmatpush1.msra.mxu1 %v7672_v25  ;;  %8033 = vmatprep.mubr.f32.mxu1 %v12181_v29 }
 0x37b   : > { %8086 = vmatprep.subr.mxu1 %v8080_v28 }
 0x37d   : > { %8682 = vmatmul.mubr.msk.f32.vlgmr.msra.gmra.mrb[12].mxu1 %vm4904_vm9, %v7651_v55 }
 0x37e   : > { %8087 = vmatpush1.msra.mxu1 %v8081_v14  ;;  %8150 = vmatprep.mubr.f32.mxu1 %v12181_v29  ;;  %v4860_v57 = vpop.permute.xlu1 %4859 }
 0x37f   : > { %8157 = vmatprep.subr.mxu1 %v8078_v42 }
 0x381   : > { %8684 = vmatmul.mubr.msk.f32.vlgmr.msra.gmra.mrb[4].mxu1 %vm4904_vm9, %v8052_v7 }
 0x382   : > { %8158 = vmatpush1.msra.mxu1 %v8079_v12  ;;  %8221 = vmatprep.mubr.f32.mxu1 %v12181_v29 }
 0x383   : > { %8228 = vmatprep.subr.mxu1 %v8076_v54 }
 0x385   : > { %8685 = vmatmul.mubr.msk.f32.vlgmr.msra.gmra.mrb[6].mxu1 %vm4904_vm9, %v8052_v7 }
 0x386   : > { %8229 = vmatpush1.msra.mxu1 %v8077_v31  ;;  %8292 = vmatprep.mubr.f32.mxu1 %v12181_v29 }
 0x387   : > { %8299 = vmatprep.subr.mxu1 %v8074_v48  ;;  %v4496_v6 = vpop.permute.xlu0 %4495 }
 0x388   : > { %v8905_v0 = vadd.f32 %v4860_v57, %v4496_v6 }
 0x389   : > { %8686 = vmatmul.mubr.msk.f32.vlgmr.msra.gmra.mrb[8].mxu1 %vm4904_vm9, %v8052_v7 }
 0x38a   : > { %8300 = vmatpush1.msra.mxu1 %v8075_v8  ;;  %8363 = vmatprep.mubr.f32.mxu1 %v12181_v29 }
 0x38b   : > { %8370 = vmatprep.subr.mxu1 %v8082_v43 }
 0x38d   : > { %8687 = vmatmul.mubr.msk.f32.vlgmr.msra.gmra.mrb[10].mxu1 %vm4904_vm9, %v8052_v7 }
 0x38e   : > { %8371 = vmatpush1.msra.mxu1 %v8073_v51  ;;  %8434 = vmatprep.mubr.f32.mxu1 %v12181_v29 }
 0x391   : > { %8688 = vmatmul.mubr.msk.f32.vlgmr.msra.gmra.mrb[12].mxu1 %vm4904_vm9, %v8052_v7 }
 0x454   : > { %v8152_v1 = vpop.f32.mrb[4].mxu1 }
 0x455   : > { %v8906_v61 = vadd.f32 %v8905_v0, %v8152_v1  ;;  %v8154_v22 = vpop.f32.mrb[5].mxu1 }
 0x456   : > { %v8908_v38 = vadd.f32 %v8905_v0, %v8154_v22 }
 0x457   : > { %v8451_v11 = vmax.f32 %v8906_v61, 0.0 }
 0x458   : > { %v8452_v17 = vmax.f32 %v8908_v38, 0.0  ;;  %v8223_v36 = vpop.f32.mrb[6].mxu1 }
 0x459   : > { %v8461_v63 = vmul.f32 %v8451_v11, %v11580_v60  ;;  %v8910_v27 = vadd.f32 %v8905_v0, %v8223_v36  ;;  %v8225_v20 = vpop.f32.mrb[7].mxu1 }
 0x45a   : > { %v8462_v26 = vmul.f32 %v8452_v17, %v11586_v50  ;;  %v8912_v29 = vadd.f32 %v8905_v0, %v8225_v20 }
 0x45b   : > { %v8453_v23 = vmax.f32 %v8910_v27, 0.0 }
 0x45c   : > { %v8696_v3 = vpack.c.bf16 %v8462_v26, %v8461_v63  ;;  %v8454_v37 = vmax.f32 %v8912_v29, 0.0  ;;  %v8294_v41 = vpop.f32.mrb[8].mxu1 }
 0x45d   : > { %v8463_v45 = vmul.f32 %v8453_v23, %v11592_v2  ;;  %v8914_v62 = vadd.f32 %v8905_v0, %v8294_v41  ;;  %v8296_v60 = vpop.f32.mrb[9].mxu1 }
 0x45e   : > { %8511 = vst [vmem:[%s12118_s21] sm:$0xff] %v8696_v3  ;;  %v8464_v21 = vmul.f32 %v8454_v37, %v11632_v4  ;;  %v8916_v50 = vadd.f32 %v8905_v0, %v8296_v60 }
 0x45f   : > { %v8455_v58 = vmax.f32 %v8914_v62, 0.0 }
 0x460   : > { %v8697_v55 = vpack.c.bf16 %v8464_v21, %v8463_v45  ;;  %v8456_v53 = vmax.f32 %v8916_v50, 0.0  ;;  %v8365_v24 = vpop.f32.mrb[10].mxu1 }
 0x461   : > { %v8465_v33 = vmul.f32 %v8455_v58, %v11608_v15  ;;  %v8918_v9 = vadd.f32 %v8905_v0, %v8365_v24  ;;  %v8367_v32 = vpop.f32.mrb[11].mxu1 }
 0x462   : > { %8512 = vst [vmem:[%s12118_s21 + $0x8] sm:$0xff] %v8697_v55  ;;  %v8466_v46 = vmul.f32 %v8456_v53, %v11649_v30  ;;  %v8920_v2 = vadd.f32 %v8905_v0, %v8367_v32 }
 0x463   : > { %v8457_v44 = vmax.f32 %v8918_v9, 0.0 }
 0x464   : > { %v8698_v34 = vpack.c.bf16 %v8466_v46, %v8465_v33  ;;  %v8458_v18 = vmax.f32 %v8920_v2, 0.0  ;;  %v8436_v4 = vpop.f32.mrb[12].mxu1 }
 0x465   : > { %v8467_v19 = vmul.f32 %v8457_v44, %v11620_v56  ;;  %v8922_v16 = vadd.f32 %v8905_v0, %v8436_v4  ;;  %v8438_v10 = vpop.f32.mrb[13].mxu1 }
 0x466   : > { %8513 = vst [vmem:[%s12118_s21 + $0x10] sm:$0xff] %v8698_v34  ;;  %v8468_v25 = vmul.f32 %v8458_v18, %v11667_v47  ;;  %v8924_v15 = vadd.f32 %v8905_v0, %v8438_v10 }
 0x467   : > { %v8459_v28 = vmax.f32 %v8922_v16, 0.0 }
 0x468   : > { %v8699_v5 = vpack.c.bf16 %v8468_v25, %v8467_v19  ;;  %v8460_v52 = vmax.f32 %v8924_v15, 0.0 }
 0x469   : > { %v8469_v30 = vmul.f32 %v8459_v28, %v11635_v49 }
 0x46a   : > { %8514 = vst [vmem:[%s12118_s21 + $0x18] sm:$0xff] %v8699_v5  ;;  %v8470_v14 = vmul.f32 %v8460_v52, %v11622_v35 }
 0x46c   : > { %v8700_v39 = vpack.c.bf16 %v8470_v14, %v8469_v30 }
 0x46e   : > { %8515 = vst [vmem:[%s12118_s21 + $0x20] sm:$0xff] %v8700_v39 }
 0x46f PF: > { %s18_s27 = sadd.s32 1, %s9754_s27  }
 0x470   : > { %p15_p4 = scmp.ge.s32.totalorder %s18_s27, 4  }
 0x472   :  { %17 = sbr.rel (!%p15_p4) target bundleno = 1 (0x1), region = 98 }

</bundles_post_ra>
